<compile_context>
chip_gen: v6e
topology: v6e:2x2x1
jax: 0.10.0
libtpu: 0.0.40
codegen_flags: <defaults>
</compile_context>

<pallas_src>
import functools

import jax
import jax.numpy as jnp
from jax.experimental import pallas as pl
from jax.experimental.pallas import tpu as pltpu

LANE = 128            # channel-padding / lane-dense output width
_LN_EPS = 1e-6
_BN_EPS = 1e-5


def _detect_vmem_limit():
    # Per-generation scoped-VMEM budget: ~3/4 of physical VMEM
    # (=> ~96 MiB on v5e/v6e's 128 MiB, ~48 MiB on v7x's 64 MiB).
    try:
        cap = int(pltpu.get_tpu_info().vmem_capacity_bytes)
        return int(min(100 * 2 ** 20, max(32 * 2 ** 20, (cap * 3) // 4)))
    except Exception:                                    # noqa: BLE001
        return 32 * 2 ** 20


_VMEM_LIMIT = _detect_vmem_limit()


def _cparams(dims):
    return pltpu.CompilerParams(dimension_semantics=dims,
                                vmem_limit_bytes=_VMEM_LIMIT)


def _row_tile(m, row_bytes, target_bytes=2 * 2 ** 20, cap=2048):
    """Row tile sized by bytes (~2 MiB of x per block) instead of a fixed 256."""
    tm = max(256, min(cap, target_bytes // max(int(row_bytes), 1)))
    tm = max(8, (int(tm) // 8) * 8)
    return int(m) if m <= tm else tm


def _pad_cols(v, width, dtype):
    v = v.astype(dtype).reshape(1, -1)
    return jnp.pad(v, ((0, 0), (0, width - v.shape[-1])))


# ----------------------------- in-kernel helpers -----------------------------

def _gelu(x):
    # tanh approximation of GELU (minor numeric difference vs. torch erf GELU)
    c = jnp.sqrt(2.0 / jnp.pi).astype(x.dtype)
    return 0.5 * x * (1.0 + jnp.tanh(c * (x + 0.044715 * x * x * x)))


def _apply_act(x, act):
    if act == "gelu":
        return _gelu(x)
    if act == "relu":
        return jnp.maximum(x, 0.0)
    return x


def _masked_ln(x, gamma, beta, eps, n_valid):
    """LayerNorm over the last axis using only the first n_valid columns.

    gamma/beta are zero beyond n_valid, so padded output columns stay exactly
    zero (keeps the channel-padding invariant)."""
    width = x.shape[-1]
    if n_valid == width:
        mu = jnp.mean(x, axis=-1, keepdims=True)
        d = x - mu
        var = jnp.mean(d * d, axis=-1, keepdims=True)
        return d * jax.lax.rsqrt(var + eps) * gamma + beta
    lane = jax.lax.broadcasted_iota(jnp.int32, x.shape, x.ndim - 1)
    m = (lane < n_valid).astype(x.dtype)
    inv = 1.0 / float(n_valid)
    xm = x * m
    mu = jnp.sum(xm, axis=-1, keepdims=True) * inv
    d = (x - mu) * m
    var = jnp.sum(d * d, axis=-1, keepdims=True) * inv
    return d * jax.lax.rsqrt(var + eps) * gamma + beta


# ------------------------ fused (LN+)matmul(+act/LN/res) ----------------------

def _fused_matmul_kernel(*refs, act, has_pre_ln, has_post_ln, has_residual,
                         eps, k_valid, n_valid):
    it = iter(refs)
    x_ref, w_ref, b_ref = next(it), next(it), next(it)
    g_ref = gb_ref = pg_ref = pb_ref = r_ref = None
    if has_pre_ln:
        g_ref, gb_ref = next(it), next(it)
    if has_post_ln:
        pg_ref, pb_ref = next(it), next(it)
    if has_residual:
        r_ref = next(it)
    o_ref = next(it)

    x = x_ref[...]
    if has_pre_ln:                                   # LN in f32, MXU in bf16
        x = _masked_ln(x.astype(jnp.float32), g_ref[...], gb_ref[...], eps,
                       k_valid).astype(w_ref.dtype)
    acc = jnp.dot(x, w_ref[...], preferred_element_type=jnp.float32)
    acc = acc + b_ref[...]
    acc = _apply_act(acc, act)
    if has_post_ln:
        acc = _masked_ln(acc, pg_ref[...], pb_ref[...], eps, n_valid)
    if has_residual:
        acc = acc + r_ref[...].astype(jnp.float32)
    o_ref[...] = acc.astype(o_ref.dtype)


def fused_matmul(x, w, b, *, act=None, pre_ln=None, post_ln=None, residual=None,
                 k_valid=None, out_dtype=jnp.bfloat16, eps=_LN_EPS):
    """y = [pre_ln](x) @ w + b [-> act] [-> post_ln] [+ residual].

    x: [M, K] (possibly channel-padded). w: [k_real, n_real] unpadded.
    Returns [M, Np] with Np = ceil(n_real/128)*128, zero-filled padding columns
    (lane-dense stores; downstream kernels can contract over the full width).
    """
    M, K = x.shape
    k_real, n_real = w.shape
    Np = pl.cdiv(n_real, LANE) * LANE
    if k_valid is None:
        k_valid = k_real

    wp = jnp.pad(w.astype(jnp.bfloat16), ((0, K - k_real), (0, Np - n_real)))
    bp = _pad_cols(b, Np, jnp.float32)

    row_bytes = 2 * (K + Np) + (2 * Np if residual is not None else 0)
    TM = _row_tile(M, row_bytes)

    inputs = [x.astype(jnp.bfloat16), wp, bp]
    in_specs = [pl.BlockSpec((TM, K), lambda i: (i, 0)),
                pl.BlockSpec((K, Np), lambda i: (0, 0)),
                pl.BlockSpec((1, Np), lambda i: (0, 0))]
    if pre_ln is not None:
        g, be = pre_ln
        inputs += [_pad_cols(g, K, jnp.float32), _pad_cols(be, K, jnp.float32)]
        in_specs += [pl.BlockSpec((1, K), lambda i: (0, 0))] * 2
    if post_ln is not None:
        g, be = post_ln
        inputs += [_pad_cols(g, Np, jnp.float32), _pad_cols(be, Np, jnp.float32)]
        in_specs += [pl.BlockSpec((1, Np), lambda i: (0, 0))] * 2
    if residual is not None:
        inputs.append(residual.astype(jnp.bfloat16))
        in_specs.append(pl.BlockSpec((TM, Np), lambda i: (i, 0)))

    bytes_accessed = (2 * M * K + 2 * K * Np + 4 * Np + 2 * M * Np
                      + (2 * M * Np if residual is not None else 0)
                      + (8 * K if pre_ln is not None else 0)
                      + (8 * Np if post_ln is not None else 0))
    cost = pl.CostEstimate(flops=2 * M * K * Np,
                           transcendentals=(M * Np if act == "gelu" else 0),
                           bytes_accessed=int(bytes_accessed))

    return pl.pallas_call(
        functools.partial(_fused_matmul_kernel, act=act,
                          has_pre_ln=pre_ln is not None,
                          has_post_ln=post_ln is not None,
                          has_residual=residual is not None,
                          eps=eps, k_valid=int(k_valid), n_valid=int(n_real)),
        out_shape=jax.ShapeDtypeStruct((M, Np), out_dtype),
        grid=(pl.cdiv(M, TM),),
        in_specs=in_specs,
        out_specs=pl.BlockSpec((TM, Np), lambda i: (i, 0)),
        compiler_params=_cparams(("parallel",)),
        cost_estimate=cost,
    )(*inputs)


# --------------------------------- layernorm ----------------------------------

def _layernorm_kernel(x_ref, g_ref, b_ref, o_ref, *, eps, n_valid):
    o_ref[...] = _masked_ln(x_ref[...].astype(jnp.float32), g_ref[...],
                            b_ref[...], eps, n_valid).astype(o_ref.dtype)


def layernorm(x2d, gamma, beta, *, n_valid, eps=_LN_EPS, out_dtype=jnp.bfloat16):
    """Masked LayerNorm on channel-padded tokens x2d:[M, P] (cols>=n_valid -> 0)."""
    M, P = x2d.shape
    TM = _row_tile(M, 4 * P)
    return pl.pallas_call(
        functools.partial(_layernorm_kernel, eps=eps, n_valid=int(n_valid)),
        out_shape=jax.ShapeDtypeStruct((M, P), out_dtype),
        grid=(pl.cdiv(M, TM),),
        in_specs=[pl.BlockSpec((TM, P), lambda i: (i, 0)),
                  pl.BlockSpec((1, P), lambda i: (0, 0)),
                  pl.BlockSpec((1, P), lambda i: (0, 0))],
        out_specs=pl.BlockSpec((TM, P), lambda i: (i, 0)),
        compiler_params=_cparams(("parallel",)),
    )(x2d.astype(jnp.bfloat16), _pad_cols(gamma, P, jnp.float32),
      _pad_cols(beta, P, jnp.float32))


# --------------------- attention (q-row tiled, +o-proj +res) -------------------

def _attn_kernel(q_ref, kv_ref, ow_ref, ob_ref, res_ref, o_ref, *, heads, hd, scale):
    q = q_ref[0]                    # [TQ, P] bf16, zero beyond heads*hd columns
    kv = kv_ref[0]                  # [Nk, P] bf16, k at cols 0:C, v at C:2C, 0 after
    acc = ob_ref[...] + res_ref[0].astype(jnp.float32)          # [TQ, P] f32
    if heads > 1:
        lane = jax.lax.broadcasted_iota(jnp.int32, q.shape, 1)
    for h in range(heads):          # tiny static loop (heads <= 8 in Segformer)
        if heads == 1:
            qh = q                  # padding is zero -> full-width contraction is exact
        else:
            sel = (lane >= h * hd) & (lane < (h + 1) * hd)
            qh = jnp.where(sel, q, 0)
        # scores on the MXU, scale applied to the f32 scores
        s = jax.lax.dot_general(qh, kv, (((1,), (1,)), ((), ())),
                                preferred_element_type=jnp.float32) * scale
        s = s - jnp.max(s, axis=-1, keepdims=True)
        p = jnp.exp(s)
        p = p * pl.reciprocal(jnp.sum(p, axis=-1, keepdims=True), approx=True)
        ctx = jnp.dot(p.astype(kv.dtype), kv,
                      preferred_element_type=jnp.float32)        # [TQ, P]
        # per-head o_w block sits at rows C + h*hd of ow_ref[h]: it picks out the
        # p@v_h columns of ctx and applies the head-merge + output projection.
        acc = acc + jnp.dot(ctx.astype(ow_ref.dtype), ow_ref[h],
                            preferred_element_type=jnp.float32)
    o_ref[0] = acc.astype(o_ref.dtype)


def attention(q, kv, o_w, o_b, res, *, heads, c):
    """q:[B,N,P] (cols 0:c real), kv:[B,Nk,P] (k at 0:c, v at c:2c), res:[B,N,P].

    Returns res + softmax(q k^T / sqrt(hd)) v @ o_w + o_b, shape [B, N, P]."""
    B, N, P = q.shape
    Nk = kv.shape[1]
    assert kv.shape[-1] == P and 2 * c <= P, "kv packing requires 2*C <= LANE pad"
    hd = c // heads
    # per-head shifted o_w so the kernel needs no slicing / reshapes
    ow_stack = jnp.zeros((heads, P, P), jnp.bfloat16)
    for h in range(heads):
        ow_stack = ow_stack.at[h, c + h * hd: c + (h + 1) * hd, :c].set(
            o_w[h * hd:(h + 1) * hd, :].astype(jnp.bfloat16))
    obp = _pad_cols(o_b, P, jnp.float32)

    # TODO(synk): for very long sequences this should become a flash-style
    # online-softmax with a kv grid axis; here kv stays resident per batch.
    TQ = N if N <= 256 else 256
    return pl.pallas_call(
        functools.partial(_attn_kernel, heads=heads, hd=hd,
                          scale=1.0 / float(hd) ** 0.5),
        out_shape=jax.ShapeDtypeStruct((B, N, P), jnp.bfloat16),
        grid=(B, pl.cdiv(N, TQ)),
        in_specs=[pl.BlockSpec((1, TQ, P), lambda b, i: (b, i, 0)),
                  pl.BlockSpec((1, Nk, P), lambda b, i: (b, 0, 0)),
                  pl.BlockSpec((heads, P, P), lambda b, i: (0, 0, 0)),
                  pl.BlockSpec((1, P), lambda b, i: (0, 0)),
                  pl.BlockSpec((1, TQ, P), lambda b, i: (b, i, 0))],
        out_specs=pl.BlockSpec((1, TQ, P), lambda b, i: (b, i, 0)),
        compiler_params=_cparams(("parallel", "parallel")),
    )(q.astype(jnp.bfloat16), kv.astype(jnp.bfloat16), ow_stack, obp,
      res.astype(jnp.bfloat16))


# -------------- Mix-FFN tail: dwconv3x3 + GELU + fc2 + residual ---------------

def _mixffn_tail_kernel(xp_ref, dw_ref, db_ref, w2_ref, b2_ref, res_ref, o_ref,
                        *, H, W):
    hid = xp_ref.shape[-1]
    xp = xp_ref[0]                                     # [H+2, W+2, hid] bf16
    acc = jnp.zeros((H, W, hid), jnp.float32)
    for dy in range(3):
        for dx in range(3):
            tap = xp[dy:dy + H, dx:dx + W, :]          # per-tap f32 upcast only
            acc = acc + tap.astype(jnp.float32) * dw_ref[dy * 3 + dx]
    h = _gelu(acc + db_ref[...])                       # [H, W, hid] f32
    h2 = h.reshape(H * W, hid).astype(w2_ref.dtype)    # collapse leading dims
    out = jnp.dot(h2, w2_ref[...], preferred_element_type=jnp.float32)
    out = out + b2_ref[...] + res_ref[0].astype(jnp.float32)
    o_ref[0] = out.astype(o_ref.dtype)


def mixffn_dwconv_fc2(x_nhwc, dw_w, dw_b, fc2_w, fc2_b, residual, *,
                      hid_valid, c_valid):
    """x_nhwc:[B,H,W,hidP] (fc1 output, padded); residual:[B,N,Cp].

    Returns residual + fc2(GELU(dwconv3x3(x))) with shape [B, N, Cp]; the
    hid-wide intermediate never leaves VMEM."""
    B, H, W, hidP = x_nhwc.shape
    Cp = residual.shape[-1]
    hid = int(hid_valid)
    # TODO(synk): halo handling should move in-kernel (row-tiled grid with a
    # 1-row halo) to avoid this padded HBM copy / whole-image block at real sizes.
    xp = jnp.pad(x_nhwc.astype(jnp.bfloat16), ((0, 0), (1, 1), (1, 1), (0, 0)))
    dwp = jnp.pad(dw_w.reshape(9, -1).astype(jnp.float32),
                  ((0, 0), (0, hidP - hid)))
    dbp = _pad_cols(dw_b, hidP, jnp.float32)
    w2p = jnp.pad(fc2_w.astype(jnp.bfloat16),
                  ((0, hidP - hid), (0, Cp - int(c_valid))))
    b2p = _pad_cols(fc2_b, Cp, jnp.float32)
    return pl.pallas_call(
        functools.partial(_mixffn_tail_kernel, H=H, W=W),
        out_shape=jax.ShapeDtypeStruct((B, H * W, Cp), jnp.bfloat16),
        grid=(B,),
        in_specs=[pl.BlockSpec((1, H + 2, W + 2, hidP), lambda b: (b, 0, 0, 0)),
                  pl.BlockSpec((9, hidP), lambda b: (0, 0)),
                  pl.BlockSpec((1, hidP), lambda b: (0, 0)),
                  pl.BlockSpec((hidP, Cp), lambda b: (0, 0)),
                  pl.BlockSpec((1, Cp), lambda b: (0, 0)),
                  pl.BlockSpec((1, H * W, Cp), lambda b: (b, 0, 0))],
        out_specs=pl.BlockSpec((1, H * W, Cp), lambda b: (b, 0, 0)),
        compiler_params=_cparams(("parallel",)),
    )(xp, dwp, dbp, w2p, b2p, residual.astype(jnp.bfloat16))


# -------------------- decode-head fuse(+BN)+ReLU + classifier ------------------

def _head_kernel(x_ref, w1_ref, b1_ref, w2_ref, b2_ref, o_ref):
    h = jnp.dot(x_ref[...], w1_ref[...], preferred_element_type=jnp.float32)
    h = jnp.maximum(h + b1_ref[...], 0.0)              # folded eval-BN + ReLU
    out = jnp.dot(h.astype(w2_ref.dtype), w2_ref[...],
                  preferred_element_type=jnp.float32) + b2_ref[...]
    o_ref[...] = out.astype(o_ref.dtype)


def head_fuse_classify(x2d, w1, b1, w2, b2):
    """x2d:[M,K]. Writes a lane-dense f32 [M, 128] slab; real logits in cols
    [:num_labels] (caller slices outside)."""
    M, K = x2d.shape
    dec = w1.shape[1]
    n_lab = w2.shape[1]
    w1p = jnp.pad(w1.astype(jnp.bfloat16), ((0, 0), (0, LANE - dec)))
    b1p = _pad_cols(b1, LANE, jnp.float32)
    w2p = jnp.pad(w2.astype(jnp.bfloat16), ((0, LANE - dec), (0, LANE - n_lab)))
    b2p = _pad_cols(b2, LANE, jnp.float32)
    TM = _row_tile(M, 2 * K + 6 * LANE)
    return pl.pallas_call(
        _head_kernel,
        out_shape=jax.ShapeDtypeStruct((M, LANE), jnp.float32),
        grid=(pl.cdiv(M, TM),),
        in_specs=[pl.BlockSpec((TM, K), lambda i: (i, 0)),
                  pl.BlockSpec((K, LANE), lambda i: (0, 0)),
                  pl.BlockSpec((1, LANE), lambda i: (0, 0)),
                  pl.BlockSpec((LANE, LANE), lambda i: (0, 0)),
                  pl.BlockSpec((1, LANE), lambda i: (0, 0))],
        out_specs=pl.BlockSpec((TM, LANE), lambda i: (i, 0)),
        compiler_params=_cparams(("parallel",)),
    )(x2d.astype(jnp.bfloat16), w1p, b1p, w2p, b2p)


# ------------------------------- conv as matmul --------------------------------

def conv2d(x_nhwc, w_oihw, bias, stride, padding, post_ln=None, act=None):
    """Dense conv via im2col + padded fused matmul; output [B,Ho,Wo,128-pad]."""
    B, H, W, Cin = x_nhwc.shape
    Cout, cin_real, kh, kw = w_oihw.shape
    if cin_real < Cin:                 # drop channel padding before the gather
        x_nhwc = x_nhwc[..., :cin_real]
    # TODO(synk): im2col tap gather stays at JAX level; at real resolutions it
    # should move in-kernel (strided ref reads) to cut HBM read traffic.
    xp = jnp.pad(x_nhwc, ((0, 0), (padding, padding), (padding, padding), (0, 0)))
    Ho = (H + 2 * padding - kh) // stride + 1
    Wo = (W + 2 * padding - kw) // stride + 1
    cols = []
    for dy in range(kh):
        for dx in range(kw):
            cols.append(xp[:, dy:dy + stride * Ho:stride,
                           dx:dx + stride * Wo:stride, :])
    a = jnp.concatenate(cols, axis=-1).reshape(B * Ho * Wo, kh * kw * cin_real)
    wm = jnp.transpose(w_oihw, (2, 3, 1, 0)).reshape(kh * kw * cin_real, Cout)
    out = fused_matmul(a, wm, bias, act=act, post_ln=post_ln)
    return out.reshape(B, Ho, Wo, out.shape[-1])


# --------------------------------- model parts ---------------------------------

def transformer_block(tok, H, W, p, heads, sr_ratio, c):
    """tok: [B, N, P] channel-padded tokens (cols 0:c real)."""
    B, N, P = tok.shape
    tok2d = tok.reshape(B * N, P)

    w_kv = jnp.concatenate([p["k_w"], p["v_w"]], axis=1)        # [c, 2c] packed
    b_kv = jnp.concatenate([p["k_b"], p["v_b"]])
    if sr_ratio == 1:
        # LN1 recomputed inside both projections (no standalone LN kernel /
        # HBM round trip of the token tensor)
        q = fused_matmul(tok2d, p["q_w"], p["q_b"],
                         pre_ln=(p["ln1_g"], p["ln1_b"]), k_valid=c
                         ).reshape(B, N, P)
        kv = fused_matmul(tok2d, w_kv, b_kv,
                          pre_ln=(p["ln1_g"], p["ln1_b"]), k_valid=c
                          ).reshape(B, N, P)
    else:
        # the LN'd map also feeds the spatial-reduction conv's im2col, so LN1
        # stays a standalone (masked) kernel here.
        h2d = layernorm(tok2d, p["ln1_g"], p["ln1_b"], n_valid=c)
        q = fused_matmul(h2d, p["q_w"], p["q_b"]).reshape(B, N, P)
        x_sr = conv2d(h2d.reshape(B, H, W, P), p["sr_w"], p["sr_b"],
                      stride=sr_ratio, padding=0,
                      post_ln=(p["sr_ln_g"], p["sr_ln_b"]))      # sr conv + sr LN fused
        Bk, Hk, Wk, _ = x_sr.shape
        kv = fused_matmul(x_sr.reshape(B * Hk * Wk, x_sr.shape[-1]), w_kv, b_kv
                          ).reshape(B, Hk * Wk, P)
    tok = attention(q, kv, p["o_w"], p["o_b"], tok, heads=heads, c=c)

    # Mix-FFN: LN2+fc1 fused; dwconv+GELU+fc2+residual fused (hid never hits HBM twice)
    hid = p["fc1_w"].shape[1]
    h = fused_matmul(tok.reshape(B * N, P), p["fc1_w"], p["fc1_b"],
                     pre_ln=(p["ln2_g"], p["ln2_b"]), k_valid=c)
    tok = mixffn_dwconv_fc2(h.reshape(B, H, W, h.shape[-1]),
                            p["dw_w"], p["dw_b"], p["fc2_w"], p["fc2_b"], tok,
                            hid_valid=hid, c_valid=c)
    return tok


def decode_head(feats, hp, cfg):
    dec = cfg["decoder_hidden"]
    n_lab = cfg["num_labels"]
    f0, _ = feats[0]
    B, H0, W0, P = f0.shape
    ups = []
    for i, (f, _c) in enumerate(feats):
        _, Hh, Ww, _ = f.shape
        m = fused_matmul(f.reshape(B * Hh * Ww, P), hp[f"mlp{i}_w"],
                         hp[f"mlp{i}_b"]).reshape(B, Hh, Ww, LANE)
        if (Hh, Ww) != (H0, W0):
            # TODO(synk): bilinear upsample stays in plain JAX.
            m = jax.image.resize(m, (B, H0, W0, LANE), method="bilinear")
        ups.append(m)
    x = jnp.concatenate(ups[::-1], axis=-1)            # HF concatenates reversed
    nf = len(feats)

    # 1x1 fuse conv (bias=False) with eval-mode BN folded into weight/bias,
    # ReLU, then classifier -- all inside one lane-dense kernel.
    bn_scale = hp["bn_g"] * jax.lax.rsqrt(hp["bn_var"] + _BN_EPS)
    bn_shift = hp["bn_b"] - hp["bn_mean"] * bn_scale
    w1 = jnp.zeros((nf * LANE, dec), jnp.float32)
    for g in range(nf):                                # per-feature 128-row slots
        w1 = w1.at[g * LANE: g * LANE + dec, :].set(
            hp["fuse_w"][g * dec:(g + 1) * dec, :])
    w1 = w1 * bn_scale

    M = B * H0 * W0
    logits = head_fuse_classify(x.reshape(M, nf * LANE), w1, bn_shift,
                                hp["cls_w"], hp["cls_b"])
    logits = logits[:, :n_lab].reshape(B, H0, W0, n_lab).astype(jnp.float32)
    return jnp.transpose(logits, (0, 3, 1, 2))         # back to NCHW


def segformer_forward(params, images_nchw, cfg):
    x = jnp.transpose(images_nchw, (0, 2, 3, 1)).astype(jnp.bfloat16)  # NCHW->NHWC
    feats = []
    for i, sp in enumerate(params["stages"]):
        C = cfg["hidden_sizes"][i]
        # overlap patch-embed conv + its LayerNorm fused into one kernel
        x = conv2d(x, sp["patch_w"], sp["patch_b"], stride=cfg["strides"][i],
                   padding=cfg["paddings"][i],
                   post_ln=(sp["emb_ln_g"], sp["emb_ln_b"]))
        B, H, W, P = x.shape
        tok = x.reshape(B, H * W, P)
        for lp in sp["layers"]:
            tok = transformer_block(tok, H, W, lp, cfg["num_heads"][i],
                                    cfg["sr_ratios"][i], C)
        tok2d = layernorm(tok.reshape(B * H * W, P), sp["out_ln_g"],
                          sp["out_ln_b"], n_valid=C)
        x = tok2d.reshape(B, H, W, P)
        feats.append((x, C))
    return decode_head(feats, params["head"], cfg)


# ------------------------------- params / config -------------------------------

CFG = dict(
    in_channels=3,
    hidden_sizes=(16, 32),
    patch_sizes=(7, 3),
    strides=(4, 2),
    paddings=(3, 1),
    num_heads=(1, 2),
    sr_ratios=(2, 1),
    depths=(1, 1),
    mlp_ratio=4,
    decoder_hidden=32,
    num_labels=4,
)


def init_params(key, cfg):
    std = 0.02
    keys = iter(jax.random.split(key, 256))

    def nrm(shape):
        return jax.random.normal(next(keys), shape, jnp.float32) * std

    params = {"stages": [], "head": {}}
    in_ch = cfg["in_channels"]
    for i, C in enumerate(cfg["hidden_sizes"]):
        ps = cfg["patch_sizes"][i]
        sp = {
            "patch_w": nrm((C, in_ch, ps, ps)), "patch_b": jnp.zeros((C,)),
            "emb_ln_g": jnp.ones((C,)), "emb_ln_b": jnp.zeros((C,)),
            "out_ln_g": jnp.ones((C,)), "out_ln_b": jnp.zeros((C,)),
            "layers": [],
        }
        hid = C * cfg["mlp_ratio"]
        for _ in range(cfg["depths"][i]):
            lp = {
                "ln1_g": jnp.ones((C,)), "ln1_b": jnp.zeros((C,)),
                "q_w": nrm((C, C)), "q_b": jnp.zeros((C,)),
                "k_w": nrm((C, C)), "k_b": jnp.zeros((C,)),
                "v_w": nrm((C, C)), "v_b": jnp.zeros((C,)),
                "o_w": nrm((C, C)), "o_b": jnp.zeros((C,)),
                "ln2_g": jnp.ones((C,)), "ln2_b": jnp.zeros((C,)),
                "fc1_w": nrm((C, hid)), "fc1_b": jnp.zeros((hid,)),
                "dw_w": nrm((9, 1, hid)), "dw_b": jnp.zeros((hid,)),
                "fc2_w": nrm((hid, C)), "fc2_b": jnp.zeros((C,)),
            }
            if cfg["sr_ratios"][i] > 1:
                sr = cfg["sr_ratios"][i]
                lp["sr_w"] = nrm((C, C, sr, sr))
                lp["sr_b"] = jnp.zeros((C,))
                lp["sr_ln_g"] = jnp.ones((C,))
                lp["sr_ln_b"] = jnp.zeros((C,))
            sp["layers"].append(lp)
        params["stages"].append(sp)
        in_ch = C

    dec = cfg["decoder_hidden"]
    hp = {}
    for i, C in enumerate(cfg["hidden_sizes"]):
        hp[f"mlp{i}_w"] = nrm((C, dec))
        hp[f"mlp{i}_b"] = jnp.zeros((dec,))
    hp["fuse_w"] = nrm((dec * len(cfg["hidden_sizes"]), dec))
    # eval-mode BatchNorm params (properly folded into the fuse matmul)
    hp["bn_g"] = jnp.ones((dec,))
    hp["bn_b"] = jnp.zeros((dec,))
    hp["bn_mean"] = jnp.zeros((dec,))
    hp["bn_var"] = jnp.ones((dec,))
    hp["cls_w"] = nrm((dec, cfg["num_labels"]))
    hp["cls_b"] = jnp.zeros((cfg["num_labels"],))
    params["head"] = hp
    return params


# ------------------------------------ main -------------------------------------

if __name__ == "__main__":
    key = jax.random.PRNGKey(0)
    kp, kx = jax.random.split(key)
    params = init_params(kp, CFG)
    images = jax.random.normal(kx, (2, 3, 32, 32), jnp.float32)   # NCHW, like PyTorch

    fwd = jax.jit(lambda p, x: segformer_forward(p, x, CFG))
    logits = fwd(params, images)
    jax.block_until_ready(logits)

    assert logits.shape == (2, CFG["num_labels"], 8, 8), logits.shape
    assert logits.dtype == jnp.float32
    print("KERNEL_OK")
</pallas_src>

<mosaic_0001>
module attributes {stable_mosaic.version = 11 : i64} {
  func.func @_fused_matmul_kernel(%arg0: i32, %arg1: memref<128x147xbf16, #tpu.memory_space<vmem>>, %arg2: memref<147x128xbf16, #tpu.memory_space<vmem>>, %arg3: memref<1x128xf32, #tpu.memory_space<vmem>>, %arg4: memref<1x128xf32, #tpu.memory_space<vmem>>, %arg5: memref<1x128xf32, #tpu.memory_space<vmem>>, %arg6: memref<128x128xbf16, #tpu.memory_space<vmem>>) attributes {dimension_semantics = [#tpu.dimension_semantics<parallel>], iteration_bounds = array<i64: 1>, scalar_prefetch = 0 : i64, scratch_operands = 0 : i64, tpu.core_type = #tpu.core_type<tc>, window_params = [{transform_indices = @transform_0, window_bounds = array<i64: 128, 147>}, {pipeline_mode = #tpu.pipeline_mode<synchronous>, transform_indices = @transform_1, window_bounds = array<i64: 147, 128>}, {pipeline_mode = #tpu.pipeline_mode<synchronous>, transform_indices = @transform_2, window_bounds = array<i64: 1, 128>}, {pipeline_mode = #tpu.pipeline_mode<synchronous>, transform_indices = @transform_3, window_bounds = array<i64: 1, 128>}, {pipeline_mode = #tpu.pipeline_mode<synchronous>, transform_indices = @transform_4, window_bounds = array<i64: 1, 128>}, {transform_indices = @transform_5, window_bounds = array<i64: 128, 128>}]} {
    %c0 = arith.constant 0 : index
    %c0_0 = arith.constant 0 : index
    %0 = vector.load %arg1[%c0, %c0_0] : memref<128x147xbf16, #tpu.memory_space<vmem>>, vector<128x147xbf16>
    %c0_1 = arith.constant 0 : index
    %c0_2 = arith.constant 0 : index
    %1 = vector.load %arg2[%c0_1, %c0_2] : memref<147x128xbf16, #tpu.memory_space<vmem>>, vector<147x128xbf16>
    %cst = arith.constant dense<0.000000e+00> : vector<128x128xf32>
    %2 = tpu.matmul %0, %1, %cst {dimension_numbers = #tpu.dot_dimension_numbers<[1], [0], [0], [1], [0, 0, 1, 1], [], []>} : vector<128x147xbf16>, vector<147x128xbf16>, vector<128x128xf32> -> vector<128x128xf32>
    %c0_3 = arith.constant 0 : index
    %c0_4 = arith.constant 0 : index
    %3 = vector.load %arg3[%c0_3, %c0_4] : memref<1x128xf32, #tpu.memory_space<vmem>>, vector<1x128xf32>
    %4 = vector.broadcast %3 : vector<1x128xf32> to vector<128x128xf32>
    %5 = arith.addf %2, %4 : vector<128x128xf32>
    %c0_5 = arith.constant 0 : index
    %c0_6 = arith.constant 0 : index
    %6 = vector.load %arg4[%c0_5, %c0_6] : memref<1x128xf32, #tpu.memory_space<vmem>>, vector<1x128xf32>
    %c0_7 = arith.constant 0 : index
    %c0_8 = arith.constant 0 : index
    %7 = vector.load %arg5[%c0_7, %c0_8] : memref<1x128xf32, #tpu.memory_space<vmem>>, vector<1x128xf32>
    %8 = tpu.iota {dimensions = array<i32: 1>} : vector<128x128xi32>
    %c16_i32 = arith.constant 16 : i32
    %9 = vector.broadcast %c16_i32 : i32 to vector<128x128xi32>
    %10 = arith.cmpi slt, %8, %9 : vector<128x128xi32>
    %11 = arith.extui %10 : vector<128x128xi1> to vector<128x128xi32>
    %12 = arith.sitofp %11 : vector<128x128xi32> to vector<128x128xf32>
    %13 = arith.mulf %5, %12 : vector<128x128xf32>
    %cst_9 = arith.constant dense<0.000000e+00> : vector<128xf32>
    %14 = vector.multi_reduction <add>, %13, %cst_9 [1] : vector<128x128xf32> to vector<128xf32>
    %15 = vector.shape_cast %14 : vector<128xf32> to vector<128x1xf32>
    %cst_10 = arith.constant 6.250000e-02 : f32
    %16 = vector.broadcast %cst_10 : f32 to vector<128x1xf32>
    %17 = arith.mulf %15, %16 : vector<128x1xf32>
    %18 = vector.broadcast %17 : vector<128x1xf32> to vector<128x128xf32>
    %19 = arith.subf %5, %18 : vector<128x128xf32>
    %20 = arith.mulf %19, %12 : vector<128x128xf32>
    %21 = arith.mulf %20, %20 : vector<128x128xf32>
    %cst_11 = arith.constant dense<0.000000e+00> : vector<128xf32>
    %22 = vector.multi_reduction <add>, %21, %cst_11 [1] : vector<128x128xf32> to vector<128xf32>
    %23 = vector.shape_cast %22 : vector<128xf32> to vector<128x1xf32>
    %cst_12 = arith.constant 6.250000e-02 : f32
    %24 = vector.broadcast %cst_12 : f32 to vector<128x1xf32>
    %25 = arith.mulf %23, %24 : vector<128x1xf32>
    %cst_13 = arith.constant 9.99999997E-7 : f32
    %26 = vector.broadcast %cst_13 : f32 to vector<128x1xf32>
    %27 = arith.addf %25, %26 : vector<128x1xf32>
    %28 = math.rsqrt %27 : vector<128x1xf32>
    %29 = vector.broadcast %28 : vector<128x1xf32> to vector<128x128xf32>
    %30 = arith.mulf %20, %29 : vector<128x128xf32>
    %31 = vector.broadcast %6 : vector<1x128xf32> to vector<128x128xf32>
    %32 = arith.mulf %30, %31 : vector<128x128xf32>
    %33 = vector.broadcast %7 : vector<1x128xf32> to vector<128x128xf32>
    %34 = arith.addf %32, %33 : vector<128x128xf32>
    %35 = arith.truncf %34 : vector<128x128xf32> to vector<128x128xbf16>
    %c0_14 = arith.constant 0 : index
    %c0_15 = arith.constant 0 : index
    %36 = vector.load %arg6[%c0_14, %c0_15] : memref<128x128xbf16, #tpu.memory_space<vmem>>, vector<128x128xbf16>
    tpu.vector_store %arg6[%c0_14, %c0_15], %35 {strides = array<i32>} : memref<128x128xbf16, #tpu.memory_space<vmem>>, vector<128x128xbf16>,
    return
  }
  func.func @transform_0(%arg0: i32) -> (i32, i32) {
    %c0_i32 = arith.constant 0 : i32
    %c0_i32_0 = arith.constant 0 : i32
    return %arg0, %c0_i32 : i32, i32
  }
  func.func @transform_1(%arg0: i32) -> (i32, i32) {
    %c0_i32 = arith.constant 0 : i32
    %c0_i32_0 = arith.constant 0 : i32
    %c0_i32_1 = arith.constant 0 : i32
    return %c0_i32, %c0_i32_0 : i32, i32
  }
  func.func @transform_2(%arg0: i32) -> (i32, i32) {
    %c0_i32 = arith.constant 0 : i32
    %c0_i32_0 = arith.constant 0 : i32
    %c0_i32_1 = arith.constant 0 : i32
    return %c0_i32, %c0_i32_0 : i32, i32
  }
  func.func @transform_3(%arg0: i32) -> (i32, i32) {
    %c0_i32 = arith.constant 0 : i32
    %c0_i32_0 = arith.constant 0 : i32
    %c0_i32_1 = arith.constant 0 : i32
    return %c0_i32, %c0_i32_0 : i32, i32
  }
  func.func @transform_4(%arg0: i32) -> (i32, i32) {
    %c0_i32 = arith.constant 0 : i32
    %c0_i32_0 = arith.constant 0 : i32
    %c0_i32_1 = arith.constant 0 : i32
    return %c0_i32, %c0_i32_0 : i32, i32
  }
  func.func @transform_5(%arg0: i32) -> (i32, i32) {
    %c0_i32 = arith.constant 0 : i32
    %c0_i32_0 = arith.constant 0 : i32
    return %arg0, %c0_i32 : i32, i32
  }
}

module attributes {stable_mosaic.version = 11 : i64} {
  func.func @_layernorm_kernel(%arg0: i32, %arg1: memref<128x128xbf16, #tpu.memory_space<vmem>>, %arg2: memref<1x128xf32, #tpu.memory_space<vmem>>, %arg3: memref<1x128xf32, #tpu.memory_space<vmem>>, %arg4: memref<128x128xbf16, #tpu.memory_space<vmem>>) attributes {dimension_semantics = [#tpu.dimension_semantics<parallel>], iteration_bounds = array<i64: 1>, scalar_prefetch = 0 : i64, scratch_operands = 0 : i64, tpu.core_type = #tpu.core_type<tc>, window_params = [{transform_indices = @transform_0, window_bounds = array<i64: 128, 128>}, {pipeline_mode = #tpu.pipeline_mode<synchronous>, transform_indices = @transform_1, window_bounds = array<i64: 1, 128>}, {pipeline_mode = #tpu.pipeline_mode<synchronous>, transform_indices = @transform_2, window_bounds = array<i64: 1, 128>}, {transform_indices = @transform_3, window_bounds = array<i64: 128, 128>}]} {
    %c0 = arith.constant 0 : index
    %c0_0 = arith.constant 0 : index
    %0 = vector.load %arg1[%c0, %c0_0] : memref<128x128xbf16, #tpu.memory_space<vmem>>, vector<128x128xbf16>
    %1 = arith.extf %0 : vector<128x128xbf16> to vector<128x128xf32>
    %c0_1 = arith.constant 0 : index
    %c0_2 = arith.constant 0 : index
    %2 = vector.load %arg2[%c0_1, %c0_2] : memref<1x128xf32, #tpu.memory_space<vmem>>, vector<1x128xf32>
    %c0_3 = arith.constant 0 : index
    %c0_4 = arith.constant 0 : index
    %3 = vector.load %arg3[%c0_3, %c0_4] : memref<1x128xf32, #tpu.memory_space<vmem>>, vector<1x128xf32>
    %4 = tpu.iota {dimensions = array<i32: 1>} : vector<128x128xi32>
    %c16_i32 = arith.constant 16 : i32
    %5 = vector.broadcast %c16_i32 : i32 to vector<128x128xi32>
    %6 = arith.cmpi slt, %4, %5 : vector<128x128xi32>
    %7 = arith.extui %6 : vector<128x128xi1> to vector<128x128xi32>
    %8 = arith.sitofp %7 : vector<128x128xi32> to vector<128x128xf32>
    %9 = arith.mulf %1, %8 : vector<128x128xf32>
    %cst = arith.constant dense<0.000000e+00> : vector<128xf32>
    %10 = vector.multi_reduction <add>, %9, %cst [1] : vector<128x128xf32> to vector<128xf32>
    %11 = vector.shape_cast %10 : vector<128xf32> to vector<128x1xf32>
    %cst_5 = arith.constant 6.250000e-02 : f32
    %12 = vector.broadcast %cst_5 : f32 to vector<128x1xf32>
    %13 = arith.mulf %11, %12 : vector<128x1xf32>
    %14 = vector.broadcast %13 : vector<128x1xf32> to vector<128x128xf32>
    %15 = arith.subf %1, %14 : vector<128x128xf32>
    %16 = arith.mulf %15, %8 : vector<128x128xf32>
    %17 = arith.mulf %16, %16 : vector<128x128xf32>
    %cst_6 = arith.constant dense<0.000000e+00> : vector<128xf32>
    %18 = vector.multi_reduction <add>, %17, %cst_6 [1] : vector<128x128xf32> to vector<128xf32>
    %19 = vector.shape_cast %18 : vector<128xf32> to vector<128x1xf32>
    %cst_7 = arith.constant 6.250000e-02 : f32
    %20 = vector.broadcast %cst_7 : f32 to vector<128x1xf32>
    %21 = arith.mulf %19, %20 : vector<128x1xf32>
    %cst_8 = arith.constant 9.99999997E-7 : f32
    %22 = vector.broadcast %cst_8 : f32 to vector<128x1xf32>
    %23 = arith.addf %21, %22 : vector<128x1xf32>
    %24 = math.rsqrt %23 : vector<128x1xf32>
    %25 = vector.broadcast %24 : vector<128x1xf32> to vector<128x128xf32>
    %26 = arith.mulf %16, %25 : vector<128x128xf32>
    %27 = vector.broadcast %2 : vector<1x128xf32> to vector<128x128xf32>
    %28 = arith.mulf %26, %27 : vector<128x128xf32>
    %29 = vector.broadcast %3 : vector<1x128xf32> to vector<128x128xf32>
    %30 = arith.addf %28, %29 : vector<128x128xf32>
    %31 = arith.truncf %30 : vector<128x128xf32> to vector<128x128xbf16>
    %c0_9 = arith.constant 0 : index
    %c0_10 = arith.constant 0 : index
    %32 = vector.load %arg4[%c0_9, %c0_10] : memref<128x128xbf16, #tpu.memory_space<vmem>>, vector<128x128xbf16>
    tpu.vector_store %arg4[%c0_9, %c0_10], %31 {strides = array<i32>} : memref<128x128xbf16, #tpu.memory_space<vmem>>, vector<128x128xbf16>,
    return
  }
  func.func @transform_0(%arg0: i32) -> (i32, i32) {
    %c0_i32 = arith.constant 0 : i32
    %c0_i32_0 = arith.constant 0 : i32
    return %arg0, %c0_i32 : i32, i32
  }
  func.func @transform_1(%arg0: i32) -> (i32, i32) {
    %c0_i32 = arith.constant 0 : i32
    %c0_i32_0 = arith.constant 0 : i32
    %c0_i32_1 = arith.constant 0 : i32
    return %c0_i32, %c0_i32_0 : i32, i32
  }
  func.func @transform_2(%arg0: i32) -> (i32, i32) {
    %c0_i32 = arith.constant 0 : i32
    %c0_i32_0 = arith.constant 0 : i32
    %c0_i32_1 = arith.constant 0 : i32
    return %c0_i32, %c0_i32_0 : i32, i32
  }
  func.func @transform_3(%arg0: i32) -> (i32, i32) {
    %c0_i32 = arith.constant 0 : i32
    %c0_i32_0 = arith.constant 0 : i32
    return %arg0, %c0_i32 : i32, i32
  }
}

module attributes {stable_mosaic.version = 11 : i64} {
  func.func @_fused_matmul_kernel(%arg0: i32, %arg1: memref<32x64xbf16, #tpu.memory_space<vmem>>, %arg2: memref<64x128xbf16, #tpu.memory_space<vmem>>, %arg3: memref<1x128xf32, #tpu.memory_space<vmem>>, %arg4: memref<1x128xf32, #tpu.memory_space<vmem>>, %arg5: memref<1x128xf32, #tpu.memory_space<vmem>>, %arg6: memref<32x128xbf16, #tpu.memory_space<vmem>>) attributes {dimension_semantics = [#tpu.dimension_semantics<parallel>], iteration_bounds = array<i64: 1>, scalar_prefetch = 0 : i64, scratch_operands = 0 : i64, tpu.core_type = #tpu.core_type<tc>, window_params = [{transform_indices = @transform_0, window_bounds = array<i64: 32, 64>}, {pipeline_mode = #tpu.pipeline_mode<synchronous>, transform_indices = @transform_1, window_bounds = array<i64: 64, 128>}, {pipeline_mode = #tpu.pipeline_mode<synchronous>, transform_indices = @transform_2, window_bounds = array<i64: 1, 128>}, {pipeline_mode = #tpu.pipeline_mode<synchronous>, transform_indices = @transform_3, window_bounds = array<i64: 1, 128>}, {pipeline_mode = #tpu.pipeline_mode<synchronous>, transform_indices = @transform_4, window_bounds = array<i64: 1, 128>}, {transform_indices = @transform_5, window_bounds = array<i64: 32, 128>}]} {
    %c0 = arith.constant 0 : index
    %c0_0 = arith.constant 0 : index
    %0 = vector.load %arg1[%c0, %c0_0] : memref<32x64xbf16, #tpu.memory_space<vmem>>, vector<32x64xbf16>
    %c0_1 = arith.constant 0 : index
    %c0_2 = arith.constant 0 : index
    %1 = vector.load %arg2[%c0_1, %c0_2] : memref<64x128xbf16, #tpu.memory_space<vmem>>, vector<64x128xbf16>
    %cst = arith.constant dense<0.000000e+00> : vector<32x128xf32>
    %2 = tpu.matmul %0, %1, %cst {dimension_numbers = #tpu.dot_dimension_numbers<[1], [0], [0], [1], [0, 0, 1, 1], [], []>} : vector<32x64xbf16>, vector<64x128xbf16>, vector<32x128xf32> -> vector<32x128xf32>
    %c0_3 = arith.constant 0 : index
    %c0_4 = arith.constant 0 : index
    %3 = vector.load %arg3[%c0_3, %c0_4] : memref<1x128xf32, #tpu.memory_space<vmem>>, vector<1x128xf32>
    %4 = vector.broadcast %3 : vector<1x128xf32> to vector<32x128xf32>
    %5 = arith.addf %2, %4 : vector<32x128xf32>
    %c0_5 = arith.constant 0 : index
    %c0_6 = arith.constant 0 : index
    %6 = vector.load %arg4[%c0_5, %c0_6] : memref<1x128xf32, #tpu.memory_space<vmem>>, vector<1x128xf32>
    %c0_7 = arith.constant 0 : index
    %c0_8 = arith.constant 0 : index
    %7 = vector.load %arg5[%c0_7, %c0_8] : memref<1x128xf32, #tpu.memory_space<vmem>>, vector<1x128xf32>
    %8 = tpu.iota {dimensions = array<i32: 1>} : vector<32x128xi32>
    %c16_i32 = arith.constant 16 : i32
    %9 = vector.broadcast %c16_i32 : i32 to vector<32x128xi32>
    %10 = arith.cmpi slt, %8, %9 : vector<32x128xi32>
    %11 = arith.extui %10 : vector<32x128xi1> to vector<32x128xi32>
    %12 = arith.sitofp %11 : vector<32x128xi32> to vector<32x128xf32>
    %13 = arith.mulf %5, %12 : vector<32x128xf32>
    %cst_9 = arith.constant dense<0.000000e+00> : vector<32xf32>
    %14 = vector.multi_reduction <add>, %13, %cst_9 [1] : vector<32x128xf32> to vector<32xf32>
    %15 = vector.shape_cast %14 : vector<32xf32> to vector<32x1xf32>
    %cst_10 = arith.constant 6.250000e-02 : f32
    %16 = vector.broadcast %cst_10 : f32 to vector<32x1xf32>
    %17 = arith.mulf %15, %16 : vector<32x1xf32>
    %18 = vector.broadcast %17 : vector<32x1xf32> to vector<32x128xf32>
    %19 = arith.subf %5, %18 : vector<32x128xf32>
    %20 = arith.mulf %19, %12 : vector<32x128xf32>
    %21 = arith.mulf %20, %20 : vector<32x128xf32>
    %cst_11 = arith.constant dense<0.000000e+00> : vector<32xf32>
    %22 = vector.multi_reduction <add>, %21, %cst_11 [1] : vector<32x128xf32> to vector<32xf32>
    %23 = vector.shape_cast %22 : vector<32xf32> to vector<32x1xf32>
    %cst_12 = arith.constant 6.250000e-02 : f32
    %24 = vector.broadcast %cst_12 : f32 to vector<32x1xf32>
    %25 = arith.mulf %23, %24 : vector<32x1xf32>
    %cst_13 = arith.constant 9.99999997E-7 : f32
    %26 = vector.broadcast %cst_13 : f32 to vector<32x1xf32>
    %27 = arith.addf %25, %26 : vector<32x1xf32>
    %28 = math.rsqrt %27 : vector<32x1xf32>
    %29 = vector.broadcast %28 : vector<32x1xf32> to vector<32x128xf32>
    %30 = arith.mulf %20, %29 : vector<32x128xf32>
    %31 = vector.broadcast %6 : vector<1x128xf32> to vector<32x128xf32>
    %32 = arith.mulf %30, %31 : vector<32x128xf32>
    %33 = vector.broadcast %7 : vector<1x128xf32> to vector<32x128xf32>
    %34 = arith.addf %32, %33 : vector<32x128xf32>
    %35 = arith.truncf %34 : vector<32x128xf32> to vector<32x128xbf16>
    %c0_14 = arith.constant 0 : index
    %c0_15 = arith.constant 0 : index
    %36 = vector.load %arg6[%c0_14, %c0_15] : memref<32x128xbf16, #tpu.memory_space<vmem>>, vector<32x128xbf16>
    tpu.vector_store %arg6[%c0_14, %c0_15], %35 {strides = array<i32>} : memref<32x128xbf16, #tpu.memory_space<vmem>>, vector<32x128xbf16>,
    return
  }
  func.func @transform_0(%arg0: i32) -> (i32, i32) {
    %c0_i32 = arith.constant 0 : i32
    %c0_i32_0 = arith.constant 0 : i32
    return %arg0, %c0_i32 : i32, i32
  }
  func.func @transform_1(%arg0: i32) -> (i32, i32) {
    %c0_i32 = arith.constant 0 : i32
    %c0_i32_0 = arith.constant 0 : i32
    %c0_i32_1 = arith.constant 0 : i32
    return %c0_i32, %c0_i32_0 : i32, i32
  }
  func.func @transform_2(%arg0: i32) -> (i32, i32) {
    %c0_i32 = arith.constant 0 : i32
    %c0_i32_0 = arith.constant 0 : i32
    %c0_i32_1 = arith.constant 0 : i32
    return %c0_i32, %c0_i32_0 : i32, i32
  }
  func.func @transform_3(%arg0: i32) -> (i32, i32) {
    %c0_i32 = arith.constant 0 : i32
    %c0_i32_0 = arith.constant 0 : i32
    %c0_i32_1 = arith.constant 0 : i32
    return %c0_i32, %c0_i32_0 : i32, i32
  }
  func.func @transform_4(%arg0: i32) -> (i32, i32) {
    %c0_i32 = arith.constant 0 : i32
    %c0_i32_0 = arith.constant 0 : i32
    %c0_i32_1 = arith.constant 0 : i32
    return %c0_i32, %c0_i32_0 : i32, i32
  }
  func.func @transform_5(%arg0: i32) -> (i32, i32) {
    %c0_i32 = arith.constant 0 : i32
    %c0_i32_0 = arith.constant 0 : i32
    return %arg0, %c0_i32 : i32, i32
  }
}

module attributes {stable_mosaic.version = 11 : i64} {
  func.func @_fused_matmul_kernel(%arg0: i32, %arg1: memref<32x128xbf16, #tpu.memory_space<vmem>>, %arg2: memref<128x128xbf16, #tpu.memory_space<vmem>>, %arg3: memref<1x128xf32, #tpu.memory_space<vmem>>, %arg4: memref<32x128xbf16, #tpu.memory_space<vmem>>) attributes {dimension_semantics = [#tpu.dimension_semantics<parallel>], iteration_bounds = array<i64: 1>, scalar_prefetch = 0 : i64, scratch_operands = 0 : i64, tpu.core_type = #tpu.core_type<tc>, window_params = [{transform_indices = @transform_0, window_bounds = array<i64: 32, 128>}, {pipeline_mode = #tpu.pipeline_mode<synchronous>, transform_indices = @transform_1, window_bounds = array<i64: 128, 128>}, {pipeline_mode = #tpu.pipeline_mode<synchronous>, transform_indices = @transform_2, window_bounds = array<i64: 1, 128>}, {transform_indices = @transform_3, window_bounds = array<i64: 32, 128>}]} {
    %c0 = arith.constant 0 : index
    %c0_0 = arith.constant 0 : index
    %0 = vector.load %arg1[%c0, %c0_0] : memref<32x128xbf16, #tpu.memory_space<vmem>>, vector<32x128xbf16>
    %c0_1 = arith.constant 0 : index
    %c0_2 = arith.constant 0 : index
    %1 = vector.load %arg2[%c0_1, %c0_2] : memref<128x128xbf16, #tpu.memory_space<vmem>>, vector<128x128xbf16>
    %cst = arith.constant dense<0.000000e+00> : vector<32x128xf32>
    %2 = tpu.matmul %0, %1, %cst {dimension_numbers = #tpu.dot_dimension_numbers<[1], [0], [0], [1], [0, 0, 1, 1], [], []>} : vector<32x128xbf16>, vector<128x128xbf16>, vector<32x128xf32> -> vector<32x128xf32>
    %c0_3 = arith.constant 0 : index
    %c0_4 = arith.constant 0 : index
    %3 = vector.load %arg3[%c0_3, %c0_4] : memref<1x128xf32, #tpu.memory_space<vmem>>, vector<1x128xf32>
    %4 = vector.broadcast %3 : vector<1x128xf32> to vector<32x128xf32>
    %5 = arith.addf %2, %4 : vector<32x128xf32>
    %6 = arith.truncf %5 : vector<32x128xf32> to vector<32x128xbf16>
    %c0_5 = arith.constant 0 : index
    %c0_6 = arith.constant 0 : index
    %7 = vector.load %arg4[%c0_5, %c0_6] : memref<32x128xbf16, #tpu.memory_space<vmem>>, vector<32x128xbf16>
    tpu.vector_store %arg4[%c0_5, %c0_6], %6 {strides = array<i32>} : memref<32x128xbf16, #tpu.memory_space<vmem>>, vector<32x128xbf16>,
    return
  }
  func.func @transform_0(%arg0: i32) -> (i32, i32) {
    %c0_i32 = arith.constant 0 : i32
    %c0_i32_0 = arith.constant 0 : i32
    return %arg0, %c0_i32 : i32, i32
  }
  func.func @transform_1(%arg0: i32) -> (i32, i32) {
    %c0_i32 = arith.constant 0 : i32
    %c0_i32_0 = arith.constant 0 : i32
    %c0_i32_1 = arith.constant 0 : i32
    return %c0_i32, %c0_i32_0 : i32, i32
  }
  func.func @transform_2(%arg0: i32) -> (i32, i32) {
    %c0_i32 = arith.constant 0 : i32
    %c0_i32_0 = arith.constant 0 : i32
    %c0_i32_1 = arith.constant 0 : i32
    return %c0_i32, %c0_i32_0 : i32, i32
  }
  func.func @transform_3(%arg0: i32) -> (i32, i32) {
    %c0_i32 = arith.constant 0 : i32
    %c0_i32_0 = arith.constant 0 : i32
    return %arg0, %c0_i32 : i32, i32
  }
}

module attributes {stable_mosaic.version = 11 : i64} {
  func.func @_attn_kernel(%arg0: i32, %arg1: i32, %arg2: memref<1x64x128xbf16, #tpu.memory_space<vmem>>, %arg3: memref<1x16x128xbf16, #tpu.memory_space<vmem>>, %arg4: memref<1x128x128xbf16, #tpu.memory_space<vmem>>, %arg5: memref<1x128xf32, #tpu.memory_space<vmem>>, %arg6: memref<1x64x128xbf16, #tpu.memory_space<vmem>>, %arg7: memref<1x64x128xbf16, #tpu.memory_space<vmem>>) attributes {dimension_semantics = [#tpu.dimension_semantics<parallel>, #tpu.dimension_semantics<parallel>], iteration_bounds = array<i64: 2, 1>, scalar_prefetch = 0 : i64, scratch_operands = 0 : i64, tpu.core_type = #tpu.core_type<tc>, window_params = [{transform_indices = @transform_0, window_bounds = array<i64: 1, 64, 128>}, {transform_indices = @transform_1, window_bounds = array<i64: 1, 16, 128>}, {pipeline_mode = #tpu.pipeline_mode<synchronous>, transform_indices = @transform_2, window_bounds = array<i64: 1, 128, 128>}, {pipeline_mode = #tpu.pipeline_mode<synchronous>, transform_indices = @transform_3, window_bounds = array<i64: 1, 128>}, {transform_indices = @transform_4, window_bounds = array<i64: 1, 64, 128>}, {transform_indices = @transform_5, window_bounds = array<i64: 1, 64, 128>}]} {
    %c0 = arith.constant 0 : index
    %c0_0 = arith.constant 0 : index
    %c0_1 = arith.constant 0 : index
    %0 = vector.load %arg2[%c0, %c0_0, %c0_1] : memref<1x64x128xbf16, #tpu.memory_space<vmem>>, vector<1x64x128xbf16>
    %1 = vector.shape_cast %0 : vector<1x64x128xbf16> to vector<64x128xbf16>
    %c0_2 = arith.constant 0 : index
    %c0_3 = arith.constant 0 : index
    %c0_4 = arith.constant 0 : index
    %2 = vector.load %arg3[%c0_2, %c0_3, %c0_4] : memref<1x16x128xbf16, #tpu.memory_space<vmem>>, vector<1x16x128xbf16>
    %3 = vector.shape_cast %2 : vector<1x16x128xbf16> to vector<16x128xbf16>
    %c0_5 = arith.constant 0 : index
    %c0_6 = arith.constant 0 : index
    %4 = vector.load %arg5[%c0_5, %c0_6] : memref<1x128xf32, #tpu.memory_space<vmem>>, vector<1x128xf32>
    %c0_7 = arith.constant 0 : index
    %c0_8 = arith.constant 0 : index
    %c0_9 = arith.constant 0 : index
    %5 = vector.load %arg6[%c0_7, %c0_8, %c0_9] : memref<1x64x128xbf16, #tpu.memory_space<vmem>>, vector<1x64x128xbf16>
    %6 = vector.shape_cast %5 : vector<1x64x128xbf16> to vector<64x128xbf16>
    %7 = arith.extf %6 : vector<64x128xbf16> to vector<64x128xf32>
    %8 = vector.broadcast %4 : vector<1x128xf32> to vector<64x128xf32>
    %9 = arith.addf %8, %7 : vector<64x128xf32>
    %cst = arith.constant dense<0.000000e+00> : vector<64x16xf32>
    %10 = tpu.matmul %1, %3, %cst {dimension_numbers = #tpu.dot_dimension_numbers<[1], [1], [0], [0], [0, 0, 1, 0], [], []>} : vector<64x128xbf16>, vector<16x128xbf16>, vector<64x16xf32> -> vector<64x16xf32>
    %cst_10 = arith.constant 2.500000e-01 : f32
    %11 = vector.broadcast %cst_10 : f32 to vector<64x16xf32>
    %12 = arith.mulf %10, %11 : vector<64x16xf32>
    %cst_11 = arith.constant dense<0xFF800000> : vector<64xf32>
    %13 = vector.multi_reduction <maximumf>, %12, %cst_11 [1] : vector<64x16xf32> to vector<64xf32>
    %14 = vector.shape_cast %13 : vector<64xf32> to vector<64x1xf32>
    %15 = vector.broadcast %14 : vector<64x1xf32> to vector<64x16xf32>
    %16 = arith.subf %12, %15 : vector<64x16xf32>
    %17 = math.exp %16 : vector<64x16xf32>
    %cst_12 = arith.constant dense<0.000000e+00> : vector<64xf32>
    %18 = vector.multi_reduction <add>, %17, %cst_12 [1] : vector<64x16xf32> to vector<64xf32>
    %19 = vector.shape_cast %18 : vector<64xf32> to vector<64x1xf32>
    %20 = tpu.reciprocal %19 {approx = true} : vector<64x1xf32> -> vector<64x1xf32>
    %21 = vector.broadcast %20 : vector<64x1xf32> to vector<64x16xf32>
    %22 = arith.mulf %17, %21 : vector<64x16xf32>
    %23 = arith.truncf %22 : vector<64x16xf32> to vector<64x16xbf16>
    %cst_13 = arith.constant dense<0.000000e+00> : vector<64x128xf32>
    %24 = tpu.matmul %23, %3, %cst_13 {dimension_numbers = #tpu.dot_dimension_numbers<[1], [0], [0], [1], [0, 0, 1, 1], [], []>} : vector<64x16xbf16>, vector<16x128xbf16>, vector<64x128xf32> -> vector<64x128xf32>
    %25 = arith.truncf %24 : vector<64x128xf32> to vector<64x128xbf16>
    %c0_14 = arith.constant 0 : index
    %c0_15 = arith.constant 0 : index
    %c0_16 = arith.constant 0 : index
    %26 = vector.load %arg4[%c0_14, %c0_15, %c0_16] : memref<1x128x128xbf16, #tpu.memory_space<vmem>>, vector<1x128x128xbf16>
    %27 = vector.shape_cast %26 : vector<1x128x128xbf16> to vector<128x128xbf16>
    %cst_17 = arith.constant dense<0.000000e+00> : vector<64x128xf32>
    %28 = tpu.matmul %25, %27, %cst_17 {dimension_numbers = #tpu.dot_dimension_numbers<[1], [0], [0], [1], [0, 0, 1, 1], [], []>} : vector<64x128xbf16>, vector<128x128xbf16>, vector<64x128xf32> -> vector<64x128xf32>
    %29 = arith.addf %9, %28 : vector<64x128xf32>
    %30 = arith.truncf %29 : vector<64x128xf32> to vector<64x128xbf16>
    %c0_18 = arith.constant 0 : index
    %c0_19 = arith.constant 0 : index
    %c0_20 = arith.constant 0 : index
    %31 = vector.load %arg7[%c0_18, %c0_19, %c0_20] : memref<1x64x128xbf16, #tpu.memory_space<vmem>>, vector<1x64x128xbf16>
    %32 = vector.shape_cast %31 : vector<1x64x128xbf16> to vector<64x128xbf16>
    %33 = vector.shape_cast %30 : vector<64x128xbf16> to vector<1x64x128xbf16>
    tpu.vector_store %arg7[%c0_18, %c0_19, %c0_20], %33 {strides = array<i32>} : memref<1x64x128xbf16, #tpu.memory_space<vmem>>, vector<1x64x128xbf16>,
    return
  }
  func.func @transform_0(%arg0: i32, %arg1: i32) -> (i32, i32, i32) {
    %c0_i32 = arith.constant 0 : i32
    %c0_i32_0 = arith.constant 0 : i32
    return %arg0, %arg1, %c0_i32 : i32, i32, i32
  }
  func.func @transform_1(%arg0: i32, %arg1: i32) -> (i32, i32, i32) {
    %c0_i32 = arith.constant 0 : i32
    %c0_i32_0 = arith.constant 0 : i32
    %c0_i32_1 = arith.constant 0 : i32
    return %arg0, %c0_i32, %c0_i32_0 : i32, i32, i32
  }
  func.func @transform_2(%arg0: i32, %arg1: i32) -> (i32, i32, i32) {
    %c0_i32 = arith.constant 0 : i32
    %c0_i32_0 = arith.constant 0 : i32
    %c0_i32_1 = arith.constant 0 : i32
    %c0_i32_2 = arith.constant 0 : i32
    return %c0_i32, %c0_i32_0, %c0_i32_1 : i32, i32, i32
  }
  func.func @transform_3(%arg0: i32, %arg1: i32) -> (i32, i32) {
    %c0_i32 = arith.constant 0 : i32
    %c0_i32_0 = arith.constant 0 : i32
    %c0_i32_1 = arith.constant 0 : i32
    return %c0_i32, %c0_i32_0 : i32, i32
  }
  func.func @transform_4(%arg0: i32, %arg1: i32) -> (i32, i32, i32) {
    %c0_i32 = arith.constant 0 : i32
    %c0_i32_0 = arith.constant 0 : i32
    return %arg0, %arg1, %c0_i32 : i32, i32, i32
  }
  func.func @transform_5(%arg0: i32, %arg1: i32) -> (i32, i32, i32) {
    %c0_i32 = arith.constant 0 : i32
    %c0_i32_0 = arith.constant 0 : i32
    return %arg0, %arg1, %c0_i32 : i32, i32, i32
  }
}

module attributes {stable_mosaic.version = 11 : i64} {
  func.func @_fused_matmul_kernel(%arg0: i32, %arg1: memref<128x128xbf16, #tpu.memory_space<vmem>>, %arg2: memref<128x128xbf16, #tpu.memory_space<vmem>>, %arg3: memref<1x128xf32, #tpu.memory_space<vmem>>, %arg4: memref<128x128xbf16, #tpu.memory_space<vmem>>) attributes {dimension_semantics = [#tpu.dimension_semantics<parallel>], iteration_bounds = array<i64: 1>, scalar_prefetch = 0 : i64, scratch_operands = 0 : i64, tpu.core_type = #tpu.core_type<tc>, window_params = [{transform_indices = @transform_0, window_bounds = array<i64: 128, 128>}, {pipeline_mode = #tpu.pipeline_mode<synchronous>, transform_indices = @transform_1, window_bounds = array<i64: 128, 128>}, {pipeline_mode = #tpu.pipeline_mode<synchronous>, transform_indices = @transform_2, window_bounds = array<i64: 1, 128>}, {transform_indices = @transform_3, window_bounds = array<i64: 128, 128>}]} {
    %c0 = arith.constant 0 : index
    %c0_0 = arith.constant 0 : index
    %0 = vector.load %arg1[%c0, %c0_0] : memref<128x128xbf16, #tpu.memory_space<vmem>>, vector<128x128xbf16>
    %c0_1 = arith.constant 0 : index
    %c0_2 = arith.constant 0 : index
    %1 = vector.load %arg2[%c0_1, %c0_2] : memref<128x128xbf16, #tpu.memory_space<vmem>>, vector<128x128xbf16>
    %cst = arith.constant dense<0.000000e+00> : vector<128x128xf32>
    %2 = tpu.matmul %0, %1, %cst {dimension_numbers = #tpu.dot_dimension_numbers<[1], [0], [0], [1], [0, 0, 1, 1], [], []>} : vector<128x128xbf16>, vector<128x128xbf16>, vector<128x128xf32> -> vector<128x128xf32>
    %c0_3 = arith.constant 0 : index
    %c0_4 = arith.constant 0 : index
    %3 = vector.load %arg3[%c0_3, %c0_4] : memref<1x128xf32, #tpu.memory_space<vmem>>, vector<1x128xf32>
    %4 = vector.broadcast %3 : vector<1x128xf32> to vector<128x128xf32>
    %5 = arith.addf %2, %4 : vector<128x128xf32>
    %6 = arith.truncf %5 : vector<128x128xf32> to vector<128x128xbf16>
    %c0_5 = arith.constant 0 : index
    %c0_6 = arith.constant 0 : index
    %7 = vector.load %arg4[%c0_5, %c0_6] : memref<128x128xbf16, #tpu.memory_space<vmem>>, vector<128x128xbf16>
    tpu.vector_store %arg4[%c0_5, %c0_6], %6 {strides = array<i32>} : memref<128x128xbf16, #tpu.memory_space<vmem>>, vector<128x128xbf16>,
    return
  }
  func.func @transform_0(%arg0: i32) -> (i32, i32) {
    %c0_i32 = arith.constant 0 : i32
    %c0_i32_0 = arith.constant 0 : i32
    return %arg0, %c0_i32 : i32, i32
  }
  func.func @transform_1(%arg0: i32) -> (i32, i32) {
    %c0_i32 = arith.constant 0 : i32
    %c0_i32_0 = arith.constant 0 : i32
    %c0_i32_1 = arith.constant 0 : i32
    return %c0_i32, %c0_i32_0 : i32, i32
  }
  func.func @transform_2(%arg0: i32) -> (i32, i32) {
    %c0_i32 = arith.constant 0 : i32
    %c0_i32_0 = arith.constant 0 : i32
    %c0_i32_1 = arith.constant 0 : i32
    return %c0_i32, %c0_i32_0 : i32, i32
  }
  func.func @transform_3(%arg0: i32) -> (i32, i32) {
    %c0_i32 = arith.constant 0 : i32
    %c0_i32_0 = arith.constant 0 : i32
    return %arg0, %c0_i32 : i32, i32
  }
}

module attributes {stable_mosaic.version = 11 : i64} {
  func.func @_fused_matmul_kernel(%arg0: i32, %arg1: memref<128x128xbf16, #tpu.memory_space<vmem>>, %arg2: memref<128x128xbf16, #tpu.memory_space<vmem>>, %arg3: memref<1x128xf32, #tpu.memory_space<vmem>>, %arg4: memref<1x128xf32, #tpu.memory_space<vmem>>, %arg5: memref<1x128xf32, #tpu.memory_space<vmem>>, %arg6: memref<128x128xbf16, #tpu.memory_space<vmem>>) attributes {dimension_semantics = [#tpu.dimension_semantics<parallel>], iteration_bounds = array<i64: 1>, scalar_prefetch = 0 : i64, scratch_operands = 0 : i64, tpu.core_type = #tpu.core_type<tc>, window_params = [{transform_indices = @transform_0, window_bounds = array<i64: 128, 128>}, {pipeline_mode = #tpu.pipeline_mode<synchronous>, transform_indices = @transform_1, window_bounds = array<i64: 128, 128>}, {pipeline_mode = #tpu.pipeline_mode<synchronous>, transform_indices = @transform_2, window_bounds = array<i64: 1, 128>}, {pipeline_mode = #tpu.pipeline_mode<synchronous>, transform_indices = @transform_3, window_bounds = array<i64: 1, 128>}, {pipeline_mode = #tpu.pipeline_mode<synchronous>, transform_indices = @transform_4, window_bounds = array<i64: 1, 128>}, {transform_indices = @transform_5, window_bounds = array<i64: 128, 128>}]} {
    %c0 = arith.constant 0 : index
    %c0_0 = arith.constant 0 : index
    %0 = vector.load %arg1[%c0, %c0_0] : memref<128x128xbf16, #tpu.memory_space<vmem>>, vector<128x128xbf16>
    %1 = arith.extf %0 : vector<128x128xbf16> to vector<128x128xf32>
    %c0_1 = arith.constant 0 : index
    %c0_2 = arith.constant 0 : index
    %2 = vector.load %arg4[%c0_1, %c0_2] : memref<1x128xf32, #tpu.memory_space<vmem>>, vector<1x128xf32>
    %c0_3 = arith.constant 0 : index
    %c0_4 = arith.constant 0 : index
    %3 = vector.load %arg5[%c0_3, %c0_4] : memref<1x128xf32, #tpu.memory_space<vmem>>, vector<1x128xf32>
    %4 = tpu.iota {dimensions = array<i32: 1>} : vector<128x128xi32>
    %c16_i32 = arith.constant 16 : i32
    %5 = vector.broadcast %c16_i32 : i32 to vector<128x128xi32>
    %6 = arith.cmpi slt, %4, %5 : vector<128x128xi32>
    %7 = arith.extui %6 : vector<128x128xi1> to vector<128x128xi32>
    %8 = arith.sitofp %7 : vector<128x128xi32> to vector<128x128xf32>
    %9 = arith.mulf %1, %8 : vector<128x128xf32>
    %cst = arith.constant dense<0.000000e+00> : vector<128xf32>
    %10 = vector.multi_reduction <add>, %9, %cst [1] : vector<128x128xf32> to vector<128xf32>
    %11 = vector.shape_cast %10 : vector<128xf32> to vector<128x1xf32>
    %cst_5 = arith.constant 6.250000e-02 : f32
    %12 = vector.broadcast %cst_5 : f32 to vector<128x1xf32>
    %13 = arith.mulf %11, %12 : vector<128x1xf32>
    %14 = vector.broadcast %13 : vector<128x1xf32> to vector<128x128xf32>
    %15 = arith.subf %1, %14 : vector<128x128xf32>
    %16 = arith.mulf %15, %8 : vector<128x128xf32>
    %17 = arith.mulf %16, %16 : vector<128x128xf32>
    %cst_6 = arith.constant dense<0.000000e+00> : vector<128xf32>
    %18 = vector.multi_reduction <add>, %17, %cst_6 [1] : vector<128x128xf32> to vector<128xf32>
    %19 = vector.shape_cast %18 : vector<128xf32> to vector<128x1xf32>
    %cst_7 = arith.constant 6.250000e-02 : f32
    %20 = vector.broadcast %cst_7 : f32 to vector<128x1xf32>
    %21 = arith.mulf %19, %20 : vector<128x1xf32>
    %cst_8 = arith.constant 9.99999997E-7 : f32
    %22 = vector.broadcast %cst_8 : f32 to vector<128x1xf32>
    %23 = arith.addf %21, %22 : vector<128x1xf32>
    %24 = math.rsqrt %23 : vector<128x1xf32>
    %25 = vector.broadcast %24 : vector<128x1xf32> to vector<128x128xf32>
    %26 = arith.mulf %16, %25 : vector<128x128xf32>
    %27 = vector.broadcast %2 : vector<1x128xf32> to vector<128x128xf32>
    %28 = arith.mulf %26, %27 : vector<128x128xf32>
    %29 = vector.broadcast %3 : vector<1x128xf32> to vector<128x128xf32>
    %30 = arith.addf %28, %29 : vector<128x128xf32>
    %31 = arith.truncf %30 : vector<128x128xf32> to vector<128x128xbf16>
    %c0_9 = arith.constant 0 : index
    %c0_10 = arith.constant 0 : index
    %32 = vector.load %arg2[%c0_9, %c0_10] : memref<128x128xbf16, #tpu.memory_space<vmem>>, vector<128x128xbf16>
    %cst_11 = arith.constant dense<0.000000e+00> : vector<128x128xf32>
    %33 = tpu.matmul %31, %32, %cst_11 {dimension_numbers = #tpu.dot_dimension_numbers<[1], [0], [0], [1], [0, 0, 1, 1], [], []>} : vector<128x128xbf16>, vector<128x128xbf16>, vector<128x128xf32> -> vector<128x128xf32>
    %c0_12 = arith.constant 0 : index
    %c0_13 = arith.constant 0 : index
    %34 = vector.load %arg3[%c0_12, %c0_13] : memref<1x128xf32, #tpu.memory_space<vmem>>, vector<1x128xf32>
    %35 = vector.broadcast %34 : vector<1x128xf32> to vector<128x128xf32>
    %36 = arith.addf %33, %35 : vector<128x128xf32>
    %37 = arith.truncf %36 : vector<128x128xf32> to vector<128x128xbf16>
    %c0_14 = arith.constant 0 : index
    %c0_15 = arith.constant 0 : index
    %38 = vector.load %arg6[%c0_14, %c0_15] : memref<128x128xbf16, #tpu.memory_space<vmem>>, vector<128x128xbf16>
    tpu.vector_store %arg6[%c0_14, %c0_15], %37 {strides = array<i32>} : memref<128x128xbf16, #tpu.memory_space<vmem>>, vector<128x128xbf16>,
    return
  }
  func.func @transform_0(%arg0: i32) -> (i32, i32) {
    %c0_i32 = arith.constant 0 : i32
    %c0_i32_0 = arith.constant 0 : i32
    return %arg0, %c0_i32 : i32, i32
  }
  func.func @transform_1(%arg0: i32) -> (i32, i32) {
    %c0_i32 = arith.constant 0 : i32
    %c0_i32_0 = arith.constant 0 : i32
    %c0_i32_1 = arith.constant 0 : i32
    return %c0_i32, %c0_i32_0 : i32, i32
  }
  func.func @transform_2(%arg0: i32) -> (i32, i32) {
    %c0_i32 = arith.constant 0 : i32
    %c0_i32_0 = arith.constant 0 : i32
    %c0_i32_1 = arith.constant 0 : i32
    return %c0_i32, %c0_i32_0 : i32, i32
  }
  func.func @transform_3(%arg0: i32) -> (i32, i32) {
    %c0_i32 = arith.constant 0 : i32
    %c0_i32_0 = arith.constant 0 : i32
    %c0_i32_1 = arith.constant 0 : i32
    return %c0_i32, %c0_i32_0 : i32, i32
  }
  func.func @transform_4(%arg0: i32) -> (i32, i32) {
    %c0_i32 = arith.constant 0 : i32
    %c0_i32_0 = arith.constant 0 : i32
    %c0_i32_1 = arith.constant 0 : i32
    return %c0_i32, %c0_i32_0 : i32, i32
  }
  func.func @transform_5(%arg0: i32) -> (i32, i32) {
    %c0_i32 = arith.constant 0 : i32
    %c0_i32_0 = arith.constant 0 : i32
    return %arg0, %c0_i32 : i32, i32
  }
}

module attributes {stable_mosaic.version = 11 : i64} {
  func.func @_mixffn_tail_kernel(%arg0: i32, %arg1: memref<1x10x10x128xbf16, #tpu.memory_space<vmem>>, %arg2: memref<9x128xf32, #tpu.memory_space<vmem>>, %arg3: memref<1x128xf32, #tpu.memory_space<vmem>>, %arg4: memref<128x128xbf16, #tpu.memory_space<vmem>>, %arg5: memref<1x128xf32, #tpu.memory_space<vmem>>, %arg6: memref<1x64x128xbf16, #tpu.memory_space<vmem>>, %arg7: memref<1x64x128xbf16, #tpu.memory_space<vmem>>) attributes {dimension_semantics = [#tpu.dimension_semantics<parallel>], iteration_bounds = array<i64: 2>, scalar_prefetch = 0 : i64, scratch_operands = 0 : i64, tpu.core_type = #tpu.core_type<tc>, window_params = [{transform_indices = @transform_0, window_bounds = array<i64: 1, 10, 10, 128>}, {pipeline_mode = #tpu.pipeline_mode<synchronous>, transform_indices = @transform_1, window_bounds = array<i64: 9, 128>}, {pipeline_mode = #tpu.pipeline_mode<synchronous>, transform_indices = @transform_2, window_bounds = array<i64: 1, 128>}, {pipeline_mode = #tpu.pipeline_mode<synchronous>, transform_indices = @transform_3, window_bounds = array<i64: 128, 128>}, {pipeline_mode = #tpu.pipeline_mode<synchronous>, transform_indices = @transform_4, window_bounds = array<i64: 1, 128>}, {transform_indices = @transform_5, window_bounds = array<i64: 1, 64, 128>}, {transform_indices = @transform_6, window_bounds = array<i64: 1, 64, 128>}]} {
    %c0 = arith.constant 0 : index
    %c0_0 = arith.constant 0 : index
    %c0_1 = arith.constant 0 : index
    %c0_2 = arith.constant 0 : index
    %0 = vector.load %arg1[%c0, %c0_0, %c0_1, %c0_2] : memref<1x10x10x128xbf16, #tpu.memory_space<vmem>>, vector<1x10x10x128xbf16>
    %1 = vector.shape_cast %0 : vector<1x10x10x128xbf16> to vector<10x10x128xbf16>
    %cst = arith.constant 0.000000e+00 : f32
    %2 = vector.broadcast %cst : f32 to vector<8x8x128xf32>
    %3 = vector.extract_strided_slice %1 {offsets = [0, 0, 0], sizes = [8, 8, 128], strides = [1, 1, 1]} : vector<10x10x128xbf16> to vector<8x8x128xbf16>
    %4 = arith.extf %3 : vector<8x8x128xbf16> to vector<8x8x128xf32>
    %c0_3 = arith.constant 0 : index
    %c0_4 = arith.constant 0 : index
    %5 = vector.load %arg2[%c0_3, %c0_4] : memref<9x128xf32, #tpu.memory_space<vmem>>, vector<1x128xf32>
    %6 = vector.shape_cast %5 : vector<1x128xf32> to vector<128xf32>
    %7 = vector.shape_cast %6 : vector<128xf32> to vector<1x1x128xf32>
    %8 = vector.broadcast %7 : vector<1x1x128xf32> to vector<8x8x128xf32>
    %9 = arith.mulf %4, %8 : vector<8x8x128xf32>
    %10 = arith.addf %2, %9 : vector<8x8x128xf32>
    %11 = vector.extract_strided_slice %1 {offsets = [0, 1, 0], sizes = [8, 8, 128], strides = [1, 1, 1]} : vector<10x10x128xbf16> to vector<8x8x128xbf16>
    %12 = arith.extf %11 : vector<8x8x128xbf16> to vector<8x8x128xf32>
    %c1 = arith.constant 1 : index
    %c0_5 = arith.constant 0 : index
    %13 = vector.load %arg2[%c1, %c0_5] : memref<9x128xf32, #tpu.memory_space<vmem>>, vector<1x128xf32>
    %14 = vector.shape_cast %13 : vector<1x128xf32> to vector<128xf32>
    %15 = vector.shape_cast %14 : vector<128xf32> to vector<1x1x128xf32>
    %16 = vector.broadcast %15 : vector<1x1x128xf32> to vector<8x8x128xf32>
    %17 = arith.mulf %12, %16 : vector<8x8x128xf32>
    %18 = arith.addf %10, %17 : vector<8x8x128xf32>
    %19 = vector.extract_strided_slice %1 {offsets = [0, 2, 0], sizes = [8, 8, 128], strides = [1, 1, 1]} : vector<10x10x128xbf16> to vector<8x8x128xbf16>
    %20 = arith.extf %19 : vector<8x8x128xbf16> to vector<8x8x128xf32>
    %c2 = arith.constant 2 : index
    %c0_6 = arith.constant 0 : index
    %21 = vector.load %arg2[%c2, %c0_6] : memref<9x128xf32, #tpu.memory_space<vmem>>, vector<1x128xf32>
    %22 = vector.shape_cast %21 : vector<1x128xf32> to vector<128xf32>
    %23 = vector.shape_cast %22 : vector<128xf32> to vector<1x1x128xf32>
    %24 = vector.broadcast %23 : vector<1x1x128xf32> to vector<8x8x128xf32>
    %25 = arith.mulf %20, %24 : vector<8x8x128xf32>
    %26 = arith.addf %18, %25 : vector<8x8x128xf32>
    %27 = vector.extract_strided_slice %1 {offsets = [1, 0, 0], sizes = [8, 8, 128], strides = [1, 1, 1]} : vector<10x10x128xbf16> to vector<8x8x128xbf16>
    %28 = arith.extf %27 : vector<8x8x128xbf16> to vector<8x8x128xf32>
    %c3 = arith.constant 3 : index
    %c0_7 = arith.constant 0 : index
    %29 = vector.load %arg2[%c3, %c0_7] : memref<9x128xf32, #tpu.memory_space<vmem>>, vector<1x128xf32>
    %30 = vector.shape_cast %29 : vector<1x128xf32> to vector<128xf32>
    %31 = vector.shape_cast %30 : vector<128xf32> to vector<1x1x128xf32>
    %32 = vector.broadcast %31 : vector<1x1x128xf32> to vector<8x8x128xf32>
    %33 = arith.mulf %28, %32 : vector<8x8x128xf32>
    %34 = arith.addf %26, %33 : vector<8x8x128xf32>
    %35 = vector.extract_strided_slice %1 {offsets = [1, 1, 0], sizes = [8, 8, 128], strides = [1, 1, 1]} : vector<10x10x128xbf16> to vector<8x8x128xbf16>
    %36 = arith.extf %35 : vector<8x8x128xbf16> to vector<8x8x128xf32>
    %c4 = arith.constant 4 : index
    %c0_8 = arith.constant 0 : index
    %37 = vector.load %arg2[%c4, %c0_8] : memref<9x128xf32, #tpu.memory_space<vmem>>, vector<1x128xf32>
    %38 = vector.shape_cast %37 : vector<1x128xf32> to vector<128xf32>
    %39 = vector.shape_cast %38 : vector<128xf32> to vector<1x1x128xf32>
    %40 = vector.broadcast %39 : vector<1x1x128xf32> to vector<8x8x128xf32>
    %41 = arith.mulf %36, %40 : vector<8x8x128xf32>
    %42 = arith.addf %34, %41 : vector<8x8x128xf32>
    %43 = vector.extract_strided_slice %1 {offsets = [1, 2, 0], sizes = [8, 8, 128], strides = [1, 1, 1]} : vector<10x10x128xbf16> to vector<8x8x128xbf16>
    %44 = arith.extf %43 : vector<8x8x128xbf16> to vector<8x8x128xf32>
    %c5 = arith.constant 5 : index
    %c0_9 = arith.constant 0 : index
    %45 = vector.load %arg2[%c5, %c0_9] : memref<9x128xf32, #tpu.memory_space<vmem>>, vector<1x128xf32>
    %46 = vector.shape_cast %45 : vector<1x128xf32> to vector<128xf32>
    %47 = vector.shape_cast %46 : vector<128xf32> to vector<1x1x128xf32>
    %48 = vector.broadcast %47 : vector<1x1x128xf32> to vector<8x8x128xf32>
    %49 = arith.mulf %44, %48 : vector<8x8x128xf32>
    %50 = arith.addf %42, %49 : vector<8x8x128xf32>
    %51 = vector.extract_strided_slice %1 {offsets = [2, 0, 0], sizes = [8, 8, 128], strides = [1, 1, 1]} : vector<10x10x128xbf16> to vector<8x8x128xbf16>
    %52 = arith.extf %51 : vector<8x8x128xbf16> to vector<8x8x128xf32>
    %c6 = arith.constant 6 : index
    %c0_10 = arith.constant 0 : index
    %53 = vector.load %arg2[%c6, %c0_10] : memref<9x128xf32, #tpu.memory_space<vmem>>, vector<1x128xf32>
    %54 = vector.shape_cast %53 : vector<1x128xf32> to vector<128xf32>
    %55 = vector.shape_cast %54 : vector<128xf32> to vector<1x1x128xf32>
    %56 = vector.broadcast %55 : vector<1x1x128xf32> to vector<8x8x128xf32>
    %57 = arith.mulf %52, %56 : vector<8x8x128xf32>
    %58 = arith.addf %50, %57 : vector<8x8x128xf32>
    %59 = vector.extract_strided_slice %1 {offsets = [2, 1, 0], sizes = [8, 8, 128], strides = [1, 1, 1]} : vector<10x10x128xbf16> to vector<8x8x128xbf16>
    %60 = arith.extf %59 : vector<8x8x128xbf16> to vector<8x8x128xf32>
    %c7 = arith.constant 7 : index
    %c0_11 = arith.constant 0 : index
    %61 = vector.load %arg2[%c7, %c0_11] : memref<9x128xf32, #tpu.memory_space<vmem>>, vector<1x128xf32>
    %62 = vector.shape_cast %61 : vector<1x128xf32> to vector<128xf32>
    %63 = vector.shape_cast %62 : vector<128xf32> to vector<1x1x128xf32>
    %64 = vector.broadcast %63 : vector<1x1x128xf32> to vector<8x8x128xf32>
    %65 = arith.mulf %60, %64 : vector<8x8x128xf32>
    %66 = arith.addf %58, %65 : vector<8x8x128xf32>
    %67 = vector.extract_strided_slice %1 {offsets = [2, 2, 0], sizes = [8, 8, 128], strides = [1, 1, 1]} : vector<10x10x128xbf16> to vector<8x8x128xbf16>
    %68 = arith.extf %67 : vector<8x8x128xbf16> to vector<8x8x128xf32>
    %c8 = arith.constant 8 : index
    %c0_12 = arith.constant 0 : index
    %69 = vector.load %arg2[%c8, %c0_12] : memref<9x128xf32, #tpu.memory_space<vmem>>, vector<1x128xf32>
    %70 = vector.shape_cast %69 : vector<1x128xf32> to vector<128xf32>
    %71 = vector.shape_cast %70 : vector<128xf32> to vector<1x1x128xf32>
    %72 = vector.broadcast %71 : vector<1x1x128xf32> to vector<8x8x128xf32>
    %73 = arith.mulf %68, %72 : vector<8x8x128xf32>
    %74 = arith.addf %66, %73 : vector<8x8x128xf32>
    %c0_13 = arith.constant 0 : index
    %c0_14 = arith.constant 0 : index
    %75 = vector.load %arg3[%c0_13, %c0_14] : memref<1x128xf32, #tpu.memory_space<vmem>>, vector<1x128xf32>
    %76 = vector.shape_cast %75 : vector<1x128xf32> to vector<1x1x128xf32>
    %77 = vector.broadcast %76 : vector<1x1x128xf32> to vector<8x8x128xf32>
    %78 = arith.addf %74, %77 : vector<8x8x128xf32>
    %cst_15 = arith.constant 0.636619746 : f32
    %79 = math.sqrt %cst_15 : f32
    %cst_16 = arith.constant 5.000000e-01 : f32
    %80 = vector.broadcast %cst_16 : f32 to vector<8x8x128xf32>
    %81 = arith.mulf %80, %78 : vector<8x8x128xf32>
    %cst_17 = arith.constant 4.471500e-02 : f32
    %82 = vector.broadcast %cst_17 : f32 to vector<8x8x128xf32>
    %83 = arith.mulf %82, %78 : vector<8x8x128xf32>
    %84 = arith.mulf %83, %78 : vector<8x8x128xf32>
    %85 = arith.mulf %84, %78 : vector<8x8x128xf32>
    %86 = arith.addf %78, %85 : vector<8x8x128xf32>
    %87 = vector.broadcast %79 : f32 to vector<8x8x128xf32>
    %88 = arith.mulf %87, %86 : vector<8x8x128xf32>
    %89 = math.tanh %88 : vector<8x8x128xf32>
    %cst_18 = arith.constant 1.000000e+00 : f32
    %90 = vector.broadcast %cst_18 : f32 to vector<8x8x128xf32>
    %91 = arith.addf %90, %89 : vector<8x8x128xf32>
    %92 = arith.mulf %81, %91 : vector<8x8x128xf32>
    %93 = vector.shape_cast %92 : vector<8x8x128xf32> to vector<64x128xf32>
    %94 = arith.truncf %93 : vector<64x128xf32> to vector<64x128xbf16>
    %c0_19 = arith.constant 0 : index
    %c0_20 = arith.constant 0 : index
    %95 = vector.load %arg4[%c0_19, %c0_20] : memref<128x128xbf16, #tpu.memory_space<vmem>>, vector<128x128xbf16>
    %cst_21 = arith.constant dense<0.000000e+00> : vector<64x128xf32>
    %96 = tpu.matmul %94, %95, %cst_21 {dimension_numbers = #tpu.dot_dimension_numbers<[1], [0], [0], [1], [0, 0, 1, 1], [], []>} : vector<64x128xbf16>, vector<128x128xbf16>, vector<64x128xf32> -> vector<64x128xf32>
    %c0_22 = arith.constant 0 : index
    %c0_23 = arith.constant 0 : index
    %97 = vector.load %arg5[%c0_22, %c0_23] : memref<1x128xf32, #tpu.memory_space<vmem>>, vector<1x128xf32>
    %98 = vector.broadcast %97 : vector<1x128xf32> to vector<64x128xf32>
    %99 = arith.addf %96, %98 : vector<64x128xf32>
    %c0_24 = arith.constant 0 : index
    %c0_25 = arith.constant 0 : index
    %c0_26 = arith.constant 0 : index
    %100 = vector.load %arg6[%c0_24, %c0_25, %c0_26] : memref<1x64x128xbf16, #tpu.memory_space<vmem>>, vector<1x64x128xbf16>
    %101 = vector.shape_cast %100 : vector<1x64x128xbf16> to vector<64x128xbf16>
    %102 = arith.extf %101 : vector<64x128xbf16> to vector<64x128xf32>
    %103 = arith.addf %99, %102 : vector<64x128xf32>
    %104 = arith.truncf %103 : vector<64x128xf32> to vector<64x128xbf16>
    %c0_27 = arith.constant 0 : index
    %c0_28 = arith.constant 0 : index
    %c0_29 = arith.constant 0 : index
    %105 = vector.load %arg7[%c0_27, %c0_28, %c0_29] : memref<1x64x128xbf16, #tpu.memory_space<vmem>>, vector<1x64x128xbf16>
    %106 = vector.shape_cast %105 : vector<1x64x128xbf16> to vector<64x128xbf16>
    %107 = vector.shape_cast %104 : vector<64x128xbf16> to vector<1x64x128xbf16>
    tpu.vector_store %arg7[%c0_27, %c0_28, %c0_29], %107 {strides = array<i32>} : memref<1x64x128xbf16, #tpu.memory_space<vmem>>, vector<1x64x128xbf16>,
    return
  }
  func.func @transform_0(%arg0: i32) -> (i32, i32, i32, i32) {
    %c0_i32 = arith.constant 0 : i32
    %c0_i32_0 = arith.constant 0 : i32
    %c0_i32_1 = arith.constant 0 : i32
    %c0_i32_2 = arith.constant 0 : i32
    return %arg0, %c0_i32, %c0_i32_0, %c0_i32_1 : i32, i32, i32, i32
  }
  func.func @transform_1(%arg0: i32) -> (i32, i32) {
    %c0_i32 = arith.constant 0 : i32
    %c0_i32_0 = arith.constant 0 : i32
    %c0_i32_1 = arith.constant 0 : i32
    return %c0_i32, %c0_i32_0 : i32, i32
  }
  func.func @transform_2(%arg0: i32) -> (i32, i32) {
    %c0_i32 = arith.constant 0 : i32
    %c0_i32_0 = arith.constant 0 : i32
    %c0_i32_1 = arith.constant 0 : i32
    return %c0_i32, %c0_i32_0 : i32, i32
  }
  func.func @transform_3(%arg0: i32) -> (i32, i32) {
    %c0_i32 = arith.constant 0 : i32
    %c0_i32_0 = arith.constant 0 : i32
    %c0_i32_1 = arith.constant 0 : i32
    return %c0_i32, %c0_i32_0 : i32, i32
  }
  func.func @transform_4(%arg0: i32) -> (i32, i32) {
    %c0_i32 = arith.constant 0 : i32
    %c0_i32_0 = arith.constant 0 : i32
    %c0_i32_1 = arith.constant 0 : i32
    return %c0_i32, %c0_i32_0 : i32, i32
  }
  func.func @transform_5(%arg0: i32) -> (i32, i32, i32) {
    %c0_i32 = arith.constant 0 : i32
    %c0_i32_0 = arith.constant 0 : i32
    %c0_i32_1 = arith.constant 0 : i32
    return %arg0, %c0_i32, %c0_i32_0 : i32, i32, i32
  }
  func.func @transform_6(%arg0: i32) -> (i32, i32, i32) {
    %c0_i32 = arith.constant 0 : i32
    %c0_i32_0 = arith.constant 0 : i32
    %c0_i32_1 = arith.constant 0 : i32
    return %arg0, %c0_i32, %c0_i32_0 : i32, i32, i32
  }
}

module attributes {stable_mosaic.version = 11 : i64} {
  func.func @_fused_matmul_kernel(%arg0: i32, %arg1: memref<32x144xbf16, #tpu.memory_space<vmem>>, %arg2: memref<144x128xbf16, #tpu.memory_space<vmem>>, %arg3: memref<1x128xf32, #tpu.memory_space<vmem>>, %arg4: memref<1x128xf32, #tpu.memory_space<vmem>>, %arg5: memref<1x128xf32, #tpu.memory_space<vmem>>, %arg6: memref<32x128xbf16, #tpu.memory_space<vmem>>) attributes {dimension_semantics = [#tpu.dimension_semantics<parallel>], iteration_bounds = array<i64: 1>, scalar_prefetch = 0 : i64, scratch_operands = 0 : i64, tpu.core_type = #tpu.core_type<tc>, window_params = [{transform_indices = @transform_0, window_bounds = array<i64: 32, 144>}, {pipeline_mode = #tpu.pipeline_mode<synchronous>, transform_indices = @transform_1, window_bounds = array<i64: 144, 128>}, {pipeline_mode = #tpu.pipeline_mode<synchronous>, transform_indices = @transform_2, window_bounds = array<i64: 1, 128>}, {pipeline_mode = #tpu.pipeline_mode<synchronous>, transform_indices = @transform_3, window_bounds = array<i64: 1, 128>}, {pipeline_mode = #tpu.pipeline_mode<synchronous>, transform_indices = @transform_4, window_bounds = array<i64: 1, 128>}, {transform_indices = @transform_5, window_bounds = array<i64: 32, 128>}]} {
    %c0 = arith.constant 0 : index
    %c0_0 = arith.constant 0 : index
    %0 = vector.load %arg1[%c0, %c0_0] : memref<32x144xbf16, #tpu.memory_space<vmem>>, vector<32x144xbf16>
    %c0_1 = arith.constant 0 : index
    %c0_2 = arith.constant 0 : index
    %1 = vector.load %arg2[%c0_1, %c0_2] : memref<144x128xbf16, #tpu.memory_space<vmem>>, vector<144x128xbf16>
    %cst = arith.constant dense<0.000000e+00> : vector<32x128xf32>
    %2 = tpu.matmul %0, %1, %cst {dimension_numbers = #tpu.dot_dimension_numbers<[1], [0], [0], [1], [0, 0, 1, 1], [], []>} : vector<32x144xbf16>, vector<144x128xbf16>, vector<32x128xf32> -> vector<32x128xf32>
    %c0_3 = arith.constant 0 : index
    %c0_4 = arith.constant 0 : index
    %3 = vector.load %arg3[%c0_3, %c0_4] : memref<1x128xf32, #tpu.memory_space<vmem>>, vector<1x128xf32>
    %4 = vector.broadcast %3 : vector<1x128xf32> to vector<32x128xf32>
    %5 = arith.addf %2, %4 : vector<32x128xf32>
    %c0_5 = arith.constant 0 : index
    %c0_6 = arith.constant 0 : index
    %6 = vector.load %arg4[%c0_5, %c0_6] : memref<1x128xf32, #tpu.memory_space<vmem>>, vector<1x128xf32>
    %c0_7 = arith.constant 0 : index
    %c0_8 = arith.constant 0 : index
    %7 = vector.load %arg5[%c0_7, %c0_8] : memref<1x128xf32, #tpu.memory_space<vmem>>, vector<1x128xf32>
    %8 = tpu.iota {dimensions = array<i32: 1>} : vector<32x128xi32>
    %c32_i32 = arith.constant 32 : i32
    %9 = vector.broadcast %c32_i32 : i32 to vector<32x128xi32>
    %10 = arith.cmpi slt, %8, %9 : vector<32x128xi32>
    %11 = arith.extui %10 : vector<32x128xi1> to vector<32x128xi32>
    %12 = arith.sitofp %11 : vector<32x128xi32> to vector<32x128xf32>
    %13 = arith.mulf %5, %12 : vector<32x128xf32>
    %cst_9 = arith.constant dense<0.000000e+00> : vector<32xf32>
    %14 = vector.multi_reduction <add>, %13, %cst_9 [1] : vector<32x128xf32> to vector<32xf32>
    %15 = vector.shape_cast %14 : vector<32xf32> to vector<32x1xf32>
    %cst_10 = arith.constant 3.125000e-02 : f32
    %16 = vector.broadcast %cst_10 : f32 to vector<32x1xf32>
    %17 = arith.mulf %15, %16 : vector<32x1xf32>
    %18 = vector.broadcast %17 : vector<32x1xf32> to vector<32x128xf32>
    %19 = arith.subf %5, %18 : vector<32x128xf32>
    %20 = arith.mulf %19, %12 : vector<32x128xf32>
    %21 = arith.mulf %20, %20 : vector<32x128xf32>
    %cst_11 = arith.constant dense<0.000000e+00> : vector<32xf32>
    %22 = vector.multi_reduction <add>, %21, %cst_11 [1] : vector<32x128xf32> to vector<32xf32>
    %23 = vector.shape_cast %22 : vector<32xf32> to vector<32x1xf32>
    %cst_12 = arith.constant 3.125000e-02 : f32
    %24 = vector.broadcast %cst_12 : f32 to vector<32x1xf32>
    %25 = arith.mulf %23, %24 : vector<32x1xf32>
    %cst_13 = arith.constant 9.99999997E-7 : f32
    %26 = vector.broadcast %cst_13 : f32 to vector<32x1xf32>
    %27 = arith.addf %25, %26 : vector<32x1xf32>
    %28 = math.rsqrt %27 : vector<32x1xf32>
    %29 = vector.broadcast %28 : vector<32x1xf32> to vector<32x128xf32>
    %30 = arith.mulf %20, %29 : vector<32x128xf32>
    %31 = vector.broadcast %6 : vector<1x128xf32> to vector<32x128xf32>
    %32 = arith.mulf %30, %31 : vector<32x128xf32>
    %33 = vector.broadcast %7 : vector<1x128xf32> to vector<32x128xf32>
    %34 = arith.addf %32, %33 : vector<32x128xf32>
    %35 = arith.truncf %34 : vector<32x128xf32> to vector<32x128xbf16>
    %c0_14 = arith.constant 0 : index
    %c0_15 = arith.constant 0 : index
    %36 = vector.load %arg6[%c0_14, %c0_15] : memref<32x128xbf16, #tpu.memory_space<vmem>>, vector<32x128xbf16>
    tpu.vector_store %arg6[%c0_14, %c0_15], %35 {strides = array<i32>} : memref<32x128xbf16, #tpu.memory_space<vmem>>, vector<32x128xbf16>,
    return
  }
  func.func @transform_0(%arg0: i32) -> (i32, i32) {
    %c0_i32 = arith.constant 0 : i32
    %c0_i32_0 = arith.constant 0 : i32
    return %arg0, %c0_i32 : i32, i32
  }
  func.func @transform_1(%arg0: i32) -> (i32, i32) {
    %c0_i32 = arith.constant 0 : i32
    %c0_i32_0 = arith.constant 0 : i32
    %c0_i32_1 = arith.constant 0 : i32
    return %c0_i32, %c0_i32_0 : i32, i32
  }
  func.func @transform_2(%arg0: i32) -> (i32, i32) {
    %c0_i32 = arith.constant 0 : i32
    %c0_i32_0 = arith.constant 0 : i32
    %c0_i32_1 = arith.constant 0 : i32
    return %c0_i32, %c0_i32_0 : i32, i32
  }
  func.func @transform_3(%arg0: i32) -> (i32, i32) {
    %c0_i32 = arith.constant 0 : i32
    %c0_i32_0 = arith.constant 0 : i32
    %c0_i32_1 = arith.constant 0 : i32
    return %c0_i32, %c0_i32_0 : i32, i32
  }
  func.func @transform_4(%arg0: i32) -> (i32, i32) {
    %c0_i32 = arith.constant 0 : i32
    %c0_i32_0 = arith.constant 0 : i32
    %c0_i32_1 = arith.constant 0 : i32
    return %c0_i32, %c0_i32_0 : i32, i32
  }
  func.func @transform_5(%arg0: i32) -> (i32, i32) {
    %c0_i32 = arith.constant 0 : i32
    %c0_i32_0 = arith.constant 0 : i32
    return %arg0, %c0_i32 : i32, i32
  }
}

module attributes {stable_mosaic.version = 11 : i64} {
  func.func @_fused_matmul_kernel(%arg0: i32, %arg1: memref<32x128xbf16, #tpu.memory_space<vmem>>, %arg2: memref<128x128xbf16, #tpu.memory_space<vmem>>, %arg3: memref<1x128xf32, #tpu.memory_space<vmem>>, %arg4: memref<1x128xf32, #tpu.memory_space<vmem>>, %arg5: memref<1x128xf32, #tpu.memory_space<vmem>>, %arg6: memref<32x128xbf16, #tpu.memory_space<vmem>>) attributes {dimension_semantics = [#tpu.dimension_semantics<parallel>], iteration_bounds = array<i64: 1>, scalar_prefetch = 0 : i64, scratch_operands = 0 : i64, tpu.core_type = #tpu.core_type<tc>, window_params = [{transform_indices = @transform_0, window_bounds = array<i64: 32, 128>}, {pipeline_mode = #tpu.pipeline_mode<synchronous>, transform_indices = @transform_1, window_bounds = array<i64: 128, 128>}, {pipeline_mode = #tpu.pipeline_mode<synchronous>, transform_indices = @transform_2, window_bounds = array<i64: 1, 128>}, {pipeline_mode = #tpu.pipeline_mode<synchronous>, transform_indices = @transform_3, window_bounds = array<i64: 1, 128>}, {pipeline_mode = #tpu.pipeline_mode<synchronous>, transform_indices = @transform_4, window_bounds = array<i64: 1, 128>}, {transform_indices = @transform_5, window_bounds = array<i64: 32, 128>}]} {
    %c0 = arith.constant 0 : index
    %c0_0 = arith.constant 0 : index
    %0 = vector.load %arg1[%c0, %c0_0] : memref<32x128xbf16, #tpu.memory_space<vmem>>, vector<32x128xbf16>
    %1 = arith.extf %0 : vector<32x128xbf16> to vector<32x128xf32>
    %c0_1 = arith.constant 0 : index
    %c0_2 = arith.constant 0 : index
    %2 = vector.load %arg4[%c0_1, %c0_2] : memref<1x128xf32, #tpu.memory_space<vmem>>, vector<1x128xf32>
    %c0_3 = arith.constant 0 : index
    %c0_4 = arith.constant 0 : index
    %3 = vector.load %arg5[%c0_3, %c0_4] : memref<1x128xf32, #tpu.memory_space<vmem>>, vector<1x128xf32>
    %4 = tpu.iota {dimensions = array<i32: 1>} : vector<32x128xi32>
    %c32_i32 = arith.constant 32 : i32
    %5 = vector.broadcast %c32_i32 : i32 to vector<32x128xi32>
    %6 = arith.cmpi slt, %4, %5 : vector<32x128xi32>
    %7 = arith.extui %6 : vector<32x128xi1> to vector<32x128xi32>
    %8 = arith.sitofp %7 : vector<32x128xi32> to vector<32x128xf32>
    %9 = arith.mulf %1, %8 : vector<32x128xf32>
    %cst = arith.constant dense<0.000000e+00> : vector<32xf32>
    %10 = vector.multi_reduction <add>, %9, %cst [1] : vector<32x128xf32> to vector<32xf32>
    %11 = vector.shape_cast %10 : vector<32xf32> to vector<32x1xf32>
    %cst_5 = arith.constant 3.125000e-02 : f32
    %12 = vector.broadcast %cst_5 : f32 to vector<32x1xf32>
    %13 = arith.mulf %11, %12 : vector<32x1xf32>
    %14 = vector.broadcast %13 : vector<32x1xf32> to vector<32x128xf32>
    %15 = arith.subf %1, %14 : vector<32x128xf32>
    %16 = arith.mulf %15, %8 : vector<32x128xf32>
    %17 = arith.mulf %16, %16 : vector<32x128xf32>
    %cst_6 = arith.constant dense<0.000000e+00> : vector<32xf32>
    %18 = vector.multi_reduction <add>, %17, %cst_6 [1] : vector<32x128xf32> to vector<32xf32>
    %19 = vector.shape_cast %18 : vector<32xf32> to vector<32x1xf32>
    %cst_7 = arith.constant 3.125000e-02 : f32
    %20 = vector.broadcast %cst_7 : f32 to vector<32x1xf32>
    %21 = arith.mulf %19, %20 : vector<32x1xf32>
    %cst_8 = arith.constant 9.99999997E-7 : f32
    %22 = vector.broadcast %cst_8 : f32 to vector<32x1xf32>
    %23 = arith.addf %21, %22 : vector<32x1xf32>
    %24 = math.rsqrt %23 : vector<32x1xf32>
    %25 = vector.broadcast %24 : vector<32x1xf32> to vector<32x128xf32>
    %26 = arith.mulf %16, %25 : vector<32x128xf32>
    %27 = vector.broadcast %2 : vector<1x128xf32> to vector<32x128xf32>
    %28 = arith.mulf %26, %27 : vector<32x128xf32>
    %29 = vector.broadcast %3 : vector<1x128xf32> to vector<32x128xf32>
    %30 = arith.addf %28, %29 : vector<32x128xf32>
    %31 = arith.truncf %30 : vector<32x128xf32> to vector<32x128xbf16>
    %c0_9 = arith.constant 0 : index
    %c0_10 = arith.constant 0 : index
    %32 = vector.load %arg2[%c0_9, %c0_10] : memref<128x128xbf16, #tpu.memory_space<vmem>>, vector<128x128xbf16>
    %cst_11 = arith.constant dense<0.000000e+00> : vector<32x128xf32>
    %33 = tpu.matmul %31, %32, %cst_11 {dimension_numbers = #tpu.dot_dimension_numbers<[1], [0], [0], [1], [0, 0, 1, 1], [], []>} : vector<32x128xbf16>, vector<128x128xbf16>, vector<32x128xf32> -> vector<32x128xf32>
    %c0_12 = arith.constant 0 : index
    %c0_13 = arith.constant 0 : index
    %34 = vector.load %arg3[%c0_12, %c0_13] : memref<1x128xf32, #tpu.memory_space<vmem>>, vector<1x128xf32>
    %35 = vector.broadcast %34 : vector<1x128xf32> to vector<32x128xf32>
    %36 = arith.addf %33, %35 : vector<32x128xf32>
    %37 = arith.truncf %36 : vector<32x128xf32> to vector<32x128xbf16>
    %c0_14 = arith.constant 0 : index
    %c0_15 = arith.constant 0 : index
    %38 = vector.load %arg6[%c0_14, %c0_15] : memref<32x128xbf16, #tpu.memory_space<vmem>>, vector<32x128xbf16>
    tpu.vector_store %arg6[%c0_14, %c0_15], %37 {strides = array<i32>} : memref<32x128xbf16, #tpu.memory_space<vmem>>, vector<32x128xbf16>,
    return
  }
  func.func @transform_0(%arg0: i32) -> (i32, i32) {
    %c0_i32 = arith.constant 0 : i32
    %c0_i32_0 = arith.constant 0 : i32
    return %arg0, %c0_i32 : i32, i32
  }
  func.func @transform_1(%arg0: i32) -> (i32, i32) {
    %c0_i32 = arith.constant 0 : i32
    %c0_i32_0 = arith.constant 0 : i32
    %c0_i32_1 = arith.constant 0 : i32
    return %c0_i32, %c0_i32_0 : i32, i32
  }
  func.func @transform_2(%arg0: i32) -> (i32, i32) {
    %c0_i32 = arith.constant 0 : i32
    %c0_i32_0 = arith.constant 0 : i32
    %c0_i32_1 = arith.constant 0 : i32
    return %c0_i32, %c0_i32_0 : i32, i32
  }
  func.func @transform_3(%arg0: i32) -> (i32, i32) {
    %c0_i32 = arith.constant 0 : i32
    %c0_i32_0 = arith.constant 0 : i32
    %c0_i32_1 = arith.constant 0 : i32
    return %c0_i32, %c0_i32_0 : i32, i32
  }
  func.func @transform_4(%arg0: i32) -> (i32, i32) {
    %c0_i32 = arith.constant 0 : i32
    %c0_i32_0 = arith.constant 0 : i32
    %c0_i32_1 = arith.constant 0 : i32
    return %c0_i32, %c0_i32_0 : i32, i32
  }
  func.func @transform_5(%arg0: i32) -> (i32, i32) {
    %c0_i32 = arith.constant 0 : i32
    %c0_i32_0 = arith.constant 0 : i32
    return %arg0, %c0_i32 : i32, i32
  }
}

module attributes {stable_mosaic.version = 11 : i64} {
  func.func @_attn_kernel(%arg0: i32, %arg1: i32, %arg2: memref<1x16x128xbf16, #tpu.memory_space<vmem>>, %arg3: memref<1x16x128xbf16, #tpu.memory_space<vmem>>, %arg4: memref<2x128x128xbf16, #tpu.memory_space<vmem>>, %arg5: memref<1x128xf32, #tpu.memory_space<vmem>>, %arg6: memref<1x16x128xbf16, #tpu.memory_space<vmem>>, %arg7: memref<1x16x128xbf16, #tpu.memory_space<vmem>>) attributes {dimension_semantics = [#tpu.dimension_semantics<parallel>, #tpu.dimension_semantics<parallel>], iteration_bounds = array<i64: 2, 1>, scalar_prefetch = 0 : i64, scratch_operands = 0 : i64, tpu.core_type = #tpu.core_type<tc>, window_params = [{transform_indices = @transform_0, window_bounds = array<i64: 1, 16, 128>}, {transform_indices = @transform_1, window_bounds = array<i64: 1, 16, 128>}, {pipeline_mode = #tpu.pipeline_mode<synchronous>, transform_indices = @transform_2, window_bounds = array<i64: 2, 128, 128>}, {pipeline_mode = #tpu.pipeline_mode<synchronous>, transform_indices = @transform_3, window_bounds = array<i64: 1, 128>}, {transform_indices = @transform_4, window_bounds = array<i64: 1, 16, 128>}, {transform_indices = @transform_5, window_bounds = array<i64: 1, 16, 128>}]} {
    %c0 = arith.constant 0 : index
    %c0_0 = arith.constant 0 : index
    %c0_1 = arith.constant 0 : index
    %0 = vector.load %arg2[%c0, %c0_0, %c0_1] : memref<1x16x128xbf16, #tpu.memory_space<vmem>>, vector<1x16x128xbf16>
    %1 = vector.shape_cast %0 : vector<1x16x128xbf16> to vector<16x128xbf16>
    %c0_2 = arith.constant 0 : index
    %c0_3 = arith.constant 0 : index
    %c0_4 = arith.constant 0 : index
    %2 = vector.load %arg3[%c0_2, %c0_3, %c0_4] : memref<1x16x128xbf16, #tpu.memory_space<vmem>>, vector<1x16x128xbf16>
    %3 = vector.shape_cast %2 : vector<1x16x128xbf16> to vector<16x128xbf16>
    %c0_5 = arith.constant 0 : index
    %c0_6 = arith.constant 0 : index
    %4 = vector.load %arg5[%c0_5, %c0_6] : memref<1x128xf32, #tpu.memory_space<vmem>>, vector<1x128xf32>
    %c0_7 = arith.constant 0 : index
    %c0_8 = arith.constant 0 : index
    %c0_9 = arith.constant 0 : index
    %5 = vector.load %arg6[%c0_7, %c0_8, %c0_9] : memref<1x16x128xbf16, #tpu.memory_space<vmem>>, vector<1x16x128xbf16>
    %6 = vector.shape_cast %5 : vector<1x16x128xbf16> to vector<16x128xbf16>
    %7 = arith.extf %6 : vector<16x128xbf16> to vector<16x128xf32>
    %8 = vector.broadcast %4 : vector<1x128xf32> to vector<16x128xf32>
    %9 = arith.addf %8, %7 : vector<16x128xf32>
    %10 = tpu.iota {dimensions = array<i32: 1>} : vector<16x128xi32>
    %c0_i32 = arith.constant 0 : i32
    %11 = vector.broadcast %c0_i32 : i32 to vector<16x128xi32>
    %12 = arith.cmpi sge, %10, %11 : vector<16x128xi32>
    %c16_i32 = arith.constant 16 : i32
    %13 = vector.broadcast %c16_i32 : i32 to vector<16x128xi32>
    %14 = arith.cmpi slt, %10, %13 : vector<16x128xi32>
    %15 = arith.andi %12, %14 : vector<16x128xi1>
    %c0_i32_10 = arith.constant 0 : i32
    %16 = arith.sitofp %c0_i32_10 : i32 to bf16
    %17 = vector.broadcast %16 : bf16 to vector<16x128xbf16>
    %18 = arith.select %15, %1, %17 : vector<16x128xi1>, vector<16x128xbf16>
    %cst = arith.constant dense<0.000000e+00> : vector<16x16xf32>
    %19 = tpu.matmul %18, %3, %cst {dimension_numbers = #tpu.dot_dimension_numbers<[1], [1], [0], [0], [0, 0, 1, 0], [], []>} : vector<16x128xbf16>, vector<16x128xbf16>, vector<16x16xf32> -> vector<16x16xf32>
    %cst_11 = arith.constant 2.500000e-01 : f32
    %20 = vector.broadcast %cst_11 : f32 to vector<16x16xf32>
    %21 = arith.mulf %19, %20 : vector<16x16xf32>
    %cst_12 = arith.constant dense<0xFF800000> : vector<16xf32>
    %22 = vector.multi_reduction <maximumf>, %21, %cst_12 [1] : vector<16x16xf32> to vector<16xf32>
    %23 = vector.shape_cast %22 : vector<16xf32> to vector<16x1xf32>
    %24 = vector.broadcast %23 : vector<16x1xf32> to vector<16x16xf32>
    %25 = arith.subf %21, %24 : vector<16x16xf32>
    %26 = math.exp %25 : vector<16x16xf32>
    %cst_13 = arith.constant dense<0.000000e+00> : vector<16xf32>
    %27 = vector.multi_reduction <add>, %26, %cst_13 [1] : vector<16x16xf32> to vector<16xf32>
    %28 = vector.shape_cast %27 : vector<16xf32> to vector<16x1xf32>
    %29 = tpu.reciprocal %28 {approx = true} : vector<16x1xf32> -> vector<16x1xf32>
    %30 = vector.broadcast %29 : vector<16x1xf32> to vector<16x16xf32>
    %31 = arith.mulf %26, %30 : vector<16x16xf32>
    %32 = arith.truncf %31 : vector<16x16xf32> to vector<16x16xbf16>
    %cst_14 = arith.constant dense<0.000000e+00> : vector<16x128xf32>
    %33 = tpu.matmul %32, %3, %cst_14 {dimension_numbers = #tpu.dot_dimension_numbers<[1], [0], [0], [1], [0, 0, 1, 1], [], []>} : vector<16x16xbf16>, vector<16x128xbf16>, vector<16x128xf32> -> vector<16x128xf32>
    %34 = arith.truncf %33 : vector<16x128xf32> to vector<16x128xbf16>
    %c0_15 = arith.constant 0 : index
    %c0_16 = arith.constant 0 : index
    %c0_17 = arith.constant 0 : index
    %35 = vector.load %arg4[%c0_15, %c0_16, %c0_17] : memref<2x128x128xbf16, #tpu.memory_space<vmem>>, vector<1x128x128xbf16>
    %36 = vector.shape_cast %35 : vector<1x128x128xbf16> to vector<128x128xbf16>
    %cst_18 = arith.constant dense<0.000000e+00> : vector<16x128xf32>
    %37 = tpu.matmul %34, %36, %cst_18 {dimension_numbers = #tpu.dot_dimension_numbers<[1], [0], [0], [1], [0, 0, 1, 1], [], []>} : vector<16x128xbf16>, vector<128x128xbf16>, vector<16x128xf32> -> vector<16x128xf32>
    %38 = arith.addf %9, %37 : vector<16x128xf32>
    %c16_i32_19 = arith.constant 16 : i32
    %39 = vector.broadcast %c16_i32_19 : i32 to vector<16x128xi32>
    %40 = arith.cmpi sge, %10, %39 : vector<16x128xi32>
    %c32_i32 = arith.constant 32 : i32
    %41 = vector.broadcast %c32_i32 : i32 to vector<16x128xi32>
    %42 = arith.cmpi slt, %10, %41 : vector<16x128xi32>
    %43 = arith.andi %40, %42 : vector<16x128xi1>
    %c0_i32_20 = arith.constant 0 : i32
    %44 = arith.sitofp %c0_i32_20 : i32 to bf16
    %45 = vector.broadcast %44 : bf16 to vector<16x128xbf16>
    %46 = arith.select %43, %1, %45 : vector<16x128xi1>, vector<16x128xbf16>
    %cst_21 = arith.constant dense<0.000000e+00> : vector<16x16xf32>
    %47 = tpu.matmul %46, %3, %cst_21 {dimension_numbers = #tpu.dot_dimension_numbers<[1], [1], [0], [0], [0, 0, 1, 0], [], []>} : vector<16x128xbf16>, vector<16x128xbf16>, vector<16x16xf32> -> vector<16x16xf32>
    %cst_22 = arith.constant 2.500000e-01 : f32
    %48 = vector.broadcast %cst_22 : f32 to vector<16x16xf32>
    %49 = arith.mulf %47, %48 : vector<16x16xf32>
    %cst_23 = arith.constant dense<0xFF800000> : vector<16xf32>
    %50 = vector.multi_reduction <maximumf>, %49, %cst_23 [1] : vector<16x16xf32> to vector<16xf32>
    %51 = vector.shape_cast %50 : vector<16xf32> to vector<16x1xf32>
    %52 = vector.broadcast %51 : vector<16x1xf32> to vector<16x16xf32>
    %53 = arith.subf %49, %52 : vector<16x16xf32>
    %54 = math.exp %53 : vector<16x16xf32>
    %cst_24 = arith.constant dense<0.000000e+00> : vector<16xf32>
    %55 = vector.multi_reduction <add>, %54, %cst_24 [1] : vector<16x16xf32> to vector<16xf32>
    %56 = vector.shape_cast %55 : vector<16xf32> to vector<16x1xf32>
    %57 = tpu.reciprocal %56 {approx = true} : vector<16x1xf32> -> vector<16x1xf32>
    %58 = vector.broadcast %57 : vector<16x1xf32> to vector<16x16xf32>
    %59 = arith.mulf %54, %58 : vector<16x16xf32>
    %60 = arith.truncf %59 : vector<16x16xf32> to vector<16x16xbf16>
    %cst_25 = arith.constant dense<0.000000e+00> : vector<16x128xf32>
    %61 = tpu.matmul %60, %3, %cst_25 {dimension_numbers = #tpu.dot_dimension_numbers<[1], [0], [0], [1], [0, 0, 1, 1], [], []>} : vector<16x16xbf16>, vector<16x128xbf16>, vector<16x128xf32> -> vector<16x128xf32>
    %62 = arith.truncf %61 : vector<16x128xf32> to vector<16x128xbf16>
    %c1 = arith.constant 1 : index
    %c0_26 = arith.constant 0 : index
    %c0_27 = arith.constant 0 : index
    %63 = vector.load %arg4[%c1, %c0_26, %c0_27] : memref<2x128x128xbf16, #tpu.memory_space<vmem>>, vector<1x128x128xbf16>
    %64 = vector.shape_cast %63 : vector<1x128x128xbf16> to vector<128x128xbf16>
    %cst_28 = arith.constant dense<0.000000e+00> : vector<16x128xf32>
    %65 = tpu.matmul %62, %64, %cst_28 {dimension_numbers = #tpu.dot_dimension_numbers<[1], [0], [0], [1], [0, 0, 1, 1], [], []>} : vector<16x128xbf16>, vector<128x128xbf16>, vector<16x128xf32> -> vector<16x128xf32>
    %66 = arith.addf %38, %65 : vector<16x128xf32>
    %67 = arith.truncf %66 : vector<16x128xf32> to vector<16x128xbf16>
    %c0_29 = arith.constant 0 : index
    %c0_30 = arith.constant 0 : index
    %c0_31 = arith.constant 0 : index
    %68 = vector.load %arg7[%c0_29, %c0_30, %c0_31] : memref<1x16x128xbf16, #tpu.memory_space<vmem>>, vector<1x16x128xbf16>
    %69 = vector.shape_cast %68 : vector<1x16x128xbf16> to vector<16x128xbf16>
    %70 = vector.shape_cast %67 : vector<16x128xbf16> to vector<1x16x128xbf16>
    tpu.vector_store %arg7[%c0_29, %c0_30, %c0_31], %70 {strides = array<i32>} : memref<1x16x128xbf16, #tpu.memory_space<vmem>>, vector<1x16x128xbf16>,
    return
  }
  func.func @transform_0(%arg0: i32, %arg1: i32) -> (i32, i32, i32) {
    %c0_i32 = arith.constant 0 : i32
    %c0_i32_0 = arith.constant 0 : i32
    return %arg0, %arg1, %c0_i32 : i32, i32, i32
  }
  func.func @transform_1(%arg0: i32, %arg1: i32) -> (i32, i32, i32) {
    %c0_i32 = arith.constant 0 : i32
    %c0_i32_0 = arith.constant 0 : i32
    %c0_i32_1 = arith.constant 0 : i32
    return %arg0, %c0_i32, %c0_i32_0 : i32, i32, i32
  }
  func.func @transform_2(%arg0: i32, %arg1: i32) -> (i32, i32, i32) {
    %c0_i32 = arith.constant 0 : i32
    %c0_i32_0 = arith.constant 0 : i32
    %c0_i32_1 = arith.constant 0 : i32
    %c0_i32_2 = arith.constant 0 : i32
    return %c0_i32, %c0_i32_0, %c0_i32_1 : i32, i32, i32
  }
  func.func @transform_3(%arg0: i32, %arg1: i32) -> (i32, i32) {
    %c0_i32 = arith.constant 0 : i32
    %c0_i32_0 = arith.constant 0 : i32
    %c0_i32_1 = arith.constant 0 : i32
    return %c0_i32, %c0_i32_0 : i32, i32
  }
  func.func @transform_4(%arg0: i32, %arg1: i32) -> (i32, i32, i32) {
    %c0_i32 = arith.constant 0 : i32
    %c0_i32_0 = arith.constant 0 : i32
    return %arg0, %arg1, %c0_i32 : i32, i32, i32
  }
  func.func @transform_5(%arg0: i32, %arg1: i32) -> (i32, i32, i32) {
    %c0_i32 = arith.constant 0 : i32
    %c0_i32_0 = arith.constant 0 : i32
    return %arg0, %arg1, %c0_i32 : i32, i32, i32
  }
}

module attributes {stable_mosaic.version = 11 : i64} {
  func.func @_mixffn_tail_kernel(%arg0: i32, %arg1: memref<1x6x6x128xbf16, #tpu.memory_space<vmem>>, %arg2: memref<9x128xf32, #tpu.memory_space<vmem>>, %arg3: memref<1x128xf32, #tpu.memory_space<vmem>>, %arg4: memref<128x128xbf16, #tpu.memory_space<vmem>>, %arg5: memref<1x128xf32, #tpu.memory_space<vmem>>, %arg6: memref<1x16x128xbf16, #tpu.memory_space<vmem>>, %arg7: memref<1x16x128xbf16, #tpu.memory_space<vmem>>) attributes {dimension_semantics = [#tpu.dimension_semantics<parallel>], iteration_bounds = array<i64: 2>, scalar_prefetch = 0 : i64, scratch_operands = 0 : i64, tpu.core_type = #tpu.core_type<tc>, window_params = [{transform_indices = @transform_0, window_bounds = array<i64: 1, 6, 6, 128>}, {pipeline_mode = #tpu.pipeline_mode<synchronous>, transform_indices = @transform_1, window_bounds = array<i64: 9, 128>}, {pipeline_mode = #tpu.pipeline_mode<synchronous>, transform_indices = @transform_2, window_bounds = array<i64: 1, 128>}, {pipeline_mode = #tpu.pipeline_mode<synchronous>, transform_indices = @transform_3, window_bounds = array<i64: 128, 128>}, {pipeline_mode = #tpu.pipeline_mode<synchronous>, transform_indices = @transform_4, window_bounds = array<i64: 1, 128>}, {transform_indices = @transform_5, window_bounds = array<i64: 1, 16, 128>}, {transform_indices = @transform_6, window_bounds = array<i64: 1, 16, 128>}]} {
    %c0 = arith.constant 0 : index
    %c0_0 = arith.constant 0 : index
    %c0_1 = arith.constant 0 : index
    %c0_2 = arith.constant 0 : index
    %0 = vector.load %arg1[%c0, %c0_0, %c0_1, %c0_2] : memref<1x6x6x128xbf16, #tpu.memory_space<vmem>>, vector<1x6x6x128xbf16>
    %1 = vector.shape_cast %0 : vector<1x6x6x128xbf16> to vector<6x6x128xbf16>
    %cst = arith.constant 0.000000e+00 : f32
    %2 = vector.broadcast %cst : f32 to vector<4x4x128xf32>
    %3 = vector.extract_strided_slice %1 {offsets = [0, 0, 0], sizes = [4, 4, 128], strides = [1, 1, 1]} : vector<6x6x128xbf16> to vector<4x4x128xbf16>
    %4 = arith.extf %3 : vector<4x4x128xbf16> to vector<4x4x128xf32>
    %c0_3 = arith.constant 0 : index
    %c0_4 = arith.constant 0 : index
    %5 = vector.load %arg2[%c0_3, %c0_4] : memref<9x128xf32, #tpu.memory_space<vmem>>, vector<1x128xf32>
    %6 = vector.shape_cast %5 : vector<1x128xf32> to vector<128xf32>
    %7 = vector.shape_cast %6 : vector<128xf32> to vector<1x1x128xf32>
    %8 = vector.broadcast %7 : vector<1x1x128xf32> to vector<4x4x128xf32>
    %9 = arith.mulf %4, %8 : vector<4x4x128xf32>
    %10 = arith.addf %2, %9 : vector<4x4x128xf32>
    %11 = vector.extract_strided_slice %1 {offsets = [0, 1, 0], sizes = [4, 4, 128], strides = [1, 1, 1]} : vector<6x6x128xbf16> to vector<4x4x128xbf16>
    %12 = arith.extf %11 : vector<4x4x128xbf16> to vector<4x4x128xf32>
    %c1 = arith.constant 1 : index
    %c0_5 = arith.constant 0 : index
    %13 = vector.load %arg2[%c1, %c0_5] : memref<9x128xf32, #tpu.memory_space<vmem>>, vector<1x128xf32>
    %14 = vector.shape_cast %13 : vector<1x128xf32> to vector<128xf32>
    %15 = vector.shape_cast %14 : vector<128xf32> to vector<1x1x128xf32>
    %16 = vector.broadcast %15 : vector<1x1x128xf32> to vector<4x4x128xf32>
    %17 = arith.mulf %12, %16 : vector<4x4x128xf32>
    %18 = arith.addf %10, %17 : vector<4x4x128xf32>
    %19 = vector.extract_strided_slice %1 {offsets = [0, 2, 0], sizes = [4, 4, 128], strides = [1, 1, 1]} : vector<6x6x128xbf16> to vector<4x4x128xbf16>
    %20 = arith.extf %19 : vector<4x4x128xbf16> to vector<4x4x128xf32>
    %c2 = arith.constant 2 : index
    %c0_6 = arith.constant 0 : index
    %21 = vector.load %arg2[%c2, %c0_6] : memref<9x128xf32, #tpu.memory_space<vmem>>, vector<1x128xf32>
    %22 = vector.shape_cast %21 : vector<1x128xf32> to vector<128xf32>
    %23 = vector.shape_cast %22 : vector<128xf32> to vector<1x1x128xf32>
    %24 = vector.broadcast %23 : vector<1x1x128xf32> to vector<4x4x128xf32>
    %25 = arith.mulf %20, %24 : vector<4x4x128xf32>
    %26 = arith.addf %18, %25 : vector<4x4x128xf32>
    %27 = vector.extract_strided_slice %1 {offsets = [1, 0, 0], sizes = [4, 4, 128], strides = [1, 1, 1]} : vector<6x6x128xbf16> to vector<4x4x128xbf16>
    %28 = arith.extf %27 : vector<4x4x128xbf16> to vector<4x4x128xf32>
    %c3 = arith.constant 3 : index
    %c0_7 = arith.constant 0 : index
    %29 = vector.load %arg2[%c3, %c0_7] : memref<9x128xf32, #tpu.memory_space<vmem>>, vector<1x128xf32>
    %30 = vector.shape_cast %29 : vector<1x128xf32> to vector<128xf32>
    %31 = vector.shape_cast %30 : vector<128xf32> to vector<1x1x128xf32>
    %32 = vector.broadcast %31 : vector<1x1x128xf32> to vector<4x4x128xf32>
    %33 = arith.mulf %28, %32 : vector<4x4x128xf32>
    %34 = arith.addf %26, %33 : vector<4x4x128xf32>
    %35 = vector.extract_strided_slice %1 {offsets = [1, 1, 0], sizes = [4, 4, 128], strides = [1, 1, 1]} : vector<6x6x128xbf16> to vector<4x4x128xbf16>
    %36 = arith.extf %35 : vector<4x4x128xbf16> to vector<4x4x128xf32>
    %c4 = arith.constant 4 : index
    %c0_8 = arith.constant 0 : index
    %37 = vector.load %arg2[%c4, %c0_8] : memref<9x128xf32, #tpu.memory_space<vmem>>, vector<1x128xf32>
    %38 = vector.shape_cast %37 : vector<1x128xf32> to vector<128xf32>
    %39 = vector.shape_cast %38 : vector<128xf32> to vector<1x1x128xf32>
    %40 = vector.broadcast %39 : vector<1x1x128xf32> to vector<4x4x128xf32>
    %41 = arith.mulf %36, %40 : vector<4x4x128xf32>
    %42 = arith.addf %34, %41 : vector<4x4x128xf32>
    %43 = vector.extract_strided_slice %1 {offsets = [1, 2, 0], sizes = [4, 4, 128], strides = [1, 1, 1]} : vector<6x6x128xbf16> to vector<4x4x128xbf16>
    %44 = arith.extf %43 : vector<4x4x128xbf16> to vector<4x4x128xf32>
    %c5 = arith.constant 5 : index
    %c0_9 = arith.constant 0 : index
    %45 = vector.load %arg2[%c5, %c0_9] : memref<9x128xf32, #tpu.memory_space<vmem>>, vector<1x128xf32>
    %46 = vector.shape_cast %45 : vector<1x128xf32> to vector<128xf32>
    %47 = vector.shape_cast %46 : vector<128xf32> to vector<1x1x128xf32>
    %48 = vector.broadcast %47 : vector<1x1x128xf32> to vector<4x4x128xf32>
    %49 = arith.mulf %44, %48 : vector<4x4x128xf32>
    %50 = arith.addf %42, %49 : vector<4x4x128xf32>
    %51 = vector.extract_strided_slice %1 {offsets = [2, 0, 0], sizes = [4, 4, 128], strides = [1, 1, 1]} : vector<6x6x128xbf16> to vector<4x4x128xbf16>
    %52 = arith.extf %51 : vector<4x4x128xbf16> to vector<4x4x128xf32>
    %c6 = arith.constant 6 : index
    %c0_10 = arith.constant 0 : index
    %53 = vector.load %arg2[%c6, %c0_10] : memref<9x128xf32, #tpu.memory_space<vmem>>, vector<1x128xf32>
    %54 = vector.shape_cast %53 : vector<1x128xf32> to vector<128xf32>
    %55 = vector.shape_cast %54 : vector<128xf32> to vector<1x1x128xf32>
    %56 = vector.broadcast %55 : vector<1x1x128xf32> to vector<4x4x128xf32>
    %57 = arith.mulf %52, %56 : vector<4x4x128xf32>
    %58 = arith.addf %50, %57 : vector<4x4x128xf32>
    %59 = vector.extract_strided_slice %1 {offsets = [2, 1, 0], sizes = [4, 4, 128], strides = [1, 1, 1]} : vector<6x6x128xbf16> to vector<4x4x128xbf16>
    %60 = arith.extf %59 : vector<4x4x128xbf16> to vector<4x4x128xf32>
    %c7 = arith.constant 7 : index
    %c0_11 = arith.constant 0 : index
    %61 = vector.load %arg2[%c7, %c0_11] : memref<9x128xf32, #tpu.memory_space<vmem>>, vector<1x128xf32>
    %62 = vector.shape_cast %61 : vector<1x128xf32> to vector<128xf32>
    %63 = vector.shape_cast %62 : vector<128xf32> to vector<1x1x128xf32>
    %64 = vector.broadcast %63 : vector<1x1x128xf32> to vector<4x4x128xf32>
    %65 = arith.mulf %60, %64 : vector<4x4x128xf32>
    %66 = arith.addf %58, %65 : vector<4x4x128xf32>
    %67 = vector.extract_strided_slice %1 {offsets = [2, 2, 0], sizes = [4, 4, 128], strides = [1, 1, 1]} : vector<6x6x128xbf16> to vector<4x4x128xbf16>
    %68 = arith.extf %67 : vector<4x4x128xbf16> to vector<4x4x128xf32>
    %c8 = arith.constant 8 : index
    %c0_12 = arith.constant 0 : index
    %69 = vector.load %arg2[%c8, %c0_12] : memref<9x128xf32, #tpu.memory_space<vmem>>, vector<1x128xf32>
    %70 = vector.shape_cast %69 : vector<1x128xf32> to vector<128xf32>
    %71 = vector.shape_cast %70 : vector<128xf32> to vector<1x1x128xf32>
    %72 = vector.broadcast %71 : vector<1x1x128xf32> to vector<4x4x128xf32>
    %73 = arith.mulf %68, %72 : vector<4x4x128xf32>
    %74 = arith.addf %66, %73 : vector<4x4x128xf32>
    %c0_13 = arith.constant 0 : index
    %c0_14 = arith.constant 0 : index
    %75 = vector.load %arg3[%c0_13, %c0_14] : memref<1x128xf32, #tpu.memory_space<vmem>>, vector<1x128xf32>
    %76 = vector.shape_cast %75 : vector<1x128xf32> to vector<1x1x128xf32>
    %77 = vector.broadcast %76 : vector<1x1x128xf32> to vector<4x4x128xf32>
    %78 = arith.addf %74, %77 : vector<4x4x128xf32>
    %cst_15 = arith.constant 0.636619746 : f32
    %79 = math.sqrt %cst_15 : f32
    %cst_16 = arith.constant 5.000000e-01 : f32
    %80 = vector.broadcast %cst_16 : f32 to vector<4x4x128xf32>
    %81 = arith.mulf %80, %78 : vector<4x4x128xf32>
    %cst_17 = arith.constant 4.471500e-02 : f32
    %82 = vector.broadcast %cst_17 : f32 to vector<4x4x128xf32>
    %83 = arith.mulf %82, %78 : vector<4x4x128xf32>
    %84 = arith.mulf %83, %78 : vector<4x4x128xf32>
    %85 = arith.mulf %84, %78 : vector<4x4x128xf32>
    %86 = arith.addf %78, %85 : vector<4x4x128xf32>
    %87 = vector.broadcast %79 : f32 to vector<4x4x128xf32>
    %88 = arith.mulf %87, %86 : vector<4x4x128xf32>
    %89 = math.tanh %88 : vector<4x4x128xf32>
    %cst_18 = arith.constant 1.000000e+00 : f32
    %90 = vector.broadcast %cst_18 : f32 to vector<4x4x128xf32>
    %91 = arith.addf %90, %89 : vector<4x4x128xf32>
    %92 = arith.mulf %81, %91 : vector<4x4x128xf32>
    %93 = vector.shape_cast %92 : vector<4x4x128xf32> to vector<16x128xf32>
    %94 = arith.truncf %93 : vector<16x128xf32> to vector<16x128xbf16>
    %c0_19 = arith.constant 0 : index
    %c0_20 = arith.constant 0 : index
    %95 = vector.load %arg4[%c0_19, %c0_20] : memref<128x128xbf16, #tpu.memory_space<vmem>>, vector<128x128xbf16>
    %cst_21 = arith.constant dense<0.000000e+00> : vector<16x128xf32>
    %96 = tpu.matmul %94, %95, %cst_21 {dimension_numbers = #tpu.dot_dimension_numbers<[1], [0], [0], [1], [0, 0, 1, 1], [], []>} : vector<16x128xbf16>, vector<128x128xbf16>, vector<16x128xf32> -> vector<16x128xf32>
    %c0_22 = arith.constant 0 : index
    %c0_23 = arith.constant 0 : index
    %97 = vector.load %arg5[%c0_22, %c0_23] : memref<1x128xf32, #tpu.memory_space<vmem>>, vector<1x128xf32>
    %98 = vector.broadcast %97 : vector<1x128xf32> to vector<16x128xf32>
    %99 = arith.addf %96, %98 : vector<16x128xf32>
    %c0_24 = arith.constant 0 : index
    %c0_25 = arith.constant 0 : index
    %c0_26 = arith.constant 0 : index
    %100 = vector.load %arg6[%c0_24, %c0_25, %c0_26] : memref<1x16x128xbf16, #tpu.memory_space<vmem>>, vector<1x16x128xbf16>
    %101 = vector.shape_cast %100 : vector<1x16x128xbf16> to vector<16x128xbf16>
    %102 = arith.extf %101 : vector<16x128xbf16> to vector<16x128xf32>
    %103 = arith.addf %99, %102 : vector<16x128xf32>
    %104 = arith.truncf %103 : vector<16x128xf32> to vector<16x128xbf16>
    %c0_27 = arith.constant 0 : index
    %c0_28 = arith.constant 0 : index
    %c0_29 = arith.constant 0 : index
    %105 = vector.load %arg7[%c0_27, %c0_28, %c0_29] : memref<1x16x128xbf16, #tpu.memory_space<vmem>>, vector<1x16x128xbf16>
    %106 = vector.shape_cast %105 : vector<1x16x128xbf16> to vector<16x128xbf16>
    %107 = vector.shape_cast %104 : vector<16x128xbf16> to vector<1x16x128xbf16>
    tpu.vector_store %arg7[%c0_27, %c0_28, %c0_29], %107 {strides = array<i32>} : memref<1x16x128xbf16, #tpu.memory_space<vmem>>, vector<1x16x128xbf16>,
    return
  }
  func.func @transform_0(%arg0: i32) -> (i32, i32, i32, i32) {
    %c0_i32 = arith.constant 0 : i32
    %c0_i32_0 = arith.constant 0 : i32
    %c0_i32_1 = arith.constant 0 : i32
    %c0_i32_2 = arith.constant 0 : i32
    return %arg0, %c0_i32, %c0_i32_0, %c0_i32_1 : i32, i32, i32, i32
  }
  func.func @transform_1(%arg0: i32) -> (i32, i32) {
    %c0_i32 = arith.constant 0 : i32
    %c0_i32_0 = arith.constant 0 : i32
    %c0_i32_1 = arith.constant 0 : i32
    return %c0_i32, %c0_i32_0 : i32, i32
  }
  func.func @transform_2(%arg0: i32) -> (i32, i32) {
    %c0_i32 = arith.constant 0 : i32
    %c0_i32_0 = arith.constant 0 : i32
    %c0_i32_1 = arith.constant 0 : i32
    return %c0_i32, %c0_i32_0 : i32, i32
  }
  func.func @transform_3(%arg0: i32) -> (i32, i32) {
    %c0_i32 = arith.constant 0 : i32
    %c0_i32_0 = arith.constant 0 : i32
    %c0_i32_1 = arith.constant 0 : i32
    return %c0_i32, %c0_i32_0 : i32, i32
  }
  func.func @transform_4(%arg0: i32) -> (i32, i32) {
    %c0_i32 = arith.constant 0 : i32
    %c0_i32_0 = arith.constant 0 : i32
    %c0_i32_1 = arith.constant 0 : i32
    return %c0_i32, %c0_i32_0 : i32, i32
  }
  func.func @transform_5(%arg0: i32) -> (i32, i32, i32) {
    %c0_i32 = arith.constant 0 : i32
    %c0_i32_0 = arith.constant 0 : i32
    %c0_i32_1 = arith.constant 0 : i32
    return %arg0, %c0_i32, %c0_i32_0 : i32, i32, i32
  }
  func.func @transform_6(%arg0: i32) -> (i32, i32, i32) {
    %c0_i32 = arith.constant 0 : i32
    %c0_i32_0 = arith.constant 0 : i32
    %c0_i32_1 = arith.constant 0 : i32
    return %arg0, %c0_i32, %c0_i32_0 : i32, i32, i32
  }
}

module attributes {stable_mosaic.version = 11 : i64} {
  func.func @_layernorm_kernel(%arg0: i32, %arg1: memref<32x128xbf16, #tpu.memory_space<vmem>>, %arg2: memref<1x128xf32, #tpu.memory_space<vmem>>, %arg3: memref<1x128xf32, #tpu.memory_space<vmem>>, %arg4: memref<32x128xbf16, #tpu.memory_space<vmem>>) attributes {dimension_semantics = [#tpu.dimension_semantics<parallel>], iteration_bounds = array<i64: 1>, scalar_prefetch = 0 : i64, scratch_operands = 0 : i64, tpu.core_type = #tpu.core_type<tc>, window_params = [{transform_indices = @transform_0, window_bounds = array<i64: 32, 128>}, {pipeline_mode = #tpu.pipeline_mode<synchronous>, transform_indices = @transform_1, window_bounds = array<i64: 1, 128>}, {pipeline_mode = #tpu.pipeline_mode<synchronous>, transform_indices = @transform_2, window_bounds = array<i64: 1, 128>}, {transform_indices = @transform_3, window_bounds = array<i64: 32, 128>}]} {
    %c0 = arith.constant 0 : index
    %c0_0 = arith.constant 0 : index
    %0 = vector.load %arg1[%c0, %c0_0] : memref<32x128xbf16, #tpu.memory_space<vmem>>, vector<32x128xbf16>
    %1 = arith.extf %0 : vector<32x128xbf16> to vector<32x128xf32>
    %c0_1 = arith.constant 0 : index
    %c0_2 = arith.constant 0 : index
    %2 = vector.load %arg2[%c0_1, %c0_2] : memref<1x128xf32, #tpu.memory_space<vmem>>, vector<1x128xf32>
    %c0_3 = arith.constant 0 : index
    %c0_4 = arith.constant 0 : index
    %3 = vector.load %arg3[%c0_3, %c0_4] : memref<1x128xf32, #tpu.memory_space<vmem>>, vector<1x128xf32>
    %4 = tpu.iota {dimensions = array<i32: 1>} : vector<32x128xi32>
    %c32_i32 = arith.constant 32 : i32
    %5 = vector.broadcast %c32_i32 : i32 to vector<32x128xi32>
    %6 = arith.cmpi slt, %4, %5 : vector<32x128xi32>
    %7 = arith.extui %6 : vector<32x128xi1> to vector<32x128xi32>
    %8 = arith.sitofp %7 : vector<32x128xi32> to vector<32x128xf32>
    %9 = arith.mulf %1, %8 : vector<32x128xf32>
    %cst = arith.constant dense<0.000000e+00> : vector<32xf32>
    %10 = vector.multi_reduction <add>, %9, %cst [1] : vector<32x128xf32> to vector<32xf32>
    %11 = vector.shape_cast %10 : vector<32xf32> to vector<32x1xf32>
    %cst_5 = arith.constant 3.125000e-02 : f32
    %12 = vector.broadcast %cst_5 : f32 to vector<32x1xf32>
    %13 = arith.mulf %11, %12 : vector<32x1xf32>
    %14 = vector.broadcast %13 : vector<32x1xf32> to vector<32x128xf32>
    %15 = arith.subf %1, %14 : vector<32x128xf32>
    %16 = arith.mulf %15, %8 : vector<32x128xf32>
    %17 = arith.mulf %16, %16 : vector<32x128xf32>
    %cst_6 = arith.constant dense<0.000000e+00> : vector<32xf32>
    %18 = vector.multi_reduction <add>, %17, %cst_6 [1] : vector<32x128xf32> to vector<32xf32>
    %19 = vector.shape_cast %18 : vector<32xf32> to vector<32x1xf32>
    %cst_7 = arith.constant 3.125000e-02 : f32
    %20 = vector.broadcast %cst_7 : f32 to vector<32x1xf32>
    %21 = arith.mulf %19, %20 : vector<32x1xf32>
    %cst_8 = arith.constant 9.99999997E-7 : f32
    %22 = vector.broadcast %cst_8 : f32 to vector<32x1xf32>
    %23 = arith.addf %21, %22 : vector<32x1xf32>
    %24 = math.rsqrt %23 : vector<32x1xf32>
    %25 = vector.broadcast %24 : vector<32x1xf32> to vector<32x128xf32>
    %26 = arith.mulf %16, %25 : vector<32x128xf32>
    %27 = vector.broadcast %2 : vector<1x128xf32> to vector<32x128xf32>
    %28 = arith.mulf %26, %27 : vector<32x128xf32>
    %29 = vector.broadcast %3 : vector<1x128xf32> to vector<32x128xf32>
    %30 = arith.addf %28, %29 : vector<32x128xf32>
    %31 = arith.truncf %30 : vector<32x128xf32> to vector<32x128xbf16>
    %c0_9 = arith.constant 0 : index
    %c0_10 = arith.constant 0 : index
    %32 = vector.load %arg4[%c0_9, %c0_10] : memref<32x128xbf16, #tpu.memory_space<vmem>>, vector<32x128xbf16>
    tpu.vector_store %arg4[%c0_9, %c0_10], %31 {strides = array<i32>} : memref<32x128xbf16, #tpu.memory_space<vmem>>, vector<32x128xbf16>,
    return
  }
  func.func @transform_0(%arg0: i32) -> (i32, i32) {
    %c0_i32 = arith.constant 0 : i32
    %c0_i32_0 = arith.constant 0 : i32
    return %arg0, %c0_i32 : i32, i32
  }
  func.func @transform_1(%arg0: i32) -> (i32, i32) {
    %c0_i32 = arith.constant 0 : i32
    %c0_i32_0 = arith.constant 0 : i32
    %c0_i32_1 = arith.constant 0 : i32
    return %c0_i32, %c0_i32_0 : i32, i32
  }
  func.func @transform_2(%arg0: i32) -> (i32, i32) {
    %c0_i32 = arith.constant 0 : i32
    %c0_i32_0 = arith.constant 0 : i32
    %c0_i32_1 = arith.constant 0 : i32
    return %c0_i32, %c0_i32_0 : i32, i32
  }
  func.func @transform_3(%arg0: i32) -> (i32, i32) {
    %c0_i32 = arith.constant 0 : i32
    %c0_i32_0 = arith.constant 0 : i32
    return %arg0, %c0_i32 : i32, i32
  }
}

module attributes {stable_mosaic.version = 11 : i64} {
  func.func @_head_kernel(%arg0: i32, %arg1: memref<128x256xbf16, #tpu.memory_space<vmem>>, %arg2: memref<256x128xbf16, #tpu.memory_space<vmem>>, %arg3: memref<1x128xf32, #tpu.memory_space<vmem>>, %arg4: memref<128x128xbf16, #tpu.memory_space<vmem>>, %arg5: memref<1x128xf32, #tpu.memory_space<vmem>>, %arg6: memref<128x128xf32, #tpu.memory_space<vmem>>) attributes {dimension_semantics = [#tpu.dimension_semantics<parallel>], iteration_bounds = array<i64: 1>, scalar_prefetch = 0 : i64, scratch_operands = 0 : i64, tpu.core_type = #tpu.core_type<tc>, window_params = [{transform_indices = @transform_0, window_bounds = array<i64: 128, 256>}, {pipeline_mode = #tpu.pipeline_mode<synchronous>, transform_indices = @transform_1, window_bounds = array<i64: 256, 128>}, {pipeline_mode = #tpu.pipeline_mode<synchronous>, transform_indices = @transform_2, window_bounds = array<i64: 1, 128>}, {pipeline_mode = #tpu.pipeline_mode<synchronous>, transform_indices = @transform_3, window_bounds = array<i64: 128, 128>}, {pipeline_mode = #tpu.pipeline_mode<synchronous>, transform_indices = @transform_4, window_bounds = array<i64: 1, 128>}, {transform_indices = @transform_5, window_bounds = array<i64: 128, 128>}]} {
    %c0 = arith.constant 0 : index
    %c0_0 = arith.constant 0 : index
    %0 = vector.load %arg1[%c0, %c0_0] : memref<128x256xbf16, #tpu.memory_space<vmem>>, vector<128x256xbf16>
    %c0_1 = arith.constant 0 : index
    %c0_2 = arith.constant 0 : index
    %1 = vector.load %arg2[%c0_1, %c0_2] : memref<256x128xbf16, #tpu.memory_space<vmem>>, vector<256x128xbf16>
    %cst = arith.constant dense<0.000000e+00> : vector<128x128xf32>
    %2 = tpu.matmul %0, %1, %cst {dimension_numbers = #tpu.dot_dimension_numbers<[1], [0], [0], [1], [0, 0, 1, 1], [], []>} : vector<128x256xbf16>, vector<256x128xbf16>, vector<128x128xf32> -> vector<128x128xf32>
    %c0_3 = arith.constant 0 : index
    %c0_4 = arith.constant 0 : index
    %3 = vector.load %arg3[%c0_3, %c0_4] : memref<1x128xf32, #tpu.memory_space<vmem>>, vector<1x128xf32>
    %4 = vector.broadcast %3 : vector<1x128xf32> to vector<128x128xf32>
    %5 = arith.addf %2, %4 : vector<128x128xf32>
    %cst_5 = arith.constant 0.000000e+00 : f32
    %6 = vector.broadcast %cst_5 : f32 to vector<128x128xf32>
    %7 = arith.maximumf %5, %6 : vector<128x128xf32>
    %8 = arith.truncf %7 : vector<128x128xf32> to vector<128x128xbf16>
    %c0_6 = arith.constant 0 : index
    %c0_7 = arith.constant 0 : index
    %9 = vector.load %arg4[%c0_6, %c0_7] : memref<128x128xbf16, #tpu.memory_space<vmem>>, vector<128x128xbf16>
    %cst_8 = arith.constant dense<0.000000e+00> : vector<128x128xf32>
    %10 = tpu.matmul %8, %9, %cst_8 {dimension_numbers = #tpu.dot_dimension_numbers<[1], [0], [0], [1], [0, 0, 1, 1], [], []>} : vector<128x128xbf16>, vector<128x128xbf16>, vector<128x128xf32> -> vector<128x128xf32>
    %c0_9 = arith.constant 0 : index
    %c0_10 = arith.constant 0 : index
    %11 = vector.load %arg5[%c0_9, %c0_10] : memref<1x128xf32, #tpu.memory_space<vmem>>, vector<1x128xf32>
    %12 = vector.broadcast %11 : vector<1x128xf32> to vector<128x128xf32>
    %13 = arith.addf %10, %12 : vector<128x128xf32>
    %c0_11 = arith.constant 0 : index
    %c0_12 = arith.constant 0 : index
    %14 = vector.load %arg6[%c0_11, %c0_12] : memref<128x128xf32, #tpu.memory_space<vmem>>, vector<128x128xf32>
    tpu.vector_store %arg6[%c0_11, %c0_12], %13 {strides = array<i32>} : memref<128x128xf32, #tpu.memory_space<vmem>>, vector<128x128xf32>,
    return
  }
  func.func @transform_0(%arg0: i32) -> (i32, i32) {
    %c0_i32 = arith.constant 0 : i32
    %c0_i32_0 = arith.constant 0 : i32
    return %arg0, %c0_i32 : i32, i32
  }
  func.func @transform_1(%arg0: i32) -> (i32, i32) {
    %c0_i32 = arith.constant 0 : i32
    %c0_i32_0 = arith.constant 0 : i32
    %c0_i32_1 = arith.constant 0 : i32
    return %c0_i32, %c0_i32_0 : i32, i32
  }
  func.func @transform_2(%arg0: i32) -> (i32, i32) {
    %c0_i32 = arith.constant 0 : i32
    %c0_i32_0 = arith.constant 0 : i32
    %c0_i32_1 = arith.constant 0 : i32
    return %c0_i32, %c0_i32_0 : i32, i32
  }
  func.func @transform_3(%arg0: i32) -> (i32, i32) {
    %c0_i32 = arith.constant 0 : i32
    %c0_i32_0 = arith.constant 0 : i32
    %c0_i32_1 = arith.constant 0 : i32
    return %c0_i32, %c0_i32_0 : i32, i32
  }
  func.func @transform_4(%arg0: i32) -> (i32, i32) {
    %c0_i32 = arith.constant 0 : i32
    %c0_i32_0 = arith.constant 0 : i32
    %c0_i32_1 = arith.constant 0 : i32
    return %c0_i32, %c0_i32_0 : i32, i32
  }
  func.func @transform_5(%arg0: i32) -> (i32, i32) {
    %c0_i32 = arith.constant 0 : i32
    %c0_i32_0 = arith.constant 0 : i32
    return %arg0, %c0_i32 : i32, i32
  }
}

</mosaic_0001>

<bundles_post_ra>
// kernel: _lambda_.20
= control target key start
LH: loop header
LB: loop body
LE: loop exit
PB: predicated region body
PF: predicated region fallthrough
CT: control target
= control target key end

     0   :  { %v48_v0 = vlaneseq  ;;  %v543_v8 = vmov 0.0   ;;  %s856_s0 = inlined_call_operand.vmem [shape: bf16[128,128], index: 0, kind: input, shape index: {}]   ;;  %s857_s1 = inlined_call_operand.vmem [shape: f32[1,128], index: 1, kind: input, shape index: {}]   ;;  %s858_s2 = inlined_call_operand.vmem [shape: f32[1,128], index: 2, kind: input, shape index: {}]   ;;  %s859_s3 = inlined_call_operand.vmem [shape: bf16[128,128], index: 3, kind: output, shape index: {}]  }
   0x1   :  { %v567_v1 = vld [vmem:[%s856_s0] sm:$0xff]   ;;  %v572_v2 = vld [vmem:[%s856_s0 + $0x8] sm:$0xff]   ;;  %v583_v10 = vld [vmem:[%s856_s0 + $0x10] sm:$0xff]  }
   0x2   :  { %v426_v3 = vunpack.c.l.bf16 %v567_v1  ;;  %v49_v4 = vand.u32 127, %v48_v0  ;;  %v430_v5 = vunpack.c.l.bf16 %v572_v2  ;;  %v427_v6 = vunpack.c.h.bf16 %v567_v1  ;;  %v598_v17 = vld [vmem:[%s856_s0 + $0x18] sm:$0xff]   ;;  %v611_v22 = vld [vmem:[%s856_s0 + $0x20] sm:$0xff]   ;;  %v624_v27 = vld [vmem:[%s856_s0 + $0x28] sm:$0xff]  }
   0x3   :  { %v431_v7 = vunpack.c.h.bf16 %v572_v2  ;;  %v434_v15 = vunpack.c.l.bf16 %v583_v10  ;;  %v435_v16 = vunpack.c.h.bf16 %v583_v10  ;;  %v438_v20 = vunpack.c.l.bf16 %v598_v17  ;;  %v637_v32 = vld [vmem:[%s856_s0 + $0x30] sm:$0xff]   ;;  %v650_v37 = vld [vmem:[%s856_s0 + $0x38] sm:$0xff]  }
   0x4   :  { %vm50_vm0 = vcmp.lt.s32.totalorder %v49_v4, 16  ;;  %v439_v21 = vunpack.c.h.bf16 %v598_v17  ;;  %v442_v25 = vunpack.c.l.bf16 %v611_v22  ;;  %v443_v26 = vunpack.c.h.bf16 %v611_v22 }
   0x5   :  { %v578_v9 = vsel %vm50_vm0, 1.0, %v543_v8  ;;  %v446_v30 = vunpack.c.l.bf16 %v624_v27  ;;  %v447_v31 = vunpack.c.h.bf16 %v624_v27  ;;  %v450_v35 = vunpack.c.l.bf16 %v637_v32 }
   0x6   :  { %v53_v11 = vmul.f32 %v426_v3, %v578_v9  ;;  %v55_v12 = vmul.f32 %v430_v5, %v578_v9  ;;  %v54_v13 = vmul.f32 %v427_v6, %v578_v9  ;;  %v56_v14 = vmul.f32 %v431_v7, %v578_v9 }
   0x7   :  { %v57_v18 = vmul.f32 %v434_v15, %v578_v9  ;;  %v58_v19 = vmul.f32 %v435_v16, %v578_v9  ;;  %v59_v23 = vmul.f32 %v438_v20, %v578_v9  ;;  %v60_v24 = vmul.f32 %v439_v21, %v578_v9 }
   0x8   :  { %69 = vadd.xlane.f32.xlu0 %v53_v11  ;;  %73 = vadd.xlane.f32.xlu1 %v55_v12  ;;  %v61_v28 = vmul.f32 %v442_v25, %v578_v9  ;;  %v62_v29 = vmul.f32 %v443_v26, %v578_v9  ;;  %v63_v33 = vmul.f32 %v446_v30, %v578_v9  ;;  %v451_v36 = vunpack.c.h.bf16 %v637_v32 }
   0x9   :  { %v64_v34 = vmul.f32 %v447_v31, %v578_v9  ;;  %v65_v38 = vmul.f32 %v450_v35, %v578_v9  ;;  %v454_v40 = vunpack.c.l.bf16 %v650_v37  ;;  %v455_v41 = vunpack.c.h.bf16 %v650_v37 }
   0xa   :  { %v66_v39 = vmul.f32 %v451_v36, %v578_v9 }
   0xb   :  { %v67_v42 = vmul.f32 %v454_v40, %v578_v9  ;;  %v68_v43 = vmul.f32 %v455_v41, %v578_v9 }
   0xc   :  { %71 = vadd.xlane.f32.xlu0 %v54_v13  ;;  %75 = vadd.xlane.f32.xlu1 %v56_v14 }
  0x10   :  { %77 = vadd.xlane.f32.xlu0 %v57_v18  ;;  %79 = vadd.xlane.f32.xlu1 %v58_v19 }
  0x14   :  { %81 = vadd.xlane.f32.xlu0 %v59_v23  ;;  %83 = vadd.xlane.f32.xlu1 %v60_v24 }
  0x18   :  { %85 = vadd.xlane.f32.xlu0 %v61_v28  ;;  %87 = vadd.xlane.f32.xlu1 %v62_v29 }
  0x1c   :  { %89 = vadd.xlane.f32.xlu0 %v63_v33  ;;  %91 = vadd.xlane.f32.xlu1 %v64_v34 }
  0x20   :  { %93 = vadd.xlane.f32.xlu0 %v65_v38  ;;  %95 = vadd.xlane.f32.xlu1 %v66_v39 }
  0x24   :  { %97 = vadd.xlane.f32.xlu0 %v67_v42  ;;  %99 = vadd.xlane.f32.xlu1 %v68_v43 }
  0x91   :  { %v70_v44 = vpop.xlane.xlu0 %69  ;;  %v74_v45 = vpop.xlane.xlu1 %73 }
  0x92   :  { %v101_v46 = vmul.f32 0.0625, %v70_v44  ;;  %v103_v47 = vmul.f32 0.0625, %v74_v45 }
  0x94   :  { %v117_v48 = vsub.f32 %v426_v3, %v101_v46  ;;  %v119_v49 = vsub.f32 %v430_v5, %v103_v47 }
  0x95   :  { %v72_v50 = vpop.xlane.xlu0 %71  ;;  %v76_v51 = vpop.xlane.xlu1 %75 }
  0x96   :  { %v102_v52 = vmul.f32 0.0625, %v72_v50  ;;  %v104_v53 = vmul.f32 0.0625, %v76_v51  ;;  %v667_v54 = vmul.f32 %v578_v9, %v117_v48  ;;  %v670_v55 = vmul.f32 %v578_v9, %v119_v49 }
  0x98   :  { %v118_v56 = vsub.f32 %v427_v6, %v102_v52  ;;  %v120_v57 = vsub.f32 %v431_v7, %v104_v53  ;;  %v149_v58 = vmul.f32 %v667_v54, %v667_v54  ;;  %v151_v61 = vmul.f32 %v670_v55, %v670_v55 }
  0x99   :  { %v78_v59 = vpop.xlane.xlu0 %77  ;;  %v80_v60 = vpop.xlane.xlu1 %79 }
  0x9a   :  { %v105_v62 = vmul.f32 0.0625, %v78_v59  ;;  %165 = vadd.xlane.f32.xlu0 %v149_v58  ;;  %v106_v63 = vmul.f32 0.0625, %v80_v60  ;;  %v681_v0 = vmul.f32 %v578_v9, %v118_v56  ;;  %v684_v1 = vmul.f32 %v578_v9, %v120_v57 }
  0x9c   :  { %v121_v2 = vsub.f32 %v434_v15, %v105_v62  ;;  %v122_v3 = vsub.f32 %v435_v16, %v106_v63  ;;  %v150_v4 = vmul.f32 %v681_v0, %v681_v0  ;;  %v152_v7 = vmul.f32 %v684_v1, %v684_v1 }
  0x9d   :  { %v82_v5 = vpop.xlane.xlu0 %81  ;;  %v84_v6 = vpop.xlane.xlu1 %83 }
  0x9e   :  { %v107_v8 = vmul.f32 0.0625, %v82_v5  ;;  %169 = vadd.xlane.f32.xlu0 %v151_v61  ;;  %167 = vadd.xlane.f32.xlu1 %v150_v4  ;;  %v108_v11 = vmul.f32 0.0625, %v84_v6  ;;  %v695_v12 = vmul.f32 %v578_v9, %v121_v2  ;;  %v698_v13 = vmul.f32 %v578_v9, %v122_v3 }
  0xa0   :  { %v123_v10 = vsub.f32 %v438_v20, %v107_v8  ;;  %v124_v14 = vsub.f32 %v439_v21, %v108_v11  ;;  %v153_v15 = vmul.f32 %v695_v12, %v695_v12  ;;  %v154_v19 = vmul.f32 %v698_v13, %v698_v13 }
  0xa1   :  { %v86_v16 = vpop.xlane.xlu0 %85  ;;  %v88_v18 = vpop.xlane.xlu1 %87 }
  0xa2   :  { %v109_v23 = vmul.f32 0.0625, %v86_v16  ;;  %171 = vadd.xlane.f32.xlu1 %v152_v7  ;;  %173 = vadd.xlane.f32.xlu0 %v153_v15  ;;  %v110_v24 = vmul.f32 0.0625, %v88_v18  ;;  %v709_v28 = vmul.f32 %v578_v9, %v123_v10  ;;  %v712_v20 = vmul.f32 %v578_v9, %v124_v14 }
  0xa4   :  { %v125_v17 = vsub.f32 %v442_v25, %v109_v23  ;;  %v126_v21 = vsub.f32 %v443_v26, %v110_v24  ;;  %v155_v29 = vmul.f32 %v709_v28, %v709_v28  ;;  %v156_v38 = vmul.f32 %v712_v20, %v712_v20 }
  0xa5   :  { %v90_v33 = vpop.xlane.xlu0 %89  ;;  %v92_v34 = vpop.xlane.xlu1 %91 }
  0xa6   :  { %v111_v39 = vmul.f32 0.0625, %v90_v33  ;;  %175 = vadd.xlane.f32.xlu1 %v154_v19  ;;  %177 = vadd.xlane.f32.xlu0 %v155_v29  ;;  %v112_v42 = vmul.f32 0.0625, %v92_v34  ;;  %v723_v43 = vmul.f32 %v578_v9, %v125_v17  ;;  %v726_v25 = vmul.f32 %v578_v9, %v126_v21 }
  0xa8   :  { %v127_v22 = vsub.f32 %v446_v30, %v111_v39  ;;  %v128_v26 = vsub.f32 %v447_v31, %v112_v42  ;;  %v157_v44 = vmul.f32 %v723_v43, %v723_v43  ;;  %v158_v47 = vmul.f32 %v726_v25, %v726_v25 }
  0xa9   :  { %v94_v45 = vpop.xlane.xlu0 %93  ;;  %v96_v46 = vpop.xlane.xlu1 %95 }
  0xaa   :  { %v113_v48 = vmul.f32 0.0625, %v94_v45  ;;  %179 = vadd.xlane.f32.xlu1 %v156_v38  ;;  %181 = vadd.xlane.f32.xlu0 %v157_v44  ;;  %v114_v49 = vmul.f32 0.0625, %v96_v46  ;;  %v737_v50 = vmul.f32 %v578_v9, %v127_v22  ;;  %v740_v30 = vmul.f32 %v578_v9, %v128_v26  ;;  %v777_v22 = vld [vmem:[%s857_s1] ss:$0 sm:$0xff] }
  0xac   :  { %v129_v27 = vsub.f32 %v450_v35, %v113_v48  ;;  %v130_v31 = vsub.f32 %v451_v36, %v114_v49  ;;  %v159_v51 = vmul.f32 %v737_v50, %v737_v50  ;;  %v160_v56 = vmul.f32 %v740_v30, %v740_v30 }
  0xad   :  { %v98_v52 = vpop.xlane.xlu0 %97  ;;  %v100_v53 = vpop.xlane.xlu1 %99 }
  0xae   :  { %v115_v57 = vmul.f32 0.0625, %v98_v52  ;;  %183 = vadd.xlane.f32.xlu1 %v158_v47  ;;  %185 = vadd.xlane.f32.xlu0 %v159_v51  ;;  %v116_v58 = vmul.f32 0.0625, %v100_v53  ;;  %v751_v59 = vmul.f32 %v578_v9, %v129_v27  ;;  %v754_v35 = vmul.f32 %v578_v9, %v130_v31  ;;  %v784_v52 = vld [vmem:[%s858_s2] ss:$0 sm:$0xff] }
  0xb0   :  { %v131_v32 = vsub.f32 %v454_v40, %v115_v57  ;;  %v132_v36 = vsub.f32 %v455_v41, %v116_v58  ;;  %v161_v60 = vmul.f32 %v751_v59, %v751_v59  ;;  %v162_v61 = vmul.f32 %v754_v35, %v754_v35 }
  0xb2   :  { %187 = vadd.xlane.f32.xlu1 %v160_v56  ;;  %189 = vadd.xlane.f32.xlu0 %v161_v60  ;;  %v765_v62 = vmul.f32 %v578_v9, %v131_v32  ;;  %v768_v63 = vmul.f32 %v578_v9, %v132_v36 }
  0xb4   :  { %v163_v40 = vmul.f32 %v765_v62, %v765_v62  ;;  %v164_v37 = vmul.f32 %v768_v63, %v768_v63 }
  0xb6   :  { %191 = vadd.xlane.f32.xlu1 %v162_v61  ;;  %193 = vadd.xlane.f32.xlu0 %v163_v40 }
  0xba   :  { %195 = vadd.xlane.f32.xlu1 %v164_v37 }
 0x123   :  { %v166_v41 = vpop.xlane.xlu0 %165 }
 0x124   :  { %v197_v2 = vmul.f32 0.0625, %v166_v41 }
 0x126   :  { %v213_v3 = vadd.f32 1e-06, %v197_v2 }
 0x127   :  { %v168_v4 = vpop.xlane.xlu1 %167  ;;  %v170_v5 = vpop.xlane.xlu0 %169 }
 0x128   :  { %511 = vrsqrt.f32 %v213_v3  ;;  %v198_v6 = vmul.f32 0.0625, %v168_v4  ;;  %v199_v7 = vmul.f32 0.0625, %v170_v5 }
 0x12a   :  { %v214_v8 = vadd.f32 1e-06, %v198_v6  ;;  %v215_v9 = vadd.f32 1e-06, %v199_v7 }
 0x12b   :  { %v172_v11 = vpop.xlane.xlu1 %171  ;;  %v174_v10 = vpop.xlane.xlu0 %173 }
 0x12c   :  { %513 = vrsqrt.f32 %v214_v8  ;;  %v200_v14 = vmul.f32 0.0625, %v172_v11  ;;  %v201_v15 = vmul.f32 0.0625, %v174_v10 }
 0x12d   :  { %515 = vrsqrt.f32 %v215_v9 }
 0x12e   :  { %v216_v16 = vadd.f32 1e-06, %v200_v14  ;;  %v217_v18 = vadd.f32 1e-06, %v201_v15 }
 0x12f   :  { %v176_v19 = vpop.xlane.xlu1 %175  ;;  %v178_v23 = vpop.xlane.xlu0 %177 }
 0x130   :  { %517 = vrsqrt.f32 %v216_v16  ;;  %v202_v24 = vmul.f32 0.0625, %v176_v19  ;;  %v203_v17 = vmul.f32 0.0625, %v178_v23 }
 0x131   :  { %519 = vrsqrt.f32 %v217_v18 }
 0x132   :  { %v218_v21 = vadd.f32 1e-06, %v202_v24  ;;  %v219_v29 = vadd.f32 1e-06, %v203_v17 }
 0x133   :  { %v180_v33 = vpop.xlane.xlu1 %179  ;;  %v182_v34 = vpop.xlane.xlu0 %181 }
 0x134   :  { %521 = vrsqrt.f32 %v218_v21  ;;  %v204_v38 = vmul.f32 0.0625, %v180_v33  ;;  %v205_v39 = vmul.f32 0.0625, %v182_v34 }
 0x135   :  { %v512_v42 = vpop.eup %511  ;;  %523 = vrsqrt.f32 %v219_v29 }
 0x136   :  { %v245_v26 = vmul.f32 %v512_v42, %v667_v54  ;;  %v220_v44 = vadd.f32 1e-06, %v204_v38  ;;  %v221_v45 = vadd.f32 1e-06, %v205_v39 }
 0x137   :  { %v184_v46 = vpop.xlane.xlu1 %183  ;;  %v186_v47 = vpop.xlane.xlu0 %185 }
 0x138   :  { %525 = vrsqrt.f32 %v220_v44  ;;  %v206_v48 = vmul.f32 0.0625, %v184_v46  ;;  %v207_v49 = vmul.f32 0.0625, %v186_v47  ;;  %v267_v31 = vmul.f32 %v777_v22, %v245_v26 }
 0x139   :  { %v514_v27 = vpop.eup %513  ;;  %527 = vrsqrt.f32 %v221_v45 }
 0x13a   :  { %v516_v51 = vpop.eup %515  ;;  %v246_v53 = vmul.f32 %v514_v27, %v681_v0  ;;  %v222_v54 = vadd.f32 1e-06, %v206_v48  ;;  %v223_v56 = vadd.f32 1e-06, %v207_v49  ;;  %v289_v37 = vadd.f32 %v784_v52, %v267_v31 }
 0x13b   :  { %v247_v57 = vmul.f32 %v516_v51, %v670_v55  ;;  %v188_v58 = vpop.xlane.xlu1 %187  ;;  %v190_v32 = vpop.xlane.xlu0 %189 }
 0x13c   :  { %v268_v36 = vmul.f32 %v777_v22, %v246_v53  ;;  %529 = vrsqrt.f32 %v222_v54  ;;  %v208_v60 = vmul.f32 0.0625, %v188_v58  ;;  %v209_v61 = vmul.f32 0.0625, %v190_v32 }
 0x13d   :  { %v518_v40 = vpop.eup %517  ;;  %v269_v41 = vmul.f32 %v777_v22, %v247_v57  ;;  %531 = vrsqrt.f32 %v223_v56 }
 0x13e   :  { %v520_v2 = vpop.eup %519  ;;  %v290_v0 = vadd.f32 %v784_v52, %v268_v36  ;;  %v248_v3 = vmul.f32 %v518_v40, %v684_v1  ;;  %v224_v4 = vadd.f32 1e-06, %v208_v60  ;;  %v225_v55 = vadd.f32 1e-06, %v209_v61 }
 0x13f   :  { %v249_v5 = vmul.f32 %v520_v2, %v695_v12  ;;  %v192_v6 = vpop.xlane.xlu1 %191  ;;  %v194_v7 = vpop.xlane.xlu0 %193  ;;  %v291_v1 = vadd.f32 %v784_v52, %v269_v41 }
 0x140   :  { %v459_v8 = vpack.c.bf16 %v290_v0, %v289_v37  ;;  %v270_v9 = vmul.f32 %v777_v22, %v248_v3  ;;  %533 = vrsqrt.f32 %v224_v4  ;;  %v210_v11 = vmul.f32 0.0625, %v192_v6 }
 0x141   :  { %v522_v10 = vpop.eup %521  ;;  %v271_v14 = vmul.f32 %v777_v22, %v249_v5  ;;  %535 = vrsqrt.f32 %v225_v55  ;;  %v211_v15 = vmul.f32 0.0625, %v194_v7 }
 0x142   :  { %v524_v16 = vpop.eup %523  ;;  %460 = vst [vmem:[%s859_s3] sm:$0xff] %v459_v8   ;;  %v292_v12 = vadd.f32 %v784_v52, %v270_v9  ;;  %v250_v18 = vmul.f32 %v522_v10, %v698_v13  ;;  %v226_v19 = vadd.f32 1e-06, %v210_v11 }
 0x143   :  { %v251_v23 = vmul.f32 %v524_v16, %v709_v28  ;;  %v227_v24 = vadd.f32 1e-06, %v211_v15  ;;  %v196_v17 = vpop.xlane.xlu1 %195  ;;  %v293_v38 = vadd.f32 %v784_v52, %v271_v14 }
 0x144   :  { %v464_v21 = vpack.c.bf16 %v292_v12, %v291_v1  ;;  %v272_v29 = vmul.f32 %v777_v22, %v250_v18  ;;  %537 = vrsqrt.f32 %v226_v19  ;;  %v212_v33 = vmul.f32 0.0625, %v196_v17 }
 0x145   :  { %v526_v34 = vpop.eup %525  ;;  %539 = vrsqrt.f32 %v227_v24  ;;  %v273_v28 = vmul.f32 %v777_v22, %v251_v23 }
 0x146   :  { %v528_v39 = vpop.eup %527  ;;  %503 = vst [vmem:[%s859_s3 + $0x8] sm:$0xff] %v464_v21   ;;  %v294_v13 = vadd.f32 %v784_v52, %v272_v29  ;;  %v252_v42 = vmul.f32 %v526_v34, %v712_v20  ;;  %v228_v26 = vadd.f32 1e-06, %v212_v33 }
 0x147   :  { %v253_v44 = vmul.f32 %v528_v39, %v723_v43  ;;  %v295_v49 = vadd.f32 %v784_v52, %v273_v28 }
 0x148   :  { %v469_v45 = vpack.c.bf16 %v294_v13, %v293_v38  ;;  %v274_v46 = vmul.f32 %v777_v22, %v252_v42  ;;  %541 = vrsqrt.f32 %v228_v26 }
 0x149   :  { %v530_v47 = vpop.eup %529  ;;  %v275_v31 = vmul.f32 %v777_v22, %v253_v44 }
 0x14a   :  { %v532_v48 = vpop.eup %531  ;;  %504 = vst [vmem:[%s859_s3 + $0x10] sm:$0xff] %v469_v45   ;;  %v296_v27 = vadd.f32 %v784_v52, %v274_v46  ;;  %v254_v20 = vmul.f32 %v530_v47, %v726_v25 }
 0x14b   :  { %v255_v43 = vmul.f32 %v532_v48, %v737_v50  ;;  %v297_v57 = vadd.f32 %v784_v52, %v275_v31 }
 0x14c   :  { %v474_v51 = vpack.c.bf16 %v296_v27, %v295_v49  ;;  %v276_v53 = vmul.f32 %v777_v22, %v254_v20 }
 0x14d   :  { %v534_v54 = vpop.eup %533  ;;  %v277_v32 = vmul.f32 %v777_v22, %v255_v43 }
 0x14e   :  { %v536_v56 = vpop.eup %535  ;;  %505 = vst [vmem:[%s859_s3 + $0x18] sm:$0xff] %v474_v51   ;;  %v298_v58 = vadd.f32 %v784_v52, %v276_v53  ;;  %v256_v36 = vmul.f32 %v534_v54, %v740_v30 }
 0x14f   :  { %v257_v25 = vmul.f32 %v536_v56, %v751_v59  ;;  %v299_v37 = vadd.f32 %v784_v52, %v277_v32 }
 0x150   :  { %v479_v50 = vpack.c.bf16 %v298_v58, %v297_v57  ;;  %v278_v60 = vmul.f32 %v777_v22, %v256_v36 }
 0x151   :  { %v538_v61 = vpop.eup %537  ;;  %v279_v2 = vmul.f32 %v777_v22, %v257_v25 }
 0x152   :  { %v540_v40 = vpop.eup %539  ;;  %506 = vst [vmem:[%s859_s3 + $0x20] sm:$0xff] %v479_v50   ;;  %v300_v41 = vadd.f32 %v784_v52, %v278_v60  ;;  %v258_v0 = vmul.f32 %v538_v61, %v754_v35 }
 0x153   :  { %v259_v30 = vmul.f32 %v540_v40, %v765_v62  ;;  %v301_v55 = vadd.f32 %v784_v52, %v279_v2 }
 0x154   :  { %v484_v59 = vpack.c.bf16 %v300_v41, %v299_v37  ;;  %v280_v3 = vmul.f32 %v777_v22, %v258_v0 }
 0x155   :  { %v542_v4 = vpop.eup %541  ;;  %v281_v6 = vmul.f32 %v777_v22, %v259_v30 }
 0x156   :  { %507 = vst [vmem:[%s859_s3 + $0x28] sm:$0xff] %v484_v59   ;;  %v302_v5 = vadd.f32 %v784_v52, %v280_v3  ;;  %v260_v7 = vmul.f32 %v542_v4, %v768_v63 }
 0x157   :  { %v303_v62 = vadd.f32 %v784_v52, %v281_v6 }
 0x158   :  { %v489_v8 = vpack.c.bf16 %v302_v5, %v301_v55  ;;  %v282_v35 = vmul.f32 %v777_v22, %v260_v7 }
 0x15a   :  { %508 = vst [vmem:[%s859_s3 + $0x30] sm:$0xff] %v489_v8   ;;  %v304_v9 = vadd.f32 %v784_v52, %v282_v35 }
 0x15c   :  { %v494_v11 = vpack.c.bf16 %v304_v9, %v303_v62 }
 0x15e   :  { %509 = vst [vmem:[%s859_s3 + $0x38] sm:$0xff] %v494_v11  }

// kernel: _lambda_.19
= control target key start
LH: loop header
LB: loop body
LE: loop exit
PB: predicated region body
PF: predicated region fallthrough
CT: control target
= control target key end

     0   :  { %v870_v0 = vmov 0   ;;  %vm192_vm0 = vcmask 154624   ;;  %vm217_vm1 = vcmask 1040384   ;;  %vm218_vm2 = vcmask 1041408   ;;  %s1254_s1 = inlined_call_operand.vmem [shape: bf16[147,128], index: 1, kind: input, shape index: {}]   ;;  %s1255_s0 = inlined_call_operand.vmem [shape: bf16[128,147], index: 0, kind: input, shape index: {}]   ;;  %s1256_s2 = inlined_call_operand.vmem [shape: f32[1,128], index: 2, kind: input, shape index: {}]   ;;  %s1257_s3 = inlined_call_operand.vmem [shape: f32[1,128], index: 3, kind: input, shape index: {}]   ;;  %s1258_s4 = inlined_call_operand.vmem [shape: f32[1,128], index: 4, kind: input, shape index: {}]   ;;  %s1259_s5 = inlined_call_operand.vmem [shape: bf16[128,128], index: 5, kind: output, shape index: {}]  }
   0x1   :  { %224 = vmatprep.subr.bf16.mxu0 %v870_v0  ;;  %781 = vmatprep.subr.bf16.mxu1 %v870_v0  ;;  %v804_v1 = vld [vmem:[%s1254_s1 + $0x38] sm:$0xff]   ;;  %v805_v2 = vld [vmem:[%s1254_s1 + $0x30] sm:$0xff]   ;;  %v806_v3 = vld [vmem:[%s1254_s1 + $0x28] sm:$0xff]   ;;  %v871_v10 = vmov 65535   ;;  %v323_v31 = vlaneseq  ;;  %v872_v36 = vmov 0.0  }
   0x2   :  { %225 = vmatpush1.bf16.msra.mxu0 %v804_v1  ;;  %791 = vmatpush1.bf16.msra.mxu1 %v804_v1  ;;  %v807_v4 = vld [vmem:[%s1254_s1 + $0x20] sm:$0xff]   ;;  %v808_v7 = vld [vmem:[%s1254_s1 + $0x18] sm:$0xff]   ;;  %v809_v8 = vld [vmem:[%s1254_s1 + $0x10] sm:$0xff]   ;;  %v219_v11 = vsel %vm217_vm1, 4294967295, %v871_v10 }
   0x3   :  { %226 = vmatprep.subr.bf16.mxu0 %v870_v0  ;;  %782 = vmatprep.subr.bf16.mxu1 %v870_v0  ;;  %v816_v5 = vld [vmem:[%s1255_s0 + $0x4] ss:$8 sps:$4 sm:$0xff]   ;;  %v812_v13 = vld [vmem:[%s1254_s1 + $0x48] ss:$0 sps:$4 sm:$0x33]   ;;  %v220_v14 = vsel %vm218_vm2, %v219_v11, 0 }
   0x4   :  { %691 = vmatprep.mubr.msk.bf16.mxu0 %vm192_vm0, %v816_v5  ;;  %v819_v6 = vld [vmem:[%s1255_s0 + $0x44] ss:$8 sps:$4 sm:$0xff]   ;;  %v222_v15 = vand.u32 %v812_v13, %v220_v14  ;;  %v814_v17 = vld [vmem:[%s1255_s0] ss:$8 sps:$4 sm:$0xff]   ;;  %v820_v19 = vld [vmem:[%s1255_s0 + $0x14] ss:$8 sps:$4 sm:$0xff]  }
   0x5   :  { %695 = vmatprep.mubr.msk.bf16.mxu1 %vm192_vm0, %v819_v6  ;;  %v810_v9 = vld [vmem:[%s1254_s1 + $0x8] sm:$0xff]   ;;  %v811_v12 = vld [vmem:[%s1254_s1] sm:$0xff]   ;;  %v823_v20 = vld [vmem:[%s1255_s0 + $0x54] ss:$8 sps:$4 sm:$0xff]   ;;  %v324_v32 = vand.u32 127, %v323_v31 }
   0x6   :  { %227 = vmatpush1.bf16.msra.mxu0 %v805_v2  ;;  %792 = vmatpush1.bf16.msra.mxu1 %v805_v2  ;;  %v813_v16 = vld [vmem:[%s1254_s1 + $0x40] sm:$0xff]   ;;  %v822_v21 = vld [vmem:[%s1255_s0 + $0x10] ss:$8 sps:$4 sm:$0xff]   ;;  %v832_v27 = vld [vmem:[%s1255_s0 + $0x34] ss:$8 sps:$4 sm:$0xff]  }
   0x7   :  { %228 = vmatprep.subr.bf16.mxu0 %v870_v0  ;;  %783 = vmatprep.subr.bf16.mxu1 %v870_v0  ;;  %v817_v18 = vld [vmem:[%s1255_s0 + $0x40] ss:$8 sps:$4 sm:$0xff]   ;;  %v825_v22 = vld [vmem:[%s1255_s0 + $0x50] ss:$8 sps:$4 sm:$0xff]   ;;  %v826_v23 = vld [vmem:[%s1255_s0 + $0x24] ss:$8 sps:$4 sm:$0xff]  }
   0x8   :  { %v829_v24 = vld [vmem:[%s1255_s0 + $0x64] ss:$8 sps:$4 sm:$0xff]   ;;  %v828_v25 = vld [vmem:[%s1255_s0 + $0x20] ss:$8 sps:$4 sm:$0xff]   ;;  %v835_v28 = vld [vmem:[%s1255_s0 + $0x74] ss:$8 sps:$4 sm:$0xff]  }
   0x9   :  { %v831_v26 = vld [vmem:[%s1255_s0 + $0x60] ss:$8 sps:$4 sm:$0xff]   ;;  %v834_v29 = vld [vmem:[%s1255_s0 + $0x30] ss:$8 sps:$4 sm:$0xff]   ;;  %vm325_vm3 = vcmp.lt.s32.totalorder %v324_v32, 16 }
   0xa   :  { %229 = vmatpush1.bf16.msra.mxu0 %v806_v3  ;;  %793 = vmatpush1.bf16.msra.mxu1 %v806_v3  ;;  %v837_v30 = vld [vmem:[%s1255_s0 + $0x70] ss:$8 sps:$4 sm:$0xff]   ;;  %v992_v33 = vld [vmem:[%s1256_s2] ss:$0 sm:$0xff]  ;;  %v994_v37 = vsel %vm325_vm3, 1.0, %v872_v36 }
   0xb   :  { %230 = vmatprep.subr.bf16.mxu0 %v870_v0  ;;  %784 = vmatprep.subr.bf16.mxu1 %v870_v0 }
   0xe   :  { %231 = vmatpush1.bf16.msra.mxu0 %v807_v4  ;;  %794 = vmatpush1.bf16.msra.mxu1 %v807_v4 }
   0xf   :  { %232 = vmatprep.subr.bf16.mxu0 %v870_v0  ;;  %785 = vmatprep.subr.bf16.mxu1 %v870_v0 }
  0x12   :  { %233 = vmatpush1.bf16.msra.mxu0 %v808_v7  ;;  %795 = vmatpush1.bf16.msra.mxu1 %v808_v7 }
  0x13   :  { %234 = vmatprep.subr.bf16.mxu0 %v870_v0  ;;  %786 = vmatprep.subr.bf16.mxu1 %v870_v0 }
  0x16   :  { %235 = vmatpush1.bf16.msra.mxu0 %v809_v8  ;;  %796 = vmatpush1.bf16.msra.mxu1 %v809_v8 }
  0x17   :  { %236 = vmatprep.subr.bf16.mxu0 %v870_v0  ;;  %787 = vmatprep.subr.bf16.mxu1 %v870_v0 }
  0x1a   :  { %237 = vmatpush1.bf16.msra.mxu0 %v810_v9  ;;  %797 = vmatpush1.bf16.msra.mxu1 %v810_v9 }
  0x1b   :  { %238 = vmatprep.subr.bf16.mxu0 %v870_v0  ;;  %788 = vmatprep.subr.bf16.mxu1 %v870_v0 }
  0x1e   :  { %239 = vmatpush1.bf16.msra.mxu0 %v811_v12  ;;  %798 = vmatpush1.bf16.msra.mxu1 %v811_v12 }
  0x1f   :  { %252 = vmatprep.subr.bf16.mxu0 %v870_v0  ;;  %789 = vmatprep.subr.bf16.mxu1 %v870_v0 }
  0x22   :  { %253 = vmatpush2.bf16.msra.mxu0 %v222_v15  ;;  %799 = vmatpush2.bf16.msra.mxu1 %v222_v15 }
  0x23   :  { %254 = vmatprep.subr.bf16.mxu0 %v870_v0  ;;  %790 = vmatprep.subr.bf16.mxu1 %v870_v0 }
  0x26   :  { %255 = vmatpush2.bf16.msra.mxu0 %v813_v16  ;;  %800 = vmatpush2.bf16.msra.mxu1 %v813_v16 }
  0x29   :  { %257 = vmatmul.mubr.bf16.vlgmr.msra.gmra.mxu0 %v814_v17  ;;  %289 = vmatmul.mubr.bf16.vlgmr.msra.gmra.mxu1 %v817_v18 }
  0x2a   :  { %692 = vmatprep.mubr.msk.bf16.mxu0 %vm192_vm0, %v820_v19  ;;  %696 = vmatprep.mubr.msk.bf16.mxu1 %vm192_vm0, %v823_v20 }
  0x31   :  { %265 = vmatmul.mubr.bf16.gmra.mxu0 %v822_v21  ;;  %297 = vmatmul.mubr.bf16.gmra.mxu1 %v825_v22 }
  0x32   :  { %693 = vmatprep.mubr.msk.bf16.mxu0 %vm192_vm0, %v826_v23  ;;  %697 = vmatprep.mubr.msk.bf16.mxu1 %vm192_vm0, %v829_v24 }
  0x39   :  { %273 = vmatmul.mubr.bf16.gmra.mxu0 %v828_v25  ;;  %305 = vmatmul.mubr.bf16.gmra.mxu1 %v831_v26 }
  0x3a   :  { %694 = vmatprep.mubr.msk.bf16.mxu0 %vm192_vm0, %v832_v27  ;;  %698 = vmatprep.mubr.msk.bf16.mxu1 %vm192_vm0, %v835_v28 }
  0x41   :  { %281 = vmatmul.mubr.bf16.gmra.mxu0 %v834_v29  ;;  %313 = vmatmul.mubr.bf16.gmra.mxu1 %v837_v30 }
  0xe9   :  { %v258_v34 = vpop.f32.mrf.mxu0  ;;  %v290_v35 = vpop.f32.mrf.mxu1 }
  0xea   :  { %v997_v38 = vadd.f32 %v992_v33, %v258_v34  ;;  %v1000_v39 = vadd.f32 %v992_v33, %v290_v35 }
  0xeb   :  { %v260_v40 = vpop.f32.mrf.mxu0  ;;  %v292_v41 = vpop.f32.mrf.mxu1 }
  0xec   :  { %v328_v42 = vmul.f32 %v994_v37, %v997_v38  ;;  %v336_v46 = vmul.f32 %v994_v37, %v1000_v39 }
  0xed   :  { %v261_v43 = vpop.f32.mrf.mxu0  ;;  %v293_v44 = vpop.f32.mrf.mxu1 }
  0xee   :  { %v1005_v45 = vadd.f32 %v992_v33, %v293_v44  ;;  %344 = vadd.xlane.f32.xlu0 %v328_v42  ;;  %v1010_v49 = vadd.f32 %v992_v33, %v261_v43 }
  0xef   :  { %v263_v47 = vpop.f32.mrf.mxu0  ;;  %v295_v48 = vpop.f32.mrf.mxu1 }
  0xf0   :  { %v337_v50 = vmul.f32 %v994_v37, %v1005_v45  ;;  %v329_v58 = vmul.f32 %v994_v37, %v1010_v49 }
  0xf1   :  { %v266_v51 = vpop.f32.mrf.mxu0  ;;  %v298_v52 = vpop.f32.mrf.mxu1 }
  0xf2   :  { %v1015_v53 = vadd.f32 %v992_v33, %v266_v51  ;;  %362 = vadd.xlane.f32.xlu1 %v337_v50  ;;  %360 = vadd.xlane.f32.xlu0 %v336_v46  ;;  %v1018_v54 = vadd.f32 %v992_v33, %v298_v52 }
  0xf3   :  { %v268_v55 = vpop.f32.mrf.mxu0  ;;  %v300_v56 = vpop.f32.mrf.mxu1 }
  0xf4   :  { %v330_v57 = vmul.f32 %v994_v37, %v1015_v53  ;;  %v338_v63 = vmul.f32 %v994_v37, %v1018_v54 }
  0xf5   :  { %v269_v59 = vpop.f32.mrf.mxu0  ;;  %v301_v60 = vpop.f32.mrf.mxu1 }
  0xf6   :  { %v1025_v61 = vadd.f32 %v992_v33, %v269_v59  ;;  %348 = vadd.xlane.f32.xlu1 %v330_v57  ;;  %346 = vadd.xlane.f32.xlu0 %v329_v58  ;;  %v1028_v62 = vadd.f32 %v992_v33, %v301_v60 }
  0xf7   :  { %v271_v0 = vpop.f32.mrf.mxu0  ;;  %v303_v1 = vpop.f32.mrf.mxu1 }
  0xf8   :  { %v331_v2 = vmul.f32 %v994_v37, %v1025_v61  ;;  %v339_v7 = vmul.f32 %v994_v37, %v1028_v62 }
  0xf9   :  { %v274_v3 = vpop.f32.mrf.mxu0  ;;  %v306_v4 = vpop.f32.mrf.mxu1 }
  0xfa   :  { %v1035_v5 = vadd.f32 %v992_v33, %v274_v3  ;;  %350 = vadd.xlane.f32.xlu1 %v331_v2  ;;  %364 = vadd.xlane.f32.xlu0 %v338_v63  ;;  %v1038_v6 = vadd.f32 %v992_v33, %v306_v4 }
  0xfb   :  { %v276_v8 = vpop.f32.mrf.mxu0  ;;  %v308_v9 = vpop.f32.mrf.mxu1 }
  0xfc   :  { %v332_v10 = vmul.f32 %v994_v37, %v1035_v5  ;;  %v340_v15 = vmul.f32 %v994_v37, %v1038_v6 }
  0xfd   :  { %v277_v11 = vpop.f32.mrf.mxu0  ;;  %v309_v12 = vpop.f32.mrf.mxu1 }
  0xfe   :  { %v1045_v13 = vadd.f32 %v992_v33, %v277_v11  ;;  %366 = vadd.xlane.f32.xlu1 %v339_v7  ;;  %352 = vadd.xlane.f32.xlu0 %v332_v10  ;;  %v1048_v14 = vadd.f32 %v992_v33, %v309_v12 }
  0xff   :  { %v279_v16 = vpop.f32.mrf.mxu0  ;;  %v311_v17 = vpop.f32.mrf.mxu1 }
 0x100   :  { %v333_v18 = vmul.f32 %v994_v37, %v1045_v13  ;;  %v341_v23 = vmul.f32 %v994_v37, %v1048_v14 }
 0x101   :  { %v282_v19 = vpop.f32.mrf.mxu0  ;;  %v314_v20 = vpop.f32.mrf.mxu1 }
 0x102   :  { %v1055_v21 = vadd.f32 %v992_v33, %v282_v19  ;;  %354 = vadd.xlane.f32.xlu1 %v333_v18  ;;  %368 = vadd.xlane.f32.xlu0 %v340_v15  ;;  %v1058_v22 = vadd.f32 %v992_v33, %v314_v20 }
 0x103   :  { %v284_v24 = vpop.f32.mrf.mxu0  ;;  %v316_v25 = vpop.f32.mrf.mxu1 }
 0x104   :  { %v334_v26 = vmul.f32 %v994_v37, %v1055_v21  ;;  %v342_v31 = vmul.f32 %v994_v37, %v1058_v22 }
 0x105   :  { %v285_v27 = vpop.f32.mrf.mxu0  ;;  %v317_v28 = vpop.f32.mrf.mxu1 }
 0x106   :  { %v1065_v29 = vadd.f32 %v992_v33, %v285_v27  ;;  %370 = vadd.xlane.f32.xlu1 %v341_v23  ;;  %356 = vadd.xlane.f32.xlu0 %v334_v26  ;;  %v1068_v30 = vadd.f32 %v992_v33, %v317_v28 }
 0x107   :  { %v287_v32 = vpop.f32.mrf.mxu0  ;;  %v319_v34 = vpop.f32.mrf.mxu1 }
 0x108   :  { %v335_v35 = vmul.f32 %v994_v37, %v1065_v29  ;;  %v343_v36 = vmul.f32 %v994_v37, %v1068_v30 }
 0x10a   :  { %358 = vadd.xlane.f32.xlu1 %v335_v35  ;;  %372 = vadd.xlane.f32.xlu0 %v342_v31 }
 0x10e   :  { %374 = vadd.xlane.f32.xlu1 %v343_v36 }
 0x177   :  { %v345_v40 = vpop.xlane.xlu0 %344 }
 0x178   :  { %v376_v41 = vmul.f32 0.0625, %v345_v40 }
 0x17a   :  { %v392_v42 = vsub.f32 %v997_v38, %v376_v41 }
 0x17b   :  { %v363_v33 = vpop.xlane.xlu1 %362  ;;  %v361_v43 = vpop.xlane.xlu0 %360 }
 0x17c   :  { %v384_v44 = vmul.f32 0.0625, %v361_v43  ;;  %v1078_v46 = vmul.f32 %v994_v37, %v392_v42  ;;  %v385_v47 = vmul.f32 0.0625, %v363_v33 }
 0x17e   :  { %v400_v48 = vsub.f32 %v1000_v39, %v384_v44  ;;  %v424_v50 = vmul.f32 %v1078_v46, %v1078_v46  ;;  %v401_v38 = vsub.f32 %v1005_v45, %v385_v47 }
 0x17f   :  { %v349_v51 = vpop.xlane.xlu1 %348  ;;  %v347_v52 = vpop.xlane.xlu0 %346 }
 0x180   :  { %v378_v55 = vmul.f32 0.0625, %v349_v51  ;;  %v377_v56 = vmul.f32 0.0625, %v347_v52  ;;  %440 = vadd.xlane.f32.xlu0 %v424_v50  ;;  %v1084_v57 = vmul.f32 %v994_v37, %v400_v48  ;;  %v1098_v45 = vmul.f32 %v994_v37, %v401_v38 }
 0x182   :  { %v394_v58 = vsub.f32 %v1015_v53, %v378_v55  ;;  %v393_v59 = vsub.f32 %v1010_v49, %v377_v56  ;;  %v432_v39 = vmul.f32 %v1084_v57, %v1084_v57  ;;  %v433_v16 = vmul.f32 %v1098_v45, %v1098_v45 }
 0x183   :  { %v351_v60 = vpop.xlane.xlu1 %350  ;;  %v365_v63 = vpop.xlane.xlu0 %364 }
 0x184   :  { %v379_v0 = vmul.f32 0.0625, %v351_v60  ;;  %v386_v1 = vmul.f32 0.0625, %v365_v63  ;;  %456 = vadd.xlane.f32.xlu0 %v432_v39  ;;  %v1092_v2 = vmul.f32 %v994_v37, %v394_v58  ;;  %v1095_v3 = vmul.f32 %v994_v37, %v393_v59 }
 0x186   :  { %v395_v53 = vsub.f32 %v1025_v61, %v379_v0  ;;  %v402_v49 = vsub.f32 %v1018_v54, %v386_v1  ;;  %v426_v4 = vmul.f32 %v1092_v2, %v1092_v2  ;;  %v425_v7 = vmul.f32 %v1095_v3, %v1095_v3 }
 0x187   :  { %v367_v8 = vpop.xlane.xlu1 %366  ;;  %v353_v9 = vpop.xlane.xlu0 %352 }
 0x188   :  { %v387_v10 = vmul.f32 0.0625, %v367_v8  ;;  %v380_v11 = vmul.f32 0.0625, %v353_v9  ;;  %444 = vadd.xlane.f32.xlu0 %v426_v4  ;;  %442 = vadd.xlane.f32.xlu1 %v425_v7  ;;  %v1107_v12 = vmul.f32 %v994_v37, %v402_v49  ;;  %v1110_v15 = vmul.f32 %v994_v37, %v395_v53 }
 0x18a   :  { %v403_v54 = vsub.f32 %v1028_v62, %v387_v10  ;;  %v396_v61 = vsub.f32 %v1035_v5, %v380_v11  ;;  %v434_v17 = vmul.f32 %v1107_v12, %v1107_v12  ;;  %v427_v62 = vmul.f32 %v1110_v15, %v1110_v15 }
 0x18b   :  { %v355_v18 = vpop.xlane.xlu1 %354  ;;  %v369_v19 = vpop.xlane.xlu0 %368 }
 0x18c   :  { %v381_v20 = vmul.f32 0.0625, %v355_v18  ;;  %v388_v23 = vmul.f32 0.0625, %v369_v19  ;;  %458 = vadd.xlane.f32.xlu1 %v433_v16  ;;  %460 = vadd.xlane.f32.xlu0 %v434_v17  ;;  %v1119_v24 = vmul.f32 %v994_v37, %v396_v61  ;;  %v1128_v27 = vmul.f32 %v994_v37, %v403_v54 }
 0x18e   :  { %v397_v5 = vsub.f32 %v1045_v13, %v381_v20  ;;  %v404_v25 = vsub.f32 %v1038_v6, %v388_v23  ;;  %v428_v26 = vmul.f32 %v1119_v24, %v1119_v24  ;;  %v435_v40 = vmul.f32 %v1128_v27, %v1128_v27 }
 0x18f   :  { %v371_v28 = vpop.xlane.xlu1 %370  ;;  %v357_v31 = vpop.xlane.xlu0 %356 }
 0x190   :  { %v389_v32 = vmul.f32 0.0625, %v371_v28  ;;  %v382_v34 = vmul.f32 0.0625, %v357_v31  ;;  %446 = vadd.xlane.f32.xlu1 %v427_v62  ;;  %448 = vadd.xlane.f32.xlu0 %v428_v26  ;;  %v1131_v35 = vmul.f32 %v994_v37, %v404_v25  ;;  %v1134_v36 = vmul.f32 %v994_v37, %v397_v5 }
 0x192   :  { %v405_v6 = vsub.f32 %v1048_v14, %v389_v32  ;;  %v398_v13 = vsub.f32 %v1055_v21, %v382_v34  ;;  %v436_v41 = vmul.f32 %v1131_v35, %v1131_v35  ;;  %v429_v14 = vmul.f32 %v1134_v36, %v1134_v36 }
 0x193   :  { %v359_v42 = vpop.xlane.xlu1 %358  ;;  %v373_v33 = vpop.xlane.xlu0 %372 }
 0x194   :  { %v383_v43 = vmul.f32 0.0625, %v359_v42  ;;  %v390_v44 = vmul.f32 0.0625, %v373_v33  ;;  %462 = vadd.xlane.f32.xlu1 %v435_v40  ;;  %464 = vadd.xlane.f32.xlu0 %v436_v41  ;;  %v1143_v47 = vmul.f32 %v994_v37, %v398_v13  ;;  %v1152_v51 = vmul.f32 %v994_v37, %v405_v6  ;;  %v1176_v40 = vld [vmem:[%s1257_s3] ss:$0 sm:$0xff] }
 0x196   :  { %v399_v21 = vsub.f32 %v1065_v29, %v383_v43  ;;  %v406_v48 = vsub.f32 %v1058_v22, %v390_v44  ;;  %v430_v50 = vmul.f32 %v1143_v47, %v1143_v47  ;;  %v437_v29 = vmul.f32 %v1152_v51, %v1152_v51 }
 0x197   :  { %v375_v52 = vpop.xlane.xlu1 %374 }
 0x198   :  { %v391_v55 = vmul.f32 0.0625, %v375_v52  ;;  %450 = vadd.xlane.f32.xlu1 %v429_v14  ;;  %452 = vadd.xlane.f32.xlu0 %v430_v50  ;;  %v1155_v56 = vmul.f32 %v994_v37, %v406_v48  ;;  %v1163_v58 = vmul.f32 %v994_v37, %v399_v21  ;;  %v1183_v52 = vld [vmem:[%s1258_s4] ss:$0 sm:$0xff] }
 0x19a   :  { %v407_v38 = vsub.f32 %v1068_v30, %v391_v55  ;;  %v438_v22 = vmul.f32 %v1155_v56, %v1155_v56  ;;  %v431_v59 = vmul.f32 %v1163_v58, %v1163_v58 }
 0x19c   :  { %466 = vadd.xlane.f32.xlu1 %v437_v29  ;;  %468 = vadd.xlane.f32.xlu0 %v438_v22  ;;  %v1168_v39 = vmul.f32 %v994_v37, %v407_v38 }
 0x19e   :  { %v439_v30 = vmul.f32 %v1168_v39, %v1168_v39 }
 0x1a0   :  { %454 = vadd.xlane.f32.xlu1 %v431_v59 }
 0x1a4   :  { %470 = vadd.xlane.f32.xlu1 %v439_v30 }
 0x209   :  { %v441_v60 = vpop.xlane.xlu0 %440 }
 0x20a   :  { %v472_v63 = vmul.f32 0.0625, %v441_v60 }
 0x20c   :  { %v488_v0 = vadd.f32 1e-06, %v472_v63 }
 0x20d   :  { %v457_v1 = vpop.xlane.xlu0 %456 }
 0x20e   :  { %v480_v53 = vmul.f32 0.0625, %v457_v1  ;;  %838 = vrsqrt.f32 %v488_v0 }
 0x210   :  { %v496_v49 = vadd.f32 1e-06, %v480_v53 }
 0x211   :  { %v443_v4 = vpop.xlane.xlu1 %442  ;;  %v445_v7 = vpop.xlane.xlu0 %444 }
 0x212   :  { %v473_v8 = vmul.f32 0.0625, %v443_v4  ;;  %v474_v9 = vmul.f32 0.0625, %v445_v7  ;;  %840 = vrsqrt.f32 %v496_v49 }
 0x214   :  { %v489_v10 = vadd.f32 1e-06, %v473_v8  ;;  %v490_v37 = vadd.f32 1e-06, %v474_v9 }
 0x215   :  { %v459_v11 = vpop.xlane.xlu1 %458  ;;  %v461_v54 = vpop.xlane.xlu0 %460 }
 0x216   :  { %842 = vrsqrt.f32 %v489_v10  ;;  %v481_v61 = vmul.f32 0.0625, %v459_v11  ;;  %v482_v16 = vmul.f32 0.0625, %v461_v54 }
 0x217   :  { %844 = vrsqrt.f32 %v490_v37 }
 0x218   :  { %v497_v17 = vadd.f32 1e-06, %v481_v61  ;;  %v498_v18 = vadd.f32 1e-06, %v482_v16 }
 0x219   :  { %v447_v19 = vpop.xlane.xlu1 %446  ;;  %v449_v20 = vpop.xlane.xlu0 %448 }
 0x21a   :  { %846 = vrsqrt.f32 %v497_v17  ;;  %v475_v23 = vmul.f32 0.0625, %v447_v19  ;;  %v476_v62 = vmul.f32 0.0625, %v449_v20 }
 0x21b   :  { %848 = vrsqrt.f32 %v498_v18  ;;  %v839_v5 = vpop.eup %838 }
 0x21c   :  { %v491_v25 = vadd.f32 1e-06, %v475_v23  ;;  %v492_v26 = vadd.f32 1e-06, %v476_v62  ;;  %v520_v6 = vmul.f32 %v839_v5, %v1078_v46 }
 0x21d   :  { %v463_v28 = vpop.xlane.xlu1 %462  ;;  %v465_v31 = vpop.xlane.xlu0 %464 }
 0x21e   :  { %850 = vrsqrt.f32 %v491_v25  ;;  %v483_v32 = vmul.f32 0.0625, %v463_v28  ;;  %v484_v34 = vmul.f32 0.0625, %v465_v31  ;;  %v542_v48 = vmul.f32 %v1176_v40, %v520_v6 }
 0x21f   :  { %v841_v13 = vpop.eup %840  ;;  %852 = vrsqrt.f32 %v492_v26 }
 0x220   :  { %v499_v41 = vadd.f32 1e-06, %v483_v32  ;;  %v500_v42 = vadd.f32 1e-06, %v484_v34  ;;  %v528_v50 = vmul.f32 %v841_v13, %v1084_v57  ;;  %v564_v57 = vadd.f32 %v1183_v52, %v542_v48 }
 0x221   :  { %v451_v33 = vpop.xlane.xlu1 %450  ;;  %v453_v43 = vpop.xlane.xlu0 %452 }
 0x222   :  { %854 = vrsqrt.f32 %v499_v41  ;;  %v477_v44 = vmul.f32 0.0625, %v451_v33  ;;  %v478_v14 = vmul.f32 0.0625, %v453_v43  ;;  %v550_v1 = vmul.f32 %v1176_v40, %v528_v50 }
 0x223   :  { %v843_v21 = vpop.eup %842  ;;  %856 = vrsqrt.f32 %v500_v42 }
 0x224   :  { %v845_v46 = vpop.eup %844  ;;  %v521_v55 = vmul.f32 %v843_v21, %v1095_v3  ;;  %v493_v38 = vadd.f32 1e-06, %v477_v44  ;;  %v494_v29 = vadd.f32 1e-06, %v478_v14  ;;  %v572_v61 = vadd.f32 %v1183_v52, %v550_v1 }
 0x225   :  { %v467_v22 = vpop.xlane.xlu1 %466  ;;  %v469_v59 = vpop.xlane.xlu0 %468  ;;  %v522_v53 = vmul.f32 %v845_v46, %v1092_v2 }
 0x226   :  { %v543_v30 = vmul.f32 %v1176_v40, %v521_v55  ;;  %858 = vrsqrt.f32 %v493_v38  ;;  %v485_v60 = vmul.f32 0.0625, %v467_v22  ;;  %v486_v63 = vmul.f32 0.0625, %v469_v59 }
 0x227   :  { %v847_v0 = vpop.eup %846  ;;  %860 = vrsqrt.f32 %v494_v29  ;;  %v544_v16 = vmul.f32 %v1176_v40, %v522_v53 }
 0x228   :  { %v849_v49 = vpop.eup %848  ;;  %v565_v3 = vadd.f32 %v1183_v52, %v543_v30  ;;  %v529_v4 = vmul.f32 %v847_v0, %v1098_v45  ;;  %v501_v7 = vadd.f32 1e-06, %v485_v60  ;;  %v502_v8 = vadd.f32 1e-06, %v486_v63 }
 0x229   :  { %v455_v9 = vpop.xlane.xlu1 %454  ;;  %v530_v2 = vmul.f32 %v849_v49, %v1107_v12  ;;  %v566_v12 = vadd.f32 %v1183_v52, %v544_v16 }
 0x22a   :  { %v737_v10 = vpack.c.bf16 %v565_v3, %v564_v57  ;;  %v551_v37 = vmul.f32 %v1176_v40, %v529_v4  ;;  %862 = vrsqrt.f32 %v501_v7  ;;  %v479_v11 = vmul.f32 0.0625, %v455_v9 }
 0x22b   :  { %v851_v54 = vpop.eup %850  ;;  %864 = vrsqrt.f32 %v502_v8  ;;  %v552_v26 = vmul.f32 %v1176_v40, %v530_v2 }
 0x22c   :  { %738 = vst [vmem:[%s1259_s5] sm:$0xff] %v737_v10   ;;  %v573_v45 = vadd.f32 %v1183_v52, %v551_v37  ;;  %v523_v17 = vmul.f32 %v851_v54, %v1110_v15  ;;  %v495_v18 = vadd.f32 1e-06, %v479_v11  ;;  %v853_v19 = vpop.eup %852 }
 0x22d   :  { %v471_v20 = vpop.xlane.xlu1 %470  ;;  %v524_v31 = vmul.f32 %v853_v19, %v1119_v24  ;;  %v574_v43 = vadd.f32 %v1183_v52, %v552_v26 }
 0x22e   :  { %v757_v23 = vpack.c.bf16 %v573_v45, %v572_v61  ;;  %v545_v62 = vmul.f32 %v1176_v40, %v523_v17  ;;  %866 = vrsqrt.f32 %v495_v18  ;;  %v487_v5 = vmul.f32 0.0625, %v471_v20 }
 0x22f   :  { %v855_v25 = vpop.eup %854  ;;  %v546_v44 = vmul.f32 %v1176_v40, %v524_v31 }
 0x230   :  { %v857_v28 = vpop.eup %856  ;;  %777 = vst [vmem:[%s1259_s5 + $0x20] sm:$0xff] %v757_v23   ;;  %v567_v15 = vadd.f32 %v1183_v52, %v545_v62  ;;  %v531_v32 = vmul.f32 %v855_v25, %v1128_v27  ;;  %v503_v34 = vadd.f32 1e-06, %v487_v5 }
 0x231   :  { %v532_v42 = vmul.f32 %v857_v28, %v1131_v35  ;;  %v568_v35 = vadd.f32 %v1183_v52, %v546_v44 }
 0x232   :  { %v742_v6 = vpack.c.bf16 %v567_v15, %v566_v12  ;;  %v553_v13 = vmul.f32 %v1176_v40, %v531_v32  ;;  %868 = vrsqrt.f32 %v503_v34 }
 0x233   :  { %v859_v41 = vpop.eup %858  ;;  %v554_v50 = vmul.f32 %v1176_v40, %v532_v42 }
 0x234   :  { %v861_v33 = vpop.eup %860  ;;  %774 = vst [vmem:[%s1259_s5 + $0x8] sm:$0xff] %v742_v6   ;;  %v575_v24 = vadd.f32 %v1183_v52, %v553_v13  ;;  %v525_v27 = vmul.f32 %v859_v41, %v1134_v36 }
 0x235   :  { %v526_v55 = vmul.f32 %v861_v33, %v1143_v47  ;;  %v576_v30 = vadd.f32 %v1183_v52, %v554_v50 }
 0x236   :  { %v762_v14 = vpack.c.bf16 %v575_v24, %v574_v43  ;;  %v547_v21 = vmul.f32 %v1176_v40, %v525_v27 }
 0x237   :  { %v863_v48 = vpop.eup %862  ;;  %v548_v60 = vmul.f32 %v1176_v40, %v526_v55 }
 0x238   :  { %778 = vst [vmem:[%s1259_s5 + $0x28] sm:$0xff] %v762_v14   ;;  %v569_v46 = vadd.f32 %v1183_v52, %v547_v21  ;;  %v533_v38 = vmul.f32 %v863_v48, %v1152_v51  ;;  %v865_v29 = vpop.eup %864 }
 0x239   :  { %v534_v0 = vmul.f32 %v865_v29, %v1155_v56  ;;  %v570_v53 = vadd.f32 %v1183_v52, %v548_v60 }
 0x23a   :  { %v747_v36 = vpack.c.bf16 %v569_v46, %v568_v35  ;;  %v555_v22 = vmul.f32 %v1176_v40, %v533_v38 }
 0x23b   :  { %v867_v59 = vpop.eup %866  ;;  %v556_v49 = vmul.f32 %v1176_v40, %v534_v0 }
 0x23c   :  { %775 = vst [vmem:[%s1259_s5 + $0x10] sm:$0xff] %v747_v36   ;;  %v577_v63 = vadd.f32 %v1183_v52, %v555_v22  ;;  %v527_v47 = vmul.f32 %v867_v59, %v1163_v58 }
 0x23d   :  { %v578_v58 = vadd.f32 %v1183_v52, %v556_v49 }
 0x23e   :  { %v767_v51 = vpack.c.bf16 %v577_v63, %v576_v30  ;;  %v549_v57 = vmul.f32 %v1176_v40, %v527_v47 }
 0x23f   :  { %v869_v1 = vpop.eup %868 }
 0x240   :  { %779 = vst [vmem:[%s1259_s5 + $0x30] sm:$0xff] %v767_v51   ;;  %v571_v3 = vadd.f32 %v1183_v52, %v549_v57  ;;  %v535_v4 = vmul.f32 %v869_v1, %v1168_v39 }
 0x242   :  { %v752_v7 = vpack.c.bf16 %v571_v3, %v570_v53  ;;  %v557_v56 = vmul.f32 %v1176_v40, %v535_v4 }
 0x244   :  { %776 = vst [vmem:[%s1259_s5 + $0x18] sm:$0xff] %v752_v7   ;;  %v579_v8 = vadd.f32 %v1183_v52, %v557_v56 }
 0x246   :  { %v772_v9 = vpack.c.bf16 %v579_v8, %v578_v58 }
 0x248   :  { %780 = vst [vmem:[%s1259_s5 + $0x38] sm:$0xff] %v772_v9  }

// kernel: _lambda_.22
= control target key start
LH: loop header
LB: loop body
LE: loop exit
PB: predicated region body
PF: predicated region fallthrough
CT: control target
= control target key end

     0   :  { %vm74_vm0 = vcmask 523264   ;;  %v132_v6 = vlaneseq  ;;  %v297_v10 = vmov 0.0   ;;  %s361_s1 = inlined_call_operand.vmem [shape: bf16[64,128], index: 1, kind: input, shape index: {}]   ;;  %s362_s0 = inlined_call_operand.vmem [shape: bf16[32,64], index: 0, kind: input, shape index: {}]   ;;  %s363_s2 = inlined_call_operand.vmem [shape: f32[1,128], index: 2, kind: input, shape index: {}]   ;;  %s364_s3 = inlined_call_operand.vmem [shape: f32[1,128], index: 3, kind: input, shape index: {}]   ;;  %s365_s4 = inlined_call_operand.vmem [shape: f32[1,128], index: 4, kind: input, shape index: {}]   ;;  %s366_s5 = inlined_call_operand.vmem [shape: bf16[32,128], index: 5, kind: output, shape index: {}]  }
   0x1   :  { %v283_v0 = vld [vmem:[%s361_s1 + $0x18] sm:$0xff]   ;;  %v284_v1 = vld [vmem:[%s361_s1 + $0x10] sm:$0xff]   ;;  %v285_v2 = vld [vmem:[%s361_s1 + $0x8] sm:$0xff]  }
   0x2   :  { %270 = vmatprep.subr.bf16.mxu0 %v283_v0  ;;  %v287_v3 = vld [vmem:[%s362_s0] sm:$0xff]   ;;  %v288_v5 = vld [vmem:[%s362_s0 + $0x8] sm:$0xff]   ;;  %v133_v7 = vand.u32 127, %v132_v6 }
   0x3   :  { %271 = vmatpush3.bf16.msra.mxu0 %v283_v0  ;;  %278 = vmatprep.mubr.msk.bf16.mxu0 %vm74_vm0, %v287_v3  ;;  %v286_v4 = vld [vmem:[%s361_s1] sm:$0xff]  }
   0x4   :  { %272 = vmatprep.subr.bf16.mxu0 %v284_v1  ;;  %vm134_vm1 = vcmp.lt.s32.totalorder %v133_v7, 16  ;;  %v233_v8 = vld [vmem:[%s363_s2] ss:$0 sm:$0xff] }
   0x5   :  { %v242_v11 = vsel %vm134_vm1, 1.0, %v297_v10  ;;  %v243_v57 = vld [vmem:[%s364_s3] ss:$0 sm:$0xff] }
   0x6   :  { %v244_v62 = vld [vmem:[%s365_s4] ss:$0 sm:$0xff] }
   0x7   :  { %273 = vmatpush3.bf16.msra.mxu0 %v284_v1 }
   0x8   :  { %274 = vmatprep.subr.bf16.mxu0 %v285_v2 }
   0xb   :  { %275 = vmatpush3.bf16.msra.mxu0 %v285_v2 }
   0xc   :  { %276 = vmatprep.subr.bf16.mxu0 %v286_v4 }
   0xf   :  { %277 = vmatpush3.bf16.msra.mxu0 %v286_v4 }
  0x12   :  { %279 = vmatmul.mubr.msk.bf16.vlgmr.msra.gmra.mxu0 %vm74_vm0, %v288_v5 }
  0xd2   :  { %v280_v9 = vpop.f32.mrf.mxu0 }
  0xd3   :  { %v124_v12 = vadd.f32 %v280_v9, %v233_v8 }
  0xd4   :  { %v115_v13 = vpop.f32.mrf.mxu0 }
  0xd5   :  { %v116_v14 = vadd.f32 %v233_v8, %v115_v13  ;;  %v139_v15 = vmul.f32 %v242_v11, %v124_v12 }
  0xd6   :  { %v281_v16 = vpop.f32.mrf.mxu0 }
  0xd7   :  { %v127_v17 = vadd.f32 %v281_v16, %v233_v8  ;;  %145 = vadd.xlane.f32.xlu1 %v139_v15  ;;  %v137_v18 = vmul.f32 %v242_v11, %v116_v14 }
  0xd8   :  { %v118_v19 = vpop.f32.mrf.mxu0 }
  0xd9   :  { %v119_v20 = vadd.f32 %v233_v8, %v118_v19  ;;  %141 = vadd.xlane.f32.xlu0 %v137_v18  ;;  %v140_v21 = vmul.f32 %v242_v11, %v127_v17 }
  0xdb   :  { %147 = vadd.xlane.f32.xlu1 %v140_v21  ;;  %v138_v22 = vmul.f32 %v242_v11, %v119_v20 }
  0xdd   :  { %143 = vadd.xlane.f32.xlu0 %v138_v22 }
 0x160   :  { %v146_v23 = vpop.xlane.xlu1 %145 }
 0x161   :  { %v151_v24 = vmul.f32 0.0625, %v146_v23 }
 0x162   :  { %v142_v25 = vpop.xlane.xlu0 %141 }
 0x163   :  { %v149_v26 = vmul.f32 0.0625, %v142_v25  ;;  %v155_v28 = vsub.f32 %v124_v12, %v151_v24 }
 0x164   :  { %v148_v27 = vpop.xlane.xlu1 %147 }
 0x165   :  { %v153_v29 = vsub.f32 %v116_v14, %v149_v26  ;;  %v152_v30 = vmul.f32 0.0625, %v148_v27  ;;  %v159_v37 = vmul.f32 %v242_v11, %v155_v28 }
 0x166   :  { %v144_v31 = vpop.xlane.xlu0 %143 }
 0x167   :  { %v150_v32 = vmul.f32 0.0625, %v144_v31  ;;  %v157_v33 = vmul.f32 %v242_v11, %v153_v29  ;;  %v156_v34 = vsub.f32 %v127_v17, %v152_v30  ;;  %v163_v39 = vmul.f32 %v159_v37, %v159_v37 }
 0x169   :  { %v154_v35 = vsub.f32 %v119_v20, %v150_v32  ;;  %v161_v36 = vmul.f32 %v157_v33, %v157_v33  ;;  %v160_v41 = vmul.f32 %v242_v11, %v156_v34 }
 0x16b   :  { %165 = vadd.xlane.f32.xlu0 %v161_v36  ;;  %v158_v38 = vmul.f32 %v242_v11, %v154_v35  ;;  %v164_v42 = vmul.f32 %v160_v41, %v160_v41 }
 0x16d   :  { %v162_v40 = vmul.f32 %v158_v38, %v158_v38 }
 0x16f   :  { %169 = vadd.xlane.f32.xlu0 %v163_v39  ;;  %167 = vadd.xlane.f32.xlu1 %v162_v40 }
 0x173   :  { %171 = vadd.xlane.f32.xlu1 %v164_v42 }
 0x1f4   :  { %v166_v43 = vpop.xlane.xlu0 %165 }
 0x1f5   :  { %v173_v44 = vmul.f32 0.0625, %v166_v43 }
 0x1f7   :  { %v177_v45 = vadd.f32 1e-06, %v173_v44 }
 0x1f8   :  { %v168_v46 = vpop.xlane.xlu1 %167  ;;  %v170_v47 = vpop.xlane.xlu0 %169 }
 0x1f9   :  { %289 = vrsqrt.f32 %v177_v45  ;;  %v174_v48 = vmul.f32 0.0625, %v168_v46  ;;  %v175_v49 = vmul.f32 0.0625, %v170_v47 }
 0x1fb   :  { %v178_v50 = vadd.f32 1e-06, %v174_v48  ;;  %v179_v51 = vadd.f32 1e-06, %v175_v49 }
 0x1fc   :  { %v172_v52 = vpop.xlane.xlu1 %171 }
 0x1fd   :  { %291 = vrsqrt.f32 %v178_v50  ;;  %v176_v53 = vmul.f32 0.0625, %v172_v52 }
 0x1fe   :  { %293 = vrsqrt.f32 %v179_v51 }
 0x1ff   :  { %v180_v54 = vadd.f32 1e-06, %v176_v53 }
 0x201   :  { %295 = vrsqrt.f32 %v180_v54 }
 0x206   :  { %v290_v55 = vpop.eup %289 }
 0x207   :  { %v185_v56 = vmul.f32 %v290_v55, %v157_v33 }
 0x209   :  { %v195_v60 = vmul.f32 %v243_v57, %v185_v56 }
 0x20a   :  { %v292_v58 = vpop.eup %291 }
 0x20b   :  { %v294_v59 = vpop.eup %293  ;;  %v186_v61 = vmul.f32 %v292_v58, %v158_v38  ;;  %v205_v2 = vadd.f32 %v244_v62, %v195_v60 }
 0x20c   :  { %v187_v63 = vmul.f32 %v294_v59, %v159_v37 }
 0x20d   :  { %v196_v0 = vmul.f32 %v243_v57, %v186_v61 }
 0x20e   :  { %v296_v1 = vpop.eup %295  ;;  %v197_v4 = vmul.f32 %v243_v57, %v187_v63 }
 0x20f   :  { %v206_v3 = vadd.f32 %v244_v62, %v196_v0  ;;  %v188_v5 = vmul.f32 %v296_v1, %v160_v41 }
 0x210   :  { %v207_v8 = vadd.f32 %v244_v62, %v197_v4 }
 0x211   :  { %v256_v6 = vpack.c.bf16 %v206_v3, %v205_v2  ;;  %v198_v7 = vmul.f32 %v243_v57, %v188_v5 }
 0x213   :  { %257 = vst [vmem:[%s366_s5] sm:$0xff] %v256_v6   ;;  %v208_v9 = vadd.f32 %v244_v62, %v198_v7 }
 0x215   :  { %v261_v10 = vpack.c.bf16 %v208_v9, %v207_v8 }
 0x217   :  { %263 = vst [vmem:[%s366_s5 + $0x8] sm:$0xff] %v261_v10  }

// kernel: _lambda_.23
= control target key start
LH: loop header
LB: loop body
LE: loop exit
PB: predicated region body
PF: predicated region fallthrough
CT: control target
= control target key end

     0   :  { %s304_s1 = inlined_call_operand.vmem [shape: bf16[128,128], index: 1, kind: input, shape index: {}]   ;;  %s305_s0 = inlined_call_operand.vmem [shape: bf16[32,128], index: 0, kind: input, shape index: {}]   ;;  %s306_s2 = inlined_call_operand.vmem [shape: f32[1,128], index: 2, kind: input, shape index: {}]   ;;  %s307_s3 = inlined_call_operand.vmem [shape: bf16[32,128], index: 3, kind: output, shape index: {}]  }
   0x1   :  { %v235_v0 = vld [vmem:[%s304_s1 + $0x38] sm:$0xff]   ;;  %v236_v1 = vld [vmem:[%s304_s1 + $0x30] sm:$0xff]   ;;  %v237_v2 = vld [vmem:[%s304_s1 + $0x28] sm:$0xff]  }
   0x2   :  { %215 = vmatprep.subr.bf16.mxu0 %v235_v0  ;;  %v238_v3 = vld [vmem:[%s304_s1 + $0x20] sm:$0xff]   ;;  %v239_v5 = vld [vmem:[%s304_s1 + $0x18] sm:$0xff]   ;;  %v240_v6 = vld [vmem:[%s304_s1 + $0x10] sm:$0xff]  }
   0x3   :  { %216 = vmatpush3.bf16.msra.mxu0 %v235_v0  ;;  %v243_v4 = vld [vmem:[%s305_s0] sm:$0xff]   ;;  %v241_v7 = vld [vmem:[%s304_s1 + $0x8] sm:$0xff]  }
   0x4   :  { %217 = vmatprep.subr.bf16.mxu0 %v236_v1  ;;  %231 = vmatprep.mubr.bf16.mxu0 %v243_v4  ;;  %v242_v8 = vld [vmem:[%s304_s1] sm:$0xff]   ;;  %v244_v9 = vld [vmem:[%s305_s0 + $0x8] sm:$0xff]  }
   0x5   :  { %v175_v11 = vld [vmem:[%s306_s2] ss:$0 sm:$0xff] }
   0x7   :  { %218 = vmatpush3.bf16.msra.mxu0 %v236_v1 }
   0x8   :  { %219 = vmatprep.subr.bf16.mxu0 %v237_v2 }
   0xb   :  { %220 = vmatpush3.bf16.msra.mxu0 %v237_v2 }
   0xc   :  { %221 = vmatprep.subr.bf16.mxu0 %v238_v3 }
   0xf   :  { %222 = vmatpush3.bf16.msra.mxu0 %v238_v3 }
  0x10   :  { %223 = vmatprep.subr.bf16.mxu0 %v239_v5 }
  0x13   :  { %224 = vmatpush3.bf16.msra.mxu0 %v239_v5 }
  0x14   :  { %225 = vmatprep.subr.bf16.mxu0 %v240_v6 }
  0x17   :  { %226 = vmatpush3.bf16.msra.mxu0 %v240_v6 }
  0x18   :  { %227 = vmatprep.subr.bf16.mxu0 %v241_v7 }
  0x1b   :  { %228 = vmatpush3.bf16.msra.mxu0 %v241_v7 }
  0x1c   :  { %229 = vmatprep.subr.bf16.mxu0 %v242_v8 }
  0x1f   :  { %230 = vmatpush3.bf16.msra.mxu0 %v242_v8 }
  0x22   :  { %232 = vmatmul.mubr.bf16.vlgmr.msra.gmra.mxu0 %v244_v9 }
  0xe2   :  { %v233_v10 = vpop.f32.mrf.mxu0 }
  0xe3   :  { %v145_v14 = vadd.f32 %v233_v10, %v175_v11 }
  0xe4   :  { %v136_v12 = vpop.f32.mrf.mxu0 }
  0xe5   :  { %v137_v17 = vadd.f32 %v175_v11, %v136_v12 }
  0xe6   :  { %v234_v13 = vpop.f32.mrf.mxu0 }
  0xe7   :  { %v148_v15 = vadd.f32 %v234_v13, %v175_v11 }
  0xe8   :  { %v139_v16 = vpop.f32.mrf.mxu0 }
  0xe9   :  { %v202_v18 = vpack.c.bf16 %v148_v15, %v145_v14  ;;  %v140_v19 = vadd.f32 %v175_v11, %v139_v16 }
  0xeb   :  { %204 = vst [vmem:[%s307_s3 + $0x8] sm:$0xff] %v202_v18   ;;  %v197_v20 = vpack.c.bf16 %v140_v19, %v137_v17 }
  0xed   :  { %198 = vst [vmem:[%s307_s3] sm:$0xff] %v197_v20  }

// kernel: _lambda_.24
= control target key start
LH: loop header
LB: loop body
LE: loop exit
PB: predicated region body
PF: predicated region fallthrough
CT: control target
= control target key end

     0   :  { %s1217_s18 = smov 0   ;;  %s1219_s19 = smov 0   ;;  %s1320_s0 = inlined_call_operand.vmem [shape: bf16[2,64,128], index: 0, kind: input, shape index: {}]   ;;  %s1321_s1 = inlined_call_operand.vmem [shape: bf16[2,16,128], index: 1, kind: input, shape index: {}]   ;;  %s1322_s2 = inlined_call_operand.vmem [shape: bf16[1,128,128], index: 2, kind: input, shape index: {}]   ;;  %s1323_s3 = inlined_call_operand.vmem [shape: f32[1,128], index: 3, kind: input, shape index: {}]   ;;  %s1324_s4 = inlined_call_operand.vmem [shape: bf16[2,64,128], index: 4, kind: input, shape index: {}]   ;;  %s1325_s5 = inlined_call_operand.vmem [shape: bf16[2,64,128], index: 5, kind: output, shape index: {}]  }
   0x1   :  { %s1221_s20 = smov 0  }
   0x2 LB: > { %s27_s21 = sadd.s32 1, %s1181_s19  ;;  %p937_p0 = scmp.ge.s32.totalorder %s1185_s20, 1  ;;  %s1185_s20 = sphi %s1221_s20, %s15_s20   ;;  %s1181_s19 = sphi %s1219_s19, %s1327_s19   ;;  %s1177_s18 = sphi %s1217_s18, %s1326_s18  }
   0x3   : > { %p29_p1 = scmp.ge.s32.totalorder %s27_s21, 2  ;;  %p235_p2 = scmp.lt.s32.totalorder %s1185_s20, 3 }
   0x5   : > { %s1329_s21 = smov (%p29_p1, %s27_s21), 0  ;;  %p236_p3 = pnand %p937_p0, %p235_p2 }
   0x6   : > { %p286_p4 = scmp.lt.s32.totalorder (!%p236_p3), %s1177_s18, 1 }
   0x7   : > { %239 = sbr.rel (%p236_p3) target bundleno = 958 (0x3be), region = 40 }
   0xc   : > { %s1331_s18 = smov (!%p286_p4, %s1177_s18), 1  ;;  %vm465_vm0 = vcmask 130048  }
   0xd   : > { %s1235_s22 = sshll.u32 %s1331_s18, 5  ;;  %s975_s23 = sshll.u32 %s1331_s18, 3 }
   0xe   : > { %s293_s26 = scalar_lea.vmem %s1320_s0, %s1235_s22  ;;  %s299_s29 = scalar_lea.vmem %s1321_s1, %s975_s23 }
   0xf   : > { %v1118_v0 = vld [vmem:[%s299_s29] sm:$0xff]   ;;  %v1120_v2 = vld [vmem:[%s293_s26 + $0x8] sm:$0xff]   ;;  %v1121_v3 = vld [vmem:[%s293_s26 + $0x10] sm:$0xff]   ;;  %s308_s27 = scalar_lea.vmem %s1324_s4, %s1235_s22  ;;  %s318_s7 = scalar_lea.vmem %s1325_s5, %s1235_s22 }
  0x10   : > { %v1119_v1 = vld [vmem:[%s293_s26] sm:$0xff]   ;;  %1050 = vmatprep.subr.bf16.mxu0 %v1118_v0  ;;  %v1122_v4 = vld [vmem:[%s293_s26 + $0x18] sm:$0xff]  }
  0x11   : > { %1051 = vmatpush3.bf16.xpose.msra.mxu0 %v1118_v0  ;;  %1052 = vmatprep.mubr.bf16.mxu0 %v1119_v1 }
  0x12   : > { %1060 = vmatprep.subr.bf16.mxu0 %v1118_v0 }
  0x18   : > { %1053 = vmatmul.mubr.bf16.vlgmr.msra.gmra.mxu0 %v1120_v2 }
  0x19   : > { %1056 = vmatprep.mubr.bf16.mxu0 %v1121_v3  ;;  %1061 = vmatpush3.bf16.msra.mxu0 %v1118_v0 }
  0x20   : > { %1057 = vmatmul.mubr.bf16.gmra.mxu0 %v1122_v4 }
  0xd8   : > { %v1054_v5 = vpop.f32.mrf.mxu0 }
  0xd9   : > { %v459_v6 = vmul.f32 0.25, %v1054_v5  ;;  %v1123_v5 = vld [vmem:[%s1322_s2 + $0x38] sm:$0xff]  }
  0xda   : > { %v426_v7 = vpop.f32.mrf.mxu0  ;;  %1070 = vmatprep.subr.bf16.mxu1 %v1123_v5 }
  0xdb   : > { %v457_v8 = vmul.f32 0.25, %v426_v7  ;;  %v472_v9 = vsel %vm465_vm0, %v459_v6, -inf  ;;  %1071 = vmatpush3.bf16.msra.mxu1 %v1123_v5  ;;  %v1125_v7 = vld [vmem:[%s1322_s2 + $0x28] sm:$0xff]  }
  0xdc   : > { %473 = vmax.xlane.f32.xlu1 %v472_v9  ;;  %v1055_v10 = vpop.f32.mrf.mxu0  ;;  %v1127_v9 = vld [vmem:[%s1322_s2 + $0x18] sm:$0xff]  }
  0xdd   : > { %v460_v11 = vmul.f32 0.25, %v1055_v10  ;;  %v466_v12 = vsel %vm465_vm0, %v457_v8, -inf  ;;  %v1128_v10 = vld [vmem:[%s1322_s2 + $0x10] sm:$0xff]  }
  0xde   : > { %467 = vmax.xlane.f32.xlu0 %v466_v12  ;;  %v429_v13 = vpop.f32.mrf.mxu0 }
  0xdf   : > { %v458_v14 = vmul.f32 0.25, %v429_v13  ;;  %v475_v15 = vsel %vm465_vm0, %v460_v11, -inf }
  0xe0   : > { %476 = vmax.xlane.f32.xlu1 %v475_v15  ;;  %v1058_v16 = vpop.f32.mrf.mxu0 }
  0xe1   : > { %v469_v17 = vsel %vm465_vm0, %v458_v14, -inf  ;;  %v463_v21 = vmul.f32 0.25, %v1058_v16 }
  0xe2   : > { %470 = vmax.xlane.f32.xlu0 %v469_v17  ;;  %v442_v18 = vpop.f32.mrf.mxu0 }
  0xe3   : > { %v461_v19 = vmul.f32 0.25, %v442_v18  ;;  %v484_v26 = vsel %vm465_vm0, %v463_v21, -inf }
  0xe4   : > { %v1059_v20 = vpop.f32.mrf.mxu0 }
  0xe5   : > { %v478_v22 = vsel %vm465_vm0, %v461_v19, -inf  ;;  %v464_v25 = vmul.f32 0.25, %v1059_v20 }
  0xe6   : > { %479 = vmax.xlane.f32.xlu0 %v478_v22  ;;  %v445_v23 = vpop.f32.mrf.mxu0 }
  0xe7   : > { %v462_v24 = vmul.f32 0.25, %v445_v23  ;;  %v487_v28 = vsel %vm465_vm0, %v464_v25, -inf }
  0xe9   : > { %v481_v27 = vsel %vm465_vm0, %v462_v24, -inf }
  0xea   : > { %485 = vmax.xlane.f32.xlu0 %v484_v26  ;;  %482 = vmax.xlane.f32.xlu1 %v481_v27 }
  0xee   : > { %488 = vmax.xlane.f32.xlu1 %v487_v28 }
 0x165   : > { %v474_v29 = vpop.xlane.xlu1 %473 }
 0x166   : > { %v492_v30 = vsub.f32 %v459_v6, %v474_v29  ;;  %v1124_v6 = vld [vmem:[%s1322_s2 + $0x30] sm:$0xff]  }
 0x167   : > { %v468_v31 = vpop.xlane.xlu0 %467  ;;  %1072 = vmatprep.subr.bf16.mxu1 %v1124_v6 }
 0x168   : > { %v490_v32 = vsub.f32 %v457_v8, %v468_v31  ;;  %v502_v34 = vmul.f32 1.442695, %v492_v30  ;;  %1073 = vmatpush3.bf16.msra.mxu1 %v1124_v6  ;;  %v1126_v8 = vld [vmem:[%s1322_s2 + $0x20] sm:$0xff]  }
 0x169   : > { %v477_v33 = vpop.xlane.xlu1 %476  ;;  %1074 = vmatprep.subr.bf16.mxu1 %v1125_v7 }
 0x16a   : > { %v498_v35 = vmul.f32 1.442695, %v490_v32  ;;  %v493_v36 = vsub.f32 %v460_v11, %v477_v33 }
 0x16b   : > { %v471_v37 = vpop.xlane.xlu0 %470 }
 0x16c   : > { %1131 = vpow2.f32 %v498_v35  ;;  %v491_v38 = vsub.f32 %v458_v14, %v471_v37  ;;  %v504_v39 = vmul.f32 1.442695, %v493_v36  ;;  %1075 = vmatpush3.bf16.msra.mxu1 %v1125_v7 }
 0x16d   : > { %1133 = vpow2.f32 %v502_v34  ;;  %1076 = vmatprep.subr.bf16.mxu1 %v1126_v8 }
 0x16e   : > { %v500_v40 = vmul.f32 1.442695, %v491_v38 }
 0x16f   : > { %v480_v41 = vpop.xlane.xlu0 %479 }
 0x170   : > { %1135 = vpow2.f32 %v500_v40  ;;  %v494_v42 = vsub.f32 %v461_v19, %v480_v41  ;;  %1077 = vmatpush3.bf16.msra.mxu1 %v1126_v8  ;;  %v1130_v40 = vld [vmem:[%s1322_s2] sm:$0xff]  }
 0x171   : > { %1137 = vpow2.f32 %v504_v39  ;;  %1078 = vmatprep.subr.bf16.mxu1 %v1127_v9  ;;  %v1129_v39 = vld [vmem:[%s1322_s2 + $0x8] sm:$0xff]  }
 0x172   : > { %v506_v43 = vmul.f32 1.442695, %v494_v42 }
 0x173   : > { %v486_v44 = vpop.xlane.xlu0 %485  ;;  %v483_v45 = vpop.xlane.xlu1 %482 }
 0x174   : > { %1139 = vpow2.f32 %v506_v43  ;;  %v496_v46 = vsub.f32 %v463_v21, %v486_v44  ;;  %v495_v47 = vsub.f32 %v462_v24, %v483_v45  ;;  %1079 = vmatpush3.bf16.msra.mxu1 %v1127_v9 }
 0x175   : > { %1080 = vmatprep.subr.bf16.mxu1 %v1128_v10 }
 0x176   : > { %v510_v48 = vmul.f32 1.442695, %v496_v46  ;;  %v508_v49 = vmul.f32 1.442695, %v495_v47 }
 0x177   : > { %v489_v50 = vpop.xlane.xlu1 %488 }
 0x178   : > { %1141 = vpow2.f32 %v510_v48  ;;  %v497_v51 = vsub.f32 %v464_v25, %v489_v50  ;;  %1081 = vmatpush3.bf16.msra.mxu1 %v1128_v10 }
 0x179   : > { %v1252_v52 = vpop.eup %1131  ;;  %1143 = vpow2.f32 %v508_v49  ;;  %1082 = vmatprep.subr.bf16.mxu1 %v1129_v39 }
 0x17a   : > { %v512_v53 = vmul.f32 1.442695, %v497_v51  ;;  %v514_v54 = vsel %vm465_vm0, %v1252_v52, 0.0  ;;  %v1256_v55 = vpop.eup %1133 }
 0x17b   : > { %515 = vadd.xlane.f32.xlu0 %v514_v54  ;;  %v520_v57 = vsel %vm465_vm0, %v1256_v55, 0.0  ;;  %v987_v54 = vld [vmem:[%s308_s27] sm:$0xff]  }
 0x17c   : > { %1145 = vpow2.f32 %v512_v53  ;;  %1083 = vmatpush3.bf16.msra.mxu1 %v1129_v39  ;;  %v1022_v53 = vld [vmem:[%s308_s27 + $0x8] sm:$0xff]  }
 0x17d   : > { %v1136_v56 = vpop.eup %1135  ;;  %1084 = vmatprep.subr.bf16.mxu1 %v1130_v40 }
 0x17e   : > { %v517_v58 = vsel %vm465_vm0, %v1136_v56, 0.0  ;;  %v1138_v59 = vpop.eup %1137 }
 0x17f   : > { %521 = vadd.xlane.f32.xlu0 %v520_v57  ;;  %518 = vadd.xlane.f32.xlu1 %v517_v58  ;;  %v523_v62 = vsel %vm465_vm0, %v1138_v59, 0.0  ;;  %v946_v57 = vld [vmem:[%s1323_s3] ss:$0 sm:$0xff]  ;;  %v988_v58 = vunpack.c.l.bf16 %v987_v54 }
 0x180   : > { %1085 = vmatpush3.bf16.msra.mxu1 %v1130_v40 }
 0x181   : > { %v1140_v60 = vpop.eup %1139 }
 0x182   : > { %v526_v61 = vsel %vm465_vm0, %v1140_v60, 0.0 }
 0x183   : > { %527 = vadd.xlane.f32.xlu0 %v526_v61  ;;  %524 = vadd.xlane.f32.xlu1 %v523_v62 }
 0x185   : > { %v1263_v63 = vpop.eup %1141 }
 0x186   : > { %v1144_v0 = vpop.eup %1143  ;;  %v532_v1 = vsel %vm465_vm0, %v1263_v63, 0.0 }
 0x187   : > { %533 = vadd.xlane.f32.xlu0 %v532_v1  ;;  %v529_v2 = vsel %vm465_vm0, %v1144_v0, 0.0  ;;  %v354_v1 = vadd.f32 %v988_v58, %v946_v57 }
 0x188   : > { %530 = vadd.xlane.f32.xlu1 %v529_v2 }
 0x189   : > { %v1146_v3 = vpop.eup %1145 }
 0x18a   : > { %v535_v4 = vsel %vm465_vm0, %v1146_v3, 0.0 }
 0x18c   : > { %536 = vadd.xlane.f32.xlu1 %v535_v4 }
 0x204   : > { %v516_v11 = vpop.xlane.xlu0 %515 }
 0x205   : > { %1147 = vrcp.f32 %v516_v11 }
 0x208   : > { %v522_v12 = vpop.xlane.xlu0 %521  ;;  %v519_v13 = vpop.xlane.xlu1 %518 }
 0x209   : > { %1149 = vrcp.f32 %v519_v13 }
 0x20a   : > { %1151 = vrcp.f32 %v522_v12 }
 0x20c   : > { %v528_v14 = vpop.xlane.xlu0 %527  ;;  %v525_v15 = vpop.xlane.xlu1 %524 }
 0x20d   : > { %1153 = vrcp.f32 %v525_v15 }
 0x20e   : > { %1155 = vrcp.f32 %v528_v14 }
 0x210   : > { %v534_v16 = vpop.xlane.xlu0 %533 }
 0x211   : > { %v531_v17 = vpop.xlane.xlu1 %530 }
 0x212   : > { %1157 = vrcp.f32 %v531_v17  ;;  %v1148_v18 = vpop.eup %1147 }
 0x213   : > { %1159 = vrcp.f32 %v534_v16  ;;  %v546_v21 = vmul.f32 %v1148_v18, %v1252_v52 }
 0x215   : > { %v537_v19 = vpop.xlane.xlu1 %536 }
 0x216   : > { %1161 = vrcp.f32 %v537_v19  ;;  %v1150_v20 = vpop.eup %1149 }
 0x217   : > { %v547_v22 = vmul.f32 %v1150_v20, %v1136_v56  ;;  %v1152_v23 = vpop.eup %1151  ;;  %v993_v56 = vunpack.c.h.bf16 %v1022_v53 }
 0x218   : > { %v548_v26 = vmul.f32 %v1152_v23, %v1256_v55  ;;  %v992_v55 = vunpack.c.l.bf16 %v1022_v53 }
 0x219   : > { %v554_v24 = vpack.c.bf16 %v547_v22, %v546_v21  ;;  %v357_v62 = vadd.f32 %v993_v56, %v946_v57 }
 0x21a   : > { %v1154_v25 = vpop.eup %1153  ;;  %v356_v61 = vadd.f32 %v992_v55, %v946_v57 }
 0x21b   : > { %v549_v27 = vmul.f32 %v1154_v25, %v1138_v59  ;;  %1062 = vmatprep.mubr.msk.bf16.mxu0 %vm465_vm0, %v554_v24  ;;  %v1156_v28 = vpop.eup %1155  ;;  %v989_v59 = vunpack.c.h.bf16 %v987_v54 }
 0x21c   : > { %v550_v31 = vmul.f32 %v1156_v28, %v1140_v60 }
 0x21d   : > { %v555_v29 = vpack.c.bf16 %v549_v27, %v548_v26  ;;  %v355_v2 = vadd.f32 %v989_v59, %v946_v57 }
 0x21f   : > { %v1158_v30 = vpop.eup %1157  ;;  %1063 = vmatmul.mubr.msk.bf16.vlgmr.msra.gmra.mxu0 %vm465_vm0, %v555_v29 }
 0x220   : > { %v551_v32 = vmul.f32 %v1158_v30, %v1144_v0  ;;  %v1160_v33 = vpop.eup %1159  ;;  %v1024_v0 = vld [vmem:[%s308_s27 + $0x18] sm:$0xff]  }
 0x221   : > { %v552_v36 = vmul.f32 %v1160_v33, %v1263_v63  ;;  %v1000_v7 = vunpack.c.l.bf16 %v1024_v0  ;;  %v1001_v8 = vunpack.c.h.bf16 %v1024_v0 }
 0x222   : > { %v556_v34 = vpack.c.bf16 %v551_v32, %v550_v31 }
 0x223   : > { %v1162_v35 = vpop.eup %1161  ;;  %v360_v17 = vadd.f32 %v1000_v7, %v946_v57  ;;  %v361_v18 = vadd.f32 %v1001_v8, %v946_v57 }
 0x224   : > { %1066 = vmatprep.mubr.msk.bf16.mxu0 %vm465_vm0, %v556_v34  ;;  %v553_v37 = vmul.f32 %v1162_v35, %v1146_v3  ;;  %v1023_v3 = vld [vmem:[%s308_s27 + $0x10] sm:$0xff]  }
 0x225   : > { %v996_v10 = vunpack.c.l.bf16 %v1023_v3  ;;  %v997_v14 = vunpack.c.h.bf16 %v1023_v3 }
 0x226   : > { %v557_v38 = vpack.c.bf16 %v553_v37, %v552_v36 }
 0x227   : > { %v358_v20 = vadd.f32 %v996_v10, %v946_v57  ;;  %v359_v21 = vadd.f32 %v997_v14, %v946_v57 }
 0x228   : > { %1067 = vmatmul.mubr.msk.bf16.gmra.mxu0 %vm465_vm0, %v557_v38 }
 0x2df   : > { %v1064_v41 = vpop.f32.mrf.mxu0 }
 0x2e1   : > { %v604_v42 = vpop.f32.mrf.mxu0 }
 0x2e3   : > { %v1065_v43 = vpop.f32.mrf.mxu0 }
 0x2e4   : > { %v636_v46 = vpack.c.bf16 %v1065_v43, %v1064_v41 }
 0x2e5   : > { %v607_v44 = vpop.f32.mrf.mxu0 }
 0x2e6   : > { %v635_v45 = vpack.c.bf16 %v607_v44, %v604_v42 }
 0x2e8   : > { %v1068_v47 = vpop.f32.mrf.mxu0  ;;  %1086 = vmatprep.mubr.bf16.mxu1 %v635_v45 }
 0x2e9   : > { %1087 = vmatmul.mubr.bf16.vlgmr.msra.gmra.mxu1 %v636_v46 }
 0x2ea   : > { %v620_v48 = vpop.f32.mrf.mxu0 }
 0x2ec   : > { %v1069_v49 = vpop.f32.mrf.mxu0 }
 0x2ed   : > { %v638_v52 = vpack.c.bf16 %v1069_v49, %v1068_v47 }
 0x2ee   : > { %v623_v50 = vpop.f32.mrf.mxu0 }
 0x2ef   : > { %v637_v51 = vpack.c.bf16 %v623_v50, %v620_v48 }
 0x2f1   : > { %1090 = vmatprep.mubr.bf16.mxu1 %v637_v51 }
 0x2f2   : > { %1091 = vmatmul.mubr.bf16.gmra.mxu1 %v638_v52 }
 0x3a9   : > { %v1088_v60 = vpop.f32.mrf.mxu1 }
 0x3aa   : > { %v770_v5 = vadd.f32 %v1088_v60, %v356_v61 }
 0x3ab   : > { %v737_v63 = vpop.f32.mrf.mxu1 }
 0x3ac   : > { %v768_v11 = vadd.f32 %v737_v63, %v354_v1 }
 0x3ad   : > { %v1089_v4 = vpop.f32.mrf.mxu1 }
 0x3ae   : > { %v771_v6 = vadd.f32 %v1089_v4, %v357_v62 }
 0x3af   : > { %v740_v9 = vpop.f32.mrf.mxu1 }
 0x3b0   : > { %v1010_v12 = vpack.c.bf16 %v771_v6, %v770_v5  ;;  %v769_v13 = vadd.f32 %v740_v9, %v355_v2 }
 0x3b2   : > { %v1092_v15 = vpop.f32.mrf.mxu1  ;;  %1025 = vst [vmem:[%s318_s7 + $0x8] sm:$0xff] %v1010_v12   ;;  %v1005_v16 = vpack.c.bf16 %v769_v13, %v768_v11 }
 0x3b3   : > { %v774_v23 = vadd.f32 %v1092_v15, %v360_v17 }
 0x3b4   : > { %v753_v19 = vpop.f32.mrf.mxu1  ;;  %1006 = vst [vmem:[%s318_s7] sm:$0xff] %v1005_v16  }
 0x3b5   : > { %v772_v26 = vadd.f32 %v753_v19, %v358_v20 }
 0x3b6   : > { %v1093_v22 = vpop.f32.mrf.mxu1 }
 0x3b7   : > { %v775_v24 = vadd.f32 %v1093_v22, %v361_v18 }
 0x3b8   : > { %v756_v25 = vpop.f32.mrf.mxu1 }
 0x3b9   : > { %v1020_v27 = vpack.c.bf16 %v775_v24, %v774_v23  ;;  %v773_v28 = vadd.f32 %v756_v25, %v359_v21 }
 0x3bb   : > { %1027 = vst [vmem:[%s318_s7 + $0x18] sm:$0xff] %v1020_v27   ;;  %v1015_v29 = vpack.c.bf16 %v773_v28, %v772_v26 }
 0x3bd   : > { %1026 = vst [vmem:[%s318_s7 + $0x10] sm:$0xff] %v1015_v29  }
 0x3be PF: > { %s15_s20 = sadd.s32 1, %s1185_s20   ;;  %s1326_s18 = smov %s1181_s19 }
 0x3bf   : > { %p12_p5 = scmp.ge.s32.totalorder %s15_s20, 4   ;;  %s1327_s19 = smov %s1329_s21 }
 0x3c1   :  { %14 = sbr.rel (!%p12_p5) target bundleno = 2 (0x2), region = 76 }

// kernel: _lambda_.21
= control target key start
LH: loop header
LB: loop body
LE: loop exit
PB: predicated region body
PF: predicated region fallthrough
CT: control target
= control target key end

     0   :  { %s602_s1 = inlined_call_operand.vmem [shape: bf16[128,128], index: 1, kind: input, shape index: {}]   ;;  %s603_s0 = inlined_call_operand.vmem [shape: bf16[128,128], index: 0, kind: input, shape index: {}]   ;;  %s604_s2 = inlined_call_operand.vmem [shape: f32[1,128], index: 2, kind: input, shape index: {}]   ;;  %s605_s3 = inlined_call_operand.vmem [shape: bf16[128,128], index: 3, kind: output, shape index: {}]  }
   0x1   :  { %v491_v0 = vld [vmem:[%s602_s1 + $0x38] sm:$0xff]   ;;  %v492_v1 = vld [vmem:[%s602_s1 + $0x30] sm:$0xff]   ;;  %v493_v2 = vld [vmem:[%s602_s1 + $0x28] sm:$0xff]  }
   0x2   :  { %443 = vmatprep.subr.bf16.mxu0 %v491_v0  ;;  %475 = vmatprep.subr.bf16.mxu1 %v491_v0  ;;  %v494_v3 = vld [vmem:[%s602_s1 + $0x20] sm:$0xff]   ;;  %v495_v6 = vld [vmem:[%s602_s1 + $0x18] sm:$0xff]   ;;  %v496_v7 = vld [vmem:[%s602_s1 + $0x10] sm:$0xff]  }
   0x3   :  { %444 = vmatpush3.bf16.msra.mxu0 %v491_v0  ;;  %483 = vmatpush3.bf16.msra.mxu1 %v491_v0  ;;  %v499_v4 = vld [vmem:[%s603_s0] sm:$0xff]   ;;  %v497_v8 = vld [vmem:[%s602_s1 + $0x8] sm:$0xff]   ;;  %v503_v12 = vld [vmem:[%s603_s0 + $0x10] sm:$0xff]  }
   0x4   :  { %445 = vmatprep.subr.bf16.mxu0 %v492_v1  ;;  %476 = vmatprep.subr.bf16.mxu1 %v492_v1  ;;  %v500_v5 = vld [vmem:[%s603_s0 + $0x20] sm:$0xff]   ;;  %v501_v10 = vld [vmem:[%s603_s0 + $0x8] sm:$0xff]   ;;  %v504_v13 = vld [vmem:[%s603_s0 + $0x30] sm:$0xff]  }
   0x5   :  { %459 = vmatprep.mubr.bf16.mxu0 %v499_v4  ;;  %467 = vmatprep.mubr.bf16.mxu1 %v500_v5  ;;  %v498_v9 = vld [vmem:[%s602_s1] sm:$0xff]   ;;  %v502_v11 = vld [vmem:[%s603_s0 + $0x28] sm:$0xff]   ;;  %v505_v14 = vld [vmem:[%s603_s0 + $0x18] sm:$0xff]  }
   0x6   :  { %v506_v15 = vld [vmem:[%s603_s0 + $0x38] sm:$0xff]   ;;  %v331_v18 = vld [vmem:[%s604_s2] ss:$0 sm:$0xff] }
   0x7   :  { %446 = vmatpush3.bf16.msra.mxu0 %v492_v1  ;;  %484 = vmatpush3.bf16.msra.mxu1 %v492_v1 }
   0x8   :  { %447 = vmatprep.subr.bf16.mxu0 %v493_v2  ;;  %477 = vmatprep.subr.bf16.mxu1 %v493_v2 }
   0xb   :  { %448 = vmatpush3.bf16.msra.mxu0 %v493_v2  ;;  %485 = vmatpush3.bf16.msra.mxu1 %v493_v2 }
   0xc   :  { %449 = vmatprep.subr.bf16.mxu0 %v494_v3  ;;  %478 = vmatprep.subr.bf16.mxu1 %v494_v3 }
   0xf   :  { %450 = vmatpush3.bf16.msra.mxu0 %v494_v3  ;;  %486 = vmatpush3.bf16.msra.mxu1 %v494_v3 }
  0x10   :  { %451 = vmatprep.subr.bf16.mxu0 %v495_v6  ;;  %479 = vmatprep.subr.bf16.mxu1 %v495_v6 }
  0x13   :  { %452 = vmatpush3.bf16.msra.mxu0 %v495_v6  ;;  %487 = vmatpush3.bf16.msra.mxu1 %v495_v6 }
  0x14   :  { %453 = vmatprep.subr.bf16.mxu0 %v496_v7  ;;  %480 = vmatprep.subr.bf16.mxu1 %v496_v7 }
  0x17   :  { %454 = vmatpush3.bf16.msra.mxu0 %v496_v7  ;;  %488 = vmatpush3.bf16.msra.mxu1 %v496_v7 }
  0x18   :  { %455 = vmatprep.subr.bf16.mxu0 %v497_v8  ;;  %481 = vmatprep.subr.bf16.mxu1 %v497_v8 }
  0x1b   :  { %456 = vmatpush3.bf16.msra.mxu0 %v497_v8  ;;  %489 = vmatpush3.bf16.msra.mxu1 %v497_v8 }
  0x1c   :  { %457 = vmatprep.subr.bf16.mxu0 %v498_v9  ;;  %482 = vmatprep.subr.bf16.mxu1 %v498_v9 }
  0x1f   :  { %458 = vmatpush3.bf16.msra.mxu0 %v498_v9  ;;  %490 = vmatpush3.bf16.msra.mxu1 %v498_v9 }
  0x22   :  { %460 = vmatmul.mubr.bf16.vlgmr.msra.gmra.mxu0 %v501_v10  ;;  %468 = vmatmul.mubr.bf16.vlgmr.msra.gmra.mxu1 %v502_v11 }
  0x23   :  { %463 = vmatprep.mubr.bf16.mxu0 %v503_v12  ;;  %471 = vmatprep.mubr.bf16.mxu1 %v504_v13 }
  0x2a   :  { %464 = vmatmul.mubr.bf16.gmra.mxu0 %v505_v14  ;;  %472 = vmatmul.mubr.bf16.gmra.mxu1 %v506_v15 }
  0xe2   :  { %v461_v16 = vpop.f32.mrf.mxu0  ;;  %v469_v17 = vpop.f32.mrf.mxu1 }
  0xe3   :  { %v193_v23 = vadd.f32 %v461_v16, %v331_v18  ;;  %v225_v24 = vadd.f32 %v469_v17, %v331_v18 }
  0xe4   :  { %v184_v19 = vpop.f32.mrf.mxu0  ;;  %v216_v20 = vpop.f32.mrf.mxu1 }
  0xe5   :  { %v185_v27 = vadd.f32 %v331_v18, %v184_v19  ;;  %v217_v28 = vadd.f32 %v331_v18, %v216_v20 }
  0xe6   :  { %v462_v21 = vpop.f32.mrf.mxu0  ;;  %v470_v22 = vpop.f32.mrf.mxu1 }
  0xe7   :  { %v196_v25 = vadd.f32 %v462_v21, %v331_v18  ;;  %v228_v26 = vadd.f32 %v470_v22, %v331_v18 }
  0xe8   :  { %v187_v29 = vpop.f32.mrf.mxu0  ;;  %v219_v30 = vpop.f32.mrf.mxu1 }
  0xe9   :  { %v388_v31 = vpack.c.bf16 %v196_v25, %v193_v23  ;;  %v408_v32 = vpack.c.bf16 %v228_v26, %v225_v24  ;;  %v188_v33 = vadd.f32 %v331_v18, %v187_v29  ;;  %v220_v34 = vadd.f32 %v331_v18, %v219_v30 }
  0xea   :  { %v465_v35 = vpop.f32.mrf.mxu0  ;;  %v473_v36 = vpop.f32.mrf.mxu1 }
  0xeb   :  { %420 = vst [vmem:[%s605_s3 + $0x8] sm:$0xff] %v388_v31   ;;  %424 = vst [vmem:[%s605_s3 + $0x28] sm:$0xff] %v408_v32   ;;  %v383_v37 = vpack.c.bf16 %v188_v33, %v185_v27  ;;  %v403_v38 = vpack.c.bf16 %v220_v34, %v217_v28  ;;  %v209_v43 = vadd.f32 %v465_v35, %v331_v18 }
  0xec   :  { %v200_v39 = vpop.f32.mrf.mxu0  ;;  %v232_v40 = vpop.f32.mrf.mxu1  ;;  %v241_v44 = vadd.f32 %v473_v36, %v331_v18 }
  0xed   :  { %384 = vst [vmem:[%s605_s3] sm:$0xff] %v383_v37   ;;  %423 = vst [vmem:[%s605_s3 + $0x20] sm:$0xff] %v403_v38   ;;  %v201_v47 = vadd.f32 %v331_v18, %v200_v39  ;;  %v233_v48 = vadd.f32 %v331_v18, %v232_v40 }
  0xee   :  { %v466_v41 = vpop.f32.mrf.mxu0  ;;  %v474_v42 = vpop.f32.mrf.mxu1 }
  0xef   :  { %v212_v45 = vadd.f32 %v466_v41, %v331_v18  ;;  %v244_v46 = vadd.f32 %v474_v42, %v331_v18 }
  0xf0   :  { %v203_v49 = vpop.f32.mrf.mxu0  ;;  %v235_v50 = vpop.f32.mrf.mxu1 }
  0xf1   :  { %v398_v51 = vpack.c.bf16 %v212_v45, %v209_v43  ;;  %v418_v52 = vpack.c.bf16 %v244_v46, %v241_v44  ;;  %v204_v53 = vadd.f32 %v331_v18, %v203_v49  ;;  %v236_v54 = vadd.f32 %v331_v18, %v235_v50 }
  0xf3   :  { %422 = vst [vmem:[%s605_s3 + $0x18] sm:$0xff] %v398_v51   ;;  %426 = vst [vmem:[%s605_s3 + $0x38] sm:$0xff] %v418_v52   ;;  %v393_v55 = vpack.c.bf16 %v204_v53, %v201_v47  ;;  %v413_v56 = vpack.c.bf16 %v236_v54, %v233_v48 }
  0xf5   :  { %421 = vst [vmem:[%s605_s3 + $0x10] sm:$0xff] %v393_v55   ;;  %425 = vst [vmem:[%s605_s3 + $0x30] sm:$0xff] %v413_v56  }

// kernel: _lambda_.25
= control target key start
LH: loop header
LB: loop body
LE: loop exit
PB: predicated region body
PF: predicated region fallthrough
CT: control target
= control target key end

     0   :  { %v55_v0 = vlaneseq  ;;  %v807_v8 = vmov 0.0   ;;  %s1157_s0 = inlined_call_operand.vmem [shape: bf16[128,128], index: 0, kind: input, shape index: {}]   ;;  %s1158_s1 = inlined_call_operand.vmem [shape: bf16[128,128], index: 1, kind: input, shape index: {}]   ;;  %s1159_s3 = inlined_call_operand.vmem [shape: f32[1,128], index: 3, kind: input, shape index: {}]   ;;  %s1160_s4 = inlined_call_operand.vmem [shape: f32[1,128], index: 4, kind: input, shape index: {}]   ;;  %s1161_s2 = inlined_call_operand.vmem [shape: f32[1,128], index: 2, kind: input, shape index: {}]   ;;  %s1162_s5 = inlined_call_operand.vmem [shape: bf16[128,128], index: 5, kind: output, shape index: {}]  }
   0x1   :  { %v841_v1 = vld [vmem:[%s1157_s0] sm:$0xff]   ;;  %v857_v10 = vld [vmem:[%s1157_s0 + $0x8] sm:$0xff]   ;;  %v885_v22 = vld [vmem:[%s1157_s0 + $0x10] sm:$0xff]  }
   0x2   :  { %v846_v2 = vld [vmem:[%s1157_s0 + $0x20] sm:$0xff]   ;;  %v618_v3 = vunpack.c.l.bf16 %v841_v1  ;;  %v56_v4 = vand.u32 127, %v55_v0  ;;  %v619_v6 = vunpack.c.h.bf16 %v841_v1  ;;  %v622_v15 = vunpack.c.l.bf16 %v857_v10  ;;  %v872_v17 = vld [vmem:[%s1157_s0 + $0x28] sm:$0xff]   ;;  %v898_v27 = vld [vmem:[%s1157_s0 + $0x30] sm:$0xff]  }
   0x3   :  { %v634_v5 = vunpack.c.l.bf16 %v846_v2  ;;  %v635_v7 = vunpack.c.h.bf16 %v846_v2  ;;  %v623_v16 = vunpack.c.h.bf16 %v857_v10  ;;  %v638_v20 = vunpack.c.l.bf16 %v872_v17  ;;  %v911_v32 = vld [vmem:[%s1157_s0 + $0x18] sm:$0xff]  }
   0x4   :  { %vm57_vm0 = vcmp.lt.s32.totalorder %v56_v4, 16  ;;  %v639_v21 = vunpack.c.h.bf16 %v872_v17  ;;  %v626_v25 = vunpack.c.l.bf16 %v885_v22  ;;  %v627_v26 = vunpack.c.h.bf16 %v885_v22  ;;  %v924_v37 = vld [vmem:[%s1157_s0 + $0x38] sm:$0xff]  }
   0x5   :  { %v852_v9 = vsel %vm57_vm0, 1.0, %v807_v8  ;;  %v642_v30 = vunpack.c.l.bf16 %v898_v27  ;;  %v643_v31 = vunpack.c.h.bf16 %v898_v27  ;;  %v630_v35 = vunpack.c.l.bf16 %v911_v32 }
   0x6   :  { %v60_v11 = vmul.f32 %v618_v3, %v852_v9  ;;  %v68_v12 = vmul.f32 %v634_v5, %v852_v9  ;;  %v61_v13 = vmul.f32 %v619_v6, %v852_v9  ;;  %v69_v14 = vmul.f32 %v635_v7, %v852_v9 }
   0x7   :  { %v62_v18 = vmul.f32 %v622_v15, %v852_v9  ;;  %v63_v19 = vmul.f32 %v623_v16, %v852_v9  ;;  %v70_v23 = vmul.f32 %v638_v20, %v852_v9  ;;  %v71_v24 = vmul.f32 %v639_v21, %v852_v9 }
   0x8   :  { %76 = vadd.xlane.f32.xlu0 %v60_v11  ;;  %92 = vadd.xlane.f32.xlu1 %v68_v12  ;;  %v64_v28 = vmul.f32 %v626_v25, %v852_v9  ;;  %v65_v29 = vmul.f32 %v627_v26, %v852_v9  ;;  %v72_v33 = vmul.f32 %v642_v30, %v852_v9  ;;  %v631_v36 = vunpack.c.h.bf16 %v911_v32 }
   0x9   :  { %v73_v34 = vmul.f32 %v643_v31, %v852_v9  ;;  %v66_v38 = vmul.f32 %v630_v35, %v852_v9  ;;  %v646_v40 = vunpack.c.l.bf16 %v924_v37  ;;  %v647_v41 = vunpack.c.h.bf16 %v924_v37 }
   0xa   :  { %v67_v39 = vmul.f32 %v631_v36, %v852_v9 }
   0xb   :  { %v74_v42 = vmul.f32 %v646_v40, %v852_v9  ;;  %v75_v43 = vmul.f32 %v647_v41, %v852_v9 }
   0xc   :  { %78 = vadd.xlane.f32.xlu0 %v61_v13  ;;  %94 = vadd.xlane.f32.xlu1 %v69_v14 }
  0x10   :  { %80 = vadd.xlane.f32.xlu0 %v62_v18  ;;  %82 = vadd.xlane.f32.xlu1 %v63_v19 }
  0x14   :  { %96 = vadd.xlane.f32.xlu0 %v70_v23  ;;  %98 = vadd.xlane.f32.xlu1 %v71_v24 }
  0x18   :  { %84 = vadd.xlane.f32.xlu0 %v64_v28  ;;  %86 = vadd.xlane.f32.xlu1 %v65_v29 }
  0x1c   :  { %100 = vadd.xlane.f32.xlu0 %v72_v33  ;;  %102 = vadd.xlane.f32.xlu1 %v73_v34 }
  0x20   :  { %88 = vadd.xlane.f32.xlu0 %v66_v38  ;;  %90 = vadd.xlane.f32.xlu1 %v67_v39 }
  0x24   :  { %104 = vadd.xlane.f32.xlu0 %v74_v42  ;;  %106 = vadd.xlane.f32.xlu1 %v75_v43 }
  0x91   :  { %v77_v44 = vpop.xlane.xlu0 %76  ;;  %v93_v45 = vpop.xlane.xlu1 %92 }
  0x92   :  { %v108_v46 = vmul.f32 0.0625, %v77_v44  ;;  %v116_v47 = vmul.f32 0.0625, %v93_v45 }
  0x94   :  { %v124_v48 = vsub.f32 %v618_v3, %v108_v46  ;;  %v132_v49 = vsub.f32 %v634_v5, %v116_v47 }
  0x95   :  { %v79_v50 = vpop.xlane.xlu0 %78  ;;  %v95_v51 = vpop.xlane.xlu1 %94 }
  0x96   :  { %v109_v52 = vmul.f32 0.0625, %v79_v50  ;;  %v117_v53 = vmul.f32 0.0625, %v95_v51  ;;  %v941_v54 = vmul.f32 %v852_v9, %v124_v48  ;;  %v944_v55 = vmul.f32 %v852_v9, %v132_v49  ;;  %v767_v48 = vld [vmem:[%s1158_s1 + $0x38] sm:$0xff]  }
  0x97   :  { %718 = vmatprep.subr.bf16.mxu0 %v767_v48  ;;  %750 = vmatprep.subr.bf16.mxu1 %v767_v48 }
  0x98   :  { %v125_v56 = vsub.f32 %v619_v6, %v109_v52  ;;  %v133_v57 = vsub.f32 %v635_v7, %v117_v53  ;;  %v156_v58 = vmul.f32 %v941_v54, %v941_v54  ;;  %v164_v61 = vmul.f32 %v944_v55, %v944_v55  ;;  %719 = vmatpush3.bf16.msra.mxu0 %v767_v48 }
  0x99   :  { %v81_v59 = vpop.xlane.xlu0 %80  ;;  %v83_v60 = vpop.xlane.xlu1 %82  ;;  %758 = vmatpush3.bf16.msra.mxu1 %v767_v48 }
  0x9a   :  { %v110_v62 = vmul.f32 0.0625, %v81_v59  ;;  %172 = vadd.xlane.f32.xlu0 %v156_v58  ;;  %v111_v63 = vmul.f32 0.0625, %v83_v60  ;;  %v955_v0 = vmul.f32 %v852_v9, %v125_v56  ;;  %v958_v1 = vmul.f32 %v852_v9, %v133_v57  ;;  %v768_v58 = vld [vmem:[%s1158_s1 + $0x30] sm:$0xff]  }
  0x9b   :  { %720 = vmatprep.subr.bf16.mxu0 %v768_v58  ;;  %751 = vmatprep.subr.bf16.mxu1 %v768_v58 }
  0x9c   :  { %v126_v2 = vsub.f32 %v622_v15, %v110_v62  ;;  %v127_v3 = vsub.f32 %v623_v16, %v111_v63  ;;  %v157_v4 = vmul.f32 %v955_v0, %v955_v0  ;;  %v165_v7 = vmul.f32 %v958_v1, %v958_v1  ;;  %721 = vmatpush3.bf16.msra.mxu0 %v768_v58  ;;  %v769_v63 = vld [vmem:[%s1158_s1 + $0x28] sm:$0xff]  }
  0x9d   :  { %v97_v5 = vpop.xlane.xlu0 %96  ;;  %v99_v6 = vpop.xlane.xlu1 %98  ;;  %759 = vmatpush3.bf16.msra.mxu1 %v768_v58  ;;  %722 = vmatprep.subr.bf16.mxu0 %v769_v63 }
  0x9e   :  { %v118_v8 = vmul.f32 0.0625, %v97_v5  ;;  %188 = vadd.xlane.f32.xlu0 %v164_v61  ;;  %174 = vadd.xlane.f32.xlu1 %v157_v4  ;;  %v119_v11 = vmul.f32 0.0625, %v99_v6  ;;  %v969_v12 = vmul.f32 %v852_v9, %v126_v2  ;;  %v972_v13 = vmul.f32 %v852_v9, %v127_v3  ;;  %v772_v5 = vld [vmem:[%s1158_s1 + $0x10] sm:$0xff]   ;;  %v773_v6 = vld [vmem:[%s1158_s1 + $0x8] sm:$0xff]  }
  0x9f   :  { %752 = vmatprep.subr.bf16.mxu1 %v769_v63 }
  0xa0   :  { %v134_v10 = vsub.f32 %v638_v20, %v118_v8  ;;  %v135_v14 = vsub.f32 %v639_v21, %v119_v11  ;;  %v158_v15 = vmul.f32 %v969_v12, %v969_v12  ;;  %v159_v19 = vmul.f32 %v972_v13, %v972_v13  ;;  %723 = vmatpush3.bf16.msra.mxu0 %v769_v63 }
  0xa1   :  { %v85_v16 = vpop.xlane.xlu0 %84  ;;  %v87_v18 = vpop.xlane.xlu1 %86  ;;  %760 = vmatpush3.bf16.msra.mxu1 %v769_v63  ;;  %v1082_v63 = vld [vmem:[%s1160_s4] ss:$0 sm:$0xff] }
  0xa2   :  { %v112_v23 = vmul.f32 0.0625, %v85_v16  ;;  %190 = vadd.xlane.f32.xlu1 %v165_v7  ;;  %176 = vadd.xlane.f32.xlu0 %v158_v15  ;;  %v113_v24 = vmul.f32 0.0625, %v87_v18  ;;  %v983_v28 = vmul.f32 %v852_v9, %v134_v10  ;;  %v986_v20 = vmul.f32 %v852_v9, %v135_v14  ;;  %v774_v7 = vld [vmem:[%s1158_s1] sm:$0xff]  }
  0xa4   :  { %v128_v17 = vsub.f32 %v626_v25, %v112_v23  ;;  %v129_v21 = vsub.f32 %v627_v26, %v113_v24  ;;  %v166_v29 = vmul.f32 %v983_v28, %v983_v28  ;;  %v167_v38 = vmul.f32 %v986_v20, %v986_v20 }
  0xa5   :  { %v101_v33 = vpop.xlane.xlu0 %100  ;;  %v103_v34 = vpop.xlane.xlu1 %102 }
  0xa6   :  { %v120_v39 = vmul.f32 0.0625, %v101_v33  ;;  %178 = vadd.xlane.f32.xlu1 %v159_v19  ;;  %192 = vadd.xlane.f32.xlu0 %v166_v29  ;;  %v121_v42 = vmul.f32 0.0625, %v103_v34  ;;  %v997_v43 = vmul.f32 %v852_v9, %v128_v17  ;;  %v1000_v25 = vmul.f32 %v852_v9, %v129_v21 }
  0xa8   :  { %v136_v22 = vsub.f32 %v642_v30, %v120_v39  ;;  %v137_v26 = vsub.f32 %v643_v31, %v121_v42  ;;  %v160_v44 = vmul.f32 %v997_v43, %v997_v43  ;;  %v161_v47 = vmul.f32 %v1000_v25, %v1000_v25 }
  0xa9   :  { %v89_v45 = vpop.xlane.xlu0 %88  ;;  %v91_v46 = vpop.xlane.xlu1 %90 }
  0xaa   :  { %v114_v49 = vmul.f32 0.0625, %v89_v45  ;;  %194 = vadd.xlane.f32.xlu1 %v167_v38  ;;  %180 = vadd.xlane.f32.xlu0 %v160_v44  ;;  %v115_v50 = vmul.f32 0.0625, %v91_v46  ;;  %v1014_v30 = vmul.f32 %v852_v9, %v136_v22  ;;  %v1017_v27 = vmul.f32 %v852_v9, %v137_v26 }
  0xac   :  { %v130_v31 = vsub.f32 %v630_v35, %v114_v49  ;;  %v131_v51 = vsub.f32 %v631_v36, %v115_v50  ;;  %v168_v52 = vmul.f32 %v1014_v30, %v1014_v30  ;;  %v169_v57 = vmul.f32 %v1017_v27, %v1017_v27 }
  0xad   :  { %v105_v53 = vpop.xlane.xlu0 %104  ;;  %v107_v56 = vpop.xlane.xlu1 %106 }
  0xae   :  { %v122_v59 = vmul.f32 0.0625, %v105_v53  ;;  %182 = vadd.xlane.f32.xlu1 %v161_v47  ;;  %196 = vadd.xlane.f32.xlu0 %v168_v52  ;;  %v123_v35 = vmul.f32 0.0625, %v107_v56  ;;  %v1031_v32 = vmul.f32 %v852_v9, %v130_v31  ;;  %v1034_v36 = vmul.f32 %v852_v9, %v131_v51  ;;  %v1075_v51 = vld [vmem:[%s1159_s3] ss:$0 sm:$0xff] }
  0xb0   :  { %v138_v60 = vsub.f32 %v646_v40, %v122_v59  ;;  %v139_v61 = vsub.f32 %v647_v41, %v123_v35  ;;  %v162_v62 = vmul.f32 %v1031_v32, %v1031_v32  ;;  %v163_v2 = vmul.f32 %v1034_v36, %v1034_v36  ;;  %v770_v41 = vld [vmem:[%s1158_s1 + $0x20] sm:$0xff]  }
  0xb1   :  { %724 = vmatprep.subr.bf16.mxu0 %v770_v41  ;;  %753 = vmatprep.subr.bf16.mxu1 %v770_v41 }
  0xb2   :  { %198 = vadd.xlane.f32.xlu1 %v169_v57  ;;  %184 = vadd.xlane.f32.xlu0 %v162_v62  ;;  %v1048_v3 = vmul.f32 %v852_v9, %v138_v60  ;;  %v1051_v37 = vmul.f32 %v852_v9, %v139_v61  ;;  %v771_v9 = vld [vmem:[%s1158_s1 + $0x18] sm:$0xff]  }
  0xb3   :  { %725 = vmatpush3.bf16.msra.mxu0 %v770_v41  ;;  %761 = vmatpush3.bf16.msra.mxu1 %v770_v41 }
  0xb4   :  { %v170_v40 = vmul.f32 %v1048_v3, %v1048_v3  ;;  %v171_v4 = vmul.f32 %v1051_v37, %v1051_v37  ;;  %726 = vmatprep.subr.bf16.mxu0 %v771_v9  ;;  %754 = vmatprep.subr.bf16.mxu1 %v771_v9 }
  0xb6   :  { %186 = vadd.xlane.f32.xlu1 %v163_v2  ;;  %200 = vadd.xlane.f32.xlu0 %v170_v40 }
  0xb7   :  { %727 = vmatpush3.bf16.msra.mxu0 %v771_v9  ;;  %762 = vmatpush3.bf16.msra.mxu1 %v771_v9 }
  0xb8   :  { %728 = vmatprep.subr.bf16.mxu0 %v772_v5  ;;  %755 = vmatprep.subr.bf16.mxu1 %v772_v5 }
  0xba   :  { %202 = vadd.xlane.f32.xlu1 %v171_v4 }
  0xbb   :  { %729 = vmatpush3.bf16.msra.mxu0 %v772_v5  ;;  %763 = vmatpush3.bf16.msra.mxu1 %v772_v5 }
  0xbc   :  { %730 = vmatprep.subr.bf16.mxu0 %v773_v6  ;;  %756 = vmatprep.subr.bf16.mxu1 %v773_v6 }
  0xbf   :  { %731 = vmatpush3.bf16.msra.mxu0 %v773_v6  ;;  %764 = vmatpush3.bf16.msra.mxu1 %v773_v6 }
  0xc0   :  { %732 = vmatprep.subr.bf16.mxu0 %v774_v7  ;;  %757 = vmatprep.subr.bf16.mxu1 %v774_v7 }
  0xc3   :  { %733 = vmatpush3.bf16.msra.mxu0 %v774_v7  ;;  %765 = vmatpush3.bf16.msra.mxu1 %v774_v7 }
 0x123   :  { %v173_v8 = vpop.xlane.xlu0 %172 }
 0x124   :  { %v204_v11 = vmul.f32 0.0625, %v173_v8 }
 0x126   :  { %v220_v10 = vadd.f32 1e-06, %v204_v11 }
 0x127   :  { %v175_v14 = vpop.xlane.xlu1 %174  ;;  %v189_v15 = vpop.xlane.xlu0 %188 }
 0x128   :  { %775 = vrsqrt.f32 %v220_v10  ;;  %v205_v16 = vmul.f32 0.0625, %v175_v14  ;;  %v212_v18 = vmul.f32 0.0625, %v189_v15 }
 0x12a   :  { %v221_v19 = vadd.f32 1e-06, %v205_v16  ;;  %v228_v23 = vadd.f32 1e-06, %v212_v18 }
 0x12b   :  { %v191_v24 = vpop.xlane.xlu1 %190  ;;  %v177_v17 = vpop.xlane.xlu0 %176 }
 0x12c   :  { %777 = vrsqrt.f32 %v221_v19  ;;  %v213_v21 = vmul.f32 0.0625, %v191_v24  ;;  %v206_v29 = vmul.f32 0.0625, %v177_v17 }
 0x12d   :  { %779 = vrsqrt.f32 %v228_v23 }
 0x12e   :  { %v229_v33 = vadd.f32 1e-06, %v213_v21  ;;  %v222_v34 = vadd.f32 1e-06, %v206_v29 }
 0x12f   :  { %v179_v38 = vpop.xlane.xlu1 %178  ;;  %v193_v39 = vpop.xlane.xlu0 %192 }
 0x130   :  { %781 = vrsqrt.f32 %v229_v33  ;;  %v207_v42 = vmul.f32 0.0625, %v179_v38  ;;  %v214_v22 = vmul.f32 0.0625, %v193_v39 }
 0x131   :  { %783 = vrsqrt.f32 %v222_v34 }
 0x132   :  { %v223_v26 = vadd.f32 1e-06, %v207_v42  ;;  %v230_v44 = vadd.f32 1e-06, %v214_v22 }
 0x133   :  { %v195_v45 = vpop.xlane.xlu1 %194  ;;  %v181_v46 = vpop.xlane.xlu0 %180 }
 0x134   :  { %785 = vrsqrt.f32 %v223_v26  ;;  %v215_v47 = vmul.f32 0.0625, %v195_v45  ;;  %v208_v48 = vmul.f32 0.0625, %v181_v46 }
 0x135   :  { %v776_v49 = vpop.eup %775  ;;  %787 = vrsqrt.f32 %v230_v44 }
 0x136   :  { %v231_v50 = vadd.f32 1e-06, %v215_v47  ;;  %v224_v31 = vadd.f32 1e-06, %v208_v48  ;;  %v252_v52 = vmul.f32 %v776_v49, %v941_v54 }
 0x137   :  { %v183_v53 = vpop.xlane.xlu1 %182  ;;  %v197_v56 = vpop.xlane.xlu0 %196 }
 0x138   :  { %789 = vrsqrt.f32 %v231_v50  ;;  %v209_v57 = vmul.f32 0.0625, %v183_v53  ;;  %v216_v58 = vmul.f32 0.0625, %v197_v56  ;;  %v274_v35 = vmul.f32 %v1075_v51, %v252_v52 }
 0x139   :  { %v778_v59 = vpop.eup %777  ;;  %791 = vrsqrt.f32 %v224_v31 }
 0x13a   :  { %v780_v60 = vpop.eup %779  ;;  %v225_v61 = vadd.f32 1e-06, %v209_v57  ;;  %v232_v62 = vadd.f32 1e-06, %v216_v58  ;;  %v253_v2 = vmul.f32 %v778_v59, %v955_v0  ;;  %v296_v7 = vadd.f32 %v1082_v63, %v274_v35 }
 0x13b   :  { %v199_v54 = vpop.xlane.xlu1 %198  ;;  %v185_v40 = vpop.xlane.xlu0 %184  ;;  %v260_v41 = vmul.f32 %v780_v60, %v944_v55 }
 0x13c   :  { %793 = vrsqrt.f32 %v225_v61  ;;  %v217_v4 = vmul.f32 0.0625, %v199_v54  ;;  %v210_v9 = vmul.f32 0.0625, %v185_v40  ;;  %v275_v5 = vmul.f32 %v1075_v51, %v253_v2 }
 0x13d   :  { %v782_v6 = vpop.eup %781  ;;  %795 = vrsqrt.f32 %v232_v62  ;;  %v282_v55 = vmul.f32 %v1075_v51, %v260_v41 }
 0x13e   :  { %v784_v8 = vpop.eup %783  ;;  %v233_v11 = vadd.f32 1e-06, %v217_v4  ;;  %v226_v10 = vadd.f32 1e-06, %v210_v9  ;;  %v297_v14 = vadd.f32 %v1082_v63, %v275_v5  ;;  %v261_v0 = vmul.f32 %v782_v6, %v958_v1 }
 0x13f   :  { %v187_v15 = vpop.xlane.xlu1 %186  ;;  %v201_v16 = vpop.xlane.xlu0 %200  ;;  %v254_v18 = vmul.f32 %v784_v8, %v969_v12  ;;  %v304_v42 = vadd.f32 %v1082_v63, %v282_v55 }
 0x140   :  { %797 = vrsqrt.f32 %v233_v11  ;;  %v211_v19 = vmul.f32 0.0625, %v187_v15  ;;  %v218_v23 = vmul.f32 0.0625, %v201_v16  ;;  %v312_v24 = vpack.c.bf16 %v297_v14, %v296_v7 }
 0x141   :  { %v786_v17 = vpop.eup %785  ;;  %799 = vrsqrt.f32 %v226_v10  ;;  %v283_v21 = vmul.f32 %v1075_v51, %v261_v0  ;;  %v276_v29 = vmul.f32 %v1075_v51, %v254_v18 }
 0x142   :  { %v788_v33 = vpop.eup %787  ;;  %v227_v34 = vadd.f32 1e-06, %v211_v19  ;;  %v234_v38 = vadd.f32 1e-06, %v218_v23  ;;  %734 = vmatprep.mubr.bf16.mxu0 %v312_v24  ;;  %v255_v1 = vmul.f32 %v786_v17, %v972_v13 }
 0x143   :  { %v203_v39 = vpop.xlane.xlu1 %202  ;;  %v305_v12 = vadd.f32 %v1082_v63, %v283_v21  ;;  %v262_v22 = vmul.f32 %v788_v33, %v983_v28  ;;  %v298_v47 = vadd.f32 %v1082_v63, %v276_v29  ;;  %v575_v21 = vld [vmem:[%s1161_s2] ss:$0 sm:$0xff] }
 0x144   :  { %801 = vrsqrt.f32 %v227_v34  ;;  %v219_v26 = vmul.f32 0.0625, %v203_v39  ;;  %v277_v44 = vmul.f32 %v1075_v51, %v255_v1 }
 0x145   :  { %v790_v45 = vpop.eup %789  ;;  %803 = vrsqrt.f32 %v234_v38  ;;  %v316_v46 = vpack.c.bf16 %v305_v12, %v304_v42  ;;  %v284_v31 = vmul.f32 %v1075_v51, %v262_v22 }
 0x146   :  { %v792_v48 = vpop.eup %791  ;;  %v235_v49 = vadd.f32 1e-06, %v219_v26  ;;  %v299_v13 = vadd.f32 %v1082_v63, %v277_v44  ;;  %v263_v50 = vmul.f32 %v790_v45, %v986_v20 }
 0x147   :  { %742 = vmatprep.mubr.bf16.mxu1 %v316_v46  ;;  %v256_v28 = vmul.f32 %v792_v48, %v997_v43  ;;  %v306_v58 = vadd.f32 %v1082_v63, %v284_v31 }
 0x148   :  { %805 = vrsqrt.f32 %v235_v49  ;;  %v313_v52 = vpack.c.bf16 %v299_v13, %v298_v47  ;;  %v285_v53 = vmul.f32 %v1075_v51, %v263_v50 }
 0x149   :  { %v794_v56 = vpop.eup %793  ;;  %v278_v20 = vmul.f32 %v1075_v51, %v256_v28 }
 0x14a   :  { %v796_v57 = vpop.eup %795  ;;  %735 = vmatmul.mubr.bf16.vlgmr.msra.gmra.mxu0 %v313_v52  ;;  %v307_v59 = vadd.f32 %v1082_v63, %v285_v53  ;;  %v257_v35 = vmul.f32 %v794_v56, %v1000_v25 }
 0x14b   :  { %v264_v60 = vmul.f32 %v796_v57, %v1014_v30  ;;  %v300_v54 = vadd.f32 %v1082_v63, %v278_v20 }
 0x14c   :  { %v317_v61 = vpack.c.bf16 %v307_v59, %v306_v58  ;;  %v279_v43 = vmul.f32 %v1075_v51, %v257_v35 }
 0x14d   :  { %v798_v62 = vpop.eup %797  ;;  %v286_v4 = vmul.f32 %v1075_v51, %v264_v60 }
 0x14e   :  { %v800_v2 = vpop.eup %799  ;;  %743 = vmatmul.mubr.bf16.vlgmr.msra.gmra.mxu1 %v317_v61  ;;  %v301_v40 = vadd.f32 %v1082_v63, %v279_v43  ;;  %v265_v41 = vmul.f32 %v798_v62, %v1017_v27 }
 0x14f   :  { %v258_v25 = vmul.f32 %v800_v2, %v1031_v32  ;;  %v308_v7 = vadd.f32 %v1082_v63, %v286_v4 }
 0x150   :  { %v314_v9 = vpack.c.bf16 %v301_v40, %v300_v54  ;;  %v287_v5 = vmul.f32 %v1075_v51, %v265_v41 }
 0x151   :  { %v802_v30 = vpop.eup %801  ;;  %v280_v10 = vmul.f32 %v1075_v51, %v258_v25 }
 0x152   :  { %v804_v6 = vpop.eup %803  ;;  %738 = vmatprep.mubr.bf16.mxu0 %v314_v9  ;;  %v309_v8 = vadd.f32 %v1082_v63, %v287_v5  ;;  %v259_v11 = vmul.f32 %v802_v30, %v1034_v36 }
 0x153   :  { %v266_v27 = vmul.f32 %v804_v6, %v1048_v3  ;;  %v302_v15 = vadd.f32 %v1082_v63, %v280_v10 }
 0x154   :  { %v318_v14 = vpack.c.bf16 %v309_v8, %v308_v7  ;;  %v281_v0 = vmul.f32 %v1075_v51, %v259_v11 }
 0x155   :  { %v806_v32 = vpop.eup %805  ;;  %v288_v18 = vmul.f32 %v1075_v51, %v266_v27 }
 0x156   :  { %746 = vmatprep.mubr.bf16.mxu1 %v318_v14  ;;  %v303_v16 = vadd.f32 %v1082_v63, %v281_v0  ;;  %v267_v55 = vmul.f32 %v806_v32, %v1051_v37 }
 0x157   :  { %v310_v23 = vadd.f32 %v1082_v63, %v288_v18 }
 0x158   :  { %v315_v19 = vpack.c.bf16 %v303_v16, %v302_v15  ;;  %v289_v36 = vmul.f32 %v1075_v51, %v267_v55 }
 0x15a   :  { %739 = vmatmul.mubr.bf16.gmra.mxu0 %v315_v19  ;;  %v311_v3 = vadd.f32 %v1082_v63, %v289_v36 }
 0x15c   :  { %v319_v24 = vpack.c.bf16 %v311_v3, %v310_v23 }
 0x15e   :  { %747 = vmatmul.mubr.bf16.gmra.mxu1 %v319_v24 }
 0x20a   :  { %v736_v17 = vpop.f32.mrf.mxu0 }
 0x20b   :  { %v434_v34 = vadd.f32 %v736_v17, %v575_v21 }
 0x20c   :  { %v425_v29 = vpop.f32.mrf.mxu0 }
 0x20d   :  { %v426_v51 = vadd.f32 %v575_v21, %v425_v29 }
 0x20e   :  { %v737_v33 = vpop.f32.mrf.mxu0  ;;  %v744_v37 = vpop.f32.mrf.mxu1 }
 0x20f   :  { %v437_v38 = vadd.f32 %v737_v33, %v575_v21  ;;  %v466_v63 = vadd.f32 %v744_v37, %v575_v21 }
 0x210   :  { %v428_v1 = vpop.f32.mrf.mxu0  ;;  %v457_v39 = vpop.f32.mrf.mxu1 }
 0x211   :  { %v656_v42 = vpack.c.bf16 %v437_v38, %v434_v34  ;;  %v429_v12 = vadd.f32 %v575_v21, %v428_v1  ;;  %v458_v46 = vadd.f32 %v575_v21, %v457_v39 }
 0x212   :  { %v745_v22 = vpop.f32.mrf.mxu1 }
 0x213   :  { %695 = vst [vmem:[%s1162_s5 + $0x8] sm:$0xff] %v656_v42   ;;  %v651_v26 = vpack.c.bf16 %v429_v12, %v426_v51  ;;  %v469_v44 = vadd.f32 %v745_v22, %v575_v21 }
 0x214   :  { %v460_v45 = vpop.f32.mrf.mxu1 }
 0x215   :  { %652 = vst [vmem:[%s1162_s5] sm:$0xff] %v651_v26   ;;  %v676_v47 = vpack.c.bf16 %v469_v44, %v466_v63  ;;  %v461_v48 = vadd.f32 %v575_v21, %v460_v45 }
 0x217   :  { %699 = vst [vmem:[%s1162_s5 + $0x28] sm:$0xff] %v676_v47   ;;  %v671_v49 = vpack.c.bf16 %v461_v48, %v458_v46 }
 0x219   :  { %698 = vst [vmem:[%s1162_s5 + $0x20] sm:$0xff] %v671_v49  }
 0x21a   :  { %v740_v13 = vpop.f32.mrf.mxu0 }
 0x21b   :  { %v450_v52 = vadd.f32 %v740_v13, %v575_v21 }
 0x21c   :  { %v441_v50 = vpop.f32.mrf.mxu0 }
 0x21d   :  { %v442_v58 = vadd.f32 %v575_v21, %v441_v50 }
 0x21e   :  { %v741_v31 = vpop.f32.mrf.mxu0  ;;  %v748_v28 = vpop.f32.mrf.mxu1 }
 0x21f   :  { %v453_v53 = vadd.f32 %v741_v31, %v575_v21  ;;  %v482_v60 = vadd.f32 %v748_v28, %v575_v21 }
 0x220   :  { %v444_v56 = vpop.f32.mrf.mxu0  ;;  %v473_v57 = vpop.f32.mrf.mxu1 }
 0x221   :  { %v666_v59 = vpack.c.bf16 %v453_v53, %v450_v52  ;;  %v445_v35 = vadd.f32 %v575_v21, %v444_v56  ;;  %v474_v2 = vadd.f32 %v575_v21, %v473_v57 }
 0x222   :  { %v749_v20 = vpop.f32.mrf.mxu1 }
 0x223   :  { %697 = vst [vmem:[%s1162_s5 + $0x18] sm:$0xff] %v666_v59   ;;  %v661_v61 = vpack.c.bf16 %v445_v35, %v442_v58  ;;  %v485_v43 = vadd.f32 %v749_v20, %v575_v21 }
 0x224   :  { %v476_v62 = vpop.f32.mrf.mxu1 }
 0x225   :  { %696 = vst [vmem:[%s1162_s5 + $0x10] sm:$0xff] %v661_v61   ;;  %v686_v54 = vpack.c.bf16 %v485_v43, %v482_v60  ;;  %v477_v40 = vadd.f32 %v575_v21, %v476_v62 }
 0x227   :  { %701 = vst [vmem:[%s1162_s5 + $0x38] sm:$0xff] %v686_v54   ;;  %v681_v41 = vpack.c.bf16 %v477_v40, %v474_v2 }
 0x229   :  { %700 = vst [vmem:[%s1162_s5 + $0x30] sm:$0xff] %v681_v41  }

// kernel: _lambda_.26
= control target key start
LH: loop header
LB: loop body
LE: loop exit
PB: predicated region body
PF: predicated region fallthrough
CT: control target
= control target key end

     0   :  { %s1417_s21 = smov 0   ;;  %s1857_s0 = inlined_call_operand.vmem [shape: bf16[2,10,10,128], index: 0, kind: input, shape index: {}]   ;;  %s1858_s1 = inlined_call_operand.vmem [shape: f32[9,128], index: 1, kind: input, shape index: {}]   ;;  %s1859_s2 = inlined_call_operand.vmem [shape: f32[1,128], index: 2, kind: input, shape index: {}]   ;;  %s1860_s3 = inlined_call_operand.vmem [shape: bf16[128,128], index: 3, kind: input, shape index: {}]   ;;  %s1861_s4 = inlined_call_operand.vmem [shape: f32[1,128], index: 4, kind: input, shape index: {}]   ;;  %s1862_s5 = inlined_call_operand.vmem [shape: bf16[2,64,128], index: 5, kind: input, shape index: {}]   ;;  %s1863_s6 = inlined_call_operand.vmem [shape: bf16[2,64,128], index: 6, kind: output, shape index: {}]  }
   0x1 LB: > { %s1198_s22 = sadd.s32 4294967295, %s1380_s21   ;;  %p1202_p0 = scmp.ge.s32.totalorder %s1380_s21, 1  ;;  %s1380_s21 = sphi %s1417_s21, %s16_s21  }
   0x2   : > { %p222_p1 = scmp.lt.s32.totalorder %s1380_s21, 3 }
   0x4   : > { %p223_p2 = pnand %p1202_p0, %p222_p1 }
   0x5   : > { %p257_p3 = scmp.lt.s32.totalorder (!%p223_p2), %s1198_s22, 1 }
   0x6   : > { %226 = sbr.rel (%p223_p2) target bundleno = 359 (0x167), region = 44 }
   0xb   : > { %v1350_v0 = vld [vmem:[%s1860_s3 + $0x38] sm:$0xff]   ;;  %v1351_v1 = vld [vmem:[%s1860_s3 + $0x30] sm:$0xff]   ;;  %s1865_s22 = smov (!%p257_p3, %s1198_s22), 1  ;;  %v1352_v2 = vld [vmem:[%s1860_s3 + $0x28] sm:$0xff]   ;;  %vm367_vm0 = vcmask 1046528   ;;  %vm445_vm1 = vcmask 1045504  }
   0xc   : > { %1301 = vmatprep.subr.bf16.mxu0 %v1350_v0  ;;  %1325 = vmatprep.subr.bf16.mxu1 %v1350_v0  ;;  %s1341_s29 = smul.u32 80, %s1865_s22  ;;  %v1353_v3 = vld [vmem:[%s1860_s3 + $0x20] sm:$0xff]   ;;  %v1354_v23 = vld [vmem:[%s1860_s3 + $0x18] sm:$0xff]   ;;  %v1355_v42 = vld [vmem:[%s1860_s3 + $0x10] sm:$0xff]  }
   0xd   : > { %1302 = vmatpush3.bf16.msra.mxu0 %v1350_v0  ;;  %1333 = vmatpush3.bf16.msra.mxu1 %v1350_v0  ;;  %v1460_v16 = vld [vmem:[%s1858_s1] ss:$0 sm:$0xff]  ;;  %v1465_v17 = vld [vmem:[%s1858_s1 + $0x1] ss:$0 sm:$0xff]  ;;  %v1470_v18 = vld [vmem:[%s1858_s1 + $0x2] ss:$0 sm:$0xff] }
   0xe   : > { %1303 = vmatprep.subr.bf16.mxu0 %v1351_v1  ;;  %1326 = vmatprep.subr.bf16.mxu1 %v1351_v1  ;;  %s1440_s8 = scalar_lea.vmem %s1857_s0, %s1341_s29  ;;  %v1489_v28 = vld [vmem:[%s1858_s1 + $0x3] ss:$0 sm:$0xff]  ;;  %v1499_v37 = vld [vmem:[%s1858_s1 + $0x4] ss:$0 sm:$0xff]  ;;  %v1512_v47 = vld [vmem:[%s1858_s1 + $0x5] ss:$0 sm:$0xff] }
   0xf   : > { %v273_v4 = vld [vmem:[%s1440_s8] ss:$8 sps:$4 sm:$0xff]   ;;  %v274_v5 = vld [vmem:[%s1440_s8 + $0x4] sm:$0x1]  ;;  %v276_v6 = vld [vmem:[%s1440_s8 + $0xc] sm:$0x1] }
  0x10   : > { %v277_v7 = vld [vmem:[%s1440_s8 + $0x10] ss:$8 sps:$4 sm:$0xff]   ;;  %v278_v8 = vld [vmem:[%s1440_s8 + $0x14] sm:$0x1]  ;;  %v280_v9 = vld [vmem:[%s1440_s8 + $0x1c] sm:$0x1]  ;;  %v293_v10 = vunpack.c.l.bf16 %v273_v4  ;;  %v294_v11 = vunpack.c.h.bf16 %v273_v4  ;;  %v322_v12 = vunpack.c.l.bf16 %v274_v5  ;;  %v1451_v13 = vunpack.c.l.bf16 %v276_v6 }
  0x11   : > { %1304 = vmatpush3.bf16.msra.mxu0 %v1351_v1  ;;  %1334 = vmatpush3.bf16.msra.mxu1 %v1351_v1  ;;  %v1453_v14 = vunpack.c.l.bf16 %v277_v7  ;;  %v1455_v15 = vunpack.c.h.bf16 %v277_v7  ;;  %v1474_v21 = vunpack.c.l.bf16 %v278_v8  ;;  %v1480_v24 = vunpack.c.l.bf16 %v280_v9  ;;  %v1356_v60 = vld [vmem:[%s1860_s3 + $0x8] sm:$0xff]   ;;  %v1536_v5 = vld [vmem:[%s1858_s1 + $0x6] ss:$0 sm:$0xff] }
  0x12   : > { %1305 = vmatprep.subr.bf16.mxu0 %v1352_v2  ;;  %1327 = vmatprep.subr.bf16.mxu1 %v1352_v2  ;;  %v306_v19 = vmul.f32 %v1460_v16, %v293_v10  ;;  %v307_v20 = vmul.f32 %v1460_v16, %v294_v11  ;;  %v335_v22 = vmul.f32 %v1465_v17, %v293_v10  ;;  %v281_v6 = vld [vmem:[%s1440_s8 + $0x20] ss:$8 sps:$4 sm:$0xff]  }
  0x13   : > { %v336_v25 = vmul.f32 %v1465_v17, %v322_v12  ;;  %v337_v26 = vmul.f32 %v1465_v17, %v294_v11  ;;  %v338_v27 = vmul.f32 %v1465_v17, %v1451_v13  ;;  %v413_v30 = vmul.f32 %v1470_v18, %v293_v10 }
  0x14   : > { %v368_v29 = vrot.slane %v335_v22, 1  ;;  %v414_v31 = vmul.f32 %v1470_v18, %v322_v12  ;;  %v415_v32 = vmul.f32 %v1470_v18, %v294_v11  ;;  %v416_v36 = vmul.f32 %v1470_v18, %v1451_v13  ;;  %v1549_v22 = vld [vmem:[%s1858_s1 + $0x8] ss:$0 sm:$0xff] }
  0x15   : > { %1306 = vmatpush3.bf16.msra.mxu0 %v1352_v2  ;;  %1335 = vmatpush3.bf16.msra.mxu1 %v1352_v2  ;;  %v369_v33 = vrot.slane %v336_v25, 1  ;;  %v371_v34 = vrot.slane %v337_v26, 1  ;;  %v372_v35 = vrot.slane %v338_v27, 1  ;;  %v446_v38 = vrot.slane %v413_v30, 2 }
  0x16   : > { %1307 = vmatprep.subr.bf16.mxu0 %v1353_v3  ;;  %1328 = vmatprep.subr.bf16.mxu1 %v1353_v3  ;;  %v447_v39 = vrot.slane %v414_v31, 2  ;;  %v449_v40 = vrot.slane %v415_v32, 2  ;;  %v492_v41 = vmul.f32 %v1489_v28, %v294_v11  ;;  %v450_v45 = vrot.slane %v416_v36, 2 }
  0x17   : > { %v370_v43 = vsel %vm367_vm0, %v368_v29, %v369_v33  ;;  %v373_v44 = vsel %vm367_vm0, %v371_v34, %v372_v35  ;;  %v493_v46 = vmul.f32 %v1489_v28, %v1453_v14  ;;  %v514_v51 = vmul.f32 %v1499_v37, %v294_v11 }
  0x18   : > { %v400_v48 = vadd.f32 %v370_v43, %v306_v19  ;;  %v401_v49 = vadd.f32 %v373_v44, %v307_v20  ;;  %v448_v50 = vsel %vm445_vm1, %v446_v38, %v447_v39  ;;  %v451_v52 = vsel %vm445_vm1, %v449_v40, %v450_v45 }
  0x19   : > { %1308 = vmatpush3.bf16.msra.mxu0 %v1353_v3  ;;  %1336 = vmatpush3.bf16.msra.mxu1 %v1353_v3  ;;  %v515_v53 = vmul.f32 %v1499_v37, %v1451_v13  ;;  %v516_v54 = vmul.f32 %v1499_v37, %v1453_v14  ;;  %v517_v55 = vmul.f32 %v1499_v37, %v1474_v21  ;;  %v546_v58 = vrot.slane %v514_v51, 1 }
  0x1a   : > { %1309 = vmatprep.subr.bf16.mxu0 %v1354_v23  ;;  %1329 = vmatprep.subr.bf16.mxu1 %v1354_v23  ;;  %v478_v56 = vadd.f32 %v448_v50, %v400_v48  ;;  %v479_v57 = vadd.f32 %v451_v52, %v401_v49  ;;  %v591_v59 = vmul.f32 %v1512_v47, %v294_v11  ;;  %v1544_v11 = vld [vmem:[%s1858_s1 + $0x7] ss:$0 sm:$0xff]  ;;  %v1559_v29 = vunpack.c.l.bf16 %v281_v6  ;;  %v285_v48 = vld [vmem:[%s1440_s8 + $0x30] ss:$8 sps:$4 sm:$0xff]  }
  0x1b   : > { %v547_v61 = vrot.slane %v515_v53, 1  ;;  %v549_v62 = vrot.slane %v516_v54, 1  ;;  %v550_v63 = vrot.slane %v517_v55, 1  ;;  %v592_v0 = vmul.f32 %v1512_v47, %v1451_v13  ;;  %v282_v53 = vld [vmem:[%s1440_s8 + $0x24] sm:$0x1] }
  0x1c   : > { %v500_v1 = vadd.f32 %v492_v41, %v478_v56  ;;  %v501_v2 = vadd.f32 %v493_v46, %v479_v57  ;;  %v593_v3 = vmul.f32 %v1512_v47, %v1453_v14  ;;  %v594_v4 = vmul.f32 %v1512_v47, %v1474_v21  ;;  %v284_v57 = vld [vmem:[%s1440_s8 + $0x2c] sm:$0x1] }
  0x1d   : > { %1310 = vmatpush3.bf16.msra.mxu0 %v1354_v23  ;;  %1337 = vmatpush3.bf16.msra.mxu1 %v1354_v23  ;;  %v548_v7 = vsel %vm367_vm0, %v546_v58, %v547_v61  ;;  %v551_v8 = vsel %vm367_vm0, %v549_v62, %v550_v63  ;;  %v623_v9 = vrot.slane %v591_v59, 2  ;;  %v624_v10 = vrot.slane %v592_v0, 2  ;;  %v1357_v23 = vld [vmem:[%s1860_s3] sm:$0xff]   ;;  %v286_v58 = vld [vmem:[%s1440_s8 + $0x34] sm:$0x1] }
  0x1e   : > { %1311 = vmatprep.subr.bf16.mxu0 %v1355_v42  ;;  %1330 = vmatprep.subr.bf16.mxu1 %v1355_v42  ;;  %v578_v12 = vadd.f32 %v548_v7, %v500_v1  ;;  %v579_v13 = vadd.f32 %v551_v8, %v501_v2  ;;  %v626_v19 = vrot.slane %v593_v3, 2  ;;  %v627_v20 = vrot.slane %v594_v4, 2  ;;  %v1590_v63 = vld [vmem:[%s1859_s2] ss:$0 sm:$0xff]  ;;  %v288_v0 = vld [vmem:[%s1440_s8 + $0x3c] sm:$0x1] }
  0x1f   : > { %v625_v25 = vsel %vm445_vm1, %v623_v9, %v624_v10  ;;  %v669_v26 = vmul.f32 %v1536_v5, %v1453_v14  ;;  %v670_v27 = vmul.f32 %v1536_v5, %v1455_v15  ;;  %v691_v32 = vmul.f32 %v1544_v11, %v1453_v14 }
  0x20   : > { %v628_v30 = vsel %vm445_vm1, %v626_v19, %v627_v20  ;;  %v655_v31 = vadd.f32 %v625_v25, %v578_v12  ;;  %v692_v33 = vmul.f32 %v1544_v11, %v1474_v21  ;;  %v693_v35 = vmul.f32 %v1544_v11, %v1455_v15 }
  0x21   : > { %1312 = vmatpush3.bf16.msra.mxu0 %v1355_v42  ;;  %1338 = vmatpush3.bf16.msra.mxu1 %v1355_v42  ;;  %v656_v34 = vadd.f32 %v628_v30, %v579_v13  ;;  %v694_v36 = vmul.f32 %v1544_v11, %v1480_v24  ;;  %v768_v38 = vmul.f32 %v1549_v22, %v1453_v14  ;;  %v723_v40 = vrot.slane %v691_v32, 1 }
  0x22   : > { %1313 = vmatprep.subr.bf16.mxu0 %v1356_v60  ;;  %1331 = vmatprep.subr.bf16.mxu1 %v1356_v60  ;;  %v677_v39 = vadd.f32 %v669_v26, %v655_v31  ;;  %v724_v41 = vrot.slane %v692_v33, 1  ;;  %v769_v42 = vmul.f32 %v1549_v22, %v1474_v21  ;;  %v726_v44 = vrot.slane %v693_v35, 1 }
  0x23   : > { %v678_v43 = vadd.f32 %v670_v27, %v656_v34  ;;  %v727_v45 = vrot.slane %v694_v36, 1  ;;  %v770_v46 = vmul.f32 %v1549_v22, %v1455_v15  ;;  %v771_v50 = vmul.f32 %v1549_v22, %v1480_v24 }
  0x24   : > { %v725_v49 = vsel %vm367_vm0, %v723_v40, %v724_v41  ;;  %v800_v51 = vrot.slane %v768_v38, 2  ;;  %v801_v52 = vrot.slane %v769_v42, 2  ;;  %v1584_v59 = vunpack.c.h.bf16 %v281_v6 }
  0x25   : > { %1314 = vmatpush3.bf16.msra.mxu0 %v1356_v60  ;;  %1339 = vmatpush3.bf16.msra.mxu1 %v1356_v60  ;;  %v728_v54 = vsel %vm367_vm0, %v726_v44, %v727_v45  ;;  %v755_v55 = vadd.f32 %v725_v49, %v677_v39  ;;  %v803_v56 = vrot.slane %v770_v46, 2  ;;  %v804_v62 = vrot.slane %v771_v50, 2 }
  0x26   : > { %1315 = vmatprep.subr.bf16.mxu0 %v1357_v23  ;;  %1332 = vmatprep.subr.bf16.mxu1 %v1357_v23  ;;  %v756_v60 = vadd.f32 %v728_v54, %v678_v43  ;;  %v802_v61 = vsel %vm445_vm1, %v800_v51, %v801_v52  ;;  %v1593_v1 = vunpack.c.l.bf16 %v285_v48  ;;  %v1595_v3 = vunpack.c.h.bf16 %v285_v48 }
  0x27   : > { %v832_v2 = vadd.f32 %v802_v61, %v755_v55  ;;  %v310_v4 = vmul.f32 %v1460_v16, %v1559_v29  ;;  %v311_v6 = vmul.f32 %v1460_v16, %v1584_v59  ;;  %v805_v7 = vsel %vm445_vm1, %v803_v56, %v804_v62 }
  0x28   : > { %v1602_v8 = vunpack.c.l.bf16 %v282_v53  ;;  %v1604_v9 = vunpack.c.l.bf16 %v284_v57  ;;  %v1606_v10 = vunpack.c.l.bf16 %v286_v58  ;;  %v833_v12 = vadd.f32 %v805_v7, %v756_v60 }
  0x29   : > { %1316 = vmatpush3.bf16.msra.mxu0 %v1357_v23  ;;  %1340 = vmatpush3.bf16.msra.mxu1 %v1357_v23  ;;  %v847_v13 = vadd.f32 %v1590_v63, %v832_v2  ;;  %v1609_v19 = vunpack.c.l.bf16 %v288_v0  ;;  %v343_v20 = vmul.f32 %v1465_v17, %v1559_v29  ;;  %v345_v25 = vmul.f32 %v1465_v17, %v1584_v59 }
  0x2a   : > { %v344_v23 = vmul.f32 %v1465_v17, %v1602_v8  ;;  %v346_v26 = vmul.f32 %v1465_v17, %v1604_v9  ;;  %v421_v27 = vmul.f32 %v1470_v18, %v1559_v29  ;;  %v848_v30 = vadd.f32 %v1590_v63, %v833_v12 }
  0x2b   : > { %v1622_v31 = vmul.f32 0.5, %v847_v13  ;;  %v863_v32 = vmul.f32 0.044715, %v847_v13  ;;  %v380_v33 = vrot.slane %v343_v20, 1  ;;  %v383_v35 = vrot.slane %v345_v25, 1 }
  0x2c   : > { %v381_v34 = vrot.slane %v344_v23, 1  ;;  %v384_v36 = vrot.slane %v346_v26, 1  ;;  %v422_v38 = vmul.f32 %v1470_v18, %v1602_v8  ;;  %v1626_v39 = vmul.f32 0.5, %v848_v30 }
  0x2d   : > { %v864_v40 = vmul.f32 0.044715, %v848_v30  ;;  %v871_v41 = vmul.f32 %v863_v32, %v847_v13  ;;  %v423_v42 = vmul.f32 %v1470_v18, %v1584_v59  ;;  %v424_v45 = vmul.f32 %v1470_v18, %v1604_v9 }
  0x2e   : > { %v382_v43 = vsel %vm367_vm0, %v380_v33, %v381_v34  ;;  %v385_v44 = vsel %vm367_vm0, %v383_v35, %v384_v36  ;;  %v458_v46 = vrot.slane %v421_v27, 2  ;;  %v459_v52 = vrot.slane %v422_v38, 2 }
  0x2f   : > { %v872_v48 = vmul.f32 %v864_v40, %v848_v30  ;;  %v879_v49 = vmul.f32 %v871_v41, %v847_v13  ;;  %v404_v50 = vadd.f32 %v382_v43, %v310_v4  ;;  %v405_v51 = vadd.f32 %v385_v44, %v311_v6 }
  0x30   : > { %v461_v53 = vrot.slane %v423_v42, 2  ;;  %v462_v54 = vrot.slane %v424_v45, 2  ;;  %v496_v55 = vmul.f32 %v1489_v28, %v1584_v59  ;;  %v497_v58 = vmul.f32 %v1489_v28, %v1593_v1 }
  0x31   : > { %v880_v56 = vmul.f32 %v872_v48, %v848_v30  ;;  %v887_v57 = vadd.f32 %v879_v49, %v847_v13  ;;  %v522_v60 = vmul.f32 %v1499_v37, %v1584_v59  ;;  %v460_v61 = vsel %vm445_vm1, %v458_v46, %v459_v52 }
  0x32   : > { %v463_v62 = vsel %vm445_vm1, %v461_v53, %v462_v54  ;;  %v523_v0 = vmul.f32 %v1499_v37, %v1604_v9  ;;  %v524_v2 = vmul.f32 %v1499_v37, %v1593_v1  ;;  %v482_v7 = vadd.f32 %v460_v61, %v404_v50 }
  0x33   : > { %v888_v4 = vadd.f32 %v880_v56, %v848_v30  ;;  %v895_v6 = vmul.f32 0.7978845, %v887_v57  ;;  %v483_v12 = vadd.f32 %v463_v62, %v405_v51  ;;  %v525_v13 = vmul.f32 %v1499_v37, %v1606_v10 }
  0x34   : > { %v558_v20 = vrot.slane %v522_v60, 1  ;;  %v559_v23 = vrot.slane %v523_v0, 1  ;;  %v561_v25 = vrot.slane %v524_v2, 1  ;;  %v504_v27 = vadd.f32 %v496_v55, %v482_v7 }
  0x35   : > { %v896_v26 = vmul.f32 0.7978845, %v888_v4  ;;  %1358 = vtanh.f32 %v895_v6  ;;  %v505_v32 = vadd.f32 %v497_v58, %v483_v12  ;;  %v562_v34 = vrot.slane %v525_v13, 1 }
  0x36   : > { %v560_v33 = vsel %vm367_vm0, %v558_v20, %v559_v23  ;;  %v599_v35 = vmul.f32 %v1512_v47, %v1584_v59  ;;  %v600_v30 = vmul.f32 %v1512_v47, %v1604_v9  ;;  %v601_v38 = vmul.f32 %v1512_v47, %v1593_v1 }
  0x37   : > { %1360 = vtanh.f32 %v896_v26  ;;  %v582_v36 = vadd.f32 %v560_v33, %v504_v27  ;;  %v602_v40 = vmul.f32 %v1512_v47, %v1606_v10  ;;  %v563_v41 = vsel %vm367_vm0, %v561_v25, %v562_v34 }
  0x38   : > { %v635_v42 = vrot.slane %v599_v35, 2  ;;  %v636_v43 = vrot.slane %v600_v30, 2  ;;  %v673_v44 = vmul.f32 %v1536_v5, %v1593_v1  ;;  %v583_v45 = vadd.f32 %v563_v41, %v505_v32 }
  0x39   : > { %v638_v46 = vrot.slane %v601_v38, 2  ;;  %v639_v48 = vrot.slane %v602_v40, 2  ;;  %v674_v49 = vmul.f32 %v1536_v5, %v1595_v3  ;;  %v699_v51 = vmul.f32 %v1544_v11, %v1593_v1 }
  0x3a   : > { %v637_v50 = vsel %vm445_vm1, %v635_v42, %v636_v43  ;;  %v700_v52 = vmul.f32 %v1544_v11, %v1606_v10  ;;  %v701_v53 = vmul.f32 %v1544_v11, %v1595_v3  ;;  %v702_v56 = vmul.f32 %v1544_v11, %v1609_v19 }
  0x3b   : > { %v640_v54 = vsel %vm445_vm1, %v638_v46, %v639_v48  ;;  %v659_v55 = vadd.f32 %v637_v50, %v582_v36  ;;  %v776_v57 = vmul.f32 %v1549_v22, %v1593_v1  ;;  %v735_v60 = vrot.slane %v699_v51, 1 }
  0x3c   : > { %v660_v58 = vadd.f32 %v640_v54, %v583_v45  ;;  %v736_v61 = vrot.slane %v700_v52, 1  ;;  %v738_v62 = vrot.slane %v701_v53, 1  ;;  %v739_v2 = vrot.slane %v702_v56, 1 }
  0x3d   : > { %v681_v0 = vadd.f32 %v673_v44, %v659_v55  ;;  %v777_v4 = vmul.f32 %v1549_v22, %v1606_v10  ;;  %v778_v6 = vmul.f32 %v1549_v22, %v1595_v3  ;;  %v779_v13 = vmul.f32 %v1549_v22, %v1609_v19 }
  0x3e   : > { %v682_v7 = vadd.f32 %v674_v49, %v660_v58  ;;  %v737_v12 = vsel %vm367_vm0, %v735_v60, %v736_v61  ;;  %v812_v20 = vrot.slane %v776_v57, 2  ;;  %v740_v23 = vsel %vm367_vm0, %v738_v62, %v739_v2 }
  0x3f   : > { %v759_v25 = vadd.f32 %v737_v12, %v681_v0  ;;  %v813_v26 = vrot.slane %v777_v4, 2  ;;  %v815_v27 = vrot.slane %v778_v6, 2  ;;  %v816_v33 = vrot.slane %v779_v13, 2 }
  0x40   : > { %v760_v32 = vadd.f32 %v740_v23, %v682_v7  ;;  %v308_v34 = vmul.f32 %v1460_v16, %v1453_v14  ;;  %v309_v35 = vmul.f32 %v1460_v16, %v1455_v15  ;;  %v339_v36 = vmul.f32 %v1465_v17, %v1453_v14 }
  0x41   : > { %v814_v30 = vsel %vm445_vm1, %v812_v20, %v813_v26  ;;  %v340_v38 = vmul.f32 %v1465_v17, %v1474_v21  ;;  %v341_v40 = vmul.f32 %v1465_v17, %v1455_v15  ;;  %v817_v42 = vsel %vm445_vm1, %v815_v27, %v816_v33 }
  0x42   : > { %v1359_v41 = vpop.eup %1358  ;;  %v836_v43 = vadd.f32 %v814_v30, %v759_v25  ;;  %v342_v44 = vmul.f32 %v1465_v17, %v1480_v24  ;;  %v417_v45 = vmul.f32 %v1470_v18, %v1453_v14  ;;  %v837_v48 = vadd.f32 %v817_v42, %v760_v32 }
  0x43   : > { %v911_v46 = vadd.f32 1.0, %v1359_v41  ;;  %v374_v49 = vrot.slane %v339_v36, 1  ;;  %v375_v50 = vrot.slane %v340_v38, 1  ;;  %v377_v53 = vrot.slane %v341_v40, 1 }
  0x44   : > { %v1361_v51 = vpop.eup %1360  ;;  %v851_v52 = vadd.f32 %v1590_v63, %v836_v43  ;;  %v378_v54 = vrot.slane %v342_v44, 1  ;;  %v418_v55 = vmul.f32 %v1470_v18, %v1474_v21  ;;  %v852_v58 = vadd.f32 %v1590_v63, %v837_v48 }
  0x45   : > { %v912_v56 = vadd.f32 1.0, %v1361_v51  ;;  %v919_v57 = vmul.f32 %v911_v46, %v1622_v31  ;;  %v376_v60 = vsel %vm367_vm0, %v374_v49, %v375_v50  ;;  %v419_v31 = vmul.f32 %v1470_v18, %v1455_v15 }
  0x46   : > { %v1704_v14 = vmul.f32 0.5, %v851_v52  ;;  %v867_v61 = vmul.f32 0.044715, %v851_v52  ;;  %v379_v62 = vsel %vm367_vm0, %v377_v53, %v378_v54  ;;  %v402_v0 = vadd.f32 %v376_v60, %v308_v34 }
  0x47   : > { %v920_v2 = vmul.f32 %v912_v56, %v1626_v39  ;;  %v1708_v4 = vmul.f32 0.5, %v852_v58  ;;  %v868_v6 = vmul.f32 0.044715, %v852_v58  ;;  %v403_v7 = vadd.f32 %v379_v62, %v309_v35 }
  0x48   : > { %v875_v21 = vmul.f32 %v867_v61, %v851_v52  ;;  %v420_v12 = vmul.f32 %v1470_v18, %v1480_v24  ;;  %v452_v13 = vrot.slane %v417_v45, 2  ;;  %v453_v25 = vrot.slane %v418_v55, 2 }
  0x49   : > { %v927_v20 = vpack.c.bf16 %v920_v2, %v919_v57  ;;  %v876_v23 = vmul.f32 %v868_v6, %v852_v58  ;;  %v494_v26 = vmul.f32 %v1489_v28, %v1455_v15  ;;  %v455_v39 = vrot.slane %v419_v31, 2 }
  0x4a   : > { %v883_v27 = vmul.f32 %v875_v21, %v851_v52  ;;  %v456_v32 = vrot.slane %v420_v12, 2  ;;  %v495_v33 = vmul.f32 %v1489_v28, %v1559_v29  ;;  %v454_v35 = vsel %vm445_vm1, %v452_v13, %v453_v25 }
  0x4b   : > { %1317 = vmatprep.mubr.bf16.mxu0 %v927_v20  ;;  %v884_v34 = vmul.f32 %v876_v23, %v852_v58  ;;  %v518_v30 = vmul.f32 %v1499_v37, %v1455_v15  ;;  %v519_v36 = vmul.f32 %v1499_v37, %v1480_v24  ;;  %v480_v41 = vadd.f32 %v454_v35, %v402_v0 }
  0x4c   : > { %v891_v38 = vadd.f32 %v883_v27, %v851_v52  ;;  %v457_v40 = vsel %vm445_vm1, %v455_v39, %v456_v32  ;;  %v520_v42 = vmul.f32 %v1499_v37, %v1559_v29  ;;  %v521_v45 = vmul.f32 %v1499_v37, %v1602_v8 }
  0x4d   : > { %v892_v43 = vadd.f32 %v884_v34, %v852_v58  ;;  %v481_v44 = vadd.f32 %v457_v40, %v403_v7  ;;  %v552_v46 = vrot.slane %v518_v30, 1  ;;  %v502_v49 = vadd.f32 %v494_v26, %v480_v41 }
  0x4e   : > { %v899_v48 = vmul.f32 0.7978845, %v891_v38  ;;  %v553_v50 = vrot.slane %v519_v36, 1  ;;  %v555_v51 = vrot.slane %v520_v42, 1  ;;  %v556_v55 = vrot.slane %v521_v45, 1 }
  0x4f   : > { %v900_v53 = vmul.f32 0.7978845, %v892_v43  ;;  %v503_v54 = vadd.f32 %v495_v33, %v481_v44  ;;  %v595_v52 = vmul.f32 %v1512_v47, %v1455_v15  ;;  %v596_v57 = vmul.f32 %v1512_v47, %v1480_v24 }
  0x50   : > { %1362 = vtanh.f32 %v899_v48  ;;  %v554_v56 = vsel %vm367_vm0, %v552_v46, %v553_v50  ;;  %v597_v58 = vmul.f32 %v1512_v47, %v1559_v29  ;;  %v557_v60 = vsel %vm367_vm0, %v555_v51, %v556_v55 }
  0x51   : > { %1364 = vtanh.f32 %v900_v53  ;;  %v580_v61 = vadd.f32 %v554_v56, %v502_v49  ;;  %v598_v62 = vmul.f32 %v1512_v47, %v1602_v8  ;;  %v581_v0 = vadd.f32 %v557_v60, %v503_v54 }
  0x52   : > { %v629_v2 = vrot.slane %v595_v52, 2  ;;  %v630_v6 = vrot.slane %v596_v57, 2  ;;  %v632_v15 = vrot.slane %v597_v58, 2  ;;  %v671_v21 = vmul.f32 %v1536_v5, %v1559_v29 }
  0x53   : > { %v633_v7 = vrot.slane %v598_v62, 2  ;;  %v672_v24 = vmul.f32 %v1536_v5, %v1584_v59  ;;  %v695_v31 = vmul.f32 %v1544_v11, %v1559_v29  ;;  %v696_v13 = vmul.f32 %v1544_v11, %v1602_v8 }
  0x54   : > { %v631_v12 = vsel %vm445_vm1, %v629_v2, %v630_v6  ;;  %v697_v20 = vmul.f32 %v1544_v11, %v1584_v59  ;;  %v698_v23 = vmul.f32 %v1544_v11, %v1604_v9  ;;  %v772_v39 = vmul.f32 %v1549_v22, %v1559_v29 }
  0x55   : > { %v634_v25 = vsel %vm445_vm1, %v632_v15, %v633_v7  ;;  %v657_v26 = vadd.f32 %v631_v12, %v580_v61  ;;  %v729_v27 = vrot.slane %v695_v31, 1  ;;  %v730_v33 = vrot.slane %v696_v13, 1 }
  0x56   : > { %v658_v32 = vadd.f32 %v634_v25, %v581_v0  ;;  %v732_v34 = vrot.slane %v697_v20, 1  ;;  %v733_v35 = vrot.slane %v698_v23, 1  ;;  %v773_v36 = vmul.f32 %v1549_v22, %v1602_v8  ;;  %v289_v20 = vld [vmem:[%s1440_s8 + $0x40] ss:$8 sps:$4 sm:$0xff]  }
  0x57   : > { %v679_v30 = vadd.f32 %v671_v21, %v657_v26  ;;  %v774_v38 = vmul.f32 %v1549_v22, %v1584_v59  ;;  %v775_v40 = vmul.f32 %v1549_v22, %v1604_v9  ;;  %v731_v42 = vsel %vm367_vm0, %v729_v27, %v730_v33  ;;  %v290_v27 = vld [vmem:[%s1440_s8 + $0x44] sm:$0x1] }
  0x58   : > { %v680_v41 = vadd.f32 %v672_v24, %v658_v32  ;;  %v734_v43 = vsel %vm367_vm0, %v732_v34, %v733_v35  ;;  %v806_v29 = vrot.slane %v772_v39, 2  ;;  %v807_v45 = vrot.slane %v773_v36, 2 }
  0x59   : > { %v757_v44 = vadd.f32 %v731_v42, %v679_v30  ;;  %v809_v46 = vrot.slane %v774_v38, 2  ;;  %v810_v48 = vrot.slane %v775_v40, 2  ;;  %v312_v8 = vmul.f32 %v1460_v16, %v1593_v1 }
  0x5a   : > { %v758_v49 = vadd.f32 %v734_v43, %v680_v41  ;;  %v313_v59 = vmul.f32 %v1460_v16, %v1595_v3  ;;  %v347_v9 = vmul.f32 %v1465_v17, %v1593_v1  ;;  %v808_v50 = vsel %vm445_vm1, %v806_v29, %v807_v45 }
  0x5b   : > { %v811_v51 = vsel %vm445_vm1, %v809_v46, %v810_v48  ;;  %v348_v53 = vmul.f32 %v1465_v17, %v1606_v10  ;;  %v349_v54 = vmul.f32 %v1465_v17, %v1595_v3  ;;  %v834_v55 = vadd.f32 %v808_v50, %v757_v44 }
  0x5c   : > { %v835_v52 = vadd.f32 %v811_v51, %v758_v49  ;;  %v350_v56 = vmul.f32 %v1465_v17, %v1609_v19  ;;  %v386_v57 = vrot.slane %v347_v9, 1  ;;  %v425_v61 = vmul.f32 %v1470_v18, %v1593_v1 }
  0x5d   : > { %v1363_v16 = vpop.eup %1362  ;;  %v387_v58 = vrot.slane %v348_v53, 1  ;;  %v389_v60 = vrot.slane %v349_v54, 1  ;;  %v426_v62 = vmul.f32 %v1470_v18, %v1606_v10  ;;  %v1781_v6 = vadd.f32 %v1590_v63, %v834_v55 }
  0x5e   : > { %v1365_v0 = vpop.eup %1364  ;;  %v915_v2 = vadd.f32 1.0, %v1363_v16  ;;  %v1784_v15 = vadd.f32 %v1590_v63, %v835_v52  ;;  %v390_v17 = vrot.slane %v350_v56, 1  ;;  %v427_v24 = vmul.f32 %v1470_v18, %v1595_v3 }
  0x5f   : > { %v916_v7 = vadd.f32 1.0, %v1365_v0  ;;  %v388_v21 = vsel %vm367_vm0, %v386_v57, %v387_v58  ;;  %v428_v1 = vmul.f32 %v1470_v18, %v1609_v19  ;;  %v865_v31 = vmul.f32 0.044715, %v1781_v6  ;;  %v292_v58 = vld [vmem:[%s1440_s8 + $0x4c] sm:$0x1]  ;;  %s1237_s8 = sshll.u32 %s1865_s22, 5 }
  0x60   : > { %v923_v10 = vmul.f32 %v915_v2, %v1704_v14  ;;  %v866_v13 = vmul.f32 0.044715, %v1784_v15  ;;  %v391_v23 = vsel %vm367_vm0, %v389_v60, %v390_v17  ;;  %v406_v25 = vadd.f32 %v388_v21, %v312_v8  ;;  %s266_s20 = scalar_lea.vmem %s1862_s5, %s1237_s8  ;;  %s271_s26 = scalar_lea.vmem %s1863_s6, %s1237_s8 }
  0x61   : > { %v924_v12 = vmul.f32 %v916_v7, %v1708_v4  ;;  %v873_v26 = vmul.f32 %v865_v31, %v1781_v6  ;;  %v407_v39 = vadd.f32 %v391_v23, %v313_v59  ;;  %v464_v32 = vrot.slane %v425_v61, 2 }
  0x62   : > { %v465_v33 = vrot.slane %v426_v62, 2  ;;  %v874_v18 = vmul.f32 %v866_v13, %v1784_v15  ;;  %v467_v14 = vrot.slane %v427_v24, 2  ;;  %v468_v35 = vrot.slane %v428_v1, 2 }
  0x63   : > { %v929_v34 = vpack.c.bf16 %v924_v12, %v923_v10  ;;  %v881_v30 = vmul.f32 %v873_v26, %v1781_v6  ;;  %v486_v36 = vunpack.c.l.bf16 %v289_v20  ;;  %v498_v38 = vmul.f32 %v1489_v28, %v1595_v3 }
  0x64   : > { %v466_v4 = vsel %vm445_vm1, %v464_v32, %v465_v33  ;;  %v882_v40 = vmul.f32 %v874_v18, %v1784_v15  ;;  %v469_v41 = vsel %vm445_vm1, %v467_v14, %v468_v35  ;;  %v508_v43 = vunpack.c.l.bf16 %v290_v27 }
  0x65   : > { %1321 = vmatprep.mubr.bf16.mxu1 %v929_v34  ;;  %v484_v42 = vadd.f32 %v466_v4, %v406_v25  ;;  %v889_v29 = vadd.f32 %v881_v30, %v1781_v6  ;;  %v485_v44 = vadd.f32 %v469_v41, %v407_v39  ;;  %v499_v45 = vmul.f32 %v1489_v28, %v486_v36 }
  0x66   : > { %v526_v46 = vmul.f32 %v1499_v37, %v1595_v3  ;;  %v890_v48 = vadd.f32 %v882_v40, %v1784_v15  ;;  %v527_v8 = vmul.f32 %v1499_v37, %v1609_v19  ;;  %v528_v59 = vmul.f32 %v1499_v37, %v486_v36 }
  0x67   : > { %v506_v49 = vadd.f32 %v498_v38, %v484_v42  ;;  %v897_v9 = vmul.f32 0.7978845, %v889_v29  ;;  %v507_v50 = vadd.f32 %v499_v45, %v485_v44  ;;  %v529_v51 = vmul.f32 %v1499_v37, %v508_v43 }
  0x68   : > { %v564_v53 = vrot.slane %v526_v46, 1  ;;  %v898_v54 = vmul.f32 0.7978845, %v890_v48  ;;  %v565_v55 = vrot.slane %v527_v8, 1  ;;  %v567_v28 = vrot.slane %v528_v59, 1 }
  0x69   : > { %v603_v52 = vmul.f32 %v1512_v47, %v1595_v3  ;;  %1366 = vtanh.f32 %v897_v9  ;;  %v568_v56 = vrot.slane %v529_v51, 1  ;;  %v604_v57 = vmul.f32 %v1512_v47, %v1609_v19 }
  0x6a   : > { %v605_v16 = vmul.f32 %v1512_v47, %v486_v36  ;;  %1368 = vtanh.f32 %v898_v54  ;;  %v566_v60 = vsel %vm367_vm0, %v564_v53, %v565_v55  ;;  %v606_v37 = vmul.f32 %v1512_v47, %v508_v43 }
  0x6b   : > { %v641_v61 = vrot.slane %v603_v52, 2  ;;  %v569_v62 = vsel %vm367_vm0, %v567_v28, %v568_v56  ;;  %v584_v0 = vadd.f32 %v566_v60, %v506_v49  ;;  %v642_v2 = vrot.slane %v604_v57, 2 }
  0x6c   : > { %v644_v17 = vrot.slane %v605_v16, 2  ;;  %v585_v3 = vadd.f32 %v569_v62, %v507_v50  ;;  %v645_v7 = vrot.slane %v606_v37, 2  ;;  %v663_v21 = vunpack.c.h.bf16 %v289_v20 }
  0x6d   : > { %v675_v24 = vmul.f32 %v1536_v5, %v486_v36  ;;  %v643_v19 = vsel %vm445_vm1, %v641_v61, %v642_v2  ;;  %v685_v1 = vunpack.c.l.bf16 %v292_v58  ;;  %v703_v10 = vmul.f32 %v1544_v11, %v486_v36 }
  0x6e   : > { %v704_v31 = vmul.f32 %v1544_v11, %v508_v43  ;;  %v646_v47 = vsel %vm445_vm1, %v644_v17, %v645_v7  ;;  %v661_v12 = vadd.f32 %v643_v19, %v584_v0  ;;  %v676_v13 = vmul.f32 %v1536_v5, %v663_v21  ;;  %v1283_v19 = vld [vmem:[%s266_s20 + $0x8] sm:$0xff]  }
  0x6f   : > { %v705_v23 = vmul.f32 %v1544_v11, %v663_v21  ;;  %v662_v25 = vadd.f32 %v646_v47, %v585_v3  ;;  %v706_v26 = vmul.f32 %v1544_v11, %v685_v1  ;;  %v741_v20 = vrot.slane %v703_v10, 1  ;;  %v1248_v10 = vld [vmem:[%s266_s20] sm:$0xff]  }
  0x70   : > { %v742_v27 = vrot.slane %v704_v31, 1  ;;  %v683_v39 = vadd.f32 %v675_v24, %v661_v12  ;;  %v780_v33 = vmul.f32 %v1549_v22, %v486_v36  ;;  %v781_v34 = vmul.f32 %v1549_v22, %v508_v43  ;;  %v1218_v24 = vld [vmem:[%s1861_s4] ss:$0 sm:$0xff] }
  0x71   : > { %v744_v32 = vrot.slane %v705_v23, 1  ;;  %v684_v18 = vadd.f32 %v676_v13, %v662_v25  ;;  %v745_v35 = vrot.slane %v706_v26, 1  ;;  %v782_v30 = vmul.f32 %v1549_v22, %v663_v21 }
  0x72   : > { %v743_v14 = vsel %vm367_vm0, %v741_v20, %v742_v27  ;;  %v783_v4 = vmul.f32 %v1549_v22, %v685_v1  ;;  %v818_v38 = vrot.slane %v780_v33, 2  ;;  %v819_v40 = vrot.slane %v781_v34, 2 }
  0x73   : > { %v761_v5 = vadd.f32 %v743_v14, %v683_v39  ;;  %v746_v11 = vsel %vm367_vm0, %v744_v32, %v745_v35  ;;  %v821_v41 = vrot.slane %v782_v30, 2  ;;  %v857_v43 = vmul.f32 0.5, %v1781_v6 }
  0x74   : > { %v762_v42 = vadd.f32 %v746_v11, %v684_v18  ;;  %v820_v29 = vsel %vm445_vm1, %v818_v38, %v819_v40  ;;  %v822_v36 = vrot.slane %v783_v4, 2  ;;  %v858_v46 = vmul.f32 0.5, %v1784_v15  ;;  %v1284_v38 = vld [vmem:[%s266_s20 + $0x10] sm:$0xff]  }
  0x75   : > { %v838_v44 = vadd.f32 %v820_v29, %v761_v5  ;;  %v1253_v47 = vunpack.c.l.bf16 %v1283_v19  ;;  %v1254_v12 = vunpack.c.h.bf16 %v1283_v19  ;;  %v1249_v25 = vunpack.c.l.bf16 %v1248_v10  ;;  %v1285_v5 = vld [vmem:[%s266_s20 + $0x18] sm:$0xff]  }
  0x76   : > { %v1367_v45 = vpop.eup %1366  ;;  %v823_v48 = vsel %vm445_vm1, %v821_v41, %v822_v36  ;;  %v1250_v20 = vunpack.c.h.bf16 %v1248_v10  ;;  %v1261_v11 = vunpack.c.l.bf16 %v1285_v5  ;;  %v1262_v41 = vunpack.c.h.bf16 %v1285_v5 }
  0x77   : > { %v1369_v49 = vpop.eup %1368  ;;  %v913_v8 = vadd.f32 1.0, %v1367_v45  ;;  %v839_v22 = vadd.f32 %v823_v48, %v762_v42  ;;  %v853_v59 = vadd.f32 %v1590_v63, %v838_v44  ;;  %v1257_v36 = vunpack.c.l.bf16 %v1284_v38 }
  0x78   : > { %v914_v9 = vadd.f32 1.0, %v1369_v49  ;;  %v1258_v44 = vunpack.c.h.bf16 %v1284_v38 }
  0x79   : > { %v921_v50 = vmul.f32 %v913_v8, %v857_v43  ;;  %v854_v51 = vadd.f32 %v1590_v63, %v839_v22  ;;  %v869_v53 = vmul.f32 0.044715, %v853_v59  ;;  %v861_v37 = vmul.f32 0.5, %v853_v59 }
  0x7a   : > { %v922_v54 = vmul.f32 %v914_v9, %v858_v46 }
  0x7b   : > { %v870_v55 = vmul.f32 0.044715, %v854_v51  ;;  %v877_v28 = vmul.f32 %v869_v53, %v853_v59  ;;  %v862_v62 = vmul.f32 0.5, %v854_v51 }
  0x7c   : > { %v928_v6 = vpack.c.bf16 %v922_v54, %v921_v50 }
  0x7d   : > { %v878_v52 = vmul.f32 %v870_v55, %v854_v51  ;;  %v885_v56 = vmul.f32 %v877_v28, %v853_v59 }
  0x7e   : > { %1318 = vmatmul.mubr.bf16.vlgmr.msra.gmra.mxu0 %v928_v6 }
  0x7f   : > { %v886_v15 = vmul.f32 %v878_v52, %v854_v51  ;;  %v893_v57 = vadd.f32 %v885_v56, %v853_v59 }
  0x81   : > { %v894_v16 = vadd.f32 %v886_v15, %v854_v51  ;;  %v901_v58 = vmul.f32 0.7978845, %v893_v57 }
  0x83   : > { %v902_v60 = vmul.f32 0.7978845, %v894_v16  ;;  %1370 = vtanh.f32 %v901_v58 }
  0x85   : > { %1372 = vtanh.f32 %v902_v60 }
  0x90   : > { %v1371_v61 = vpop.eup %1370 }
  0x91   : > { %v917_v63 = vadd.f32 1.0, %v1371_v61 }
  0x92   : > { %v1373_v0 = vpop.eup %1372 }
  0x93   : > { %v918_v2 = vadd.f32 1.0, %v1373_v0  ;;  %v925_v17 = vmul.f32 %v917_v63, %v861_v37 }
  0x95   : > { %v926_v3 = vmul.f32 %v918_v2, %v862_v62 }
  0x97   : > { %v930_v7 = vpack.c.bf16 %v926_v3, %v925_v17 }
  0x99   : > { %1322 = vmatmul.mubr.bf16.vlgmr.msra.gmra.mxu1 %v930_v7 }
 0x13e   : > { %v1319_v21 = vpop.f32.mrf.mxu0 }
 0x13f   : > { %v1045_v31 = vadd.f32 %v1319_v21, %v1218_v24 }
 0x140   : > { %v1036_v1 = vpop.f32.mrf.mxu0 }
 0x141   : > { %v1037_v23 = vadd.f32 %v1218_v24, %v1036_v1  ;;  %v1085_v39 = vadd.f32 %v1253_v47, %v1045_v31 }
 0x142   : > { %v1320_v13 = vpop.f32.mrf.mxu0 }
 0x143   : > { %v1048_v26 = vadd.f32 %v1320_v13, %v1218_v24  ;;  %v1083_v34 = vadd.f32 %v1249_v25, %v1037_v23 }
 0x144   : > { %v1039_v27 = vpop.f32.mrf.mxu0 }
 0x145   : > { %v1086_v32 = vadd.f32 %v1254_v12, %v1048_v26  ;;  %v1040_v33 = vadd.f32 %v1218_v24, %v1039_v27 }
 0x147   : > { %v1271_v18 = vpack.c.bf16 %v1086_v32, %v1085_v39  ;;  %v1084_v14 = vadd.f32 %v1250_v20, %v1040_v33 }
 0x149   : > { %1286 = vst [vmem:[%s271_s26 + $0x8] sm:$0xff] %v1271_v18   ;;  %v1266_v35 = vpack.c.bf16 %v1084_v14, %v1083_v34 }
 0x14b   : > { %1267 = vst [vmem:[%s271_s26] sm:$0xff] %v1266_v35  }
 0x159   : > { %v1323_v30 = vpop.f32.mrf.mxu1 }
 0x15a   : > { %v1061_v40 = vadd.f32 %v1323_v30, %v1218_v24 }
 0x15b   : > { %v1052_v4 = vpop.f32.mrf.mxu1 }
 0x15c   : > { %v1053_v29 = vadd.f32 %v1218_v24, %v1052_v4  ;;  %v1089_v46 = vadd.f32 %v1261_v11, %v1061_v40 }
 0x15d   : > { %v1324_v42 = vpop.f32.mrf.mxu1 }
 0x15e   : > { %v1064_v43 = vadd.f32 %v1324_v42, %v1218_v24  ;;  %v1087_v8 = vadd.f32 %v1257_v36, %v1053_v29 }
 0x15f   : > { %v1055_v45 = vpop.f32.mrf.mxu1 }
 0x160   : > { %v1090_v48 = vadd.f32 %v1262_v41, %v1064_v43  ;;  %v1056_v49 = vadd.f32 %v1218_v24, %v1055_v45 }
 0x162   : > { %v1281_v22 = vpack.c.bf16 %v1090_v48, %v1089_v46  ;;  %v1088_v59 = vadd.f32 %v1258_v44, %v1056_v49 }
 0x164   : > { %1288 = vst [vmem:[%s271_s26 + $0x18] sm:$0xff] %v1281_v22   ;;  %v1276_v9 = vpack.c.bf16 %v1088_v59, %v1087_v8 }
 0x166   : > { %1287 = vst [vmem:[%s271_s26 + $0x10] sm:$0xff] %v1276_v9  }
 0x167 PF: > { %s16_s21 = sadd.s32 1, %s1380_s21  }
 0x168   : > { %p13_p4 = scmp.ge.s32.totalorder %s16_s21, 4  }
 0x16a   :  { %15 = sbr.rel (!%p13_p4) target bundleno = 1 (0x1), region = 77 }

// kernel: _lambda_.28
= control target key start
LH: loop header
LB: loop body
LE: loop exit
PB: predicated region body
PF: predicated region fallthrough
CT: control target
= control target key end

     0   :  { %v362_v0 = vmov 0   ;;  %vm122_vm0 = vcmask 130048   ;;  %v180_v14 = vlaneseq  ;;  %v363_v19 = vmov 0.0   ;;  %s448_s1 = inlined_call_operand.vmem [shape: bf16[144,128], index: 1, kind: input, shape index: {}]   ;;  %s449_s0 = inlined_call_operand.vmem [shape: bf16[32,144], index: 0, kind: input, shape index: {}]   ;;  %s450_s2 = inlined_call_operand.vmem [shape: f32[1,128], index: 2, kind: input, shape index: {}]   ;;  %s451_s3 = inlined_call_operand.vmem [shape: f32[1,128], index: 3, kind: input, shape index: {}]   ;;  %s452_s4 = inlined_call_operand.vmem [shape: f32[1,128], index: 4, kind: input, shape index: {}]   ;;  %s453_s5 = inlined_call_operand.vmem [shape: bf16[32,128], index: 5, kind: output, shape index: {}]  }
   0x1   :  { %129 = vmatprep.subr.bf16.mxu0 %v362_v0  ;;  %319 = vmatprep.subr.bf16.mxu1 %v362_v0  ;;  %v339_v1 = vld [vmem:[%s448_s1 + $0x38] sm:$0xff]   ;;  %v340_v2 = vld [vmem:[%s448_s1 + $0x30] sm:$0xff]   ;;  %v341_v3 = vld [vmem:[%s448_s1 + $0x28] sm:$0xff]  }
   0x2   :  { %130 = vmatpush1.bf16.msra.mxu0 %v339_v1  ;;  %328 = vmatpush1.bf16.msra.mxu1 %v339_v1  ;;  %v342_v4 = vld [vmem:[%s448_s1 + $0x20] sm:$0xff]   ;;  %v353_v6 = vld [vmem:[%s449_s0 + $0x14] ss:$8 sps:$4 sm:$0xff]   ;;  %v345_v9 = vld [vmem:[%s448_s1 + $0x8] sm:$0xff]   ;;  %v181_v15 = vand.u32 127, %v180_v14 }
   0x3   :  { %131 = vmatprep.subr.bf16.mxu0 %v362_v0  ;;  %320 = vmatprep.subr.bf16.mxu1 %v362_v0  ;;  %v350_v5 = vld [vmem:[%s449_s0 + $0x4] ss:$8 sps:$4 sm:$0xff]   ;;  %v343_v7 = vld [vmem:[%s448_s1 + $0x18] sm:$0xff]   ;;  %v344_v8 = vld [vmem:[%s448_s1 + $0x10] sm:$0xff]  }
   0x4   :  { %295 = vmatprep.mubr.msk.bf16.mxu0 %vm122_vm0, %v350_v5  ;;  %296 = vmatprep.mubr.msk.bf16.mxu1 %vm122_vm0, %v353_v6  ;;  %v346_v10 = vld [vmem:[%s448_s1] sm:$0xff]   ;;  %v351_v13 = vld [vmem:[%s449_s0 + $0x10] ss:$8 sps:$4 sm:$0xff]   ;;  %vm182_vm1 = vcmp.lt.s32.totalorder %v181_v15, 32 }
   0x5   :  { %v347_v11 = vld [vmem:[%s448_s1 + $0x40] sm:$0xff]   ;;  %v297_v20 = vsel %vm182_vm1, 1.0, %v363_v19 }
   0x6   :  { %132 = vmatpush1.bf16.msra.mxu0 %v340_v2  ;;  %329 = vmatpush1.bf16.msra.mxu1 %v340_v2  ;;  %v348_v12 = vld [vmem:[%s449_s0] ss:$8 sps:$4 sm:$0xff]  }
   0x7   :  { %133 = vmatprep.subr.bf16.mxu0 %v362_v0  ;;  %321 = vmatprep.subr.bf16.mxu1 %v362_v0  ;;  %v281_v16 = vld [vmem:[%s450_s2] ss:$0 sm:$0xff] }
   0x8   :  { %v298_v5 = vld [vmem:[%s451_s3] ss:$0 sm:$0xff] }
   0xa   :  { %134 = vmatpush1.bf16.msra.mxu0 %v341_v3  ;;  %330 = vmatpush1.bf16.msra.mxu1 %v341_v3 }
   0xb   :  { %135 = vmatprep.subr.bf16.mxu0 %v362_v0  ;;  %322 = vmatprep.subr.bf16.mxu1 %v362_v0 }
   0xe   :  { %136 = vmatpush1.bf16.msra.mxu0 %v342_v4  ;;  %331 = vmatpush1.bf16.msra.mxu1 %v342_v4 }
   0xf   :  { %137 = vmatprep.subr.bf16.mxu0 %v362_v0  ;;  %323 = vmatprep.subr.bf16.mxu1 %v362_v0 }
  0x12   :  { %138 = vmatpush1.bf16.msra.mxu0 %v343_v7  ;;  %332 = vmatpush1.bf16.msra.mxu1 %v343_v7 }
  0x13   :  { %139 = vmatprep.subr.bf16.mxu0 %v362_v0  ;;  %324 = vmatprep.subr.bf16.mxu1 %v362_v0 }
  0x16   :  { %140 = vmatpush1.bf16.msra.mxu0 %v344_v8  ;;  %333 = vmatpush1.bf16.msra.mxu1 %v344_v8 }
  0x17   :  { %141 = vmatprep.subr.bf16.mxu0 %v362_v0  ;;  %325 = vmatprep.subr.bf16.mxu1 %v362_v0 }
  0x1a   :  { %142 = vmatpush1.bf16.msra.mxu0 %v345_v9  ;;  %334 = vmatpush1.bf16.msra.mxu1 %v345_v9 }
  0x1b   :  { %143 = vmatprep.subr.bf16.mxu0 %v362_v0  ;;  %326 = vmatprep.subr.bf16.mxu1 %v362_v0 }
  0x1e   :  { %144 = vmatpush1.bf16.msra.mxu0 %v346_v10  ;;  %335 = vmatpush1.bf16.msra.mxu1 %v346_v10  ;;  %v299_v10 = vld [vmem:[%s452_s4] ss:$0 sm:$0xff] }
  0x1f   :  { %159 = vmatprep.subr.bf16.mxu0 %v362_v0  ;;  %327 = vmatprep.subr.bf16.mxu1 %v362_v0 }
  0x22   :  { %160 = vmatpush2.bf16.msra.mxu0 %v347_v11  ;;  %336 = vmatpush2.bf16.msra.mxu1 %v347_v11 }
  0x25   :  { %162 = vmatmul.mubr.bf16.vlgmr.msra.gmra.mxu0 %v348_v12  ;;  %170 = vmatmul.mubr.bf16.vlgmr.msra.gmra.mxu1 %v351_v13 }
  0xe5   :  { %v163_v17 = vpop.f32.mrf.mxu0  ;;  %v171_v18 = vpop.f32.mrf.mxu1 }
  0xe6   :  { %v164_v21 = vadd.f32 %v281_v16, %v163_v17  ;;  %v172_v22 = vadd.f32 %v281_v16, %v171_v18 }
  0xe7   :  { %v165_v23 = vpop.f32.mrf.mxu0  ;;  %v173_v24 = vpop.f32.mrf.mxu1 }
  0xe8   :  { %v187_v25 = vmul.f32 %v297_v20, %v172_v22  ;;  %v185_v26 = vmul.f32 %v297_v20, %v164_v21 }
  0xe9   :  { %v166_v27 = vpop.f32.mrf.mxu0  ;;  %v174_v28 = vpop.f32.mrf.mxu1 }
  0xea   :  { %v167_v29 = vadd.f32 %v281_v16, %v166_v27  ;;  %v175_v30 = vadd.f32 %v281_v16, %v174_v28  ;;  %193 = vadd.xlane.f32.xlu1 %v187_v25  ;;  %189 = vadd.xlane.f32.xlu0 %v185_v26 }
  0xeb   :  { %v168_v31 = vpop.f32.mrf.mxu0  ;;  %v176_v32 = vpop.f32.mrf.mxu1 }
  0xec   :  { %v188_v33 = vmul.f32 %v297_v20, %v175_v30  ;;  %v186_v34 = vmul.f32 %v297_v20, %v167_v29 }
  0xee   :  { %195 = vadd.xlane.f32.xlu1 %v188_v33  ;;  %191 = vadd.xlane.f32.xlu0 %v186_v34 }
 0x173   :  { %v194_v35 = vpop.xlane.xlu1 %193  ;;  %v190_v36 = vpop.xlane.xlu0 %189 }
 0x174   :  { %v199_v37 = vmul.f32 0.03125, %v194_v35  ;;  %v197_v38 = vmul.f32 0.03125, %v190_v36 }
 0x176   :  { %v203_v39 = vsub.f32 %v172_v22, %v199_v37  ;;  %v201_v40 = vsub.f32 %v164_v21, %v197_v38 }
 0x177   :  { %v196_v41 = vpop.xlane.xlu1 %195  ;;  %v192_v42 = vpop.xlane.xlu0 %191 }
 0x178   :  { %v200_v43 = vmul.f32 0.03125, %v196_v41  ;;  %v198_v44 = vmul.f32 0.03125, %v192_v42  ;;  %v205_v45 = vmul.f32 %v297_v20, %v201_v40  ;;  %v207_v49 = vmul.f32 %v297_v20, %v203_v39 }
 0x17a   :  { %v204_v46 = vsub.f32 %v175_v30, %v200_v43  ;;  %v202_v47 = vsub.f32 %v167_v29, %v198_v44  ;;  %v209_v48 = vmul.f32 %v205_v45, %v205_v45  ;;  %v211_v51 = vmul.f32 %v207_v49, %v207_v49 }
 0x17c   :  { %213 = vadd.xlane.f32.xlu0 %v209_v48  ;;  %v206_v50 = vmul.f32 %v297_v20, %v202_v47  ;;  %v208_v53 = vmul.f32 %v297_v20, %v204_v46 }
 0x17e   :  { %v210_v52 = vmul.f32 %v206_v50, %v206_v50  ;;  %v212_v54 = vmul.f32 %v208_v53, %v208_v53 }
 0x180   :  { %217 = vadd.xlane.f32.xlu0 %v211_v51  ;;  %215 = vadd.xlane.f32.xlu1 %v210_v52 }
 0x184   :  { %219 = vadd.xlane.f32.xlu1 %v212_v54 }
 0x205   :  { %v214_v55 = vpop.xlane.xlu0 %213 }
 0x206   :  { %v221_v56 = vmul.f32 0.03125, %v214_v55 }
 0x208   :  { %v225_v57 = vadd.f32 1e-06, %v221_v56 }
 0x209   :  { %v216_v58 = vpop.xlane.xlu1 %215  ;;  %v218_v59 = vpop.xlane.xlu0 %217 }
 0x20a   :  { %354 = vrsqrt.f32 %v225_v57  ;;  %v222_v60 = vmul.f32 0.03125, %v216_v58  ;;  %v223_v61 = vmul.f32 0.03125, %v218_v59 }
 0x20c   :  { %v226_v62 = vadd.f32 1e-06, %v222_v60  ;;  %v227_v63 = vadd.f32 1e-06, %v223_v61 }
 0x20d   :  { %v220_v0 = vpop.xlane.xlu1 %219 }
 0x20e   :  { %356 = vrsqrt.f32 %v226_v62  ;;  %v224_v1 = vmul.f32 0.03125, %v220_v0 }
 0x20f   :  { %358 = vrsqrt.f32 %v227_v63 }
 0x210   :  { %v228_v2 = vadd.f32 1e-06, %v224_v1 }
 0x212   :  { %360 = vrsqrt.f32 %v228_v2 }
 0x217   :  { %v355_v3 = vpop.eup %354 }
 0x218   :  { %v233_v4 = vmul.f32 %v355_v3, %v205_v45 }
 0x21a   :  { %v243_v8 = vmul.f32 %v298_v5, %v233_v4 }
 0x21b   :  { %v357_v6 = vpop.eup %356 }
 0x21c   :  { %v359_v7 = vpop.eup %358  ;;  %v234_v9 = vmul.f32 %v357_v6, %v206_v50  ;;  %v253_v14 = vadd.f32 %v299_v10, %v243_v8 }
 0x21d   :  { %v235_v11 = vmul.f32 %v359_v7, %v207_v49 }
 0x21e   :  { %v244_v12 = vmul.f32 %v298_v5, %v234_v9 }
 0x21f   :  { %v361_v13 = vpop.eup %360  ;;  %v245_v16 = vmul.f32 %v298_v5, %v235_v11 }
 0x220   :  { %v254_v15 = vadd.f32 %v299_v10, %v244_v12  ;;  %v236_v17 = vmul.f32 %v361_v13, %v208_v53 }
 0x221   :  { %v255_v20 = vadd.f32 %v299_v10, %v245_v16 }
 0x222   :  { %v311_v18 = vpack.c.bf16 %v254_v15, %v253_v14  ;;  %v246_v19 = vmul.f32 %v298_v5, %v236_v17 }
 0x224   :  { %312 = vst [vmem:[%s453_s5] sm:$0xff] %v311_v18   ;;  %v256_v21 = vadd.f32 %v299_v10, %v246_v19 }
 0x226   :  { %v316_v22 = vpack.c.bf16 %v256_v21, %v255_v20 }
 0x228   :  { %318 = vst [vmem:[%s453_s5 + $0x8] sm:$0xff] %v316_v22  }

// kernel: _lambda_.30
= control target key start
LH: loop header
LB: loop body
LE: loop exit
PB: predicated region body
PF: predicated region fallthrough
CT: control target
= control target key end

     0   :  { %v31_v0 = vlaneseq  ;;  %v341_v8 = vmov 0.0   ;;  %s422_s0 = inlined_call_operand.vmem [shape: bf16[32,128], index: 0, kind: input, shape index: {}]   ;;  %s423_s1 = inlined_call_operand.vmem [shape: bf16[128,128], index: 1, kind: input, shape index: {}]   ;;  %s424_s3 = inlined_call_operand.vmem [shape: f32[1,128], index: 3, kind: input, shape index: {}]   ;;  %s425_s4 = inlined_call_operand.vmem [shape: f32[1,128], index: 4, kind: input, shape index: {}]   ;;  %s426_s2 = inlined_call_operand.vmem [shape: f32[1,128], index: 2, kind: input, shape index: {}]   ;;  %s427_s5 = inlined_call_operand.vmem [shape: bf16[32,128], index: 5, kind: output, shape index: {}]  }
   0x1   :  { %v275_v1 = vld [vmem:[%s422_s0] sm:$0xff]   ;;  %v292_v2 = vld [vmem:[%s422_s0 + $0x8] sm:$0xff]   ;;  %v325_v34 = vld [vmem:[%s423_s1 + $0x38] sm:$0xff]  }
   0x2   :  { %v276_v3 = vunpack.c.l.bf16 %v275_v1  ;;  %v32_v4 = vand.u32 127, %v31_v0  ;;  %v280_v5 = vunpack.c.l.bf16 %v292_v2  ;;  %v277_v6 = vunpack.c.h.bf16 %v275_v1  ;;  %304 = vmatprep.subr.bf16.mxu0 %v325_v34  ;;  %v326_v35 = vld [vmem:[%s423_s1 + $0x30] sm:$0xff]   ;;  %v327_v36 = vld [vmem:[%s423_s1 + $0x28] sm:$0xff]   ;;  %v328_v37 = vld [vmem:[%s423_s1 + $0x20] sm:$0xff]  }
   0x3   :  { %v281_v7 = vunpack.c.h.bf16 %v292_v2  ;;  %305 = vmatpush3.bf16.msra.mxu0 %v325_v34  ;;  %v329_v38 = vld [vmem:[%s423_s1 + $0x18] sm:$0xff]   ;;  %v330_v39 = vld [vmem:[%s423_s1 + $0x10] sm:$0xff]   ;;  %v331_v40 = vld [vmem:[%s423_s1 + $0x8] sm:$0xff]  }
   0x4   :  { %vm33_vm0 = vcmp.lt.s32.totalorder %v32_v4, 32  ;;  %306 = vmatprep.subr.bf16.mxu0 %v326_v35  ;;  %v332_v41 = vld [vmem:[%s423_s1] sm:$0xff]  }
   0x5   :  { %v254_v9 = vsel %vm33_vm0, 1.0, %v341_v8  ;;  %v255_v56 = vld [vmem:[%s424_s3] ss:$0 sm:$0xff] }
   0x6   :  { %v36_v10 = vmul.f32 %v276_v3, %v254_v9  ;;  %v38_v11 = vmul.f32 %v280_v5, %v254_v9  ;;  %v37_v12 = vmul.f32 %v277_v6, %v254_v9  ;;  %v39_v13 = vmul.f32 %v281_v7, %v254_v9  ;;  %v256_v61 = vld [vmem:[%s425_s4] ss:$0 sm:$0xff] }
   0x7   :  { %307 = vmatpush3.bf16.msra.mxu0 %v326_v35 }
   0x8   :  { %40 = vadd.xlane.f32.xlu0 %v36_v10  ;;  %44 = vadd.xlane.f32.xlu1 %v38_v11  ;;  %v257_v11 = vld [vmem:[%s426_s2] ss:$0 sm:$0xff] }
   0x9   :  { %308 = vmatprep.subr.bf16.mxu0 %v327_v36 }
   0xb   :  { %309 = vmatpush3.bf16.msra.mxu0 %v327_v36 }
   0xc   :  { %42 = vadd.xlane.f32.xlu0 %v37_v12  ;;  %46 = vadd.xlane.f32.xlu1 %v39_v13 }
   0xd   :  { %310 = vmatprep.subr.bf16.mxu0 %v328_v37 }
   0xf   :  { %311 = vmatpush3.bf16.msra.mxu0 %v328_v37 }
  0x10   :  { %312 = vmatprep.subr.bf16.mxu0 %v329_v38 }
  0x13   :  { %313 = vmatpush3.bf16.msra.mxu0 %v329_v38 }
  0x14   :  { %314 = vmatprep.subr.bf16.mxu0 %v330_v39 }
  0x17   :  { %315 = vmatpush3.bf16.msra.mxu0 %v330_v39 }
  0x18   :  { %316 = vmatprep.subr.bf16.mxu0 %v331_v40 }
  0x1b   :  { %317 = vmatpush3.bf16.msra.mxu0 %v331_v40 }
  0x1c   :  { %318 = vmatprep.subr.bf16.mxu0 %v332_v41 }
  0x1f   :  { %319 = vmatpush3.bf16.msra.mxu0 %v332_v41 }
  0x91   :  { %v41_v14 = vpop.xlane.xlu0 %40  ;;  %v45_v15 = vpop.xlane.xlu1 %44 }
  0x92   :  { %v48_v16 = vmul.f32 0.03125, %v41_v14  ;;  %v50_v17 = vmul.f32 0.03125, %v45_v15 }
  0x94   :  { %v52_v18 = vsub.f32 %v276_v3, %v48_v16  ;;  %v54_v19 = vsub.f32 %v280_v5, %v50_v17 }
  0x95   :  { %v43_v20 = vpop.xlane.xlu0 %42  ;;  %v47_v21 = vpop.xlane.xlu1 %46 }
  0x96   :  { %v49_v22 = vmul.f32 0.03125, %v43_v20  ;;  %v51_v23 = vmul.f32 0.03125, %v47_v21  ;;  %v56_v24 = vmul.f32 %v254_v9, %v52_v18  ;;  %v378_v25 = vmul.f32 %v254_v9, %v54_v19 }
  0x98   :  { %v53_v26 = vsub.f32 %v277_v6, %v49_v22  ;;  %v55_v27 = vsub.f32 %v281_v7, %v51_v23  ;;  %v60_v28 = vmul.f32 %v56_v24, %v56_v24  ;;  %v62_v29 = vmul.f32 %v378_v25, %v378_v25 }
  0x9a   :  { %64 = vadd.xlane.f32.xlu0 %v60_v28  ;;  %v57_v30 = vmul.f32 %v254_v9, %v53_v26  ;;  %v59_v31 = vmul.f32 %v254_v9, %v55_v27 }
  0x9c   :  { %v61_v32 = vmul.f32 %v57_v30, %v57_v30  ;;  %v63_v33 = vmul.f32 %v59_v31, %v59_v31 }
  0x9e   :  { %68 = vadd.xlane.f32.xlu0 %v62_v29  ;;  %66 = vadd.xlane.f32.xlu1 %v61_v32 }
  0xa2   :  { %70 = vadd.xlane.f32.xlu1 %v63_v33 }
 0x123   :  { %v65_v42 = vpop.xlane.xlu0 %64 }
 0x124   :  { %v72_v43 = vmul.f32 0.03125, %v65_v42 }
 0x126   :  { %v76_v44 = vadd.f32 1e-06, %v72_v43 }
 0x127   :  { %v67_v45 = vpop.xlane.xlu1 %66  ;;  %v69_v46 = vpop.xlane.xlu0 %68 }
 0x128   :  { %333 = vrsqrt.f32 %v76_v44  ;;  %v73_v47 = vmul.f32 0.03125, %v67_v45  ;;  %v74_v48 = vmul.f32 0.03125, %v69_v46 }
 0x12a   :  { %v77_v49 = vadd.f32 1e-06, %v73_v47  ;;  %v78_v50 = vadd.f32 1e-06, %v74_v48 }
 0x12b   :  { %v71_v51 = vpop.xlane.xlu1 %70 }
 0x12c   :  { %335 = vrsqrt.f32 %v77_v49  ;;  %v75_v52 = vmul.f32 0.03125, %v71_v51 }
 0x12d   :  { %337 = vrsqrt.f32 %v78_v50 }
 0x12e   :  { %v79_v53 = vadd.f32 1e-06, %v75_v52 }
 0x130   :  { %339 = vrsqrt.f32 %v79_v53 }
 0x135   :  { %v334_v54 = vpop.eup %333 }
 0x136   :  { %v84_v55 = vmul.f32 %v334_v54, %v56_v24 }
 0x138   :  { %v94_v60 = vmul.f32 %v255_v56, %v84_v55 }
 0x139   :  { %v336_v57 = vpop.eup %335 }
 0x13a   :  { %v338_v58 = vpop.eup %337  ;;  %v85_v59 = vmul.f32 %v336_v57, %v57_v30  ;;  %v104_v1 = vadd.f32 %v256_v61, %v94_v60 }
 0x13b   :  { %v86_v62 = vmul.f32 %v338_v58, %v378_v25 }
 0x13c   :  { %v95_v63 = vmul.f32 %v255_v56, %v85_v59 }
 0x13d   :  { %v340_v0 = vpop.eup %339  ;;  %v96_v4 = vmul.f32 %v255_v56, %v86_v62 }
 0x13e   :  { %v105_v2 = vadd.f32 %v256_v61, %v95_v63  ;;  %v87_v3 = vmul.f32 %v340_v0, %v59_v31 }
 0x13f   :  { %v106_v7 = vadd.f32 %v256_v61, %v96_v4 }
 0x140   :  { %v108_v5 = vpack.c.bf16 %v105_v2, %v104_v1  ;;  %v97_v6 = vmul.f32 %v255_v56, %v87_v3 }
 0x142   :  { %320 = vmatprep.mubr.bf16.mxu0 %v108_v5  ;;  %v107_v8 = vadd.f32 %v256_v61, %v97_v6 }
 0x144   :  { %v109_v9 = vpack.c.bf16 %v107_v8, %v106_v7 }
 0x146   :  { %321 = vmatmul.mubr.bf16.vlgmr.msra.gmra.mxu0 %v109_v9 }
 0x206   :  { %v322_v10 = vpop.f32.mrf.mxu0 }
 0x207   :  { %v224_v14 = vadd.f32 %v322_v10, %v257_v11 }
 0x208   :  { %v215_v12 = vpop.f32.mrf.mxu0 }
 0x209   :  { %v216_v17 = vadd.f32 %v257_v11, %v215_v12 }
 0x20a   :  { %v323_v13 = vpop.f32.mrf.mxu0 }
 0x20b   :  { %v227_v15 = vadd.f32 %v323_v13, %v257_v11 }
 0x20c   :  { %v218_v16 = vpop.f32.mrf.mxu0 }
 0x20d   :  { %v290_v18 = vpack.c.bf16 %v227_v15, %v224_v14  ;;  %v219_v19 = vadd.f32 %v257_v11, %v218_v16 }
 0x20f   :  { %293 = vst [vmem:[%s427_s5 + $0x8] sm:$0xff] %v290_v18   ;;  %v285_v20 = vpack.c.bf16 %v219_v19, %v216_v17 }
 0x211   :  { %286 = vst [vmem:[%s427_s5] sm:$0xff] %v285_v20  }

// kernel: _lambda_.31
= control target key start
LH: loop header
LB: loop body
LE: loop exit
PB: predicated region body
PF: predicated region fallthrough
CT: control target
= control target key end

     0   :  { %s1210_s18 = smov 0   ;;  %s1212_s19 = smov 0   ;;  %s1348_s0 = inlined_call_operand.vmem [shape: bf16[2,16,128], index: 0, kind: input, shape index: {}]   ;;  %s1349_s1 = inlined_call_operand.vmem [shape: bf16[2,16,128], index: 1, kind: input, shape index: {}]   ;;  %s1350_s2 = inlined_call_operand.vmem [shape: bf16[2,128,128], index: 2, kind: input, shape index: {}]   ;;  %s1351_s3 = inlined_call_operand.vmem [shape: f32[1,128], index: 3, kind: input, shape index: {}]   ;;  %s1352_s4 = inlined_call_operand.vmem [shape: bf16[2,16,128], index: 4, kind: input, shape index: {}]   ;;  %s1353_s5 = inlined_call_operand.vmem [shape: bf16[2,16,128], index: 5, kind: output, shape index: {}]  }
   0x1   :  { %s1214_s20 = smov 0  }
   0x2 LB: > { %s27_s21 = sadd.s32 1, %s1172_s19  ;;  %p939_p0 = scmp.ge.s32.totalorder %s1176_s20, 1  ;;  %s1176_s20 = sphi %s1214_s20, %s15_s20   ;;  %s1172_s19 = sphi %s1212_s19, %s1355_s19   ;;  %s1168_s18 = sphi %s1210_s18, %s1354_s18  }
   0x3   : > { %p29_p1 = scmp.ge.s32.totalorder %s27_s21, 2  ;;  %p235_p2 = scmp.lt.s32.totalorder %s1176_s20, 3 }
   0x5   : > { %s1357_s21 = smov (%p29_p1, %s27_s21), 0  ;;  %p236_p3 = pnand %p939_p0, %p235_p2 }
   0x6   : > { %p286_p4 = scmp.lt.s32.totalorder (!%p236_p3), %s1168_s18, 1 }
   0x7   : > { %239 = sbr.rel (%p236_p3) target bundleno = 941 (0x3ad), region = 40 }
   0xc   : > { %v338_v0 = vlaneseq  ;;  %v1178_v1 = vmov 0.0   ;;  %s1359_s18 = smov (!%p286_p4, %s1168_s18), 1  ;;  %vm1179_vm0 = vmmov 0   ;;  %vm401_vm7 = vcmask 130048   ;;  %v1122_v57 = vld [vmem:[%s1350_s2 + $0x38] sm:$0xff]   ;;  %v1123_v62 = vld [vmem:[%s1350_s2 + $0x30] sm:$0xff]  }
   0xd   : > { %1031 = vmatprep.subr.bf16.mxu1 %v1178_v1  ;;  %1063 = vmatprep.subr.bf16.mxu0 %v1178_v1  ;;  %s1234_s22 = sshll.u32 %s1359_s18, 3  ;;  %v1124_v63 = vld [vmem:[%s1350_s2 + $0x78] sm:$0xff]  }
   0xe   : > { %1033 = vmatprep.mubr.msk.bf16.mxu1 %vm1179_vm0, %v1178_v1  ;;  %1065 = vmatprep.mubr.msk.bf16.mxu0 %vm1179_vm0, %v1178_v1  ;;  %v339_v2 = vand.u32 127, %v338_v0  ;;  %s299_s25 = scalar_lea.vmem %s1349_s1, %s1234_s22  ;;  %s293_s28 = scalar_lea.vmem %s1348_s0, %s1234_s22 }
   0xf   : > { %v1121_v3 = vld [vmem:[%s299_s25] sm:$0xff]   ;;  %s308_s17 = scalar_lea.vmem %s1352_s4, %s1234_s22  ;;  %s318_s26 = scalar_lea.vmem %s1353_s5, %s1234_s22 }
  0x10   : > { %vm341_vm1 = vcmp.lt.s32.totalorder %v339_v2, 16  ;;  %vm577_vm2 = vcmp.ge.s32.totalorder %v339_v2, 16  ;;  %vm578_vm3 = vcmp.lt.s32.totalorder %v339_v2, 32  ;;  %v321_v4 = vld [vmem:[%s293_s28] sm:$0xf]  ;;  %1032 = vmatpush3.bf16.xpose.msra.mxu1 %v1121_v3  ;;  %1064 = vmatpush3.bf16.xpose.msra.mxu0 %v1121_v3  ;;  %v1125_v2 = vld [vmem:[%s1350_s2 + $0x28] sm:$0xff]  }
  0x11   : > { %vm343_vm4 = vmpackc.low %vm341_vm1, %vm341_vm1  ;;  %v322_v5 = vld [vmem:[%s293_s28 + $0x4] sm:$0xf]  ;;  %1037 = vmatprep.subr.bf16.mxu1 %v1178_v1  ;;  %1069 = vmatprep.subr.bf16.mxu0 %v1178_v1 }
  0x12   : > { %vm579_vm5 = vmand %vm577_vm2, %vm578_vm3  ;;  %v344_v6 = vsel %vm343_vm4, %v321_v4, 0  ;;  %v345_v7 = vsel %vm343_vm4, %v322_v5, 0 }
  0x13   : > { %vm580_vm6 = vmpackc.low %vm579_vm5, %vm579_vm5  ;;  %v949_v10 = vcombine.low %v344_v6, %v345_v7  ;;  %v1129_v6 = vld [vmem:[%s1350_s2 + $0x18] sm:$0xff]   ;;  %v1130_v7 = vld [vmem:[%s1350_s2 + $0x60] sm:$0xff]  }
  0x14   : > { %v581_v8 = vsel %vm580_vm6, %v321_v4, 0  ;;  %v582_v9 = vsel %vm580_vm6, %v322_v5, 0  ;;  %v1127_v4 = vld [vmem:[%s1350_s2 + $0x20] sm:$0xff]   ;;  %v1128_v5 = vld [vmem:[%s1350_s2 + $0x68] sm:$0xff]  }
  0x15   : > { %v960_v11 = vcombine.low %v581_v8, %v582_v9  ;;  %v1131_v8 = vld [vmem:[%s1350_s2 + $0x10] sm:$0xff]   ;;  %v1132_v9 = vld [vmem:[%s1350_s2 + $0x58] sm:$0xff]  }
  0x17   : > { %1034 = vmatmul.mubr.bf16.vlgmr.msra.gmra.mxu1 %v949_v10  ;;  %1066 = vmatmul.mubr.bf16.vlgmr.msra.gmra.mxu0 %v960_v11  ;;  %v1133_v10 = vld [vmem:[%s1350_s2 + $0x8] sm:$0xff]   ;;  %v1134_v11 = vld [vmem:[%s1350_s2 + $0x50] sm:$0xff]  }
  0x18   : > { %1038 = vmatpush3.bf16.msra.mxu1 %v1121_v3  ;;  %1070 = vmatpush3.bf16.msra.mxu0 %v1121_v3  ;;  %v1126_v3 = vld [vmem:[%s1350_s2 + $0x70] sm:$0xff]  }
  0x19   : > { %1039 = vmatprep.mubr.msk.bf16.mxu1 %vm1179_vm0, %v1178_v1  ;;  %1071 = vmatprep.mubr.msk.bf16.mxu0 %vm1179_vm0, %v1178_v1 }
  0x1a   : > { %1043 = vmatprep.subr.bf16.mxu1 %v1178_v1  ;;  %1075 = vmatprep.subr.bf16.mxu0 %v1178_v1 }
  0xd7   : > { %v392_v12 = vpop.f32.mrf.mxu1  ;;  %v623_v13 = vpop.f32.mrf.mxu0 }
  0xd8   : > { %v399_v14 = vmul.f32 0.25, %v392_v12  ;;  %v630_v15 = vmul.f32 0.25, %v623_v13  ;;  %v1135_v12 = vld [vmem:[%s1350_s2] sm:$0xff]   ;;  %v1136_v13 = vld [vmem:[%s1350_s2 + $0x48] sm:$0xff]  }
  0xd9   : > { %v1035_v16 = vpop.f32.mrf.mxu1  ;;  %v1067_v17 = vpop.f32.mrf.mxu0 }
  0xda   : > { %v632_v18 = vsel %vm401_vm7, %v630_v15, -inf  ;;  %v402_v19 = vsel %vm401_vm7, %v399_v14, -inf }
  0xdb   : > { %633 = vmax.xlane.f32.xlu1 %v632_v18  ;;  %v626_v20 = vpop.f32.mrf.mxu0  ;;  %403 = vmax.xlane.f32.xlu0 %v402_v19  ;;  %v395_v21 = vpop.f32.mrf.mxu1 }
  0xdc   : > { %v631_v22 = vmul.f32 0.25, %v626_v20  ;;  %v400_v23 = vmul.f32 0.25, %v395_v21 }
  0xdd   : > { %v1036_v24 = vpop.f32.mrf.mxu1  ;;  %v1068_v25 = vpop.f32.mrf.mxu0 }
  0xde   : > { %v635_v26 = vsel %vm401_vm7, %v631_v22, -inf  ;;  %v405_v27 = vsel %vm401_vm7, %v400_v23, -inf }
  0xdf   : > { %636 = vmax.xlane.f32.xlu1 %v635_v26  ;;  %406 = vmax.xlane.f32.xlu0 %v405_v27  ;;  %v948_v27 = vld [vmem:[%s1351_s3] ss:$0 sm:$0xff] }
 0x164   : > { %v634_v28 = vpop.xlane.xlu1 %633  ;;  %v404_v29 = vpop.xlane.xlu0 %403 }
 0x165   : > { %v638_v30 = vsub.f32 %v630_v15, %v634_v28  ;;  %v408_v31 = vsub.f32 %v399_v14, %v404_v29  ;;  %v1137_v14 = vld [vmem:[%s1350_s2 + $0x40] sm:$0xff]  }
 0x167   : > { %v410_v32 = vmul.f32 1.442695, %v408_v31  ;;  %v640_v33 = vmul.f32 1.442695, %v638_v30 }
 0x168   : > { %v637_v34 = vpop.xlane.xlu1 %636  ;;  %v407_v35 = vpop.xlane.xlu0 %406 }
 0x169   : > { %v639_v36 = vsub.f32 %v631_v22, %v637_v34  ;;  %v409_v37 = vsub.f32 %v400_v23, %v407_v35  ;;  %1138 = vpow2.f32 %v410_v32 }
 0x16a   : > { %1140 = vpow2.f32 %v640_v33 }
 0x16b   : > { %v412_v38 = vmul.f32 1.442695, %v409_v37  ;;  %v642_v39 = vmul.f32 1.442695, %v639_v36 }
 0x16d   : > { %1142 = vpow2.f32 %v412_v38 }
 0x16e   : > { %1144 = vpow2.f32 %v642_v39 }
 0x176   : > { %v1139_v40 = vpop.eup %1138 }
 0x177   : > { %v414_v41 = vsel %vm401_vm7, %v1139_v40, 0.0  ;;  %v1141_v42 = vpop.eup %1140 }
 0x178   : > { %415 = vadd.xlane.f32.xlu0 %v414_v41  ;;  %v644_v44 = vsel %vm401_vm7, %v1141_v42, 0.0 }
 0x17a   : > { %v1143_v43 = vpop.eup %1142 }
 0x17b   : > { %v417_v45 = vsel %vm401_vm7, %v1143_v43, 0.0  ;;  %v1145_v46 = vpop.eup %1144 }
 0x17c   : > { %645 = vadd.xlane.f32.xlu0 %v644_v44  ;;  %418 = vadd.xlane.f32.xlu1 %v417_v45  ;;  %v647_v47 = vsel %vm401_vm7, %v1145_v46, 0.0 }
 0x180   : > { %648 = vadd.xlane.f32.xlu1 %v647_v47 }
 0x201   : > { %v416_v48 = vpop.xlane.xlu0 %415 }
 0x202   : > { %1146 = vrcp.f32 %v416_v48 }
 0x205   : > { %v419_v49 = vpop.xlane.xlu1 %418  ;;  %v646_v50 = vpop.xlane.xlu0 %645 }
 0x206   : > { %1148 = vrcp.f32 %v419_v49 }
 0x207   : > { %1150 = vrcp.f32 %v646_v50 }
 0x209   : > { %v649_v51 = vpop.xlane.xlu1 %648 }
 0x20a   : > { %1152 = vrcp.f32 %v649_v51 }
 0x20f   : > { %v1147_v52 = vpop.eup %1146 }
 0x210   : > { %v422_v54 = vmul.f32 %v1147_v52, %v1139_v40 }
 0x213   : > { %v1149_v53 = vpop.eup %1148 }
 0x214   : > { %v423_v55 = vmul.f32 %v1149_v53, %v1143_v43  ;;  %v1151_v56 = vpop.eup %1150 }
 0x215   : > { %v652_v60 = vmul.f32 %v1151_v56, %v1141_v42 }
 0x216   : > { %v424_v58 = vpack.c.bf16 %v423_v55, %v422_v54 }
 0x217   : > { %v1153_v59 = vpop.eup %1152 }
 0x218   : > { %v653_v61 = vmul.f32 %v1153_v59, %v1145_v46  ;;  %1040 = vmatmul.mubr.msk.bf16.vlgmr.msra.gmra.mxu1 %vm401_vm7, %v424_v58 }
 0x219   : > { %1044 = vmatpush3.bf16.msra.mxu1 %v1122_v57  ;;  %1059 = vmatprep.mubr.msk.bf16.mxu1 %vm1179_vm0, %v1178_v1 }
 0x21a   : > { %v654_v0 = vpack.c.bf16 %v653_v61, %v652_v60  ;;  %1045 = vmatprep.subr.bf16.mxu1 %v1178_v1 }
 0x21c   : > { %1072 = vmatmul.mubr.msk.bf16.vlgmr.msra.gmra.mxu0 %vm401_vm7, %v654_v0 }
 0x21d   : > { %1046 = vmatpush3.bf16.msra.mxu1 %v1123_v62  ;;  %1076 = vmatpush3.bf16.msra.mxu0 %v1124_v63 }
 0x21e   : > { %1047 = vmatprep.subr.bf16.mxu1 %v1178_v1  ;;  %1077 = vmatprep.subr.bf16.mxu0 %v1178_v1 }
 0x21f   : > { %1091 = vmatprep.mubr.msk.bf16.mxu0 %vm1179_vm0, %v1178_v1 }
 0x221   : > { %1048 = vmatpush3.bf16.msra.mxu1 %v1125_v2  ;;  %1078 = vmatpush3.bf16.msra.mxu0 %v1126_v3 }
 0x222   : > { %1049 = vmatprep.subr.bf16.mxu1 %v1178_v1  ;;  %1079 = vmatprep.subr.bf16.mxu0 %v1178_v1 }
 0x225   : > { %1050 = vmatpush3.bf16.msra.mxu1 %v1127_v4  ;;  %1080 = vmatpush3.bf16.msra.mxu0 %v1128_v5 }
 0x226   : > { %1051 = vmatprep.subr.bf16.mxu1 %v1178_v1  ;;  %1081 = vmatprep.subr.bf16.mxu0 %v1178_v1 }
 0x229   : > { %1052 = vmatpush3.bf16.msra.mxu1 %v1129_v6  ;;  %1082 = vmatpush3.bf16.msra.mxu0 %v1130_v7 }
 0x22a   : > { %1053 = vmatprep.subr.bf16.mxu1 %v1178_v1  ;;  %1083 = vmatprep.subr.bf16.mxu0 %v1178_v1 }
 0x22d   : > { %1054 = vmatpush3.bf16.msra.mxu1 %v1131_v8  ;;  %1084 = vmatpush3.bf16.msra.mxu0 %v1132_v9 }
 0x22e   : > { %1055 = vmatprep.subr.bf16.mxu1 %v1178_v1  ;;  %1085 = vmatprep.subr.bf16.mxu0 %v1178_v1 }
 0x231   : > { %1056 = vmatpush3.bf16.msra.mxu1 %v1133_v10  ;;  %1086 = vmatpush3.bf16.msra.mxu0 %v1134_v11 }
 0x232   : > { %1057 = vmatprep.subr.bf16.mxu1 %v1178_v1  ;;  %1087 = vmatprep.subr.bf16.mxu0 %v1178_v1 }
 0x235   : > { %1058 = vmatpush3.bf16.msra.mxu1 %v1135_v12  ;;  %1088 = vmatpush3.bf16.msra.mxu0 %v1136_v13 }
 0x236   : > { %1089 = vmatprep.subr.bf16.mxu0 %v1178_v1  ;;  %v997_v1 = vld [vmem:[%s308_s17] sm:$0xff]  }
 0x237   : > { %v998_v25 = vunpack.c.l.bf16 %v997_v1  ;;  %v999_v26 = vunpack.c.h.bf16 %v997_v1 }
 0x239   : > { %1090 = vmatpush3.bf16.msra.mxu0 %v1137_v14  ;;  %v336_v30 = vadd.f32 %v998_v25, %v948_v27  ;;  %v337_v31 = vadd.f32 %v999_v26, %v948_v27 }
 0x2d8   : > { %v462_v15 = vpop.f32.mrf.mxu1 }
 0x2da   : > { %v1041_v16 = vpop.f32.mrf.mxu1 }
 0x2dc   : > { %v465_v17 = vpop.f32.mrf.mxu1  ;;  %v692_v18 = vpop.f32.mrf.mxu0 }
 0x2dd   : > { %v469_v19 = vpack.c.bf16 %v465_v17, %v462_v15 }
 0x2de   : > { %v1042_v20 = vpop.f32.mrf.mxu1  ;;  %v1073_v21 = vpop.f32.mrf.mxu0 }
 0x2df   : > { %1060 = vmatmul.mubr.bf16.vlgmr.msra.gmra.mxu1 %v469_v19 }
 0x2e0   : > { %v695_v22 = vpop.f32.mrf.mxu0 }
 0x2e1   : > { %v699_v23 = vpack.c.bf16 %v695_v22, %v692_v18 }
 0x2e2   : > { %v1074_v24 = vpop.f32.mrf.mxu0 }
 0x2e3   : > { %1092 = vmatmul.mubr.bf16.vlgmr.msra.gmra.mxu0 %v699_v23 }
 0x39f   : > { %v568_v28 = vpop.f32.mrf.mxu1 }
 0x3a0   : > { %v575_v36 = vadd.f32 %v568_v28, %v336_v30 }
 0x3a1   : > { %v1061_v29 = vpop.f32.mrf.mxu1 }
 0x3a3   : > { %v571_v32 = vpop.f32.mrf.mxu1  ;;  %v799_v33 = vpop.f32.mrf.mxu0 }
 0x3a4   : > { %v576_v37 = vadd.f32 %v571_v32, %v337_v31  ;;  %v806_v39 = vadd.f32 %v799_v33, %v575_v36 }
 0x3a5   : > { %v1062_v34 = vpop.f32.mrf.mxu1  ;;  %v1093_v35 = vpop.f32.mrf.mxu0 }
 0x3a7   : > { %v802_v38 = vpop.f32.mrf.mxu0 }
 0x3a8   : > { %v807_v40 = vadd.f32 %v802_v38, %v576_v37 }
 0x3a9   : > { %v1094_v41 = vpop.f32.mrf.mxu0 }
 0x3aa   : > { %v1003_v42 = vpack.c.bf16 %v807_v40, %v806_v39 }
 0x3ac   : > { %1004 = vst [vmem:[%s318_s26] sm:$0xff] %v1003_v42  }
 0x3ad PF: > { %s15_s20 = sadd.s32 1, %s1176_s20   ;;  %s1354_s18 = smov %s1172_s19 }
 0x3ae   : > { %p12_p5 = scmp.ge.s32.totalorder %s15_s20, 4   ;;  %s1355_s19 = smov %s1357_s21 }
 0x3b0   :  { %14 = sbr.rel (!%p12_p5) target bundleno = 2 (0x2), region = 77 }

// kernel: _lambda_.34
= control target key start
LH: loop header
LB: loop body
LE: loop exit
PB: predicated region body
PF: predicated region fallthrough
CT: control target
= control target key end

     0   :  { %v24_v0 = vlaneseq  ;;  %v165_v8 = vmov 0.0   ;;  %s204_s0 = inlined_call_operand.vmem [shape: bf16[32,128], index: 0, kind: input, shape index: {}]   ;;  %s205_s1 = inlined_call_operand.vmem [shape: f32[1,128], index: 1, kind: input, shape index: {}]   ;;  %s206_s2 = inlined_call_operand.vmem [shape: f32[1,128], index: 2, kind: input, shape index: {}]   ;;  %s207_s3 = inlined_call_operand.vmem [shape: bf16[32,128], index: 3, kind: output, shape index: {}]  }
   0x1   :  { %v137_v1 = vld [vmem:[%s204_s0] sm:$0xff]   ;;  %v154_v2 = vld [vmem:[%s204_s0 + $0x8] sm:$0xff]  }
   0x2   :  { %v138_v3 = vunpack.c.l.bf16 %v137_v1  ;;  %v25_v4 = vand.u32 127, %v24_v0  ;;  %v142_v5 = vunpack.c.l.bf16 %v154_v2  ;;  %v139_v6 = vunpack.c.h.bf16 %v137_v1  ;;  %v126_v48 = vld [vmem:[%s205_s1] ss:$0 sm:$0xff] }
   0x3   :  { %v143_v7 = vunpack.c.h.bf16 %v154_v2  ;;  %v127_v53 = vld [vmem:[%s206_s2] ss:$0 sm:$0xff] }
   0x4   :  { %vm26_vm0 = vcmp.lt.s32.totalorder %v25_v4, 32 }
   0x5   :  { %v125_v9 = vsel %vm26_vm0, 1.0, %v165_v8 }
   0x6   :  { %v29_v10 = vmul.f32 %v138_v3, %v125_v9  ;;  %v31_v11 = vmul.f32 %v142_v5, %v125_v9  ;;  %v30_v12 = vmul.f32 %v139_v6, %v125_v9  ;;  %v32_v13 = vmul.f32 %v143_v7, %v125_v9 }
   0x8   :  { %33 = vadd.xlane.f32.xlu0 %v29_v10  ;;  %37 = vadd.xlane.f32.xlu1 %v31_v11 }
   0xc   :  { %35 = vadd.xlane.f32.xlu0 %v30_v12  ;;  %39 = vadd.xlane.f32.xlu1 %v32_v13 }
  0x91   :  { %v34_v14 = vpop.xlane.xlu0 %33  ;;  %v38_v15 = vpop.xlane.xlu1 %37 }
  0x92   :  { %v41_v16 = vmul.f32 0.03125, %v34_v14  ;;  %v43_v17 = vmul.f32 0.03125, %v38_v15 }
  0x94   :  { %v45_v18 = vsub.f32 %v138_v3, %v41_v16  ;;  %v47_v19 = vsub.f32 %v142_v5, %v43_v17 }
  0x95   :  { %v36_v20 = vpop.xlane.xlu0 %35  ;;  %v40_v21 = vpop.xlane.xlu1 %39 }
  0x96   :  { %v42_v22 = vmul.f32 0.03125, %v36_v20  ;;  %v44_v23 = vmul.f32 0.03125, %v40_v21  ;;  %v49_v24 = vmul.f32 %v125_v9, %v45_v18  ;;  %v51_v25 = vmul.f32 %v125_v9, %v47_v19 }
  0x98   :  { %v46_v26 = vsub.f32 %v139_v6, %v42_v22  ;;  %v48_v27 = vsub.f32 %v143_v7, %v44_v23  ;;  %v53_v28 = vmul.f32 %v49_v24, %v49_v24  ;;  %v55_v29 = vmul.f32 %v51_v25, %v51_v25 }
  0x9a   :  { %57 = vadd.xlane.f32.xlu0 %v53_v28  ;;  %v50_v30 = vmul.f32 %v125_v9, %v46_v26  ;;  %v52_v31 = vmul.f32 %v125_v9, %v48_v27 }
  0x9c   :  { %v54_v32 = vmul.f32 %v50_v30, %v50_v30  ;;  %v56_v33 = vmul.f32 %v52_v31, %v52_v31 }
  0x9e   :  { %61 = vadd.xlane.f32.xlu0 %v55_v29  ;;  %59 = vadd.xlane.f32.xlu1 %v54_v32 }
  0xa2   :  { %63 = vadd.xlane.f32.xlu1 %v56_v33 }
 0x123   :  { %v58_v34 = vpop.xlane.xlu0 %57 }
 0x124   :  { %v65_v35 = vmul.f32 0.03125, %v58_v34 }
 0x126   :  { %v69_v36 = vadd.f32 1e-06, %v65_v35 }
 0x127   :  { %v60_v37 = vpop.xlane.xlu1 %59  ;;  %v62_v38 = vpop.xlane.xlu0 %61 }
 0x128   :  { %157 = vrsqrt.f32 %v69_v36  ;;  %v66_v39 = vmul.f32 0.03125, %v60_v37  ;;  %v67_v40 = vmul.f32 0.03125, %v62_v38 }
 0x12a   :  { %v70_v41 = vadd.f32 1e-06, %v66_v39  ;;  %v71_v42 = vadd.f32 1e-06, %v67_v40 }
 0x12b   :  { %v64_v43 = vpop.xlane.xlu1 %63 }
 0x12c   :  { %159 = vrsqrt.f32 %v70_v41  ;;  %v68_v44 = vmul.f32 0.03125, %v64_v43 }
 0x12d   :  { %161 = vrsqrt.f32 %v71_v42 }
 0x12e   :  { %v72_v45 = vadd.f32 1e-06, %v68_v44 }
 0x130   :  { %163 = vrsqrt.f32 %v72_v45 }
 0x135   :  { %v158_v46 = vpop.eup %157 }
 0x136   :  { %v77_v47 = vmul.f32 %v158_v46, %v49_v24 }
 0x138   :  { %v87_v51 = vmul.f32 %v126_v48, %v77_v47 }
 0x139   :  { %v160_v49 = vpop.eup %159 }
 0x13a   :  { %v162_v50 = vpop.eup %161  ;;  %v78_v52 = vmul.f32 %v160_v49, %v50_v30  ;;  %v97_v57 = vadd.f32 %v127_v53, %v87_v51 }
 0x13b   :  { %v79_v54 = vmul.f32 %v162_v50, %v51_v25 }
 0x13c   :  { %v88_v55 = vmul.f32 %v126_v48, %v78_v52 }
 0x13d   :  { %v164_v56 = vpop.eup %163  ;;  %v89_v59 = vmul.f32 %v126_v48, %v79_v54 }
 0x13e   :  { %v98_v58 = vadd.f32 %v127_v53, %v88_v55  ;;  %v80_v60 = vmul.f32 %v164_v56, %v52_v31 }
 0x13f   :  { %v99_v63 = vadd.f32 %v127_v53, %v89_v59 }
 0x140   :  { %v147_v61 = vpack.c.bf16 %v98_v58, %v97_v57  ;;  %v90_v62 = vmul.f32 %v126_v48, %v80_v60 }
 0x142   :  { %148 = vst [vmem:[%s207_s3] sm:$0xff] %v147_v61   ;;  %v100_v0 = vadd.f32 %v127_v53, %v90_v62 }
 0x144   :  { %v152_v1 = vpack.c.bf16 %v100_v0, %v99_v63 }
 0x146   :  { %155 = vst [vmem:[%s207_s3 + $0x8] sm:$0xff] %v152_v1  }

// kernel: _lambda_.33
= control target key start
LH: loop header
LB: loop body
LE: loop exit
PB: predicated region body
PF: predicated region fallthrough
CT: control target
= control target key end

     0   :  { %s872_s21 = smov 0   ;;  %s997_s0 = inlined_call_operand.vmem [shape: bf16[2,6,6,128], index: 0, kind: input, shape index: {}]   ;;  %s998_s1 = inlined_call_operand.vmem [shape: f32[9,128], index: 1, kind: input, shape index: {}]   ;;  %s999_s2 = inlined_call_operand.vmem [shape: f32[1,128], index: 2, kind: input, shape index: {}]   ;;  %s1000_s3 = inlined_call_operand.vmem [shape: bf16[128,128], index: 3, kind: input, shape index: {}]   ;;  %s1001_s4 = inlined_call_operand.vmem [shape: f32[1,128], index: 4, kind: input, shape index: {}]   ;;  %s1002_s5 = inlined_call_operand.vmem [shape: bf16[2,16,128], index: 5, kind: input, shape index: {}]   ;;  %s1003_s6 = inlined_call_operand.vmem [shape: bf16[2,16,128], index: 6, kind: output, shape index: {}]  }
   0x1 LB: > { %s725_s22 = sadd.s32 4294967295, %s833_s21   ;;  %p729_p0 = scmp.ge.s32.totalorder %s833_s21, 1  ;;  %s833_s21 = sphi %s872_s21, %s16_s21  }
   0x2   : > { %p222_p1 = scmp.lt.s32.totalorder %s833_s21, 3 }
   0x4   : > { %p223_p2 = pnand %p729_p0, %p222_p1 }
   0x5   : > { %p257_p3 = scmp.lt.s32.totalorder (!%p223_p2), %s725_s22, 1 }
   0x6   : > { %226 = sbr.rel (%p223_p2) target bundleno = 284 (0x11c), region = 44 }
   0xb   : > { %v811_v0 = vld [vmem:[%s1000_s3 + $0x38] sm:$0xff]   ;;  %v835_v1 = vmov 0.0   ;;  %v812_v2 = vld [vmem:[%s1000_s3 + $0x30] sm:$0xff]   ;;  %vm836_vm0 = vmmov 0   ;;  %s1005_s22 = smov (!%p257_p3, %s725_s22), 1  ;;  %v813_v3 = vld [vmem:[%s1000_s3 + $0x28] sm:$0xff]  }
   0xc   : > { %780 = vmatprep.subr.bf16.mxu0 %v835_v1  ;;  %796 = vmatprep.mubr.msk.bf16.mxu0 %vm836_vm0, %v835_v1  ;;  %s800_s29 = smul.u32 24, %s1005_s22  ;;  %v814_v4 = vld [vmem:[%s1000_s3 + $0x20] sm:$0xff]   ;;  %v815_v28 = vld [vmem:[%s1000_s3 + $0x18] sm:$0xff]   ;;  %v816_v47 = vld [vmem:[%s1000_s3 + $0x10] sm:$0xff]   ;;  %s758_s17 = sshll.u32 %s1005_s22, 3 }
   0xd   : > { %781 = vmatpush3.bf16.msra.mxu0 %v811_v0  ;;  %v735_v5 = vld [vmem:[%s998_s1] ss:$0 sm:$0xff]  ;;  %v736_v6 = vld [vmem:[%s998_s1 + $0x1] ss:$0 sm:$0xff]  ;;  %v737_v17 = vld [vmem:[%s998_s1 + $0x2] ss:$0 sm:$0xff]  ;;  %s266_s20 = scalar_lea.vmem %s1002_s5, %s758_s17  ;;  %s271_s26 = scalar_lea.vmem %s1003_s6, %s758_s17 }
   0xe   : > { %782 = vmatprep.subr.bf16.mxu0 %v835_v1  ;;  %s261_s10 = scalar_lea.vmem %s997_s0, %s800_s29  ;;  %v738_v37 = vld [vmem:[%s998_s1 + $0x3] ss:$0 sm:$0xff]  ;;  %v739_v46 = vld [vmem:[%s998_s1 + $0x4] ss:$0 sm:$0xff]  ;;  %v740_v56 = vld [vmem:[%s998_s1 + $0x5] ss:$0 sm:$0xff] }
   0xf   : > { %v273_v7 = vld [vmem:[%s261_s10] sm:$0x7]  ;;  %v274_v8 = vld [vmem:[%s261_s10 + $0x4] sm:$0x7]  ;;  %v275_v9 = vld [vmem:[%s261_s10 + $0x8] sm:$0x7] }
  0x10   : > { %v276_v10 = vld [vmem:[%s261_s10 + $0xc] sm:$0x7]  ;;  %v277_v11 = vld [vmem:[%s261_s10 + $0x10] sm:$0x7]  ;;  %v278_v12 = vld [vmem:[%s261_s10 + $0x14] sm:$0x7]  ;;  %v279_v13 = vunpack.c.l.bf16 %v273_v7  ;;  %v280_v14 = vunpack.c.l.bf16 %v274_v8  ;;  %v908_v15 = vunpack.c.l.bf16 %v275_v9 }
  0x11   : > { %783 = vmatpush3.bf16.msra.mxu0 %v812_v2  ;;  %v911_v16 = vunpack.c.l.bf16 %v276_v10  ;;  %v916_v18 = vunpack.c.l.bf16 %v277_v11  ;;  %v918_v19 = vunpack.c.l.bf16 %v278_v12  ;;  %v817_v2 = vld [vmem:[%s1000_s3 + $0x8] sm:$0xff]   ;;  %v741_v11 = vld [vmem:[%s998_s1 + $0x6] ss:$0 sm:$0xff] }
  0x12   : > { %784 = vmatprep.subr.bf16.mxu0 %v835_v1  ;;  %v288_v20 = vmul.f32 %v735_v5, %v279_v13  ;;  %v289_v21 = vmul.f32 %v735_v5, %v280_v14  ;;  %v290_v22 = vmul.f32 %v735_v5, %v908_v15  ;;  %v301_v23 = vmul.f32 %v736_v6, %v279_v13 }
  0x13   : > { %v291_v24 = vmul.f32 %v735_v5, %v911_v16  ;;  %v302_v25 = vmul.f32 %v736_v6, %v280_v14  ;;  %v303_v26 = vmul.f32 %v736_v6, %v908_v15  ;;  %v304_v27 = vmul.f32 %v736_v6, %v911_v16 }
  0x14   : > { %v309_v29 = vrot.slane %v301_v23, 1  ;;  %v326_v30 = vmul.f32 %v737_v17, %v279_v13  ;;  %v327_v31 = vmul.f32 %v737_v17, %v280_v14  ;;  %v328_v32 = vmul.f32 %v737_v17, %v908_v15 }
  0x15   : > { %785 = vmatpush3.bf16.msra.mxu0 %v813_v3  ;;  %v310_v33 = vrot.slane %v302_v25, 1  ;;  %v311_v34 = vrot.slane %v303_v26, 1  ;;  %v312_v35 = vrot.slane %v304_v27, 1  ;;  %v329_v36 = vmul.f32 %v737_v17, %v911_v16  ;;  %v818_v25 = vld [vmem:[%s1000_s3] sm:$0xff]  }
  0x16   : > { %786 = vmatprep.subr.bf16.mxu0 %v835_v1  ;;  %v317_v38 = vadd.f32 %v309_v29, %v288_v20  ;;  %v334_v39 = vrot.slane %v326_v30, 2  ;;  %v335_v40 = vrot.slane %v327_v31, 2  ;;  %v336_v41 = vrot.slane %v328_v32, 2 }
  0x17   : > { %v318_v42 = vadd.f32 %v310_v33, %v289_v21  ;;  %v319_v43 = vadd.f32 %v311_v34, %v290_v22  ;;  %v320_v44 = vadd.f32 %v312_v35, %v291_v24  ;;  %v337_v45 = vrot.slane %v329_v36, 2  ;;  %v742_v24 = vld [vmem:[%s998_s1 + $0x7] ss:$0 sm:$0xff]  ;;  %v743_v34 = vld [vmem:[%s998_s1 + $0x8] ss:$0 sm:$0xff] }
  0x18   : > { %v342_v48 = vadd.f32 %v334_v39, %v317_v38  ;;  %v352_v49 = vmul.f32 %v738_v37, %v280_v14  ;;  %v353_v50 = vmul.f32 %v738_v37, %v908_v15  ;;  %v354_v51 = vmul.f32 %v738_v37, %v911_v16 }
  0x19   : > { %787 = vmatpush3.bf16.msra.mxu0 %v814_v4  ;;  %v343_v52 = vadd.f32 %v335_v40, %v318_v42  ;;  %v344_v53 = vadd.f32 %v336_v41, %v319_v43  ;;  %v345_v54 = vadd.f32 %v337_v45, %v320_v44  ;;  %v355_v55 = vmul.f32 %v738_v37, %v916_v18 }
  0x1a   : > { %788 = vmatprep.subr.bf16.mxu0 %v835_v1  ;;  %v356_v57 = vadd.f32 %v352_v49, %v342_v48  ;;  %v365_v58 = vmul.f32 %v739_v46, %v280_v14  ;;  %v366_v59 = vmul.f32 %v739_v46, %v908_v15  ;;  %v367_v60 = vmul.f32 %v739_v46, %v911_v16 }
  0x1b   : > { %v357_v61 = vadd.f32 %v353_v50, %v343_v52  ;;  %v358_v62 = vadd.f32 %v354_v51, %v344_v53  ;;  %v359_v63 = vadd.f32 %v355_v55, %v345_v54  ;;  %v368_v0 = vmul.f32 %v739_v46, %v916_v18 }
  0x1c   : > { %v373_v3 = vrot.slane %v365_v58, 1  ;;  %v374_v4 = vrot.slane %v366_v59, 1  ;;  %v375_v5 = vrot.slane %v367_v60, 1  ;;  %v390_v6 = vmul.f32 %v740_v56, %v280_v14  ;;  %v744_v58 = vld [vmem:[%s999_s2] ss:$0 sm:$0xff] }
  0x1d   : > { %789 = vmatpush3.bf16.msra.mxu0 %v815_v28  ;;  %v376_v7 = vrot.slane %v368_v0, 1  ;;  %v391_v8 = vmul.f32 %v740_v56, %v908_v15  ;;  %v392_v9 = vmul.f32 %v740_v56, %v911_v16  ;;  %v393_v10 = vmul.f32 %v740_v56, %v916_v18 }
  0x1e   : > { %790 = vmatprep.subr.bf16.mxu0 %v835_v1  ;;  %v381_v12 = vadd.f32 %v373_v3, %v356_v57  ;;  %v382_v13 = vadd.f32 %v374_v4, %v357_v61  ;;  %v383_v17 = vadd.f32 %v375_v5, %v358_v62  ;;  %v398_v20 = vrot.slane %v390_v6, 2 }
  0x1f   : > { %v384_v21 = vadd.f32 %v376_v7, %v359_v63  ;;  %v399_v22 = vrot.slane %v391_v8, 2  ;;  %v400_v14 = vrot.slane %v392_v9, 2  ;;  %v401_v23 = vrot.slane %v393_v10, 2 }
  0x20   : > { %v406_v26 = vadd.f32 %v398_v20, %v381_v12  ;;  %v416_v27 = vmul.f32 %v741_v11, %v908_v15  ;;  %v417_v28 = vmul.f32 %v741_v11, %v911_v16  ;;  %v418_v29 = vmul.f32 %v741_v11, %v916_v18 }
  0x21   : > { %791 = vmatpush3.bf16.msra.mxu0 %v816_v47  ;;  %v407_v30 = vadd.f32 %v399_v22, %v382_v13  ;;  %v408_v31 = vadd.f32 %v400_v14, %v383_v17  ;;  %v409_v32 = vadd.f32 %v401_v23, %v384_v21  ;;  %v419_v33 = vmul.f32 %v741_v11, %v918_v19 }
  0x22   : > { %792 = vmatprep.subr.bf16.mxu0 %v835_v1  ;;  %v420_v35 = vadd.f32 %v416_v27, %v406_v26  ;;  %v429_v36 = vmul.f32 %v742_v24, %v908_v15  ;;  %v430_v37 = vmul.f32 %v742_v24, %v911_v16  ;;  %v431_v38 = vmul.f32 %v742_v24, %v916_v18 }
  0x23   : > { %v421_v39 = vadd.f32 %v417_v28, %v407_v30  ;;  %v422_v40 = vadd.f32 %v418_v29, %v408_v31  ;;  %v423_v41 = vadd.f32 %v419_v33, %v409_v32  ;;  %v454_v45 = vmul.f32 %v743_v34, %v908_v15 }
  0x24   : > { %v437_v42 = vrot.slane %v429_v36, 1  ;;  %v438_v43 = vrot.slane %v430_v37, 1  ;;  %v439_v44 = vrot.slane %v431_v38, 1  ;;  %v455_v47 = vmul.f32 %v743_v34, %v911_v16 }
  0x25   : > { %793 = vmatpush3.bf16.msra.mxu0 %v817_v2  ;;  %v456_v48 = vmul.f32 %v743_v34, %v916_v18  ;;  %v457_v49 = vmul.f32 %v743_v34, %v918_v19  ;;  %v462_v53 = vrot.slane %v454_v45, 2 }
  0x26   : > { %794 = vmatprep.subr.bf16.mxu0 %v835_v1  ;;  %v432_v1 = vmul.f32 %v742_v24, %v918_v19  ;;  %v445_v50 = vadd.f32 %v437_v42, %v420_v35  ;;  %v446_v51 = vadd.f32 %v438_v43, %v421_v39  ;;  %v447_v52 = vadd.f32 %v439_v44, %v422_v40  ;;  %v745_v42 = vld [vmem:[%s1001_s4] ss:$0 sm:$0xff] }
  0x27   : > { %v463_v55 = vrot.slane %v455_v47, 2  ;;  %v464_v56 = vrot.slane %v456_v48, 2  ;;  %v465_v57 = vrot.slane %v457_v49, 2  ;;  %v763_v44 = vld [vmem:[%s266_s20] sm:$0xff]  }
  0x28   : > { %v440_v46 = vrot.slane %v432_v1, 1  ;;  %v470_v15 = vadd.f32 %v462_v53, %v445_v50  ;;  %v764_v47 = vunpack.c.l.bf16 %v763_v44  ;;  %v765_v48 = vunpack.c.h.bf16 %v763_v44 }
  0x29   : > { %795 = vmatpush3.bf16.msra.mxu0 %v818_v25  ;;  %v471_v59 = vadd.f32 %v463_v55, %v446_v51  ;;  %v472_v60 = vadd.f32 %v464_v56, %v447_v52 }
  0x2a   : > { %v448_v54 = vadd.f32 %v440_v46, %v423_v41  ;;  %v481_v61 = vadd.f32 %v744_v58, %v470_v15 }
  0x2b   : > { %v482_v18 = vadd.f32 %v744_v58, %v471_v59  ;;  %v483_v62 = vadd.f32 %v744_v58, %v472_v60 }
  0x2c   : > { %v473_v16 = vadd.f32 %v465_v57, %v448_v54  ;;  %v489_v63 = vmul.f32 0.044715, %v481_v61  ;;  %v485_v24 = vmul.f32 0.5, %v481_v61 }
  0x2d   : > { %v490_v0 = vmul.f32 0.044715, %v482_v18  ;;  %v491_v2 = vmul.f32 0.044715, %v483_v62  ;;  %v486_v26 = vmul.f32 0.5, %v482_v18  ;;  %v487_v28 = vmul.f32 0.5, %v483_v62 }
  0x2e   : > { %v484_v19 = vadd.f32 %v744_v58, %v473_v16  ;;  %v493_v4 = vmul.f32 %v489_v63, %v481_v61 }
  0x2f   : > { %v494_v5 = vmul.f32 %v490_v0, %v482_v18  ;;  %v495_v6 = vmul.f32 %v491_v2, %v483_v62 }
  0x30   : > { %v492_v3 = vmul.f32 0.044715, %v484_v19  ;;  %v497_v8 = vmul.f32 %v493_v4, %v481_v61  ;;  %v488_v31 = vmul.f32 0.5, %v484_v19 }
  0x31   : > { %v498_v9 = vmul.f32 %v494_v5, %v482_v18  ;;  %v499_v10 = vmul.f32 %v495_v6, %v483_v62 }
  0x32   : > { %v496_v7 = vmul.f32 %v492_v3, %v484_v19  ;;  %v501_v12 = vadd.f32 %v497_v8, %v481_v61 }
  0x33   : > { %v502_v13 = vadd.f32 %v498_v9, %v482_v18  ;;  %v503_v17 = vadd.f32 %v499_v10, %v483_v62 }
  0x34   : > { %v500_v11 = vmul.f32 %v496_v7, %v484_v19  ;;  %v505_v21 = vmul.f32 0.7978845, %v501_v12 }
  0x35   : > { %v506_v22 = vmul.f32 0.7978845, %v502_v13  ;;  %v507_v14 = vmul.f32 0.7978845, %v503_v17 }
  0x36   : > { %v504_v20 = vadd.f32 %v500_v11, %v484_v19  ;;  %819 = vtanh.f32 %v505_v21 }
  0x37   : > { %821 = vtanh.f32 %v506_v22 }
  0x38   : > { %v508_v23 = vmul.f32 0.7978845, %v504_v20  ;;  %823 = vtanh.f32 %v507_v14 }
  0x3a   : > { %825 = vtanh.f32 %v508_v23 }
  0x43   : > { %v820_v25 = vpop.eup %819 }
  0x44   : > { %v822_v27 = vpop.eup %821  ;;  %v513_v29 = vadd.f32 1.0, %v820_v25 }
  0x45   : > { %v824_v30 = vpop.eup %823  ;;  %v514_v32 = vadd.f32 1.0, %v822_v27 }
  0x46   : > { %v515_v34 = vadd.f32 1.0, %v824_v30  ;;  %v517_v35 = vmul.f32 %v513_v29, %v485_v24 }
  0x47   : > { %v826_v33 = vpop.eup %825  ;;  %v518_v37 = vmul.f32 %v514_v32, %v486_v26 }
  0x48   : > { %v516_v36 = vadd.f32 1.0, %v826_v33  ;;  %v519_v38 = vmul.f32 %v515_v34, %v487_v28 }
  0x49   : > { %v525_v40 = vcombine.low %v517_v35, %v518_v37 }
  0x4a   : > { %v520_v39 = vmul.f32 %v516_v36, %v488_v31 }
  0x4c   : > { %v526_v41 = vcombine.low %v519_v38, %v520_v39 }
  0x4e   : > { %v529_v1 = vpack.c.bf16 %v526_v41, %v525_v40 }
  0x50   : > { %797 = vmatmul.mubr.bf16.vlgmr.msra.gmra.mxu0 %v529_v1 }
 0x110   : > { %v635_v43 = vpop.f32.mrf.mxu0 }
 0x111   : > { %v636_v46 = vadd.f32 %v745_v42, %v635_v43 }
 0x112   : > { %v798_v45 = vpop.f32.mrf.mxu0 }
 0x113   : > { %v646_v52 = vadd.f32 %v764_v47, %v636_v46 }
 0x114   : > { %v638_v49 = vpop.f32.mrf.mxu0 }
 0x115   : > { %v639_v50 = vadd.f32 %v745_v42, %v638_v49 }
 0x116   : > { %v799_v51 = vpop.f32.mrf.mxu0 }
 0x117   : > { %v647_v53 = vadd.f32 %v765_v48, %v639_v50 }
 0x119   : > { %v769_v54 = vpack.c.bf16 %v647_v53, %v646_v52 }
 0x11b   : > { %770 = vst [vmem:[%s271_s26] sm:$0xff] %v769_v54  }
 0x11c PF: > { %s16_s21 = sadd.s32 1, %s833_s21  }
 0x11d   : > { %p13_p4 = scmp.ge.s32.totalorder %s16_s21, 4  }
 0x11f   :  { %15 = sbr.rel (!%p13_p4) target bundleno = 1 (0x1), region = 77 }

// kernel: _lambda_.37
= control target key start
LH: loop header
LB: loop body
LE: loop exit
PB: predicated region body
PF: predicated region fallthrough
CT: control target
= control target key end

     0   :  { %s985_s1 = inlined_call_operand.vmem [shape: bf16[256,128], index: 1, kind: input, shape index: {}]   ;;  %s986_s0 = inlined_call_operand.vmem [shape: bf16[128,256], index: 0, kind: input, shape index: {}]   ;;  %s987_s3 = inlined_call_operand.vmem [shape: bf16[128,128], index: 3, kind: input, shape index: {}]   ;;  %s988_s2 = inlined_call_operand.vmem [shape: f32[1,128], index: 2, kind: input, shape index: {}]   ;;  %s989_s4 = inlined_call_operand.vmem [shape: f32[1,128], index: 4, kind: input, shape index: {}]   ;;  %s990_s5 = inlined_call_operand.vmem [shape: f32[128,128], index: 5, kind: output, shape index: {}]  }
   0x1   :  { %v715_v0 = vld [vmem:[%s985_s1 + $0x78] sm:$0xff]   ;;  %v717_v2 = vld [vmem:[%s985_s1 + $0x70] sm:$0xff]   ;;  %v719_v4 = vld [vmem:[%s985_s1 + $0x68] sm:$0xff]  }
   0x2   :  { %v716_v1 = vld [vmem:[%s985_s1 + $0x38] sm:$0xff]   ;;  %603 = vmatprep.subr.bf16.mxu0 %v715_v0  ;;  %v718_v3 = vld [vmem:[%s985_s1 + $0x30] sm:$0xff]   ;;  %v720_v5 = vld [vmem:[%s985_s1 + $0x28] sm:$0xff]  }
   0x3   :  { %604 = vmatpush3.bf16.msra.mxu0 %v716_v1  ;;  %v721_v6 = vld [vmem:[%s985_s1 + $0x60] sm:$0xff]   ;;  %v723_v8 = vld [vmem:[%s985_s1 + $0x58] sm:$0xff]   ;;  %v725_v10 = vld [vmem:[%s985_s1 + $0x50] sm:$0xff]  }
   0x4   :  { %605 = vmatprep.subr.bf16.mxu0 %v717_v2  ;;  %v722_v7 = vld [vmem:[%s985_s1 + $0x20] sm:$0xff]   ;;  %v724_v9 = vld [vmem:[%s985_s1 + $0x18] sm:$0xff]   ;;  %v726_v12 = vld [vmem:[%s985_s1 + $0x10] sm:$0xff]  }
   0x5   :  { %v733_v11 = vld [vmem:[%s986_s0 + $0x4] ss:$8 sps:$4 sm:$0xff]   ;;  %v755_v17 = vld [vmem:[%s987_s3 + $0x38] sm:$0xff]   ;;  %v731_v18 = vld [vmem:[%s986_s0] ss:$8 sps:$4 sm:$0xff]  }
   0x6   :  { %284 = vmatprep.mubr.bf16.mxu0 %v733_v11  ;;  %v727_v13 = vld [vmem:[%s985_s1 + $0x48] sm:$0xff]   ;;  %v729_v15 = vld [vmem:[%s985_s1 + $0x40] sm:$0xff]   ;;  %v756_v19 = vld [vmem:[%s987_s3 + $0x30] sm:$0xff]   ;;  %683 = vmatprep.subr.bf16.mxu1 %v755_v17 }
   0x7   :  { %606 = vmatpush3.bf16.msra.mxu0 %v718_v3  ;;  %v728_v14 = vld [vmem:[%s985_s1 + $0x8] sm:$0xff]   ;;  %v730_v16 = vld [vmem:[%s985_s1] sm:$0xff]   ;;  %v734_v20 = vld [vmem:[%s986_s0 + $0x14] ss:$8 sps:$4 sm:$0xff]   ;;  %684 = vmatpush3.bf16.msra.mxu1 %v755_v17 }
   0x8   :  { %607 = vmatprep.subr.bf16.mxu0 %v719_v4  ;;  %v757_v21 = vld [vmem:[%s987_s3 + $0x28] sm:$0xff]   ;;  %685 = vmatprep.subr.bf16.mxu1 %v756_v19  ;;  %v736_v22 = vld [vmem:[%s986_s0 + $0x10] ss:$8 sps:$4 sm:$0xff]   ;;  %v740_v25 = vld [vmem:[%s986_s0 + $0x34] ss:$8 sps:$4 sm:$0xff]  }
   0x9   :  { %v737_v23 = vld [vmem:[%s986_s0 + $0x24] ss:$8 sps:$4 sm:$0xff]   ;;  %v739_v24 = vld [vmem:[%s986_s0 + $0x20] ss:$8 sps:$4 sm:$0xff]   ;;  %v742_v26 = vld [vmem:[%s986_s0 + $0x30] ss:$8 sps:$4 sm:$0xff]  }
   0xa   :  { %v743_v27 = vld [vmem:[%s986_s0 + $0x44] ss:$8 sps:$4 sm:$0xff]   ;;  %v745_v28 = vld [vmem:[%s986_s0 + $0x40] ss:$8 sps:$4 sm:$0xff]   ;;  %v746_v29 = vld [vmem:[%s986_s0 + $0x54] ss:$8 sps:$4 sm:$0xff]  }
   0xb   :  { %608 = vmatpush3.bf16.msra.mxu0 %v720_v5  ;;  %686 = vmatpush3.bf16.msra.mxu1 %v756_v19  ;;  %v748_v30 = vld [vmem:[%s986_s0 + $0x50] ss:$8 sps:$4 sm:$0xff]   ;;  %v749_v31 = vld [vmem:[%s986_s0 + $0x64] ss:$8 sps:$4 sm:$0xff]   ;;  %v751_v32 = vld [vmem:[%s986_s0 + $0x60] ss:$8 sps:$4 sm:$0xff]  }
   0xc   :  { %609 = vmatprep.subr.bf16.mxu0 %v721_v6  ;;  %687 = vmatprep.subr.bf16.mxu1 %v757_v21  ;;  %v752_v33 = vld [vmem:[%s986_s0 + $0x74] ss:$8 sps:$4 sm:$0xff]   ;;  %v754_v34 = vld [vmem:[%s986_s0 + $0x70] ss:$8 sps:$4 sm:$0xff]   ;;  %v758_v35 = vld [vmem:[%s987_s3 + $0x20] sm:$0xff]  }
   0xd   :  { %v759_v36 = vld [vmem:[%s987_s3 + $0x18] sm:$0xff]   ;;  %v760_v37 = vld [vmem:[%s987_s3 + $0x10] sm:$0xff]   ;;  %v761_v38 = vld [vmem:[%s987_s3 + $0x8] sm:$0xff]  }
   0xe   :  { %v762_v39 = vld [vmem:[%s987_s3] sm:$0xff]  }
   0xf   :  { %610 = vmatpush3.bf16.msra.mxu0 %v722_v7  ;;  %688 = vmatpush3.bf16.msra.mxu1 %v757_v21  ;;  %v916_v44 = vld [vmem:[%s988_s2] ss:$0 sm:$0xff] }
  0x10   :  { %611 = vmatprep.subr.bf16.mxu0 %v723_v8  ;;  %689 = vmatprep.subr.bf16.mxu1 %v758_v35 }
  0x13   :  { %612 = vmatpush3.bf16.msra.mxu0 %v724_v9  ;;  %690 = vmatpush3.bf16.msra.mxu1 %v758_v35 }
  0x14   :  { %613 = vmatprep.subr.bf16.mxu0 %v725_v10  ;;  %691 = vmatprep.subr.bf16.mxu1 %v759_v36 }
  0x17   :  { %614 = vmatpush3.bf16.msra.mxu0 %v726_v12  ;;  %692 = vmatpush3.bf16.msra.mxu1 %v759_v36 }
  0x18   :  { %615 = vmatprep.subr.bf16.mxu0 %v727_v13  ;;  %693 = vmatprep.subr.bf16.mxu1 %v760_v37 }
  0x1b   :  { %616 = vmatpush3.bf16.msra.mxu0 %v728_v14  ;;  %694 = vmatpush3.bf16.msra.mxu1 %v760_v37 }
  0x1c   :  { %617 = vmatprep.subr.bf16.mxu0 %v729_v15  ;;  %695 = vmatprep.subr.bf16.mxu1 %v761_v38 }
  0x1f   :  { %618 = vmatpush3.bf16.msra.mxu0 %v730_v16  ;;  %696 = vmatpush3.bf16.msra.mxu1 %v761_v38 }
  0x20   :  { %697 = vmatprep.subr.bf16.mxu1 %v762_v39 }
  0x22   :  { %285 = vmatmul.mubr.bf16.vlgmr.msra.gmra.mxu0 %v731_v18 }
  0x23   :  { %292 = vmatprep.mubr.bf16.mxu0 %v734_v20  ;;  %698 = vmatpush3.bf16.msra.mxu1 %v762_v39 }
  0x2a   :  { %293 = vmatmul.mubr.bf16.gmra.mxu0 %v736_v22 }
  0x2b   :  { %300 = vmatprep.mubr.bf16.mxu0 %v737_v23 }
  0x32   :  { %301 = vmatmul.mubr.bf16.gmra.mxu0 %v739_v24 }
  0x33   :  { %308 = vmatprep.mubr.bf16.mxu0 %v740_v25 }
  0x3a   :  { %309 = vmatmul.mubr.bf16.gmra.mxu0 %v742_v26 }
  0x3b   :  { %316 = vmatprep.mubr.bf16.mxu0 %v743_v27 }
  0x42   :  { %317 = vmatmul.mubr.bf16.gmra.mxu0 %v745_v28 }
  0x43   :  { %324 = vmatprep.mubr.bf16.mxu0 %v746_v29 }
  0x4a   :  { %325 = vmatmul.mubr.bf16.gmra.mxu0 %v748_v30 }
  0x4b   :  { %332 = vmatprep.mubr.bf16.mxu0 %v749_v31 }
  0x52   :  { %333 = vmatmul.mubr.bf16.gmra.mxu0 %v751_v32 }
  0x53   :  { %340 = vmatprep.mubr.bf16.mxu0 %v752_v33 }
  0x5a   :  { %341 = vmatmul.mubr.bf16.gmra.mxu0 %v754_v34 }
  0xe2   :  { %v619_v40 = vpop.f32.mrf.mxu0 }
  0xe4   :  { %v620_v41 = vpop.f32.mrf.mxu0 }
  0xe5   :  { %v621_v42 = vadd.f32 %v620_v41, %v619_v40 }
  0xe6   :  { %v622_v43 = vpop.f32.mrf.mxu0 }
  0xe7   :  { %v287_v47 = vadd.f32 %v621_v42, %v916_v44 }
  0xe8   :  { %v623_v45 = vpop.f32.mrf.mxu0 }
  0xe9   :  { %v624_v46 = vadd.f32 %v623_v45, %v622_v43  ;;  %v349_v52 = vmax.f32 %v287_v47, 0.0 }
  0xea   :  { %v625_v48 = vpop.f32.mrf.mxu0 }
  0xeb   :  { %v290_v49 = vadd.f32 %v624_v46, %v916_v44 }
  0xec   :  { %v626_v50 = vpop.f32.mrf.mxu0 }
  0xed   :  { %v627_v51 = vadd.f32 %v626_v50, %v625_v48  ;;  %v350_v53 = vmax.f32 %v290_v49, 0.0 }
  0xee   :  { %v628_v54 = vpop.f32.mrf.mxu0 }
  0xef   :  { %v365_v55 = vpack.c.bf16 %v350_v53, %v349_v52  ;;  %v295_v57 = vadd.f32 %v627_v51, %v916_v44 }
  0xf0   :  { %v629_v56 = vpop.f32.mrf.mxu0 }
  0xf1   :  { %v630_v58 = vadd.f32 %v629_v56, %v628_v54  ;;  %699 = vmatprep.mubr.bf16.mxu1 %v365_v55  ;;  %v351_v62 = vmax.f32 %v295_v57, 0.0 }
  0xf2   :  { %v631_v59 = vpop.f32.mrf.mxu0 }
  0xf3   :  { %v298_v60 = vadd.f32 %v630_v58, %v916_v44 }
  0xf4   :  { %v632_v61 = vpop.f32.mrf.mxu0 }
  0xf5   :  { %v352_v63 = vmax.f32 %v298_v60, 0.0  ;;  %v633_v0 = vadd.f32 %v632_v61, %v631_v59 }
  0xf6   :  { %v634_v1 = vpop.f32.mrf.mxu0 }
  0xf7   :  { %v366_v2 = vpack.c.bf16 %v352_v63, %v351_v62  ;;  %v303_v4 = vadd.f32 %v633_v0, %v916_v44 }
  0xf8   :  { %v635_v3 = vpop.f32.mrf.mxu0 }
  0xf9   :  { %v636_v5 = vadd.f32 %v635_v3, %v634_v1  ;;  %700 = vmatmul.mubr.bf16.vlgmr.msra.gmra.mxu1 %v366_v2  ;;  %v353_v9 = vmax.f32 %v303_v4, 0.0  ;;  %v594_v2 = vld [vmem:[%s989_s4] ss:$0 sm:$0xff] }
  0xfa   :  { %v637_v6 = vpop.f32.mrf.mxu0 }
  0xfb   :  { %v306_v7 = vadd.f32 %v636_v5, %v916_v44 }
  0xfc   :  { %v638_v8 = vpop.f32.mrf.mxu0 }
  0xfd   :  { %v354_v10 = vmax.f32 %v306_v7, 0.0  ;;  %v639_v11 = vadd.f32 %v638_v8, %v637_v6 }
  0xfe   :  { %v640_v12 = vpop.f32.mrf.mxu0 }
  0xff   :  { %v367_v13 = vpack.c.bf16 %v354_v10, %v353_v9  ;;  %v311_v15 = vadd.f32 %v639_v11, %v916_v44 }
 0x100   :  { %v641_v14 = vpop.f32.mrf.mxu0 }
 0x101   :  { %v642_v16 = vadd.f32 %v641_v14, %v640_v12  ;;  %703 = vmatprep.mubr.bf16.mxu1 %v367_v13  ;;  %v355_v20 = vmax.f32 %v311_v15, 0.0 }
 0x102   :  { %v643_v17 = vpop.f32.mrf.mxu0 }
 0x103   :  { %v314_v18 = vadd.f32 %v642_v16, %v916_v44 }
 0x104   :  { %v644_v19 = vpop.f32.mrf.mxu0 }
 0x105   :  { %v356_v21 = vmax.f32 %v314_v18, 0.0  ;;  %v645_v22 = vadd.f32 %v644_v19, %v643_v17 }
 0x106   :  { %v646_v23 = vpop.f32.mrf.mxu0 }
 0x107   :  { %v368_v24 = vpack.c.bf16 %v356_v21, %v355_v20  ;;  %v319_v26 = vadd.f32 %v645_v22, %v916_v44 }
 0x108   :  { %v647_v25 = vpop.f32.mrf.mxu0 }
 0x109   :  { %v648_v27 = vadd.f32 %v647_v25, %v646_v23  ;;  %704 = vmatmul.mubr.bf16.gmra.mxu1 %v368_v24  ;;  %v357_v31 = vmax.f32 %v319_v26, 0.0 }
 0x10a   :  { %v649_v28 = vpop.f32.mrf.mxu0 }
 0x10b   :  { %v322_v29 = vadd.f32 %v648_v27, %v916_v44 }
 0x10c   :  { %v650_v30 = vpop.f32.mrf.mxu0 }
 0x10d   :  { %v358_v32 = vmax.f32 %v322_v29, 0.0  ;;  %v651_v33 = vadd.f32 %v650_v30, %v649_v28 }
 0x10e   :  { %v652_v34 = vpop.f32.mrf.mxu0 }
 0x10f   :  { %v369_v35 = vpack.c.bf16 %v358_v32, %v357_v31  ;;  %v327_v37 = vadd.f32 %v651_v33, %v916_v44 }
 0x110   :  { %v653_v36 = vpop.f32.mrf.mxu0 }
 0x111   :  { %v654_v38 = vadd.f32 %v653_v36, %v652_v34  ;;  %707 = vmatprep.mubr.bf16.mxu1 %v369_v35  ;;  %v359_v42 = vmax.f32 %v327_v37, 0.0 }
 0x112   :  { %v655_v39 = vpop.f32.mrf.mxu0 }
 0x113   :  { %v330_v40 = vadd.f32 %v654_v38, %v916_v44 }
 0x114   :  { %v656_v41 = vpop.f32.mrf.mxu0 }
 0x115   :  { %v360_v43 = vmax.f32 %v330_v40, 0.0  ;;  %v657_v45 = vadd.f32 %v656_v41, %v655_v39 }
 0x116   :  { %v658_v46 = vpop.f32.mrf.mxu0 }
 0x117   :  { %v370_v47 = vpack.c.bf16 %v360_v43, %v359_v42  ;;  %v335_v49 = vadd.f32 %v657_v45, %v916_v44 }
 0x118   :  { %v659_v48 = vpop.f32.mrf.mxu0 }
 0x119   :  { %v660_v50 = vadd.f32 %v659_v48, %v658_v46  ;;  %708 = vmatmul.mubr.bf16.gmra.mxu1 %v370_v47  ;;  %v361_v54 = vmax.f32 %v335_v49, 0.0 }
 0x11a   :  { %v661_v51 = vpop.f32.mrf.mxu0 }
 0x11b   :  { %v338_v52 = vadd.f32 %v660_v50, %v916_v44 }
 0x11c   :  { %v662_v53 = vpop.f32.mrf.mxu0 }
 0x11d   :  { %v362_v55 = vmax.f32 %v338_v52, 0.0  ;;  %v663_v56 = vadd.f32 %v662_v53, %v661_v51 }
 0x11e   :  { %v664_v57 = vpop.f32.mrf.mxu0 }
 0x11f   :  { %v371_v58 = vpack.c.bf16 %v362_v55, %v361_v54  ;;  %v343_v60 = vadd.f32 %v663_v56, %v916_v44 }
 0x120   :  { %v665_v59 = vpop.f32.mrf.mxu0 }
 0x121   :  { %v666_v61 = vadd.f32 %v665_v59, %v664_v57  ;;  %711 = vmatprep.mubr.bf16.mxu1 %v371_v58  ;;  %v363_v63 = vmax.f32 %v343_v60, 0.0 }
 0x123   :  { %v346_v62 = vadd.f32 %v666_v61, %v916_v44 }
 0x125   :  { %v364_v0 = vmax.f32 %v346_v62, 0.0 }
 0x127   :  { %v372_v1 = vpack.c.bf16 %v364_v0, %v363_v63 }
 0x129   :  { %712 = vmatmul.mubr.bf16.gmra.mxu1 %v372_v1 }
 0x1b9   :  { %v701_v3 = vpop.f32.mrf.mxu1 }
 0x1ba   :  { %v487_v4 = vadd.f32 %v701_v3, %v594_v2 }
 0x1bb   :  { %v478_v5 = vpop.f32.mrf.mxu1 }
 0x1bc   :  { %543 = vst [vmem:[%s990_s5 + $0x10] sm:$0xff] %v487_v4  ;;  %v479_v6 = vadd.f32 %v594_v2, %v478_v5 }
 0x1bd   :  { %v702_v7 = vpop.f32.mrf.mxu1 }
 0x1be   :  { %541 = vst [vmem:[%s990_s5] sm:$0xff] %v479_v6  ;;  %v490_v44 = vadd.f32 %v702_v7, %v594_v2 }
 0x1bf   :  { %v481_v8 = vpop.f32.mrf.mxu1 }
 0x1c0   :  { %544 = vst [vmem:[%s990_s5 + $0x18] sm:$0xff] %v490_v44  ;;  %v482_v9 = vadd.f32 %v594_v2, %v481_v8 }
 0x1c2   :  { %542 = vst [vmem:[%s990_s5 + $0x8] sm:$0xff] %v482_v9 }
 0x1c9   :  { %v705_v10 = vpop.f32.mrf.mxu1 }
 0x1ca   :  { %v503_v11 = vadd.f32 %v705_v10, %v594_v2 }
 0x1cb   :  { %v494_v12 = vpop.f32.mrf.mxu1 }
 0x1cc   :  { %547 = vst [vmem:[%s990_s5 + $0x30] sm:$0xff] %v503_v11  ;;  %v495_v13 = vadd.f32 %v594_v2, %v494_v12 }
 0x1cd   :  { %v706_v14 = vpop.f32.mrf.mxu1 }
 0x1ce   :  { %545 = vst [vmem:[%s990_s5 + $0x20] sm:$0xff] %v495_v13  ;;  %v506_v15 = vadd.f32 %v706_v14, %v594_v2 }
 0x1cf   :  { %v497_v16 = vpop.f32.mrf.mxu1 }
 0x1d0   :  { %548 = vst [vmem:[%s990_s5 + $0x38] sm:$0xff] %v506_v15  ;;  %v498_v17 = vadd.f32 %v594_v2, %v497_v16 }
 0x1d2   :  { %546 = vst [vmem:[%s990_s5 + $0x28] sm:$0xff] %v498_v17 }
 0x1d9   :  { %v709_v18 = vpop.f32.mrf.mxu1 }
 0x1da   :  { %v519_v19 = vadd.f32 %v709_v18, %v594_v2 }
 0x1db   :  { %v510_v20 = vpop.f32.mrf.mxu1 }
 0x1dc   :  { %551 = vst [vmem:[%s990_s5 + $0x50] sm:$0xff] %v519_v19  ;;  %v511_v21 = vadd.f32 %v594_v2, %v510_v20 }
 0x1dd   :  { %v710_v22 = vpop.f32.mrf.mxu1 }
 0x1de   :  { %549 = vst [vmem:[%s990_s5 + $0x40] sm:$0xff] %v511_v21  ;;  %v522_v23 = vadd.f32 %v710_v22, %v594_v2 }
 0x1df   :  { %v513_v24 = vpop.f32.mrf.mxu1 }
 0x1e0   :  { %552 = vst [vmem:[%s990_s5 + $0x58] sm:$0xff] %v522_v23  ;;  %v514_v25 = vadd.f32 %v594_v2, %v513_v24 }
 0x1e2   :  { %550 = vst [vmem:[%s990_s5 + $0x48] sm:$0xff] %v514_v25 }
 0x1e9   :  { %v713_v26 = vpop.f32.mrf.mxu1 }
 0x1ea   :  { %v535_v27 = vadd.f32 %v713_v26, %v594_v2 }
 0x1eb   :  { %v526_v28 = vpop.f32.mrf.mxu1 }
 0x1ec   :  { %555 = vst [vmem:[%s990_s5 + $0x70] sm:$0xff] %v535_v27  ;;  %v527_v29 = vadd.f32 %v594_v2, %v526_v28 }
 0x1ed   :  { %v714_v30 = vpop.f32.mrf.mxu1 }
 0x1ee   :  { %553 = vst [vmem:[%s990_s5 + $0x60] sm:$0xff] %v527_v29  ;;  %v538_v31 = vadd.f32 %v714_v30, %v594_v2 }
 0x1ef   :  { %v529_v32 = vpop.f32.mrf.mxu1 }
 0x1f0   :  { %556 = vst [vmem:[%s990_s5 + $0x78] sm:$0xff] %v538_v31  ;;  %v530_v33 = vadd.f32 %v594_v2, %v529_v32 }
 0x1f2   :  { %554 = vst [vmem:[%s990_s5 + $0x68] sm:$0xff] %v530_v33 }

</bundles_post_ra>
